<compile_context>
chip_gen: v5e
topology: v5e:2x2
jax: 0.10.0
libtpu: 0.0.40
codegen_flags: <defaults>
</compile_context>

<pallas_src>
import functools
import math

import jax
import jax.numpy as jnp
from jax.experimental import pallas as pl
from jax.experimental.pallas import tpu as pltpu

BN_EPS = 1e-5          # PyTorch BatchNorm3d default
MAX_TM = 512           # maximum GEMM row tile


def _row_tile(m):
    """Largest row tile <= MAX_TM (multiple of 8) that still gives >= 2 grid steps."""
    tm = MAX_TM
    while tm > 8 and pl.cdiv(m, tm) < 2:
        tm //= 2
    return tm


# ----------------------------------------------------------------------------
# Fused GEMM + BatchNorm + branch-combine + ReLU Pallas kernel
# ----------------------------------------------------------------------------
def _gemm_bn_kernel(a_ref, w_ref, scale_ref, shift_ref, *rest,
                    n_extra, has_res, relu, coef):
    o_ref = rest[-1]
    extra_refs = rest[:n_extra]
    res_ref = rest[n_extra] if has_res else None

    # bf16 x bf16 -> f32 on the MXU
    acc = jnp.dot(a_ref[...], w_ref[...], preferred_element_type=jnp.float32)
    y = acc * scale_ref[...] + shift_ref[...]          # folded conv bias + BatchNorm
    for e_ref in extra_refs:                           # sibling branch outputs
        y = y + e_ref[...]
    if coef != 1.0:                                    # (1 - p) scaling
        y = y * coef
    if has_res:                                        # integrate skip connection
        y = y + res_ref[...]
    if relu:
        y = jnp.maximum(y, 0.0)
    o_ref[...] = y.astype(o_ref.dtype)


def gemm_bn(a, w, scale, shift, *, relu, extras=(), residual=None, coef=1.0):
    """y = maybe_relu(coef * ((a @ w) * scale + shift + sum(extras)) + residual).

    a: (M, K)  w: (K, Cout)  scale/shift: (Cout,)  extras/residual broadcastable to (M, Cout).
    """
    m, k = a.shape
    cout = w.shape[1]
    tm = _row_tile(m)
    grid = (pl.cdiv(m, tm),)

    args = [a.astype(jnp.bfloat16), w.astype(jnp.bfloat16),
            scale.reshape(1, cout).astype(jnp.float32),
            shift.reshape(1, cout).astype(jnp.float32)]
    in_specs = [
        pl.BlockSpec((tm, k), lambda i: (i, 0)),
        pl.BlockSpec((k, cout), lambda i: (0, 0)),
        pl.BlockSpec((1, cout), lambda i: (0, 0)),
        pl.BlockSpec((1, cout), lambda i: (0, 0)),
    ]
    for e in extras:
        args.append(e.reshape(m, cout).astype(jnp.float32))
        in_specs.append(pl.BlockSpec((tm, cout), lambda i: (i, 0)))
    has_res = residual is not None
    if has_res:
        args.append(residual.reshape(m, cout).astype(jnp.float32))
        in_specs.append(pl.BlockSpec((tm, cout), lambda i: (i, 0)))

    return pl.pallas_call(
        functools.partial(_gemm_bn_kernel, n_extra=len(extras), has_res=has_res,
                          relu=relu, coef=float(coef)),
        out_shape=jax.ShapeDtypeStruct((m, cout), jnp.float32),
        grid=grid,
        in_specs=in_specs,
        out_specs=pl.BlockSpec((tm, cout), lambda i: (i, 0)),
        compiler_params=pltpu.CompilerParams(dimension_semantics=("parallel",)),
    )(*args)


# ----------------------------------------------------------------------------
# Conv helpers (im2col / offset scatter are XLA glue, GEMM+BN+ReLU+combine is Pallas)
# ----------------------------------------------------------------------------
def _im2col3(x, stride):
    """x: (N, D, H, W, C), kernel 3x3x3, padding 1 -> bf16 (M, 27*C) patches."""
    N, D, H, W, C = x.shape
    xp = jnp.pad(x.astype(jnp.bfloat16), ((0, 0), (1, 1), (1, 1), (1, 1), (0, 0)))
    Do = (D + 2 - 3) // stride + 1
    Ho = (H + 2 - 3) // stride + 1
    Wo = (W + 2 - 3) // stride + 1
    cols = []
    for kd in range(3):
        for kh in range(3):
            for kw in range(3):
                sl = xp[:,
                        kd:kd + (Do - 1) * stride + 1:stride,
                        kh:kh + (Ho - 1) * stride + 1:stride,
                        kw:kw + (Wo - 1) * stride + 1:stride, :]
                cols.append(sl)
    patches = jnp.stack(cols, axis=4)                 # (N, Do, Ho, Wo, 27, C)
    return patches.reshape(N * Do * Ho * Wo, 27 * C), (N, Do, Ho, Wo)


def _bn_fold(bias, bn):
    scale = bn["gamma"] / jnp.sqrt(bn["var"] + BN_EPS)
    shift = (bias - bn["mean"]) * scale + bn["beta"]
    return scale, shift


def conv3x3_bn(x, conv, bn, stride, relu, extras=(), residual=None, coef=1.0):
    """Conv3d(k=3, pad=1) -> BN -> [branch combine + skip] -> optional ReLU (one Pallas call)."""
    patches, (N, Do, Ho, Wo) = _im2col3(x, stride)
    cout = conv["w"].shape[0]
    # torch weight (Cout, Cin, kd, kh, kw) -> (kd, kh, kw, Cin, Cout) -> (27*Cin, Cout)
    w2d = jnp.transpose(conv["w"], (2, 3, 4, 1, 0)).reshape(-1, cout)
    scale, shift = _bn_fold(conv["b"], bn)
    y = gemm_bn(patches, w2d, scale, shift, relu=relu,
                extras=extras, residual=residual, coef=coef)
    return y.reshape(N, Do, Ho, Wo, cout)


def convT2_bn(x, convt, bn, relu=True):
    """ConvTranspose3d(k=2, s=2) -> BN -> ReLU as ONE fused (M, Cin)@(Cin, 8*Cout) GEMM.

    kernel=stride=2 means every output voxel gets exactly one contribution, so the
    8 offsets are independent column groups; BN/ReLU are per-channel elementwise and
    commute with the offset scatter done by the final reshape."""
    N, D, H, W, Cin = x.shape
    Cout = convt["w"].shape[1]
    a = x.reshape(N * D * H * W, Cin)
    scale, shift = _bn_fold(convt["b"], bn)
    # torch weight (Cin, Cout, 2,2,2) -> (Cin, dd, dh, dw, Cout) -> (Cin, 8*Cout)
    w_fused = jnp.transpose(convt["w"], (0, 2, 3, 4, 1)).reshape(Cin, 8 * Cout)
    y = gemm_bn(a, w_fused, jnp.tile(scale, 8), jnp.tile(shift, 8), relu=relu)
    y = y.reshape(N, D, H, W, 2, 2, 2, Cout)
    y = jnp.transpose(y, (0, 1, 4, 2, 5, 3, 6, 7)).reshape(N, 2 * D, 2 * H, 2 * W, Cout)
    return y


# ----------------------------------------------------------------------------
# Parameter init (deterministic, synthetic)
# ----------------------------------------------------------------------------
def _init_conv(key, cin, cout, k):
    kw, kb = jax.random.split(key)
    fan_in = cin * k ** 3
    w = jax.random.normal(kw, (cout, cin, k, k, k), jnp.float32) / math.sqrt(fan_in)
    b = 0.05 * jax.random.normal(kb, (cout,), jnp.float32)
    return {"w": w, "b": b}


def _init_convT(key, cin, cout, k=2):
    kw, kb = jax.random.split(key)
    fan_in = cout * k ** 3
    w = jax.random.normal(kw, (cin, cout, k, k, k), jnp.float32) / math.sqrt(fan_in)
    b = 0.05 * jax.random.normal(kb, (cout,), jnp.float32)
    return {"w": w, "b": b}


def _init_bn(key, c):
    kg, kb, km, kv = jax.random.split(key, 4)
    return {
        "gamma": 1.0 + 0.1 * jax.random.normal(kg, (c,), jnp.float32),
        "beta": 0.1 * jax.random.normal(kb, (c,), jnp.float32),
        "mean": 0.1 * jax.random.normal(km, (c,), jnp.float32),
        "var": 1.0 + 0.1 * jax.random.uniform(kv, (c,), jnp.float32),
    }


def _init_block(key, cin, cout, first):
    k1, k2, k3, k4 = jax.random.split(key, 4)
    l1 = _init_conv(k1, cin, cout, 3) if first == "conv" else _init_convT(k1, cin, cout, 2)
    return {"l1": l1, "bn1": _init_bn(k2, cout),
            "l2": _init_conv(k3, cout, cout, 3), "bn2": _init_bn(k4, cout)}


def init_rec3_params(key, n0, n1, n2, n3):
    ks = jax.random.split(key, 8)
    return {
        "block01": _init_block(ks[0], n0, n1, "conv"),
        "block11": _init_block(ks[1], n1, n1, "conv"),
        "block21": _init_block(ks[2], n2, n1, "convT"),
        "block12": _init_block(ks[3], n1, n2, "conv"),
        "block22": _init_block(ks[4], n2, n2, "conv"),
        "block32": _init_block(ks[5], n3, n2, "convT"),
        "block23": _init_block(ks[6], n2, n3, "conv"),
        "block33": _init_block(ks[7], n2 * 0 + n3, n3, "conv"),
    }


# ----------------------------------------------------------------------------
# Rec3 forward
# ----------------------------------------------------------------------------
def _branch(x, blk, first, stride=1):
    """Full block ending in BatchNorm (no ReLU) -- used for the non-host branches."""
    if first == "conv":
        y = conv3x3_bn(x, blk["l1"], blk["bn1"], stride=stride, relu=True)
    else:
        y = convT2_bn(x, blk["l1"], blk["bn1"], relu=True)
    return conv3x3_bn(y, blk["l2"], blk["bn2"], stride=1, relu=False)


def _host_block(x, blk, extras, residual, coef):
    """Host block: its second conv's Pallas epilogue also does the branch combine,
    (1-p) scaling, skip connection and final ReLU."""
    y = conv3x3_bn(x, blk["l1"], blk["bn1"], stride=1, relu=True)
    return conv3x3_bn(y, blk["l2"], blk["bn2"], stride=1, relu=True,
                      extras=extras, residual=residual, coef=coef)


def rec3_forward(params, x0, x1, x2, x3, p=0.0, integrate=True):
    """Inputs/outputs are PyTorch-style NCDHW float32 (inference path of Rec3.forward)."""
    to_cl = lambda t: jnp.transpose(t, (0, 2, 3, 4, 1))   # NCDHW -> NDHWC
    to_cf = lambda t: jnp.transpose(t, (0, 4, 1, 2, 3))   # NDHWC -> NCDHW
    x0c, x1c, x2c, x3c = map(to_cl, (x0, x1, x2, x3))
    # NOTE: reference eval path scales the branch sum by (1 - p) explicitly.
    coef = 1.0 - p

    # out1 = relu(coef*(B01(x0) + B11(x1) + B21(x2)) + x1)   [host: block11]
    y01 = _branch(x0c, params["block01"], "conv", stride=2)
    y21 = _branch(x2c, params["block21"], "convT")
    out1 = _host_block(x1c, params["block11"], (y01, y21),
                       x1c if integrate else None, coef)

    # out2 = relu(coef*(B12(x1) + B22(x2) + B32(x3)) + x2)   [host: block22]
    y12 = _branch(x1c, params["block12"], "conv", stride=2)
    y32 = _branch(x3c, params["block32"], "convT")
    out2 = _host_block(x2c, params["block22"], (y12, y32),
                       x2c if integrate else None, coef)

    # out3 = relu(coef*(B23(x2) + B33(x3)) + x3)             [host: block33]
    y23 = _branch(x2c, params["block23"], "conv", stride=2)
    out3 = _host_block(x3c, params["block33"], (y23,),
                       x3c if integrate else None, coef)

    return x0, to_cf(out1), to_cf(out2), to_cf(out3)


# ----------------------------------------------------------------------------
if __name__ == "__main__":
    n0, n1, n2, n3 = 4, 8, 16, 32
    N, S = 2, 16

    key = jax.random.PRNGKey(0)
    k0, k1, k2, k3, kp = jax.random.split(key, 5)
    x0 = jax.random.normal(k0, (N, n0, S, S, S), jnp.float32)
    x1 = jax.random.normal(k1, (N, n1, S // 2, S // 2, S // 2), jnp.float32)
    x2 = jax.random.normal(k2, (N, n2, S // 4, S // 4, S // 4), jnp.float32)
    x3 = jax.random.normal(k3, (N, n3, S // 8, S // 8, S // 8), jnp.float32)

    params = init_rec3_params(kp, n0, n1, n2, n3)

    fwd = jax.jit(functools.partial(rec3_forward, p=0.0, integrate=True))
    o0, o1, o2, o3 = fwd(params, x0, x1, x2, x3)
    (o0, o1, o2, o3) = jax.block_until_ready((o0, o1, o2, o3))

    assert o0.shape == x0.shape
    assert o1.shape == x1.shape
    assert o2.shape == x2.shape
    assert o3.shape == x3.shape
    assert bool(jnp.all(jnp.isfinite(o1))) and bool(jnp.all(o1 >= 0.0))
    assert bool(jnp.all(jnp.isfinite(o2))) and bool(jnp.all(o2 >= 0.0))
    assert bool(jnp.all(jnp.isfinite(o3))) and bool(jnp.all(o3 >= 0.0))
    print("KERNEL_OK")
</pallas_src>

<mosaic_0001>
module attributes {stable_mosaic.version = 11 : i64} {
  func.func @_gemm_bn_kernel(%arg0: i32, %arg1: memref<64x216xbf16, #tpu.memory_space<vmem>>, %arg2: memref<216x16xbf16, #tpu.memory_space<vmem>>, %arg3: memref<1x16xf32, #tpu.memory_space<vmem>>, %arg4: memref<1x16xf32, #tpu.memory_space<vmem>>, %arg5: memref<64x16xf32, #tpu.memory_space<vmem>>) attributes {dimension_semantics = [#tpu.dimension_semantics<parallel>], iteration_bounds = array<i64: 2>, scalar_prefetch = 0 : i64, scratch_operands = 0 : i64, tpu.core_type = #tpu.core_type<tc>, window_params = [{transform_indices = @transform_0, window_bounds = array<i64: 64, 216>}, {pipeline_mode = #tpu.pipeline_mode<synchronous>, transform_indices = @transform_1, window_bounds = array<i64: 216, 16>}, {pipeline_mode = #tpu.pipeline_mode<synchronous>, transform_indices = @transform_2, window_bounds = array<i64: 1, 16>}, {pipeline_mode = #tpu.pipeline_mode<synchronous>, transform_indices = @transform_3, window_bounds = array<i64: 1, 16>}, {transform_indices = @transform_4, window_bounds = array<i64: 64, 16>}]} {
    %c0 = arith.constant 0 : index
    %c0_0 = arith.constant 0 : index
    %0 = vector.load %arg1[%c0, %c0_0] : memref<64x216xbf16, #tpu.memory_space<vmem>>, vector<64x216xbf16>
    %c0_1 = arith.constant 0 : index
    %c0_2 = arith.constant 0 : index
    %1 = vector.load %arg2[%c0_1, %c0_2] : memref<216x16xbf16, #tpu.memory_space<vmem>>, vector<216x16xbf16>
    %cst = arith.constant dense<0.000000e+00> : vector<64x16xf32>
    %2 = tpu.matmul %0, %1, %cst {dimension_numbers = #tpu.dot_dimension_numbers<[1], [0], [0], [1], [0, 0, 1, 1], [], []>} : vector<64x216xbf16>, vector<216x16xbf16>, vector<64x16xf32> -> vector<64x16xf32>
    %c0_3 = arith.constant 0 : index
    %c0_4 = arith.constant 0 : index
    %3 = vector.load %arg3[%c0_3, %c0_4] : memref<1x16xf32, #tpu.memory_space<vmem>>, vector<1x16xf32>
    %4 = vector.broadcast %3 : vector<1x16xf32> to vector<64x16xf32>
    %5 = arith.mulf %2, %4 : vector<64x16xf32>
    %c0_5 = arith.constant 0 : index
    %c0_6 = arith.constant 0 : index
    %6 = vector.load %arg4[%c0_5, %c0_6] : memref<1x16xf32, #tpu.memory_space<vmem>>, vector<1x16xf32>
    %7 = vector.broadcast %6 : vector<1x16xf32> to vector<64x16xf32>
    %8 = arith.addf %5, %7 : vector<64x16xf32>
    %cst_7 = arith.constant 0.000000e+00 : f32
    %9 = vector.broadcast %cst_7 : f32 to vector<64x16xf32>
    %10 = arith.maximumf %8, %9 : vector<64x16xf32>
    %c0_8 = arith.constant 0 : index
    %c0_9 = arith.constant 0 : index
    %11 = vector.load %arg5[%c0_8, %c0_9] : memref<64x16xf32, #tpu.memory_space<vmem>>, vector<64x16xf32>
    tpu.vector_store %arg5[%c0_8, %c0_9], %10 {strides = array<i32>} : memref<64x16xf32, #tpu.memory_space<vmem>>, vector<64x16xf32>,
    return
  }
  func.func @transform_0(%arg0: i32) -> (i32, i32) {
    %c0_i32 = arith.constant 0 : i32
    %c0_i32_0 = arith.constant 0 : i32
    return %arg0, %c0_i32 : i32, i32
  }
  func.func @transform_1(%arg0: i32) -> (i32, i32) {
    %c0_i32 = arith.constant 0 : i32
    %c0_i32_0 = arith.constant 0 : i32
    %c0_i32_1 = arith.constant 0 : i32
    return %c0_i32, %c0_i32_0 : i32, i32
  }
  func.func @transform_2(%arg0: i32) -> (i32, i32) {
    %c0_i32 = arith.constant 0 : i32
    %c0_i32_0 = arith.constant 0 : i32
    %c0_i32_1 = arith.constant 0 : i32
    return %c0_i32, %c0_i32_0 : i32, i32
  }
  func.func @transform_3(%arg0: i32) -> (i32, i32) {
    %c0_i32 = arith.constant 0 : i32
    %c0_i32_0 = arith.constant 0 : i32
    %c0_i32_1 = arith.constant 0 : i32
    return %c0_i32, %c0_i32_0 : i32, i32
  }
  func.func @transform_4(%arg0: i32) -> (i32, i32) {
    %c0_i32 = arith.constant 0 : i32
    %c0_i32_0 = arith.constant 0 : i32
    return %arg0, %c0_i32 : i32, i32
  }
}

module attributes {stable_mosaic.version = 11 : i64} {
  func.func @_gemm_bn_kernel(%arg0: i32, %arg1: memref<64x432xbf16, #tpu.memory_space<vmem>>, %arg2: memref<432x16xbf16, #tpu.memory_space<vmem>>, %arg3: memref<1x16xf32, #tpu.memory_space<vmem>>, %arg4: memref<1x16xf32, #tpu.memory_space<vmem>>, %arg5: memref<64x16xf32, #tpu.memory_space<vmem>>) attributes {dimension_semantics = [#tpu.dimension_semantics<parallel>], iteration_bounds = array<i64: 2>, scalar_prefetch = 0 : i64, scratch_operands = 0 : i64, tpu.core_type = #tpu.core_type<tc>, window_params = [{transform_indices = @transform_0, window_bounds = array<i64: 64, 432>}, {pipeline_mode = #tpu.pipeline_mode<synchronous>, transform_indices = @transform_1, window_bounds = array<i64: 432, 16>}, {pipeline_mode = #tpu.pipeline_mode<synchronous>, transform_indices = @transform_2, window_bounds = array<i64: 1, 16>}, {pipeline_mode = #tpu.pipeline_mode<synchronous>, transform_indices = @transform_3, window_bounds = array<i64: 1, 16>}, {transform_indices = @transform_4, window_bounds = array<i64: 64, 16>}]} {
    %c0 = arith.constant 0 : index
    %c0_0 = arith.constant 0 : index
    %0 = vector.load %arg1[%c0, %c0_0] : memref<64x432xbf16, #tpu.memory_space<vmem>>, vector<64x432xbf16>
    %c0_1 = arith.constant 0 : index
    %c0_2 = arith.constant 0 : index
    %1 = vector.load %arg2[%c0_1, %c0_2] : memref<432x16xbf16, #tpu.memory_space<vmem>>, vector<432x16xbf16>
    %cst = arith.constant dense<0.000000e+00> : vector<64x16xf32>
    %2 = tpu.matmul %0, %1, %cst {dimension_numbers = #tpu.dot_dimension_numbers<[1], [0], [0], [1], [0, 0, 1, 1], [], []>} : vector<64x432xbf16>, vector<432x16xbf16>, vector<64x16xf32> -> vector<64x16xf32>
    %c0_3 = arith.constant 0 : index
    %c0_4 = arith.constant 0 : index
    %3 = vector.load %arg3[%c0_3, %c0_4] : memref<1x16xf32, #tpu.memory_space<vmem>>, vector<1x16xf32>
    %4 = vector.broadcast %3 : vector<1x16xf32> to vector<64x16xf32>
    %5 = arith.mulf %2, %4 : vector<64x16xf32>
    %c0_5 = arith.constant 0 : index
    %c0_6 = arith.constant 0 : index
    %6 = vector.load %arg4[%c0_5, %c0_6] : memref<1x16xf32, #tpu.memory_space<vmem>>, vector<1x16xf32>
    %7 = vector.broadcast %6 : vector<1x16xf32> to vector<64x16xf32>
    %8 = arith.addf %5, %7 : vector<64x16xf32>
    %c0_7 = arith.constant 0 : index
    %c0_8 = arith.constant 0 : index
    %9 = vector.load %arg5[%c0_7, %c0_8] : memref<64x16xf32, #tpu.memory_space<vmem>>, vector<64x16xf32>
    tpu.vector_store %arg5[%c0_7, %c0_8], %8 {strides = array<i32>} : memref<64x16xf32, #tpu.memory_space<vmem>>, vector<64x16xf32>,
    return
  }
  func.func @transform_0(%arg0: i32) -> (i32, i32) {
    %c0_i32 = arith.constant 0 : i32
    %c0_i32_0 = arith.constant 0 : i32
    return %arg0, %c0_i32 : i32, i32
  }
  func.func @transform_1(%arg0: i32) -> (i32, i32) {
    %c0_i32 = arith.constant 0 : i32
    %c0_i32_0 = arith.constant 0 : i32
    %c0_i32_1 = arith.constant 0 : i32
    return %c0_i32, %c0_i32_0 : i32, i32
  }
  func.func @transform_2(%arg0: i32) -> (i32, i32) {
    %c0_i32 = arith.constant 0 : i32
    %c0_i32_0 = arith.constant 0 : i32
    %c0_i32_1 = arith.constant 0 : i32
    return %c0_i32, %c0_i32_0 : i32, i32
  }
  func.func @transform_3(%arg0: i32) -> (i32, i32) {
    %c0_i32 = arith.constant 0 : i32
    %c0_i32_0 = arith.constant 0 : i32
    %c0_i32_1 = arith.constant 0 : i32
    return %c0_i32, %c0_i32_0 : i32, i32
  }
  func.func @transform_4(%arg0: i32) -> (i32, i32) {
    %c0_i32 = arith.constant 0 : i32
    %c0_i32_0 = arith.constant 0 : i32
    return %arg0, %c0_i32 : i32, i32
  }
}

module attributes {stable_mosaic.version = 11 : i64} {
  func.func @_gemm_bn_kernel(%arg0: i32, %arg1: memref<64x432xbf16, #tpu.memory_space<vmem>>, %arg2: memref<432x16xbf16, #tpu.memory_space<vmem>>, %arg3: memref<1x16xf32, #tpu.memory_space<vmem>>, %arg4: memref<1x16xf32, #tpu.memory_space<vmem>>, %arg5: memref<64x16xf32, #tpu.memory_space<vmem>>) attributes {dimension_semantics = [#tpu.dimension_semantics<parallel>], iteration_bounds = array<i64: 2>, scalar_prefetch = 0 : i64, scratch_operands = 0 : i64, tpu.core_type = #tpu.core_type<tc>, window_params = [{transform_indices = @transform_0, window_bounds = array<i64: 64, 432>}, {pipeline_mode = #tpu.pipeline_mode<synchronous>, transform_indices = @transform_1, window_bounds = array<i64: 432, 16>}, {pipeline_mode = #tpu.pipeline_mode<synchronous>, transform_indices = @transform_2, window_bounds = array<i64: 1, 16>}, {pipeline_mode = #tpu.pipeline_mode<synchronous>, transform_indices = @transform_3, window_bounds = array<i64: 1, 16>}, {transform_indices = @transform_4, window_bounds = array<i64: 64, 16>}]} {
    %c0 = arith.constant 0 : index
    %c0_0 = arith.constant 0 : index
    %0 = vector.load %arg1[%c0, %c0_0] : memref<64x432xbf16, #tpu.memory_space<vmem>>, vector<64x432xbf16>
    %c0_1 = arith.constant 0 : index
    %c0_2 = arith.constant 0 : index
    %1 = vector.load %arg2[%c0_1, %c0_2] : memref<432x16xbf16, #tpu.memory_space<vmem>>, vector<432x16xbf16>
    %cst = arith.constant dense<0.000000e+00> : vector<64x16xf32>
    %2 = tpu.matmul %0, %1, %cst {dimension_numbers = #tpu.dot_dimension_numbers<[1], [0], [0], [1], [0, 0, 1, 1], [], []>} : vector<64x432xbf16>, vector<432x16xbf16>, vector<64x16xf32> -> vector<64x16xf32>
    %c0_3 = arith.constant 0 : index
    %c0_4 = arith.constant 0 : index
    %3 = vector.load %arg3[%c0_3, %c0_4] : memref<1x16xf32, #tpu.memory_space<vmem>>, vector<1x16xf32>
    %4 = vector.broadcast %3 : vector<1x16xf32> to vector<64x16xf32>
    %5 = arith.mulf %2, %4 : vector<64x16xf32>
    %c0_5 = arith.constant 0 : index
    %c0_6 = arith.constant 0 : index
    %6 = vector.load %arg4[%c0_5, %c0_6] : memref<1x16xf32, #tpu.memory_space<vmem>>, vector<1x16xf32>
    %7 = vector.broadcast %6 : vector<1x16xf32> to vector<64x16xf32>
    %8 = arith.addf %5, %7 : vector<64x16xf32>
    %cst_7 = arith.constant 0.000000e+00 : f32
    %9 = vector.broadcast %cst_7 : f32 to vector<64x16xf32>
    %10 = arith.maximumf %8, %9 : vector<64x16xf32>
    %c0_8 = arith.constant 0 : index
    %c0_9 = arith.constant 0 : index
    %11 = vector.load %arg5[%c0_8, %c0_9] : memref<64x16xf32, #tpu.memory_space<vmem>>, vector<64x16xf32>
    tpu.vector_store %arg5[%c0_8, %c0_9], %10 {strides = array<i32>} : memref<64x16xf32, #tpu.memory_space<vmem>>, vector<64x16xf32>,
    return
  }
  func.func @transform_0(%arg0: i32) -> (i32, i32) {
    %c0_i32 = arith.constant 0 : i32
    %c0_i32_0 = arith.constant 0 : i32
    return %arg0, %c0_i32 : i32, i32
  }
  func.func @transform_1(%arg0: i32) -> (i32, i32) {
    %c0_i32 = arith.constant 0 : i32
    %c0_i32_0 = arith.constant 0 : i32
    %c0_i32_1 = arith.constant 0 : i32
    return %c0_i32, %c0_i32_0 : i32, i32
  }
  func.func @transform_2(%arg0: i32) -> (i32, i32) {
    %c0_i32 = arith.constant 0 : i32
    %c0_i32_0 = arith.constant 0 : i32
    %c0_i32_1 = arith.constant 0 : i32
    return %c0_i32, %c0_i32_0 : i32, i32
  }
  func.func @transform_3(%arg0: i32) -> (i32, i32) {
    %c0_i32 = arith.constant 0 : i32
    %c0_i32_0 = arith.constant 0 : i32
    %c0_i32_1 = arith.constant 0 : i32
    return %c0_i32, %c0_i32_0 : i32, i32
  }
  func.func @transform_4(%arg0: i32) -> (i32, i32) {
    %c0_i32 = arith.constant 0 : i32
    %c0_i32_0 = arith.constant 0 : i32
    return %arg0, %c0_i32 : i32, i32
  }
}

module attributes {stable_mosaic.version = 11 : i64} {
  func.func @_gemm_bn_kernel(%arg0: i32, %arg1: memref<8x32xbf16, #tpu.memory_space<vmem>>, %arg2: memref<32x128xbf16, #tpu.memory_space<vmem>>, %arg3: memref<1x128xf32, #tpu.memory_space<vmem>>, %arg4: memref<1x128xf32, #tpu.memory_space<vmem>>, %arg5: memref<8x128xf32, #tpu.memory_space<vmem>>) attributes {dimension_semantics = [#tpu.dimension_semantics<parallel>], iteration_bounds = array<i64: 2>, scalar_prefetch = 0 : i64, scratch_operands = 0 : i64, tpu.core_type = #tpu.core_type<tc>, window_params = [{transform_indices = @transform_0, window_bounds = array<i64: 8, 32>}, {pipeline_mode = #tpu.pipeline_mode<synchronous>, transform_indices = @transform_1, window_bounds = array<i64: 32, 128>}, {pipeline_mode = #tpu.pipeline_mode<synchronous>, transform_indices = @transform_2, window_bounds = array<i64: 1, 128>}, {pipeline_mode = #tpu.pipeline_mode<synchronous>, transform_indices = @transform_3, window_bounds = array<i64: 1, 128>}, {transform_indices = @transform_4, window_bounds = array<i64: 8, 128>}]} {
    %c0 = arith.constant 0 : index
    %c0_0 = arith.constant 0 : index
    %0 = vector.load %arg1[%c0, %c0_0] : memref<8x32xbf16, #tpu.memory_space<vmem>>, vector<8x32xbf16>
    %c0_1 = arith.constant 0 : index
    %c0_2 = arith.constant 0 : index
    %1 = vector.load %arg2[%c0_1, %c0_2] : memref<32x128xbf16, #tpu.memory_space<vmem>>, vector<32x128xbf16>
    %cst = arith.constant dense<0.000000e+00> : vector<8x128xf32>
    %2 = tpu.matmul %0, %1, %cst {dimension_numbers = #tpu.dot_dimension_numbers<[1], [0], [0], [1], [0, 0, 1, 1], [], []>} : vector<8x32xbf16>, vector<32x128xbf16>, vector<8x128xf32> -> vector<8x128xf32>
    %c0_3 = arith.constant 0 : index
    %c0_4 = arith.constant 0 : index
    %3 = vector.load %arg3[%c0_3, %c0_4] : memref<1x128xf32, #tpu.memory_space<vmem>>, vector<1x128xf32>
    %4 = vector.broadcast %3 : vector<1x128xf32> to vector<8x128xf32>
    %5 = arith.mulf %2, %4 : vector<8x128xf32>
    %c0_5 = arith.constant 0 : index
    %c0_6 = arith.constant 0 : index
    %6 = vector.load %arg4[%c0_5, %c0_6] : memref<1x128xf32, #tpu.memory_space<vmem>>, vector<1x128xf32>
    %7 = vector.broadcast %6 : vector<1x128xf32> to vector<8x128xf32>
    %8 = arith.addf %5, %7 : vector<8x128xf32>
    %cst_7 = arith.constant 0.000000e+00 : f32
    %9 = vector.broadcast %cst_7 : f32 to vector<8x128xf32>
    %10 = arith.maximumf %8, %9 : vector<8x128xf32>
    %c0_8 = arith.constant 0 : index
    %c0_9 = arith.constant 0 : index
    %11 = vector.load %arg5[%c0_8, %c0_9] : memref<8x128xf32, #tpu.memory_space<vmem>>, vector<8x128xf32>
    tpu.vector_store %arg5[%c0_8, %c0_9], %10 {strides = array<i32>} : memref<8x128xf32, #tpu.memory_space<vmem>>, vector<8x128xf32>,
    return
  }
  func.func @transform_0(%arg0: i32) -> (i32, i32) {
    %c0_i32 = arith.constant 0 : i32
    %c0_i32_0 = arith.constant 0 : i32
    return %arg0, %c0_i32 : i32, i32
  }
  func.func @transform_1(%arg0: i32) -> (i32, i32) {
    %c0_i32 = arith.constant 0 : i32
    %c0_i32_0 = arith.constant 0 : i32
    %c0_i32_1 = arith.constant 0 : i32
    return %c0_i32, %c0_i32_0 : i32, i32
  }
  func.func @transform_2(%arg0: i32) -> (i32, i32) {
    %c0_i32 = arith.constant 0 : i32
    %c0_i32_0 = arith.constant 0 : i32
    %c0_i32_1 = arith.constant 0 : i32
    return %c0_i32, %c0_i32_0 : i32, i32
  }
  func.func @transform_3(%arg0: i32) -> (i32, i32) {
    %c0_i32 = arith.constant 0 : i32
    %c0_i32_0 = arith.constant 0 : i32
    %c0_i32_1 = arith.constant 0 : i32
    return %c0_i32, %c0_i32_0 : i32, i32
  }
  func.func @transform_4(%arg0: i32) -> (i32, i32) {
    %c0_i32 = arith.constant 0 : i32
    %c0_i32_0 = arith.constant 0 : i32
    return %arg0, %c0_i32 : i32, i32
  }
}

module attributes {stable_mosaic.version = 11 : i64} {
  func.func @_gemm_bn_kernel(%arg0: i32, %arg1: memref<64x432xbf16, #tpu.memory_space<vmem>>, %arg2: memref<432x16xbf16, #tpu.memory_space<vmem>>, %arg3: memref<1x16xf32, #tpu.memory_space<vmem>>, %arg4: memref<1x16xf32, #tpu.memory_space<vmem>>, %arg5: memref<64x16xf32, #tpu.memory_space<vmem>>, %arg6: memref<64x16xf32, #tpu.memory_space<vmem>>, %arg7: memref<64x16xf32, #tpu.memory_space<vmem>>, %arg8: memref<64x16xf32, #tpu.memory_space<vmem>>) attributes {dimension_semantics = [#tpu.dimension_semantics<parallel>], iteration_bounds = array<i64: 2>, scalar_prefetch = 0 : i64, scratch_operands = 0 : i64, tpu.core_type = #tpu.core_type<tc>, window_params = [{transform_indices = @transform_0, window_bounds = array<i64: 64, 432>}, {pipeline_mode = #tpu.pipeline_mode<synchronous>, transform_indices = @transform_1, window_bounds = array<i64: 432, 16>}, {pipeline_mode = #tpu.pipeline_mode<synchronous>, transform_indices = @transform_2, window_bounds = array<i64: 1, 16>}, {pipeline_mode = #tpu.pipeline_mode<synchronous>, transform_indices = @transform_3, window_bounds = array<i64: 1, 16>}, {transform_indices = @transform_4, window_bounds = array<i64: 64, 16>}, {transform_indices = @transform_5, window_bounds = array<i64: 64, 16>}, {transform_indices = @transform_6, window_bounds = array<i64: 64, 16>}, {transform_indices = @transform_7, window_bounds = array<i64: 64, 16>}]} {
    %c0 = arith.constant 0 : index
    %c0_0 = arith.constant 0 : index
    %0 = vector.load %arg1[%c0, %c0_0] : memref<64x432xbf16, #tpu.memory_space<vmem>>, vector<64x432xbf16>
    %c0_1 = arith.constant 0 : index
    %c0_2 = arith.constant 0 : index
    %1 = vector.load %arg2[%c0_1, %c0_2] : memref<432x16xbf16, #tpu.memory_space<vmem>>, vector<432x16xbf16>
    %cst = arith.constant dense<0.000000e+00> : vector<64x16xf32>
    %2 = tpu.matmul %0, %1, %cst {dimension_numbers = #tpu.dot_dimension_numbers<[1], [0], [0], [1], [0, 0, 1, 1], [], []>} : vector<64x432xbf16>, vector<432x16xbf16>, vector<64x16xf32> -> vector<64x16xf32>
    %c0_3 = arith.constant 0 : index
    %c0_4 = arith.constant 0 : index
    %3 = vector.load %arg3[%c0_3, %c0_4] : memref<1x16xf32, #tpu.memory_space<vmem>>, vector<1x16xf32>
    %4 = vector.broadcast %3 : vector<1x16xf32> to vector<64x16xf32>
    %5 = arith.mulf %2, %4 : vector<64x16xf32>
    %c0_5 = arith.constant 0 : index
    %c0_6 = arith.constant 0 : index
    %6 = vector.load %arg4[%c0_5, %c0_6] : memref<1x16xf32, #tpu.memory_space<vmem>>, vector<1x16xf32>
    %7 = vector.broadcast %6 : vector<1x16xf32> to vector<64x16xf32>
    %8 = arith.addf %5, %7 : vector<64x16xf32>
    %c0_7 = arith.constant 0 : index
    %c0_8 = arith.constant 0 : index
    %9 = vector.load %arg5[%c0_7, %c0_8] : memref<64x16xf32, #tpu.memory_space<vmem>>, vector<64x16xf32>
    %10 = arith.addf %8, %9 : vector<64x16xf32>
    %c0_9 = arith.constant 0 : index
    %c0_10 = arith.constant 0 : index
    %11 = vector.load %arg6[%c0_9, %c0_10] : memref<64x16xf32, #tpu.memory_space<vmem>>, vector<64x16xf32>
    %12 = arith.addf %10, %11 : vector<64x16xf32>
    %c0_11 = arith.constant 0 : index
    %c0_12 = arith.constant 0 : index
    %13 = vector.load %arg7[%c0_11, %c0_12] : memref<64x16xf32, #tpu.memory_space<vmem>>, vector<64x16xf32>
    %14 = arith.addf %12, %13 : vector<64x16xf32>
    %cst_13 = arith.constant 0.000000e+00 : f32
    %15 = vector.broadcast %cst_13 : f32 to vector<64x16xf32>
    %16 = arith.maximumf %14, %15 : vector<64x16xf32>
    %c0_14 = arith.constant 0 : index
    %c0_15 = arith.constant 0 : index
    %17 = vector.load %arg8[%c0_14, %c0_15] : memref<64x16xf32, #tpu.memory_space<vmem>>, vector<64x16xf32>
    tpu.vector_store %arg8[%c0_14, %c0_15], %16 {strides = array<i32>} : memref<64x16xf32, #tpu.memory_space<vmem>>, vector<64x16xf32>,
    return
  }
  func.func @transform_0(%arg0: i32) -> (i32, i32) {
    %c0_i32 = arith.constant 0 : i32
    %c0_i32_0 = arith.constant 0 : i32
    return %arg0, %c0_i32 : i32, i32
  }
  func.func @transform_1(%arg0: i32) -> (i32, i32) {
    %c0_i32 = arith.constant 0 : i32
    %c0_i32_0 = arith.constant 0 : i32
    %c0_i32_1 = arith.constant 0 : i32
    return %c0_i32, %c0_i32_0 : i32, i32
  }
  func.func @transform_2(%arg0: i32) -> (i32, i32) {
    %c0_i32 = arith.constant 0 : i32
    %c0_i32_0 = arith.constant 0 : i32
    %c0_i32_1 = arith.constant 0 : i32
    return %c0_i32, %c0_i32_0 : i32, i32
  }
  func.func @transform_3(%arg0: i32) -> (i32, i32) {
    %c0_i32 = arith.constant 0 : i32
    %c0_i32_0 = arith.constant 0 : i32
    %c0_i32_1 = arith.constant 0 : i32
    return %c0_i32, %c0_i32_0 : i32, i32
  }
  func.func @transform_4(%arg0: i32) -> (i32, i32) {
    %c0_i32 = arith.constant 0 : i32
    %c0_i32_0 = arith.constant 0 : i32
    return %arg0, %c0_i32 : i32, i32
  }
  func.func @transform_5(%arg0: i32) -> (i32, i32) {
    %c0_i32 = arith.constant 0 : i32
    %c0_i32_0 = arith.constant 0 : i32
    return %arg0, %c0_i32 : i32, i32
  }
  func.func @transform_6(%arg0: i32) -> (i32, i32) {
    %c0_i32 = arith.constant 0 : i32
    %c0_i32_0 = arith.constant 0 : i32
    return %arg0, %c0_i32 : i32, i32
  }
  func.func @transform_7(%arg0: i32) -> (i32, i32) {
    %c0_i32 = arith.constant 0 : i32
    %c0_i32_0 = arith.constant 0 : i32
    return %arg0, %c0_i32 : i32, i32
  }
}

module attributes {stable_mosaic.version = 11 : i64} {
  func.func @_gemm_bn_kernel(%arg0: i32, %arg1: memref<512x108xbf16, #tpu.memory_space<vmem>>, %arg2: memref<108x8xbf16, #tpu.memory_space<vmem>>, %arg3: memref<1x8xf32, #tpu.memory_space<vmem>>, %arg4: memref<1x8xf32, #tpu.memory_space<vmem>>, %arg5: memref<512x8xf32, #tpu.memory_space<vmem>>) attributes {dimension_semantics = [#tpu.dimension_semantics<parallel>], iteration_bounds = array<i64: 2>, scalar_prefetch = 0 : i64, scratch_operands = 0 : i64, tpu.core_type = #tpu.core_type<tc>, window_params = [{transform_indices = @transform_0, window_bounds = array<i64: 512, 108>}, {pipeline_mode = #tpu.pipeline_mode<synchronous>, transform_indices = @transform_1, window_bounds = array<i64: 108, 8>}, {pipeline_mode = #tpu.pipeline_mode<synchronous>, transform_indices = @transform_2, window_bounds = array<i64: 1, 8>}, {pipeline_mode = #tpu.pipeline_mode<synchronous>, transform_indices = @transform_3, window_bounds = array<i64: 1, 8>}, {transform_indices = @transform_4, window_bounds = array<i64: 512, 8>}]} {
    %c0 = arith.constant 0 : index
    %c0_0 = arith.constant 0 : index
    %0 = vector.load %arg1[%c0, %c0_0] : memref<512x108xbf16, #tpu.memory_space<vmem>>, vector<512x108xbf16>
    %c0_1 = arith.constant 0 : index
    %c0_2 = arith.constant 0 : index
    %1 = vector.load %arg2[%c0_1, %c0_2] : memref<108x8xbf16, #tpu.memory_space<vmem>>, vector<108x8xbf16>
    %cst = arith.constant dense<0.000000e+00> : vector<512x8xf32>
    %2 = tpu.matmul %0, %1, %cst {dimension_numbers = #tpu.dot_dimension_numbers<[1], [0], [0], [1], [0, 0, 1, 1], [], []>} : vector<512x108xbf16>, vector<108x8xbf16>, vector<512x8xf32> -> vector<512x8xf32>
    %c0_3 = arith.constant 0 : index
    %c0_4 = arith.constant 0 : index
    %3 = vector.load %arg3[%c0_3, %c0_4] : memref<1x8xf32, #tpu.memory_space<vmem>>, vector<1x8xf32>
    %4 = vector.broadcast %3 : vector<1x8xf32> to vector<512x8xf32>
    %5 = arith.mulf %2, %4 : vector<512x8xf32>
    %c0_5 = arith.constant 0 : index
    %c0_6 = arith.constant 0 : index
    %6 = vector.load %arg4[%c0_5, %c0_6] : memref<1x8xf32, #tpu.memory_space<vmem>>, vector<1x8xf32>
    %7 = vector.broadcast %6 : vector<1x8xf32> to vector<512x8xf32>
    %8 = arith.addf %5, %7 : vector<512x8xf32>
    %cst_7 = arith.constant 0.000000e+00 : f32
    %9 = vector.broadcast %cst_7 : f32 to vector<512x8xf32>
    %10 = arith.maximumf %8, %9 : vector<512x8xf32>
    %c0_8 = arith.constant 0 : index
    %c0_9 = arith.constant 0 : index
    %11 = vector.load %arg5[%c0_8, %c0_9] : memref<512x8xf32, #tpu.memory_space<vmem>>, vector<512x8xf32>
    tpu.vector_store %arg5[%c0_8, %c0_9], %10 {strides = array<i32>} : memref<512x8xf32, #tpu.memory_space<vmem>>, vector<512x8xf32>,
    return
  }
  func.func @transform_0(%arg0: i32) -> (i32, i32) {
    %c0_i32 = arith.constant 0 : i32
    %c0_i32_0 = arith.constant 0 : i32
    return %arg0, %c0_i32 : i32, i32
  }
  func.func @transform_1(%arg0: i32) -> (i32, i32) {
    %c0_i32 = arith.constant 0 : i32
    %c0_i32_0 = arith.constant 0 : i32
    %c0_i32_1 = arith.constant 0 : i32
    return %c0_i32, %c0_i32_0 : i32, i32
  }
  func.func @transform_2(%arg0: i32) -> (i32, i32) {
    %c0_i32 = arith.constant 0 : i32
    %c0_i32_0 = arith.constant 0 : i32
    %c0_i32_1 = arith.constant 0 : i32
    return %c0_i32, %c0_i32_0 : i32, i32
  }
  func.func @transform_3(%arg0: i32) -> (i32, i32) {
    %c0_i32 = arith.constant 0 : i32
    %c0_i32_0 = arith.constant 0 : i32
    %c0_i32_1 = arith.constant 0 : i32
    return %c0_i32, %c0_i32_0 : i32, i32
  }
  func.func @transform_4(%arg0: i32) -> (i32, i32) {
    %c0_i32 = arith.constant 0 : i32
    %c0_i32_0 = arith.constant 0 : i32
    return %arg0, %c0_i32 : i32, i32
  }
}

module attributes {stable_mosaic.version = 11 : i64} {
  func.func @_gemm_bn_kernel(%arg0: i32, %arg1: memref<512x216xbf16, #tpu.memory_space<vmem>>, %arg2: memref<216x8xbf16, #tpu.memory_space<vmem>>, %arg3: memref<1x8xf32, #tpu.memory_space<vmem>>, %arg4: memref<1x8xf32, #tpu.memory_space<vmem>>, %arg5: memref<512x8xf32, #tpu.memory_space<vmem>>) attributes {dimension_semantics = [#tpu.dimension_semantics<parallel>], iteration_bounds = array<i64: 2>, scalar_prefetch = 0 : i64, scratch_operands = 0 : i64, tpu.core_type = #tpu.core_type<tc>, window_params = [{transform_indices = @transform_0, window_bounds = array<i64: 512, 216>}, {pipeline_mode = #tpu.pipeline_mode<synchronous>, transform_indices = @transform_1, window_bounds = array<i64: 216, 8>}, {pipeline_mode = #tpu.pipeline_mode<synchronous>, transform_indices = @transform_2, window_bounds = array<i64: 1, 8>}, {pipeline_mode = #tpu.pipeline_mode<synchronous>, transform_indices = @transform_3, window_bounds = array<i64: 1, 8>}, {transform_indices = @transform_4, window_bounds = array<i64: 512, 8>}]} {
    %c0 = arith.constant 0 : index
    %c0_0 = arith.constant 0 : index
    %0 = vector.load %arg1[%c0, %c0_0] : memref<512x216xbf16, #tpu.memory_space<vmem>>, vector<512x216xbf16>
    %c0_1 = arith.constant 0 : index
    %c0_2 = arith.constant 0 : index
    %1 = vector.load %arg2[%c0_1, %c0_2] : memref<216x8xbf16, #tpu.memory_space<vmem>>, vector<216x8xbf16>
    %cst = arith.constant dense<0.000000e+00> : vector<512x8xf32>
    %2 = tpu.matmul %0, %1, %cst {dimension_numbers = #tpu.dot_dimension_numbers<[1], [0], [0], [1], [0, 0, 1, 1], [], []>} : vector<512x216xbf16>, vector<216x8xbf16>, vector<512x8xf32> -> vector<512x8xf32>
    %c0_3 = arith.constant 0 : index
    %c0_4 = arith.constant 0 : index
    %3 = vector.load %arg3[%c0_3, %c0_4] : memref<1x8xf32, #tpu.memory_space<vmem>>, vector<1x8xf32>
    %4 = vector.broadcast %3 : vector<1x8xf32> to vector<512x8xf32>
    %5 = arith.mulf %2, %4 : vector<512x8xf32>
    %c0_5 = arith.constant 0 : index
    %c0_6 = arith.constant 0 : index
    %6 = vector.load %arg4[%c0_5, %c0_6] : memref<1x8xf32, #tpu.memory_space<vmem>>, vector<1x8xf32>
    %7 = vector.broadcast %6 : vector<1x8xf32> to vector<512x8xf32>
    %8 = arith.addf %5, %7 : vector<512x8xf32>
    %c0_7 = arith.constant 0 : index
    %c0_8 = arith.constant 0 : index
    %9 = vector.load %arg5[%c0_7, %c0_8] : memref<512x8xf32, #tpu.memory_space<vmem>>, vector<512x8xf32>
    tpu.vector_store %arg5[%c0_7, %c0_8], %8 {strides = array<i32>} : memref<512x8xf32, #tpu.memory_space<vmem>>, vector<512x8xf32>,
    return
  }
  func.func @transform_0(%arg0: i32) -> (i32, i32) {
    %c0_i32 = arith.constant 0 : i32
    %c0_i32_0 = arith.constant 0 : i32
    return %arg0, %c0_i32 : i32, i32
  }
  func.func @transform_1(%arg0: i32) -> (i32, i32) {
    %c0_i32 = arith.constant 0 : i32
    %c0_i32_0 = arith.constant 0 : i32
    %c0_i32_1 = arith.constant 0 : i32
    return %c0_i32, %c0_i32_0 : i32, i32
  }
  func.func @transform_2(%arg0: i32) -> (i32, i32) {
    %c0_i32 = arith.constant 0 : i32
    %c0_i32_0 = arith.constant 0 : i32
    %c0_i32_1 = arith.constant 0 : i32
    return %c0_i32, %c0_i32_0 : i32, i32
  }
  func.func @transform_3(%arg0: i32) -> (i32, i32) {
    %c0_i32 = arith.constant 0 : i32
    %c0_i32_0 = arith.constant 0 : i32
    %c0_i32_1 = arith.constant 0 : i32
    return %c0_i32, %c0_i32_0 : i32, i32
  }
  func.func @transform_4(%arg0: i32) -> (i32, i32) {
    %c0_i32 = arith.constant 0 : i32
    %c0_i32_0 = arith.constant 0 : i32
    return %arg0, %c0_i32 : i32, i32
  }
}

module attributes {stable_mosaic.version = 11 : i64} {
  func.func @_gemm_bn_kernel(%arg0: i32, %arg1: memref<512x216xbf16, #tpu.memory_space<vmem>>, %arg2: memref<216x8xbf16, #tpu.memory_space<vmem>>, %arg3: memref<1x8xf32, #tpu.memory_space<vmem>>, %arg4: memref<1x8xf32, #tpu.memory_space<vmem>>, %arg5: memref<512x8xf32, #tpu.memory_space<vmem>>) attributes {dimension_semantics = [#tpu.dimension_semantics<parallel>], iteration_bounds = array<i64: 2>, scalar_prefetch = 0 : i64, scratch_operands = 0 : i64, tpu.core_type = #tpu.core_type<tc>, window_params = [{transform_indices = @transform_0, window_bounds = array<i64: 512, 216>}, {pipeline_mode = #tpu.pipeline_mode<synchronous>, transform_indices = @transform_1, window_bounds = array<i64: 216, 8>}, {pipeline_mode = #tpu.pipeline_mode<synchronous>, transform_indices = @transform_2, window_bounds = array<i64: 1, 8>}, {pipeline_mode = #tpu.pipeline_mode<synchronous>, transform_indices = @transform_3, window_bounds = array<i64: 1, 8>}, {transform_indices = @transform_4, window_bounds = array<i64: 512, 8>}]} {
    %c0 = arith.constant 0 : index
    %c0_0 = arith.constant 0 : index
    %0 = vector.load %arg1[%c0, %c0_0] : memref<512x216xbf16, #tpu.memory_space<vmem>>, vector<512x216xbf16>
    %c0_1 = arith.constant 0 : index
    %c0_2 = arith.constant 0 : index
    %1 = vector.load %arg2[%c0_1, %c0_2] : memref<216x8xbf16, #tpu.memory_space<vmem>>, vector<216x8xbf16>
    %cst = arith.constant dense<0.000000e+00> : vector<512x8xf32>
    %2 = tpu.matmul %0, %1, %cst {dimension_numbers = #tpu.dot_dimension_numbers<[1], [0], [0], [1], [0, 0, 1, 1], [], []>} : vector<512x216xbf16>, vector<216x8xbf16>, vector<512x8xf32> -> vector<512x8xf32>
    %c0_3 = arith.constant 0 : index
    %c0_4 = arith.constant 0 : index
    %3 = vector.load %arg3[%c0_3, %c0_4] : memref<1x8xf32, #tpu.memory_space<vmem>>, vector<1x8xf32>
    %4 = vector.broadcast %3 : vector<1x8xf32> to vector<512x8xf32>
    %5 = arith.mulf %2, %4 : vector<512x8xf32>
    %c0_5 = arith.constant 0 : index
    %c0_6 = arith.constant 0 : index
    %6 = vector.load %arg4[%c0_5, %c0_6] : memref<1x8xf32, #tpu.memory_space<vmem>>, vector<1x8xf32>
    %7 = vector.broadcast %6 : vector<1x8xf32> to vector<512x8xf32>
    %8 = arith.addf %5, %7 : vector<512x8xf32>
    %cst_7 = arith.constant 0.000000e+00 : f32
    %9 = vector.broadcast %cst_7 : f32 to vector<512x8xf32>
    %10 = arith.maximumf %8, %9 : vector<512x8xf32>
    %c0_8 = arith.constant 0 : index
    %c0_9 = arith.constant 0 : index
    %11 = vector.load %arg5[%c0_8, %c0_9] : memref<512x8xf32, #tpu.memory_space<vmem>>, vector<512x8xf32>
    tpu.vector_store %arg5[%c0_8, %c0_9], %10 {strides = array<i32>} : memref<512x8xf32, #tpu.memory_space<vmem>>, vector<512x8xf32>,
    return
  }
  func.func @transform_0(%arg0: i32) -> (i32, i32) {
    %c0_i32 = arith.constant 0 : i32
    %c0_i32_0 = arith.constant 0 : i32
    return %arg0, %c0_i32 : i32, i32
  }
  func.func @transform_1(%arg0: i32) -> (i32, i32) {
    %c0_i32 = arith.constant 0 : i32
    %c0_i32_0 = arith.constant 0 : i32
    %c0_i32_1 = arith.constant 0 : i32
    return %c0_i32, %c0_i32_0 : i32, i32
  }
  func.func @transform_2(%arg0: i32) -> (i32, i32) {
    %c0_i32 = arith.constant 0 : i32
    %c0_i32_0 = arith.constant 0 : i32
    %c0_i32_1 = arith.constant 0 : i32
    return %c0_i32, %c0_i32_0 : i32, i32
  }
  func.func @transform_3(%arg0: i32) -> (i32, i32) {
    %c0_i32 = arith.constant 0 : i32
    %c0_i32_0 = arith.constant 0 : i32
    %c0_i32_1 = arith.constant 0 : i32
    return %c0_i32, %c0_i32_0 : i32, i32
  }
  func.func @transform_4(%arg0: i32) -> (i32, i32) {
    %c0_i32 = arith.constant 0 : i32
    %c0_i32_0 = arith.constant 0 : i32
    return %arg0, %c0_i32 : i32, i32
  }
}

module attributes {stable_mosaic.version = 11 : i64} {
  func.func @_gemm_bn_kernel(%arg0: i32, %arg1: memref<64x16xbf16, #tpu.memory_space<vmem>>, %arg2: memref<16x64xbf16, #tpu.memory_space<vmem>>, %arg3: memref<1x64xf32, #tpu.memory_space<vmem>>, %arg4: memref<1x64xf32, #tpu.memory_space<vmem>>, %arg5: memref<64x64xf32, #tpu.memory_space<vmem>>) attributes {dimension_semantics = [#tpu.dimension_semantics<parallel>], iteration_bounds = array<i64: 2>, scalar_prefetch = 0 : i64, scratch_operands = 0 : i64, tpu.core_type = #tpu.core_type<tc>, window_params = [{transform_indices = @transform_0, window_bounds = array<i64: 64, 16>}, {pipeline_mode = #tpu.pipeline_mode<synchronous>, transform_indices = @transform_1, window_bounds = array<i64: 16, 64>}, {pipeline_mode = #tpu.pipeline_mode<synchronous>, transform_indices = @transform_2, window_bounds = array<i64: 1, 64>}, {pipeline_mode = #tpu.pipeline_mode<synchronous>, transform_indices = @transform_3, window_bounds = array<i64: 1, 64>}, {transform_indices = @transform_4, window_bounds = array<i64: 64, 64>}]} {
    %c0 = arith.constant 0 : index
    %c0_0 = arith.constant 0 : index
    %0 = vector.load %arg1[%c0, %c0_0] : memref<64x16xbf16, #tpu.memory_space<vmem>>, vector<64x16xbf16>
    %c0_1 = arith.constant 0 : index
    %c0_2 = arith.constant 0 : index
    %1 = vector.load %arg2[%c0_1, %c0_2] : memref<16x64xbf16, #tpu.memory_space<vmem>>, vector<16x64xbf16>
    %cst = arith.constant dense<0.000000e+00> : vector<64x64xf32>
    %2 = tpu.matmul %0, %1, %cst {dimension_numbers = #tpu.dot_dimension_numbers<[1], [0], [0], [1], [0, 0, 1, 1], [], []>} : vector<64x16xbf16>, vector<16x64xbf16>, vector<64x64xf32> -> vector<64x64xf32>
    %c0_3 = arith.constant 0 : index
    %c0_4 = arith.constant 0 : index
    %3 = vector.load %arg3[%c0_3, %c0_4] : memref<1x64xf32, #tpu.memory_space<vmem>>, vector<1x64xf32>
    %4 = vector.broadcast %3 : vector<1x64xf32> to vector<64x64xf32>
    %5 = arith.mulf %2, %4 : vector<64x64xf32>
    %c0_5 = arith.constant 0 : index
    %c0_6 = arith.constant 0 : index
    %6 = vector.load %arg4[%c0_5, %c0_6] : memref<1x64xf32, #tpu.memory_space<vmem>>, vector<1x64xf32>
    %7 = vector.broadcast %6 : vector<1x64xf32> to vector<64x64xf32>
    %8 = arith.addf %5, %7 : vector<64x64xf32>
    %cst_7 = arith.constant 0.000000e+00 : f32
    %9 = vector.broadcast %cst_7 : f32 to vector<64x64xf32>
    %10 = arith.maximumf %8, %9 : vector<64x64xf32>
    %c0_8 = arith.constant 0 : index
    %c0_9 = arith.constant 0 : index
    %11 = vector.load %arg5[%c0_8, %c0_9] : memref<64x64xf32, #tpu.memory_space<vmem>>, vector<64x64xf32>
    tpu.vector_store %arg5[%c0_8, %c0_9], %10 {strides = array<i32>} : memref<64x64xf32, #tpu.memory_space<vmem>>, vector<64x64xf32>,
    return
  }
  func.func @transform_0(%arg0: i32) -> (i32, i32) {
    %c0_i32 = arith.constant 0 : i32
    %c0_i32_0 = arith.constant 0 : i32
    return %arg0, %c0_i32 : i32, i32
  }
  func.func @transform_1(%arg0: i32) -> (i32, i32) {
    %c0_i32 = arith.constant 0 : i32
    %c0_i32_0 = arith.constant 0 : i32
    %c0_i32_1 = arith.constant 0 : i32
    return %c0_i32, %c0_i32_0 : i32, i32
  }
  func.func @transform_2(%arg0: i32) -> (i32, i32) {
    %c0_i32 = arith.constant 0 : i32
    %c0_i32_0 = arith.constant 0 : i32
    %c0_i32_1 = arith.constant 0 : i32
    return %c0_i32, %c0_i32_0 : i32, i32
  }
  func.func @transform_3(%arg0: i32) -> (i32, i32) {
    %c0_i32 = arith.constant 0 : i32
    %c0_i32_0 = arith.constant 0 : i32
    %c0_i32_1 = arith.constant 0 : i32
    return %c0_i32, %c0_i32_0 : i32, i32
  }
  func.func @transform_4(%arg0: i32) -> (i32, i32) {
    %c0_i32 = arith.constant 0 : i32
    %c0_i32_0 = arith.constant 0 : i32
    return %arg0, %c0_i32 : i32, i32
  }
}

module attributes {stable_mosaic.version = 11 : i64} {
  func.func @_gemm_bn_kernel(%arg0: i32, %arg1: memref<512x216xbf16, #tpu.memory_space<vmem>>, %arg2: memref<216x8xbf16, #tpu.memory_space<vmem>>, %arg3: memref<1x8xf32, #tpu.memory_space<vmem>>, %arg4: memref<1x8xf32, #tpu.memory_space<vmem>>, %arg5: memref<512x8xf32, #tpu.memory_space<vmem>>, %arg6: memref<512x8xf32, #tpu.memory_space<vmem>>, %arg7: memref<512x8xf32, #tpu.memory_space<vmem>>, %arg8: memref<512x8xf32, #tpu.memory_space<vmem>>) attributes {dimension_semantics = [#tpu.dimension_semantics<parallel>], iteration_bounds = array<i64: 2>, scalar_prefetch = 0 : i64, scratch_operands = 0 : i64, tpu.core_type = #tpu.core_type<tc>, window_params = [{transform_indices = @transform_0, window_bounds = array<i64: 512, 216>}, {pipeline_mode = #tpu.pipeline_mode<synchronous>, transform_indices = @transform_1, window_bounds = array<i64: 216, 8>}, {pipeline_mode = #tpu.pipeline_mode<synchronous>, transform_indices = @transform_2, window_bounds = array<i64: 1, 8>}, {pipeline_mode = #tpu.pipeline_mode<synchronous>, transform_indices = @transform_3, window_bounds = array<i64: 1, 8>}, {transform_indices = @transform_4, window_bounds = array<i64: 512, 8>}, {transform_indices = @transform_5, window_bounds = array<i64: 512, 8>}, {transform_indices = @transform_6, window_bounds = array<i64: 512, 8>}, {transform_indices = @transform_7, window_bounds = array<i64: 512, 8>}]} {
    %c0 = arith.constant 0 : index
    %c0_0 = arith.constant 0 : index
    %0 = vector.load %arg1[%c0, %c0_0] : memref<512x216xbf16, #tpu.memory_space<vmem>>, vector<512x216xbf16>
    %c0_1 = arith.constant 0 : index
    %c0_2 = arith.constant 0 : index
    %1 = vector.load %arg2[%c0_1, %c0_2] : memref<216x8xbf16, #tpu.memory_space<vmem>>, vector<216x8xbf16>
    %cst = arith.constant dense<0.000000e+00> : vector<512x8xf32>
    %2 = tpu.matmul %0, %1, %cst {dimension_numbers = #tpu.dot_dimension_numbers<[1], [0], [0], [1], [0, 0, 1, 1], [], []>} : vector<512x216xbf16>, vector<216x8xbf16>, vector<512x8xf32> -> vector<512x8xf32>
    %c0_3 = arith.constant 0 : index
    %c0_4 = arith.constant 0 : index
    %3 = vector.load %arg3[%c0_3, %c0_4] : memref<1x8xf32, #tpu.memory_space<vmem>>, vector<1x8xf32>
    %4 = vector.broadcast %3 : vector<1x8xf32> to vector<512x8xf32>
    %5 = arith.mulf %2, %4 : vector<512x8xf32>
    %c0_5 = arith.constant 0 : index
    %c0_6 = arith.constant 0 : index
    %6 = vector.load %arg4[%c0_5, %c0_6] : memref<1x8xf32, #tpu.memory_space<vmem>>, vector<1x8xf32>
    %7 = vector.broadcast %6 : vector<1x8xf32> to vector<512x8xf32>
    %8 = arith.addf %5, %7 : vector<512x8xf32>
    %c0_7 = arith.constant 0 : index
    %c0_8 = arith.constant 0 : index
    %9 = vector.load %arg5[%c0_7, %c0_8] : memref<512x8xf32, #tpu.memory_space<vmem>>, vector<512x8xf32>
    %10 = arith.addf %8, %9 : vector<512x8xf32>
    %c0_9 = arith.constant 0 : index
    %c0_10 = arith.constant 0 : index
    %11 = vector.load %arg6[%c0_9, %c0_10] : memref<512x8xf32, #tpu.memory_space<vmem>>, vector<512x8xf32>
    %12 = arith.addf %10, %11 : vector<512x8xf32>
    %c0_11 = arith.constant 0 : index
    %c0_12 = arith.constant 0 : index
    %13 = vector.load %arg7[%c0_11, %c0_12] : memref<512x8xf32, #tpu.memory_space<vmem>>, vector<512x8xf32>
    %14 = arith.addf %12, %13 : vector<512x8xf32>
    %cst_13 = arith.constant 0.000000e+00 : f32
    %15 = vector.broadcast %cst_13 : f32 to vector<512x8xf32>
    %16 = arith.maximumf %14, %15 : vector<512x8xf32>
    %c0_14 = arith.constant 0 : index
    %c0_15 = arith.constant 0 : index
    %17 = vector.load %arg8[%c0_14, %c0_15] : memref<512x8xf32, #tpu.memory_space<vmem>>, vector<512x8xf32>
    tpu.vector_store %arg8[%c0_14, %c0_15], %16 {strides = array<i32>} : memref<512x8xf32, #tpu.memory_space<vmem>>, vector<512x8xf32>,
    return
  }
  func.func @transform_0(%arg0: i32) -> (i32, i32) {
    %c0_i32 = arith.constant 0 : i32
    %c0_i32_0 = arith.constant 0 : i32
    return %arg0, %c0_i32 : i32, i32
  }
  func.func @transform_1(%arg0: i32) -> (i32, i32) {
    %c0_i32 = arith.constant 0 : i32
    %c0_i32_0 = arith.constant 0 : i32
    %c0_i32_1 = arith.constant 0 : i32
    return %c0_i32, %c0_i32_0 : i32, i32
  }
  func.func @transform_2(%arg0: i32) -> (i32, i32) {
    %c0_i32 = arith.constant 0 : i32
    %c0_i32_0 = arith.constant 0 : i32
    %c0_i32_1 = arith.constant 0 : i32
    return %c0_i32, %c0_i32_0 : i32, i32
  }
  func.func @transform_3(%arg0: i32) -> (i32, i32) {
    %c0_i32 = arith.constant 0 : i32
    %c0_i32_0 = arith.constant 0 : i32
    %c0_i32_1 = arith.constant 0 : i32
    return %c0_i32, %c0_i32_0 : i32, i32
  }
  func.func @transform_4(%arg0: i32) -> (i32, i32) {
    %c0_i32 = arith.constant 0 : i32
    %c0_i32_0 = arith.constant 0 : i32
    return %arg0, %c0_i32 : i32, i32
  }
  func.func @transform_5(%arg0: i32) -> (i32, i32) {
    %c0_i32 = arith.constant 0 : i32
    %c0_i32_0 = arith.constant 0 : i32
    return %arg0, %c0_i32 : i32, i32
  }
  func.func @transform_6(%arg0: i32) -> (i32, i32) {
    %c0_i32 = arith.constant 0 : i32
    %c0_i32_0 = arith.constant 0 : i32
    return %arg0, %c0_i32 : i32, i32
  }
  func.func @transform_7(%arg0: i32) -> (i32, i32) {
    %c0_i32 = arith.constant 0 : i32
    %c0_i32_0 = arith.constant 0 : i32
    return %arg0, %c0_i32 : i32, i32
  }
}

module attributes {stable_mosaic.version = 11 : i64} {
  func.func @_gemm_bn_kernel(%arg0: i32, %arg1: memref<8x432xbf16, #tpu.memory_space<vmem>>, %arg2: memref<432x32xbf16, #tpu.memory_space<vmem>>, %arg3: memref<1x32xf32, #tpu.memory_space<vmem>>, %arg4: memref<1x32xf32, #tpu.memory_space<vmem>>, %arg5: memref<8x32xf32, #tpu.memory_space<vmem>>) attributes {dimension_semantics = [#tpu.dimension_semantics<parallel>], iteration_bounds = array<i64: 2>, scalar_prefetch = 0 : i64, scratch_operands = 0 : i64, tpu.core_type = #tpu.core_type<tc>, window_params = [{transform_indices = @transform_0, window_bounds = array<i64: 8, 432>}, {pipeline_mode = #tpu.pipeline_mode<synchronous>, transform_indices = @transform_1, window_bounds = array<i64: 432, 32>}, {pipeline_mode = #tpu.pipeline_mode<synchronous>, transform_indices = @transform_2, window_bounds = array<i64: 1, 32>}, {pipeline_mode = #tpu.pipeline_mode<synchronous>, transform_indices = @transform_3, window_bounds = array<i64: 1, 32>}, {transform_indices = @transform_4, window_bounds = array<i64: 8, 32>}]} {
    %c0 = arith.constant 0 : index
    %c0_0 = arith.constant 0 : index
    %0 = vector.load %arg1[%c0, %c0_0] : memref<8x432xbf16, #tpu.memory_space<vmem>>, vector<8x432xbf16>
    %c0_1 = arith.constant 0 : index
    %c0_2 = arith.constant 0 : index
    %1 = vector.load %arg2[%c0_1, %c0_2] : memref<432x32xbf16, #tpu.memory_space<vmem>>, vector<432x32xbf16>
    %cst = arith.constant dense<0.000000e+00> : vector<8x32xf32>
    %2 = tpu.matmul %0, %1, %cst {dimension_numbers = #tpu.dot_dimension_numbers<[1], [0], [0], [1], [0, 0, 1, 1], [], []>} : vector<8x432xbf16>, vector<432x32xbf16>, vector<8x32xf32> -> vector<8x32xf32>
    %c0_3 = arith.constant 0 : index
    %c0_4 = arith.constant 0 : index
    %3 = vector.load %arg3[%c0_3, %c0_4] : memref<1x32xf32, #tpu.memory_space<vmem>>, vector<1x32xf32>
    %4 = vector.broadcast %3 : vector<1x32xf32> to vector<8x32xf32>
    %5 = arith.mulf %2, %4 : vector<8x32xf32>
    %c0_5 = arith.constant 0 : index
    %c0_6 = arith.constant 0 : index
    %6 = vector.load %arg4[%c0_5, %c0_6] : memref<1x32xf32, #tpu.memory_space<vmem>>, vector<1x32xf32>
    %7 = vector.broadcast %6 : vector<1x32xf32> to vector<8x32xf32>
    %8 = arith.addf %5, %7 : vector<8x32xf32>
    %cst_7 = arith.constant 0.000000e+00 : f32
    %9 = vector.broadcast %cst_7 : f32 to vector<8x32xf32>
    %10 = arith.maximumf %8, %9 : vector<8x32xf32>
    %c0_8 = arith.constant 0 : index
    %c0_9 = arith.constant 0 : index
    %11 = vector.load %arg5[%c0_8, %c0_9] : memref<8x32xf32, #tpu.memory_space<vmem>>, vector<8x32xf32>
    tpu.vector_store %arg5[%c0_8, %c0_9], %10 {strides = array<i32>} : memref<8x32xf32, #tpu.memory_space<vmem>>, vector<8x32xf32>,
    return
  }
  func.func @transform_0(%arg0: i32) -> (i32, i32) {
    %c0_i32 = arith.constant 0 : i32
    %c0_i32_0 = arith.constant 0 : i32
    return %arg0, %c0_i32 : i32, i32
  }
  func.func @transform_1(%arg0: i32) -> (i32, i32) {
    %c0_i32 = arith.constant 0 : i32
    %c0_i32_0 = arith.constant 0 : i32
    %c0_i32_1 = arith.constant 0 : i32
    return %c0_i32, %c0_i32_0 : i32, i32
  }
  func.func @transform_2(%arg0: i32) -> (i32, i32) {
    %c0_i32 = arith.constant 0 : i32
    %c0_i32_0 = arith.constant 0 : i32
    %c0_i32_1 = arith.constant 0 : i32
    return %c0_i32, %c0_i32_0 : i32, i32
  }
  func.func @transform_3(%arg0: i32) -> (i32, i32) {
    %c0_i32 = arith.constant 0 : i32
    %c0_i32_0 = arith.constant 0 : i32
    %c0_i32_1 = arith.constant 0 : i32
    return %c0_i32, %c0_i32_0 : i32, i32
  }
  func.func @transform_4(%arg0: i32) -> (i32, i32) {
    %c0_i32 = arith.constant 0 : i32
    %c0_i32_0 = arith.constant 0 : i32
    return %arg0, %c0_i32 : i32, i32
  }
}

module attributes {stable_mosaic.version = 11 : i64} {
  func.func @_gemm_bn_kernel(%arg0: i32, %arg1: memref<8x864xbf16, #tpu.memory_space<vmem>>, %arg2: memref<864x32xbf16, #tpu.memory_space<vmem>>, %arg3: memref<1x32xf32, #tpu.memory_space<vmem>>, %arg4: memref<1x32xf32, #tpu.memory_space<vmem>>, %arg5: memref<8x32xf32, #tpu.memory_space<vmem>>) attributes {dimension_semantics = [#tpu.dimension_semantics<parallel>], iteration_bounds = array<i64: 2>, scalar_prefetch = 0 : i64, scratch_operands = 0 : i64, tpu.core_type = #tpu.core_type<tc>, window_params = [{transform_indices = @transform_0, window_bounds = array<i64: 8, 864>}, {pipeline_mode = #tpu.pipeline_mode<synchronous>, transform_indices = @transform_1, window_bounds = array<i64: 864, 32>}, {pipeline_mode = #tpu.pipeline_mode<synchronous>, transform_indices = @transform_2, window_bounds = array<i64: 1, 32>}, {pipeline_mode = #tpu.pipeline_mode<synchronous>, transform_indices = @transform_3, window_bounds = array<i64: 1, 32>}, {transform_indices = @transform_4, window_bounds = array<i64: 8, 32>}]} {
    %c0 = arith.constant 0 : index
    %c0_0 = arith.constant 0 : index
    %0 = vector.load %arg1[%c0, %c0_0] : memref<8x864xbf16, #tpu.memory_space<vmem>>, vector<8x864xbf16>
    %c0_1 = arith.constant 0 : index
    %c0_2 = arith.constant 0 : index
    %1 = vector.load %arg2[%c0_1, %c0_2] : memref<864x32xbf16, #tpu.memory_space<vmem>>, vector<864x32xbf16>
    %cst = arith.constant dense<0.000000e+00> : vector<8x32xf32>
    %2 = tpu.matmul %0, %1, %cst {dimension_numbers = #tpu.dot_dimension_numbers<[1], [0], [0], [1], [0, 0, 1, 1], [], []>} : vector<8x864xbf16>, vector<864x32xbf16>, vector<8x32xf32> -> vector<8x32xf32>
    %c0_3 = arith.constant 0 : index
    %c0_4 = arith.constant 0 : index
    %3 = vector.load %arg3[%c0_3, %c0_4] : memref<1x32xf32, #tpu.memory_space<vmem>>, vector<1x32xf32>
    %4 = vector.broadcast %3 : vector<1x32xf32> to vector<8x32xf32>
    %5 = arith.mulf %2, %4 : vector<8x32xf32>
    %c0_5 = arith.constant 0 : index
    %c0_6 = arith.constant 0 : index
    %6 = vector.load %arg4[%c0_5, %c0_6] : memref<1x32xf32, #tpu.memory_space<vmem>>, vector<1x32xf32>
    %7 = vector.broadcast %6 : vector<1x32xf32> to vector<8x32xf32>
    %8 = arith.addf %5, %7 : vector<8x32xf32>
    %c0_7 = arith.constant 0 : index
    %c0_8 = arith.constant 0 : index
    %9 = vector.load %arg5[%c0_7, %c0_8] : memref<8x32xf32, #tpu.memory_space<vmem>>, vector<8x32xf32>
    tpu.vector_store %arg5[%c0_7, %c0_8], %8 {strides = array<i32>} : memref<8x32xf32, #tpu.memory_space<vmem>>, vector<8x32xf32>,
    return
  }
  func.func @transform_0(%arg0: i32) -> (i32, i32) {
    %c0_i32 = arith.constant 0 : i32
    %c0_i32_0 = arith.constant 0 : i32
    return %arg0, %c0_i32 : i32, i32
  }
  func.func @transform_1(%arg0: i32) -> (i32, i32) {
    %c0_i32 = arith.constant 0 : i32
    %c0_i32_0 = arith.constant 0 : i32
    %c0_i32_1 = arith.constant 0 : i32
    return %c0_i32, %c0_i32_0 : i32, i32
  }
  func.func @transform_2(%arg0: i32) -> (i32, i32) {
    %c0_i32 = arith.constant 0 : i32
    %c0_i32_0 = arith.constant 0 : i32
    %c0_i32_1 = arith.constant 0 : i32
    return %c0_i32, %c0_i32_0 : i32, i32
  }
  func.func @transform_3(%arg0: i32) -> (i32, i32) {
    %c0_i32 = arith.constant 0 : i32
    %c0_i32_0 = arith.constant 0 : i32
    %c0_i32_1 = arith.constant 0 : i32
    return %c0_i32, %c0_i32_0 : i32, i32
  }
  func.func @transform_4(%arg0: i32) -> (i32, i32) {
    %c0_i32 = arith.constant 0 : i32
    %c0_i32_0 = arith.constant 0 : i32
    return %arg0, %c0_i32 : i32, i32
  }
}

module attributes {stable_mosaic.version = 11 : i64} {
  func.func @_gemm_bn_kernel(%arg0: i32, %arg1: memref<8x864xbf16, #tpu.memory_space<vmem>>, %arg2: memref<864x32xbf16, #tpu.memory_space<vmem>>, %arg3: memref<1x32xf32, #tpu.memory_space<vmem>>, %arg4: memref<1x32xf32, #tpu.memory_space<vmem>>, %arg5: memref<8x32xf32, #tpu.memory_space<vmem>>) attributes {dimension_semantics = [#tpu.dimension_semantics<parallel>], iteration_bounds = array<i64: 2>, scalar_prefetch = 0 : i64, scratch_operands = 0 : i64, tpu.core_type = #tpu.core_type<tc>, window_params = [{transform_indices = @transform_0, window_bounds = array<i64: 8, 864>}, {pipeline_mode = #tpu.pipeline_mode<synchronous>, transform_indices = @transform_1, window_bounds = array<i64: 864, 32>}, {pipeline_mode = #tpu.pipeline_mode<synchronous>, transform_indices = @transform_2, window_bounds = array<i64: 1, 32>}, {pipeline_mode = #tpu.pipeline_mode<synchronous>, transform_indices = @transform_3, window_bounds = array<i64: 1, 32>}, {transform_indices = @transform_4, window_bounds = array<i64: 8, 32>}]} {
    %c0 = arith.constant 0 : index
    %c0_0 = arith.constant 0 : index
    %0 = vector.load %arg1[%c0, %c0_0] : memref<8x864xbf16, #tpu.memory_space<vmem>>, vector<8x864xbf16>
    %c0_1 = arith.constant 0 : index
    %c0_2 = arith.constant 0 : index
    %1 = vector.load %arg2[%c0_1, %c0_2] : memref<864x32xbf16, #tpu.memory_space<vmem>>, vector<864x32xbf16>
    %cst = arith.constant dense<0.000000e+00> : vector<8x32xf32>
    %2 = tpu.matmul %0, %1, %cst {dimension_numbers = #tpu.dot_dimension_numbers<[1], [0], [0], [1], [0, 0, 1, 1], [], []>} : vector<8x864xbf16>, vector<864x32xbf16>, vector<8x32xf32> -> vector<8x32xf32>
    %c0_3 = arith.constant 0 : index
    %c0_4 = arith.constant 0 : index
    %3 = vector.load %arg3[%c0_3, %c0_4] : memref<1x32xf32, #tpu.memory_space<vmem>>, vector<1x32xf32>
    %4 = vector.broadcast %3 : vector<1x32xf32> to vector<8x32xf32>
    %5 = arith.mulf %2, %4 : vector<8x32xf32>
    %c0_5 = arith.constant 0 : index
    %c0_6 = arith.constant 0 : index
    %6 = vector.load %arg4[%c0_5, %c0_6] : memref<1x32xf32, #tpu.memory_space<vmem>>, vector<1x32xf32>
    %7 = vector.broadcast %6 : vector<1x32xf32> to vector<8x32xf32>
    %8 = arith.addf %5, %7 : vector<8x32xf32>
    %cst_7 = arith.constant 0.000000e+00 : f32
    %9 = vector.broadcast %cst_7 : f32 to vector<8x32xf32>
    %10 = arith.maximumf %8, %9 : vector<8x32xf32>
    %c0_8 = arith.constant 0 : index
    %c0_9 = arith.constant 0 : index
    %11 = vector.load %arg5[%c0_8, %c0_9] : memref<8x32xf32, #tpu.memory_space<vmem>>, vector<8x32xf32>
    tpu.vector_store %arg5[%c0_8, %c0_9], %10 {strides = array<i32>} : memref<8x32xf32, #tpu.memory_space<vmem>>, vector<8x32xf32>,
    return
  }
  func.func @transform_0(%arg0: i32) -> (i32, i32) {
    %c0_i32 = arith.constant 0 : i32
    %c0_i32_0 = arith.constant 0 : i32
    return %arg0, %c0_i32 : i32, i32
  }
  func.func @transform_1(%arg0: i32) -> (i32, i32) {
    %c0_i32 = arith.constant 0 : i32
    %c0_i32_0 = arith.constant 0 : i32
    %c0_i32_1 = arith.constant 0 : i32
    return %c0_i32, %c0_i32_0 : i32, i32
  }
  func.func @transform_2(%arg0: i32) -> (i32, i32) {
    %c0_i32 = arith.constant 0 : i32
    %c0_i32_0 = arith.constant 0 : i32
    %c0_i32_1 = arith.constant 0 : i32
    return %c0_i32, %c0_i32_0 : i32, i32
  }
  func.func @transform_3(%arg0: i32) -> (i32, i32) {
    %c0_i32 = arith.constant 0 : i32
    %c0_i32_0 = arith.constant 0 : i32
    %c0_i32_1 = arith.constant 0 : i32
    return %c0_i32, %c0_i32_0 : i32, i32
  }
  func.func @transform_4(%arg0: i32) -> (i32, i32) {
    %c0_i32 = arith.constant 0 : i32
    %c0_i32_0 = arith.constant 0 : i32
    return %arg0, %c0_i32 : i32, i32
  }
}

module attributes {stable_mosaic.version = 11 : i64} {
  func.func @_gemm_bn_kernel(%arg0: i32, %arg1: memref<8x864xbf16, #tpu.memory_space<vmem>>, %arg2: memref<864x32xbf16, #tpu.memory_space<vmem>>, %arg3: memref<1x32xf32, #tpu.memory_space<vmem>>, %arg4: memref<1x32xf32, #tpu.memory_space<vmem>>, %arg5: memref<8x32xf32, #tpu.memory_space<vmem>>, %arg6: memref<8x32xf32, #tpu.memory_space<vmem>>, %arg7: memref<8x32xf32, #tpu.memory_space<vmem>>) attributes {dimension_semantics = [#tpu.dimension_semantics<parallel>], iteration_bounds = array<i64: 2>, scalar_prefetch = 0 : i64, scratch_operands = 0 : i64, tpu.core_type = #tpu.core_type<tc>, window_params = [{transform_indices = @transform_0, window_bounds = array<i64: 8, 864>}, {pipeline_mode = #tpu.pipeline_mode<synchronous>, transform_indices = @transform_1, window_bounds = array<i64: 864, 32>}, {pipeline_mode = #tpu.pipeline_mode<synchronous>, transform_indices = @transform_2, window_bounds = array<i64: 1, 32>}, {pipeline_mode = #tpu.pipeline_mode<synchronous>, transform_indices = @transform_3, window_bounds = array<i64: 1, 32>}, {transform_indices = @transform_4, window_bounds = array<i64: 8, 32>}, {transform_indices = @transform_5, window_bounds = array<i64: 8, 32>}, {transform_indices = @transform_6, window_bounds = array<i64: 8, 32>}]} {
    %c0 = arith.constant 0 : index
    %c0_0 = arith.constant 0 : index
    %0 = vector.load %arg1[%c0, %c0_0] : memref<8x864xbf16, #tpu.memory_space<vmem>>, vector<8x864xbf16>
    %c0_1 = arith.constant 0 : index
    %c0_2 = arith.constant 0 : index
    %1 = vector.load %arg2[%c0_1, %c0_2] : memref<864x32xbf16, #tpu.memory_space<vmem>>, vector<864x32xbf16>
    %cst = arith.constant dense<0.000000e+00> : vector<8x32xf32>
    %2 = tpu.matmul %0, %1, %cst {dimension_numbers = #tpu.dot_dimension_numbers<[1], [0], [0], [1], [0, 0, 1, 1], [], []>} : vector<8x864xbf16>, vector<864x32xbf16>, vector<8x32xf32> -> vector<8x32xf32>
    %c0_3 = arith.constant 0 : index
    %c0_4 = arith.constant 0 : index
    %3 = vector.load %arg3[%c0_3, %c0_4] : memref<1x32xf32, #tpu.memory_space<vmem>>, vector<1x32xf32>
    %4 = vector.broadcast %3 : vector<1x32xf32> to vector<8x32xf32>
    %5 = arith.mulf %2, %4 : vector<8x32xf32>
    %c0_5 = arith.constant 0 : index
    %c0_6 = arith.constant 0 : index
    %6 = vector.load %arg4[%c0_5, %c0_6] : memref<1x32xf32, #tpu.memory_space<vmem>>, vector<1x32xf32>
    %7 = vector.broadcast %6 : vector<1x32xf32> to vector<8x32xf32>
    %8 = arith.addf %5, %7 : vector<8x32xf32>
    %c0_7 = arith.constant 0 : index
    %c0_8 = arith.constant 0 : index
    %9 = vector.load %arg5[%c0_7, %c0_8] : memref<8x32xf32, #tpu.memory_space<vmem>>, vector<8x32xf32>
    %10 = arith.addf %8, %9 : vector<8x32xf32>
    %c0_9 = arith.constant 0 : index
    %c0_10 = arith.constant 0 : index
    %11 = vector.load %arg6[%c0_9, %c0_10] : memref<8x32xf32, #tpu.memory_space<vmem>>, vector<8x32xf32>
    %12 = arith.addf %10, %11 : vector<8x32xf32>
    %cst_11 = arith.constant 0.000000e+00 : f32
    %13 = vector.broadcast %cst_11 : f32 to vector<8x32xf32>
    %14 = arith.maximumf %12, %13 : vector<8x32xf32>
    %c0_12 = arith.constant 0 : index
    %c0_13 = arith.constant 0 : index
    %15 = vector.load %arg7[%c0_12, %c0_13] : memref<8x32xf32, #tpu.memory_space<vmem>>, vector<8x32xf32>
    tpu.vector_store %arg7[%c0_12, %c0_13], %14 {strides = array<i32>} : memref<8x32xf32, #tpu.memory_space<vmem>>, vector<8x32xf32>,
    return
  }
  func.func @transform_0(%arg0: i32) -> (i32, i32) {
    %c0_i32 = arith.constant 0 : i32
    %c0_i32_0 = arith.constant 0 : i32
    return %arg0, %c0_i32 : i32, i32
  }
  func.func @transform_1(%arg0: i32) -> (i32, i32) {
    %c0_i32 = arith.constant 0 : i32
    %c0_i32_0 = arith.constant 0 : i32
    %c0_i32_1 = arith.constant 0 : i32
    return %c0_i32, %c0_i32_0 : i32, i32
  }
  func.func @transform_2(%arg0: i32) -> (i32, i32) {
    %c0_i32 = arith.constant 0 : i32
    %c0_i32_0 = arith.constant 0 : i32
    %c0_i32_1 = arith.constant 0 : i32
    return %c0_i32, %c0_i32_0 : i32, i32
  }
  func.func @transform_3(%arg0: i32) -> (i32, i32) {
    %c0_i32 = arith.constant 0 : i32
    %c0_i32_0 = arith.constant 0 : i32
    %c0_i32_1 = arith.constant 0 : i32
    return %c0_i32, %c0_i32_0 : i32, i32
  }
  func.func @transform_4(%arg0: i32) -> (i32, i32) {
    %c0_i32 = arith.constant 0 : i32
    %c0_i32_0 = arith.constant 0 : i32
    return %arg0, %c0_i32 : i32, i32
  }
  func.func @transform_5(%arg0: i32) -> (i32, i32) {
    %c0_i32 = arith.constant 0 : i32
    %c0_i32_0 = arith.constant 0 : i32
    return %arg0, %c0_i32 : i32, i32
  }
  func.func @transform_6(%arg0: i32) -> (i32, i32) {
    %c0_i32 = arith.constant 0 : i32
    %c0_i32_0 = arith.constant 0 : i32
    return %arg0, %c0_i32 : i32, i32
  }
}

</mosaic_0001>

<bundles_post_ra>
// kernel: rec3_forward.22
= control target key start
LH: loop header
LB: loop body
LE: loop exit
PB: predicated region body
PF: predicated region fallthrough
CT: control target
= control target key end

     0   :  { %s708_s15 = smov 0   ;;  %s820_s0 = inlined_call_operand.vmem [shape: bf16[128,216], index: 0, kind: input, shape index: {}]   ;;  %s821_s1 = inlined_call_operand.vmem [shape: bf16[216,16], index: 1, kind: input, shape index: {}]   ;;  %s822_s2 = inlined_call_operand.vmem [shape: f32[1,16], index: 2, kind: input, shape index: {}]   ;;  %s823_s3 = inlined_call_operand.vmem [shape: f32[1,16], index: 3, kind: input, shape index: {}]   ;;  %s824_s4 = inlined_call_operand.vmem [shape: f32[128,16], index: 4, kind: output, shape index: {}]  }
   0x1 LB: > { %s529_s16 = sadd.s32 4294967295, %s681_s15   ;;  %p533_p0 = scmp.ge.s32.totalorder %s681_s15, 1  ;;  %s681_s15 = sphi %s708_s15, %s14_s15  }
   0x2   : > { %p164_p1 = scmp.lt.s32.totalorder %s681_s15, 3 }
   0x4   : > { %p165_p2 = pnand %p533_p0, %p164_p1 }
   0x5   : > { %s534_s23 = sshll.u32 (!%p165_p2), %s529_s16, 3 }
   0x6   : > { %168 = sbr.rel (%p165_p2) target bundleno = 221 (0xdd), region = 36  ;;  %p192_p3 = scmp.lt.s32.totalorder (!%p165_p2), %s534_s23, 15 }
   0xb   : > { %v645_v0 = vld [vmem:[%s821_s1 + $0x38] sm:$0xff]  ;;  %v239_v1 = vld [vmem:[%s821_s1 + $0x68] sm:$0xf]  ;;  %vm370_vm0 = vcmask 1043456   ;;  %v644_v3 = vld [vmem:[%s821_s1 + $0x30] sm:$0xff]  ;;  %s826_s23 = smov (!%p192_p3, %s534_s23), 15 }
   0xc   : > { %v329_v2 = vunpack.c.l.b16 %v239_v1  ;;  %374 = vmatpush.bf16.msra.mxu0 %v645_v0  ;;  %651 = vmatpush.bf16.msra.mxu2 %v645_v0  ;;  %v650_v6 = vld [vmem:[%s821_s1 + $0x60] sm:$0xff]  ;;  %v643_v7 = vld [vmem:[%s821_s1 + $0x28] sm:$0xff]  ;;  %v649_v8 = vld [vmem:[%s821_s1 + $0x58] sm:$0xff]  ;;  %s629_s10 = sshll.u32 %s826_s23, 3  ;;  %vm357_vm1 = vcmask 719872   ;;  %vm464_vm2 = vcmask 130048  }
   0xd   : > { %v642_v9 = vld [vmem:[%s821_s1 + $0x20] sm:$0xff]  ;;  %v648_v10 = vld [vmem:[%s821_s1 + $0x50] sm:$0xff]  ;;  %v641_v11 = vld [vmem:[%s821_s1 + $0x18] sm:$0xff]  ;;  %s757_s18 = scalar_lea.vmem %s820_s0, %s629_s10  ;;  %s799_s6 = scalar_lea.vmem %s824_s4, %s629_s10 }
   0xe   : > { %v343_v4 = vpack.c.b16 %v329_v2, %v329_v2  ;;  %v647_v12 = vld [vmem:[%s821_s1 + $0x48] sm:$0xff]  ;;  %v640_v13 = vld [vmem:[%s821_s1 + $0x10] sm:$0xff]  ;;  %v646_v14 = vld [vmem:[%s821_s1 + $0x40] sm:$0xff] }
   0xf   : > { %v639_v15 = vld [vmem:[%s821_s1 + $0x8] sm:$0xff]  ;;  %v632_v16 = vld [vmem:[%s757_s18 + $0x14] sm:$0xf]  ;;  %v551_v17 = vld [vmem:[%s757_s18 + $0x18] sm:$0xf0] }
  0x10   : > { %v372_v5 = vsel %vm370_vm0, %v343_v4, 0  ;;  %375 = vmatpush.bf16.msra.mxu0 %v644_v3  ;;  %652 = vmatpush.bf16.msra.mxu2 %v644_v3  ;;  %v630_v18 = vld [vmem:[%s757_s18 + $0x4] sm:$0xf]  ;;  %v543_v19 = vld [vmem:[%s757_s18 + $0x8] sm:$0xf0]  ;;  %v554_v20 = vor.u32 %v632_v16, %v551_v17 }
  0x11   : > { %659 = vmatpush.bf16.msra.mxu3 %v372_v5  ;;  %405 = vmatpush.bf16.msra.mxu1 %v372_v5  ;;  %v638_v21 = vld [vmem:[%s821_s1] sm:$0xff]  ;;  %v631_v23 = vld [vmem:[%s757_s18 + $0x4] sm:$0xf0]  ;;  %v546_v24 = vor.u32 %v630_v18, %v543_v19  ;;  %v559_v30 = vld [vmem:[%s757_s18 + $0x28] sm:$0xf0] }
  0x12   : > { %v541_v22 = vld [vmem:[%s757_s18] sm:$0xf]  ;;  %v635_v26 = vld [vmem:[%s757_s18 + $0x24] sm:$0xf0]  ;;  %v634_v29 = vld [vmem:[%s757_s18 + $0x24] sm:$0xf] }
  0x13   : > { %v557_v25 = vld [vmem:[%s757_s18 + $0x20] sm:$0xf]  ;;  %v542_v27 = vor.u32 %v631_v23, %v541_v22  ;;  %v562_v31 = vor.u32 %v634_v29, %v559_v30  ;;  %v549_v32 = vld [vmem:[%s757_s18 + $0x10] sm:$0xf]  ;;  %v633_v33 = vld [vmem:[%s757_s18 + $0x14] sm:$0xf0] }
  0x14   : > { %376 = vmatpush.bf16.msra.mxu0 %v643_v7  ;;  %653 = vmatpush.bf16.msra.mxu2 %v643_v7  ;;  %v558_v28 = vor.u32 %v635_v26, %v557_v25  ;;  %v565_v34 = vld [vmem:[%s757_s18 + $0x30] sm:$0xf]  ;;  %v637_v35 = vld [vmem:[%s757_s18 + $0x34] sm:$0xf0]  ;;  %v550_v36 = vor.u32 %v633_v33, %v549_v32  ;;  %v636_v38 = vld [vmem:[%s757_s18 + $0x34] sm:$0xf] }
  0x15   : > { %660 = vmatpush.bf16.msra.mxu3 %v650_v6  ;;  %406 = vmatpush.bf16.msra.mxu1 %v650_v6  ;;  %v566_v37 = vor.u32 %v637_v35, %v565_v34  ;;  %v567_v39 = vld [vmem:[%s757_s18 + $0x38] sm:$0xf0]  ;;  %v673_v44 = vld [vmem:[%s822_s2] ss:$0 sm:$0xff] }
  0x16   : > { %v570_v40 = vor.u32 %v636_v38, %v567_v39  ;;  %v674_v47 = vld [vmem:[%s823_s3] ss:$0 sm:$0xff] }
  0x18   : > { %377 = vmatpush.bf16.msra.mxu0 %v642_v9  ;;  %654 = vmatpush.bf16.msra.mxu2 %v642_v9 }
  0x19   : > { %661 = vmatpush.bf16.msra.mxu3 %v649_v8  ;;  %407 = vmatpush.bf16.msra.mxu1 %v649_v8 }
  0x1c   : > { %378 = vmatpush.bf16.msra.mxu0 %v641_v11  ;;  %655 = vmatpush.bf16.msra.mxu2 %v641_v11 }
  0x1d   : > { %662 = vmatpush.bf16.msra.mxu3 %v648_v10  ;;  %408 = vmatpush.bf16.msra.mxu1 %v648_v10 }
  0x20   : > { %379 = vmatpush.bf16.msra.mxu0 %v640_v13  ;;  %656 = vmatpush.bf16.msra.mxu2 %v640_v13 }
  0x21   : > { %663 = vmatpush.bf16.msra.mxu3 %v647_v12  ;;  %409 = vmatpush.bf16.msra.mxu1 %v647_v12 }
  0x24   : > { %380 = vmatpush.bf16.msra.mxu0 %v639_v15  ;;  %657 = vmatpush.bf16.msra.mxu2 %v639_v15 }
  0x25   : > { %664 = vmatpush.bf16.msra.mxu3 %v646_v14  ;;  %410 = vmatpush.bf16.msra.mxu1 %v646_v14 }
  0x28   : > { %624 = vmatmul.msk.bf16.vlgmr.msra.gmra.mxu3 %vm357_vm1, %v554_v20  ;;  %381 = vmatpush.bf16.msra.mxu0 %v638_v21 }
  0x29   : > { %623 = vmatmul.msk.bf16.vlgmr.msra.gmra.mxu1 %vm357_vm1, %v546_v24  ;;  %658 = vmatpush.bf16.msra.mxu2 %v638_v21 }
  0x2b   : > { %382 = vmatmul.bf16.vlgmr.msra.gmra.mxu0 %v542_v27 }
  0x2c   : > { %392 = vmatmul.bf16.vlgmr.msra.gmra.mxu2 %v558_v28 }
  0x38   : > { %625 = vmatmul.msk.bf16.gmra.mxu3 %vm357_vm1, %v562_v31 }
  0x3b   : > { %387 = vmatmul.bf16.gmra.mxu0 %v550_v36 }
  0x3c   : > { %397 = vmatmul.bf16.gmra.mxu2 %v566_v37 }
  0x48   : > { %626 = vmatmul.msk.bf16.gmra.mxu3 %vm357_vm1, %v570_v40 }
  0xa6   : > { %v412_v41 = vpop.f32.mrf.mxu1 }
  0xa8   : > { %v383_v42 = vpop.f32.mrf.mxu0 }
  0xa9   : > { %v413_v43 = vadd.f32 %v412_v41, %v383_v42 }
  0xab   : > { %v417_v45 = vpop.f32.mrf.mxu3  ;;  %v436_v46 = vmul.f32 %v673_v44, %v413_v43 }
  0xad   : > { %v448_v48 = vadd.f32 %v674_v47, %v436_v46 }
  0xae   : > { %v414_v49 = vpop.f32.mrf.mxu1 }
  0xaf   : > { %v456_v50 = vmax.f32 %v448_v48, 0.0  ;;  %v393_v55 = vpop.f32.mrf.mxu2 }
  0xb0   : > { %v385_v51 = vpop.f32.mrf.mxu0 }
  0xb1   : > { %465 = vst.msk [vmem:[%s799_s6] sm:$0xff] %vm464_vm2, %v456_v50  ;;  %v415_v52 = vadd.f32 %v414_v49, %v385_v51 }
  0xb3   : > { %v419_v53 = vpop.f32.mrf.mxu3  ;;  %v437_v54 = vmul.f32 %v673_v44, %v415_v52 }
  0xb5   : > { %v449_v56 = vadd.f32 %v674_v47, %v437_v54 }
  0xb7   : > { %v457_v57 = vmax.f32 %v449_v56, 0.0  ;;  %v395_v1 = vpop.f32.mrf.mxu2 }
  0xb8   : > { %v388_v58 = vpop.f32.mrf.mxu0 }
  0xb9   : > { %v418_v59 = vadd.f32 %v417_v45, %v388_v58  ;;  %466 = vst.msk [vmem:[%s799_s6 + $0x8] sm:$0xff] %vm464_vm2, %v457_v57 }
  0xbb   : > { %v422_v60 = vpop.f32.mrf.mxu3  ;;  %v438_v61 = vmul.f32 %v673_v44, %v418_v59 }
  0xbc   : > { %v423_v62 = vadd.f32 %v422_v60, %v393_v55 }
  0xbd   : > { %v450_v63 = vadd.f32 %v674_v47, %v438_v61 }
  0xbe   : > { %v440_v0 = vmul.f32 %v673_v44, %v423_v62 }
  0xbf   : > { %v458_v2 = vmax.f32 %v450_v63, 0.0  ;;  %v398_v14 = vpop.f32.mrf.mxu2 }
  0xc0   : > { %v452_v3 = vadd.f32 %v674_v47, %v440_v0  ;;  %v390_v4 = vpop.f32.mrf.mxu0 }
  0xc1   : > { %467 = vst.msk [vmem:[%s799_s6 + $0x10] sm:$0xff] %vm464_vm2, %v458_v2  ;;  %v420_v6 = vadd.f32 %v419_v53, %v390_v4 }
  0xc2   : > { %v460_v5 = vmax.f32 %v452_v3, 0.0 }
  0xc3   : > { %v424_v7 = vpop.f32.mrf.mxu3  ;;  %v439_v8 = vmul.f32 %v673_v44, %v420_v6 }
  0xc4   : > { %469 = vst.msk [vmem:[%s799_s6 + $0x20] sm:$0xff] %vm464_vm2, %v460_v5  ;;  %v425_v9 = vadd.f32 %v424_v7, %v395_v1 }
  0xc5   : > { %v451_v10 = vadd.f32 %v674_v47, %v439_v8 }
  0xc6   : > { %v441_v11 = vmul.f32 %v673_v44, %v425_v9 }
  0xc7   : > { %v459_v12 = vmax.f32 %v451_v10, 0.0  ;;  %v400_v21 = vpop.f32.mrf.mxu2 }
  0xc8   : > { %v453_v13 = vadd.f32 %v674_v47, %v441_v11 }
  0xc9   : > { %468 = vst.msk [vmem:[%s799_s6 + $0x18] sm:$0xff] %vm464_vm2, %v459_v12 }
  0xca   : > { %v461_v15 = vmax.f32 %v453_v13, 0.0 }
  0xcb   : > { %v427_v16 = vpop.f32.mrf.mxu3 }
  0xcc   : > { %470 = vst.msk [vmem:[%s799_s6 + $0x28] sm:$0xff] %vm464_vm2, %v461_v15  ;;  %v428_v17 = vadd.f32 %v427_v16, %v398_v14 }
  0xce   : > { %v442_v18 = vmul.f32 %v673_v44, %v428_v17 }
  0xd0   : > { %v454_v19 = vadd.f32 %v674_v47, %v442_v18 }
  0xd2   : > { %v462_v20 = vmax.f32 %v454_v19, 0.0 }
  0xd3   : > { %v429_v22 = vpop.f32.mrf.mxu3 }
  0xd4   : > { %471 = vst.msk [vmem:[%s799_s6 + $0x30] sm:$0xff] %vm464_vm2, %v462_v20  ;;  %v430_v23 = vadd.f32 %v429_v22, %v400_v21 }
  0xd6   : > { %v443_v24 = vmul.f32 %v673_v44, %v430_v23 }
  0xd8   : > { %v455_v25 = vadd.f32 %v674_v47, %v443_v24 }
  0xda   : > { %v463_v26 = vmax.f32 %v455_v25, 0.0 }
  0xdc   : > { %472 = vst.msk [vmem:[%s799_s6 + $0x38] sm:$0xff] %vm464_vm2, %v463_v26 }
  0xdd PF: > { %s14_s15 = sadd.s32 1, %s681_s15  }
  0xde   : > { %p11_p4 = scmp.ge.s32.totalorder %s14_s15, 4  }
  0xe0   :  { %13 = sbr.rel (!%p11_p4) target bundleno = 1 (0x1), region = 66 }

// kernel: rec3_forward.23
= control target key start
LH: loop header
LB: loop body
LE: loop exit
PB: predicated region body
PF: predicated region fallthrough
CT: control target
= control target key end

     0   :  { %s1006_s15 = smov 0   ;;  %s1190_s0 = inlined_call_operand.vmem [shape: bf16[128,432], index: 0, kind: input, shape index: {}]   ;;  %s1191_s1 = inlined_call_operand.vmem [shape: bf16[432,16], index: 1, kind: input, shape index: {}]   ;;  %s1192_s2 = inlined_call_operand.vmem [shape: f32[1,16], index: 2, kind: input, shape index: {}]   ;;  %s1193_s3 = inlined_call_operand.vmem [shape: f32[1,16], index: 3, kind: input, shape index: {}]   ;;  %s1194_s4 = inlined_call_operand.vmem [shape: f32[128,16], index: 4, kind: output, shape index: {}]  }
   0x1 LB: > { %s731_s16 = sadd.s32 4294967295, %s979_s15   ;;  %p735_p0 = scmp.ge.s32.totalorder %s979_s15, 1  ;;  %s979_s15 = sphi %s1006_s15, %s14_s15  }
   0x2   : > { %p164_p1 = scmp.lt.s32.totalorder %s979_s15, 3 }
   0x4   : > { %p165_p2 = pnand %p735_p0, %p164_p1 }
   0x5   : > { %s736_s23 = sshll.u32 (!%p165_p2), %s731_s16, 3 }
   0x6   : > { %168 = sbr.rel (%p165_p2) target bundleno = 242 (0xf2), region = 36  ;;  %p192_p3 = scmp.lt.s32.totalorder (!%p165_p2), %s736_s23, 15 }
   0xb   : > { %v943_v0 = vld [vmem:[%s1191_s1 + $0x38] sm:$0xff]  ;;  %v942_v3 = vld [vmem:[%s1191_s1 + $0x30] sm:$0xff]  ;;  %s1196_s23 = smov (!%p192_p3, %s736_s23), 15  ;;  %v941_v7 = vld [vmem:[%s1191_s1 + $0x28] sm:$0xff]  ;;  %vm513_vm0 = vcmask 392192   ;;  %vm666_vm1 = vcmask 130048  }
   0xc   : > { %v951_v1 = vld [vmem:[%s1191_s1 + $0x78] sm:$0xff]  ;;  %526 = vmatpush.bf16.msra.mxu0 %v943_v0  ;;  %v950_v4 = vld [vmem:[%s1191_s1 + $0x70] sm:$0xff]  ;;  %v949_v8 = vld [vmem:[%s1191_s1 + $0x68] sm:$0xff]  ;;  %s919_s10 = sshll.u32 %s1196_s23, 4 }
   0xd   : > { %v959_v2 = vld [vmem:[%s1191_s1 + $0xb8] sm:$0xff]  ;;  %555 = vmatpush.bf16.msra.mxu1 %v951_v1  ;;  %v958_v5 = vld [vmem:[%s1191_s1 + $0xb0] sm:$0xff]  ;;  %v957_v9 = vld [vmem:[%s1191_s1 + $0xa8] sm:$0xff]  ;;  %s1053_s18 = scalar_lea.vmem %s1190_s0, %s919_s10 }
   0xe   : > { %584 = vmatpush.bf16.msra.mxu2 %v959_v2  ;;  %v962_v6 = vld [vmem:[%s1191_s1 + $0xd0] sm:$0xff]  ;;  %v961_v10 = vld [vmem:[%s1191_s1 + $0xc8] sm:$0xff]  ;;  %v940_v11 = vld [vmem:[%s1191_s1 + $0x20] sm:$0xff] }
   0xf   : > { %618 = vmatpush.bf16.msra.mxu3 %v962_v6  ;;  %v948_v12 = vld [vmem:[%s1191_s1 + $0x60] sm:$0xff]  ;;  %v921_v15 = vld [vmem:[%s1053_s18 + $0xc] sm:$0xf]  ;;  %v753_v16 = vld [vmem:[%s1053_s18 + $0x18] sm:$0xf0] }
  0x10   : > { %527 = vmatpush.bf16.msra.mxu0 %v942_v3  ;;  %v956_v13 = vld [vmem:[%s1191_s1 + $0xa0] sm:$0xff]  ;;  %v939_v17 = vld [vmem:[%s1191_s1 + $0x18] sm:$0xff]  ;;  %v756_v20 = vor.u32 %v921_v15, %v753_v16  ;;  %v938_v21 = vld [vmem:[%s1191_s1 + $0x10] sm:$0xff] }
  0x11   : > { %556 = vmatpush.bf16.msra.mxu1 %v950_v4  ;;  %v960_v14 = vld [vmem:[%s1191_s1 + $0xc0] sm:$0xff]  ;;  %v947_v18 = vld [vmem:[%s1191_s1 + $0x58] sm:$0xff]  ;;  %v946_v22 = vld [vmem:[%s1191_s1 + $0x50] sm:$0xff] }
  0x12   : > { %585 = vmatpush.bf16.msra.mxu2 %v958_v5  ;;  %v955_v19 = vld [vmem:[%s1191_s1 + $0x98] sm:$0xff]  ;;  %v954_v23 = vld [vmem:[%s1191_s1 + $0x90] sm:$0xff]  ;;  %v937_v24 = vld [vmem:[%s1191_s1 + $0x8] sm:$0xff] }
  0x13   : > { %619 = vmatpush.bf16.msra.mxu3 %v961_v10  ;;  %v945_v25 = vld [vmem:[%s1191_s1 + $0x48] sm:$0xff]  ;;  %v936_v27 = vld [vmem:[%s1191_s1] sm:$0xff]  ;;  %v922_v30 = vld [vmem:[%s1053_s18 + $0xc] sm:$0xf0] }
  0x14   : > { %528 = vmatpush.bf16.msra.mxu0 %v941_v7  ;;  %v953_v26 = vld [vmem:[%s1191_s1 + $0x88] sm:$0xff]  ;;  %v944_v28 = vld [vmem:[%s1191_s1 + $0x40] sm:$0xff]  ;;  %v745_v32 = vld [vmem:[%s1053_s18 + $0x10] sm:$0xf0] }
  0x15   : > { %557 = vmatpush.bf16.msra.mxu1 %v949_v8  ;;  %v743_v29 = vld [vmem:[%s1053_s18] sm:$0xf]  ;;  %v920_v31 = vld [vmem:[%s1053_s18 + $0x4] sm:$0xf]  ;;  %v751_v34 = vld [vmem:[%s1053_s18 + $0x8] sm:$0xf] }
  0x16   : > { %586 = vmatpush.bf16.msra.mxu2 %v957_v9  ;;  %v952_v33 = vld [vmem:[%s1191_s1 + $0x80] sm:$0xff]  ;;  %v923_v35 = vld [vmem:[%s1053_s18 + $0x14] sm:$0xf0]  ;;  %v925_v36 = vld [vmem:[%s1053_s18 + $0x2c] sm:$0xf]  ;;  %v744_v38 = vor.u32 %v922_v30, %v743_v29  ;;  %v748_v39 = vor.u32 %v920_v31, %v745_v32 }
  0x17   : > { %620 = vmatpush.bf16.msra.mxu3 %v960_v14  ;;  %v769_v37 = vld [vmem:[%s1053_s18 + $0x38] sm:$0xf0]  ;;  %v752_v40 = vor.u32 %v923_v35, %v751_v34  ;;  %v759_v42 = vld [vmem:[%s1053_s18 + $0x20] sm:$0xf]  ;;  %v926_v43 = vld [vmem:[%s1053_s18 + $0x2c] sm:$0xf0] }
  0x18   : > { %529 = vmatpush.bf16.msra.mxu0 %v940_v11  ;;  %v772_v41 = vor.u32 %v925_v36, %v769_v37  ;;  %v924_v44 = vld [vmem:[%s1053_s18 + $0x24] sm:$0xf]  ;;  %v761_v45 = vld [vmem:[%s1053_s18 + $0x30] sm:$0xf0]  ;;  %v767_v46 = vld [vmem:[%s1053_s18 + $0x28] sm:$0xf]  ;;  %v760_v50 = vor.u32 %v926_v43, %v759_v42 }
  0x19   : > { %558 = vmatpush.bf16.msra.mxu1 %v948_v12  ;;  %v927_v47 = vld [vmem:[%s1053_s18 + $0x34] sm:$0xf0]  ;;  %v929_v48 = vld [vmem:[%s1053_s18 + $0x4c] sm:$0xf]  ;;  %v785_v49 = vld [vmem:[%s1053_s18 + $0x58] sm:$0xf0]  ;;  %v764_v51 = vor.u32 %v924_v44, %v761_v45 }
  0x1a   : > { %587 = vmatpush.bf16.msra.mxu2 %v956_v13  ;;  %913 = vmatmul.msk.bf16.vlgmr.msra.gmra.mxu3 %vm513_vm0, %v756_v20  ;;  %v768_v52 = vor.u32 %v927_v47, %v767_v46  ;;  %v788_v53 = vor.u32 %v929_v48, %v785_v49  ;;  %v775_v54 = vld [vmem:[%s1053_s18 + $0x40] sm:$0xf]  ;;  %v930_v55 = vld [vmem:[%s1053_s18 + $0x4c] sm:$0xf0]  ;;  %v928_v56 = vld [vmem:[%s1053_s18 + $0x44] sm:$0xf] }
  0x1b   : > { %v777_v57 = vld [vmem:[%s1053_s18 + $0x50] sm:$0xf0]  ;;  %v783_v58 = vld [vmem:[%s1053_s18 + $0x48] sm:$0xf]  ;;  %v931_v59 = vld [vmem:[%s1053_s18 + $0x54] sm:$0xf0]  ;;  %v776_v62 = vor.u32 %v930_v55, %v775_v54 }
  0x1c   : > { %530 = vmatpush.bf16.msra.mxu0 %v939_v17  ;;  %v933_v60 = vld [vmem:[%s1053_s18 + $0x6c] sm:$0xf]  ;;  %v801_v61 = vld [vmem:[%s1053_s18 + $0x78] sm:$0xf0]  ;;  %v780_v63 = vor.u32 %v928_v56, %v777_v57  ;;  %v784_v0 = vor.u32 %v931_v59, %v783_v58  ;;  %v791_v2 = vld [vmem:[%s1053_s18 + $0x60] sm:$0xf] }
  0x1d   : > { %559 = vmatpush.bf16.msra.mxu1 %v947_v18  ;;  %v804_v1 = vor.u32 %v933_v60, %v801_v61  ;;  %v934_v3 = vld [vmem:[%s1053_s18 + $0x6c] sm:$0xf0]  ;;  %v932_v4 = vld [vmem:[%s1053_s18 + $0x64] sm:$0xf]  ;;  %v793_v5 = vld [vmem:[%s1053_s18 + $0x70] sm:$0xf0] }
  0x1e   : > { %588 = vmatpush.bf16.msra.mxu2 %v955_v19  ;;  %v799_v6 = vld [vmem:[%s1053_s18 + $0x68] sm:$0xf]  ;;  %v935_v7 = vld [vmem:[%s1053_s18 + $0x74] sm:$0xf0]  ;;  %v792_v8 = vor.u32 %v934_v3, %v791_v2  ;;  %v796_v9 = vor.u32 %v932_v4, %v793_v5  ;;  %v1142_v18 = vld [vmem:[%s1192_s2] ss:$0 sm:$0xff] }
  0x1f   : > { %v800_v10 = vor.u32 %v935_v7, %v799_v6  ;;  %s740_s18 = sshll.u32 %s1196_s23, 3 }
  0x20   : > { %531 = vmatpush.bf16.msra.mxu0 %v938_v21  ;;  %s1154_s9 = scalar_lea.vmem %s1194_s4, %s740_s18 }
  0x21   : > { %560 = vmatpush.bf16.msra.mxu1 %v946_v22  ;;  %v1148_v22 = vld [vmem:[%s1193_s3] ss:$0 sm:$0xff] }
  0x22   : > { %589 = vmatpush.bf16.msra.mxu2 %v954_v23 }
  0x24   : > { %532 = vmatpush.bf16.msra.mxu0 %v937_v24 }
  0x25   : > { %561 = vmatpush.bf16.msra.mxu1 %v945_v25 }
  0x26   : > { %590 = vmatpush.bf16.msra.mxu2 %v953_v26 }
  0x28   : > { %533 = vmatpush.bf16.msra.mxu0 %v936_v27 }
  0x29   : > { %562 = vmatpush.bf16.msra.mxu1 %v944_v28 }
  0x2a   : > { %591 = vmatpush.bf16.msra.mxu2 %v952_v33  ;;  %914 = vmatmul.msk.bf16.gmra.mxu3 %vm513_vm0, %v772_v41 }
  0x2b   : > { %534 = vmatmul.bf16.vlgmr.msra.gmra.mxu0 %v744_v38 }
  0x2c   : > { %563 = vmatmul.bf16.vlgmr.msra.gmra.mxu1 %v748_v39 }
  0x2d   : > { %592 = vmatmul.bf16.vlgmr.msra.gmra.mxu2 %v752_v40 }
  0x3a   : > { %915 = vmatmul.msk.bf16.gmra.mxu3 %vm513_vm0, %v788_v53 }
  0x3b   : > { %539 = vmatmul.bf16.gmra.mxu0 %v760_v50 }
  0x3c   : > { %568 = vmatmul.bf16.gmra.mxu1 %v764_v51 }
  0x3d   : > { %597 = vmatmul.bf16.gmra.mxu2 %v768_v52 }
  0x4a   : > { %916 = vmatmul.msk.bf16.gmra.mxu3 %vm513_vm0, %v804_v1 }
  0x4b   : > { %544 = vmatmul.bf16.gmra.mxu0 %v776_v62 }
  0x4c   : > { %573 = vmatmul.bf16.gmra.mxu1 %v780_v63 }
  0x4d   : > { %602 = vmatmul.bf16.gmra.mxu2 %v784_v0 }
  0x5b   : > { %549 = vmatmul.bf16.gmra.mxu0 %v792_v8 }
  0x5c   : > { %578 = vmatmul.bf16.gmra.mxu1 %v796_v9 }
  0x5d   : > { %607 = vmatmul.bf16.gmra.mxu2 %v800_v10 }
  0x9d   : > { %v622_v11 = vpop.f32.mrf.mxu3 }
  0xa5   : > { %v624_v15 = vpop.f32.mrf.mxu3 }
  0xa8   : > { %v535_v12 = vpop.f32.mrf.mxu0 }
  0xa9   : > { %v564_v13 = vpop.f32.mrf.mxu1 }
  0xaa   : > { %v565_v14 = vadd.f32 %v564_v13, %v535_v12 }
  0xad   : > { %v627_v27 = vpop.f32.mrf.mxu3 }
  0xb0   : > { %v593_v16 = vpop.f32.mrf.mxu2  ;;  %v537_v19 = vpop.f32.mrf.mxu0 }
  0xb1   : > { %v594_v17 = vadd.f32 %v593_v16, %v565_v14  ;;  %v566_v20 = vpop.f32.mrf.mxu1 }
  0xb2   : > { %v567_v25 = vadd.f32 %v566_v20, %v537_v19 }
  0xb3   : > { %v623_v21 = vadd.f32 %v622_v11, %v594_v17 }
  0xb5   : > { %v646_v23 = vmul.f32 %v1142_v18, %v623_v21  ;;  %v629_v39 = vpop.f32.mrf.mxu3 }
  0xb7   : > { %v658_v24 = vadd.f32 %v1148_v22, %v646_v23 }
  0xb8   : > { %v595_v26 = vpop.f32.mrf.mxu2  ;;  %v540_v29 = vpop.f32.mrf.mxu0 }
  0xb9   : > { %667 = vst.msk [vmem:[%s1154_s9] sm:$0xff] %vm666_vm1, %v658_v24  ;;  %v596_v28 = vadd.f32 %v595_v26, %v567_v25  ;;  %v569_v30 = vpop.f32.mrf.mxu1 }
  0xba   : > { %v570_v33 = vadd.f32 %v569_v30, %v540_v29 }
  0xbb   : > { %v625_v31 = vadd.f32 %v624_v15, %v596_v28 }
  0xbd   : > { %v647_v32 = vmul.f32 %v1142_v18, %v625_v31  ;;  %v632_v49 = vpop.f32.mrf.mxu3 }
  0xbf   : > { %v659_v34 = vadd.f32 %v1148_v22, %v647_v32 }
  0xc0   : > { %v598_v35 = vpop.f32.mrf.mxu2  ;;  %v542_v37 = vpop.f32.mrf.mxu0 }
  0xc1   : > { %668 = vst.msk [vmem:[%s1154_s9 + $0x8] sm:$0xff] %vm666_vm1, %v659_v34  ;;  %v599_v36 = vadd.f32 %v598_v35, %v570_v33  ;;  %v571_v38 = vpop.f32.mrf.mxu1 }
  0xc2   : > { %v572_v43 = vadd.f32 %v571_v38, %v542_v37 }
  0xc3   : > { %v628_v40 = vadd.f32 %v627_v27, %v599_v36 }
  0xc5   : > { %v648_v41 = vmul.f32 %v1142_v18, %v628_v40  ;;  %v634_v59 = vpop.f32.mrf.mxu3 }
  0xc7   : > { %v660_v42 = vadd.f32 %v1148_v22, %v648_v41 }
  0xc8   : > { %v600_v44 = vpop.f32.mrf.mxu2  ;;  %v545_v46 = vpop.f32.mrf.mxu0 }
  0xc9   : > { %669 = vst.msk [vmem:[%s1154_s9 + $0x10] sm:$0xff] %vm666_vm1, %v660_v42  ;;  %v601_v45 = vadd.f32 %v600_v44, %v572_v43  ;;  %v574_v47 = vpop.f32.mrf.mxu1 }
  0xca   : > { %v575_v51 = vadd.f32 %v574_v47, %v545_v46 }
  0xcb   : > { %v630_v48 = vadd.f32 %v629_v39, %v601_v45 }
  0xcd   : > { %v649_v50 = vmul.f32 %v1142_v18, %v630_v48  ;;  %v637_v6 = vpop.f32.mrf.mxu3 }
  0xcf   : > { %v661_v52 = vadd.f32 %v1148_v22, %v649_v50 }
  0xd0   : > { %v603_v53 = vpop.f32.mrf.mxu2  ;;  %v547_v55 = vpop.f32.mrf.mxu0 }
  0xd1   : > { %670 = vst.msk [vmem:[%s1154_s9 + $0x18] sm:$0xff] %vm666_vm1, %v661_v52  ;;  %v604_v54 = vadd.f32 %v603_v53, %v575_v51  ;;  %v576_v56 = vpop.f32.mrf.mxu1 }
  0xd2   : > { %v577_v61 = vadd.f32 %v576_v56, %v547_v55 }
  0xd3   : > { %v633_v57 = vadd.f32 %v632_v49, %v604_v54 }
  0xd5   : > { %v650_v58 = vmul.f32 %v1142_v18, %v633_v57  ;;  %v639_v17 = vpop.f32.mrf.mxu3 }
  0xd7   : > { %v662_v60 = vadd.f32 %v1148_v22, %v650_v58 }
  0xd8   : > { %v605_v62 = vpop.f32.mrf.mxu2  ;;  %v550_v0 = vpop.f32.mrf.mxu0 }
  0xd9   : > { %671 = vst.msk [vmem:[%s1154_s9 + $0x20] sm:$0xff] %vm666_vm1, %v662_v60  ;;  %v606_v63 = vadd.f32 %v605_v62, %v577_v61  ;;  %v579_v1 = vpop.f32.mrf.mxu1 }
  0xda   : > { %v580_v4 = vadd.f32 %v579_v1, %v550_v0 }
  0xdb   : > { %v635_v2 = vadd.f32 %v634_v59, %v606_v63 }
  0xdd   : > { %v651_v3 = vmul.f32 %v1142_v18, %v635_v2 }
  0xdf   : > { %v663_v5 = vadd.f32 %v1148_v22, %v651_v3 }
  0xe0   : > { %v608_v7 = vpop.f32.mrf.mxu2  ;;  %v552_v10 = vpop.f32.mrf.mxu0 }
  0xe1   : > { %672 = vst.msk [vmem:[%s1154_s9 + $0x28] sm:$0xff] %vm666_vm1, %v663_v5  ;;  %v609_v8 = vadd.f32 %v608_v7, %v580_v4  ;;  %v581_v11 = vpop.f32.mrf.mxu1 }
  0xe2   : > { %v582_v14 = vadd.f32 %v581_v11, %v552_v10 }
  0xe3   : > { %v638_v9 = vadd.f32 %v637_v6, %v609_v8 }
  0xe5   : > { %v652_v12 = vmul.f32 %v1142_v18, %v638_v9 }
  0xe7   : > { %v664_v13 = vadd.f32 %v1148_v22, %v652_v12 }
  0xe8   : > { %v610_v15 = vpop.f32.mrf.mxu2 }
  0xe9   : > { %673 = vst.msk [vmem:[%s1154_s9 + $0x30] sm:$0xff] %vm666_vm1, %v664_v13  ;;  %v611_v16 = vadd.f32 %v610_v15, %v582_v14 }
  0xeb   : > { %v640_v19 = vadd.f32 %v639_v17, %v611_v16 }
  0xed   : > { %v653_v20 = vmul.f32 %v1142_v18, %v640_v19 }
  0xef   : > { %v665_v21 = vadd.f32 %v1148_v22, %v653_v20 }
  0xf1   : > { %674 = vst.msk [vmem:[%s1154_s9 + $0x38] sm:$0xff] %vm666_vm1, %v665_v21 }
  0xf2 PF: > { %s14_s15 = sadd.s32 1, %s979_s15  }
  0xf3   : > { %p11_p4 = scmp.ge.s32.totalorder %s14_s15, 4  }
  0xf5   :  { %13 = sbr.rel (!%p11_p4) target bundleno = 1 (0x1), region = 66 }

// kernel: rec3_forward.26
= control target key start
LH: loop header
LB: loop body
LE: loop exit
PB: predicated region body
PF: predicated region fallthrough
CT: control target
= control target key end

     0   :  { %s1014_s15 = smov 0   ;;  %s1198_s0 = inlined_call_operand.vmem [shape: bf16[128,432], index: 0, kind: input, shape index: {}]   ;;  %s1199_s1 = inlined_call_operand.vmem [shape: bf16[432,16], index: 1, kind: input, shape index: {}]   ;;  %s1200_s2 = inlined_call_operand.vmem [shape: f32[1,16], index: 2, kind: input, shape index: {}]   ;;  %s1201_s3 = inlined_call_operand.vmem [shape: f32[1,16], index: 3, kind: input, shape index: {}]   ;;  %s1202_s4 = inlined_call_operand.vmem [shape: f32[128,16], index: 4, kind: output, shape index: {}]  }
   0x1 LB: > { %s739_s16 = sadd.s32 4294967295, %s987_s15   ;;  %p743_p0 = scmp.ge.s32.totalorder %s987_s15, 1  ;;  %s987_s15 = sphi %s1014_s15, %s14_s15  }
   0x2   : > { %p164_p1 = scmp.lt.s32.totalorder %s987_s15, 3 }
   0x4   : > { %p165_p2 = pnand %p743_p0, %p164_p1 }
   0x5   : > { %s744_s23 = sshll.u32 (!%p165_p2), %s739_s16, 3 }
   0x6   : > { %168 = sbr.rel (%p165_p2) target bundleno = 244 (0xf4), region = 36  ;;  %p192_p3 = scmp.lt.s32.totalorder (!%p165_p2), %s744_s23, 15 }
   0xb   : > { %v951_v0 = vld [vmem:[%s1199_s1 + $0x38] sm:$0xff]  ;;  %v950_v3 = vld [vmem:[%s1199_s1 + $0x30] sm:$0xff]  ;;  %s1204_s23 = smov (!%p192_p3, %s744_s23), 15  ;;  %v949_v7 = vld [vmem:[%s1199_s1 + $0x28] sm:$0xff]  ;;  %vm513_vm0 = vcmask 392192   ;;  %vm674_vm1 = vcmask 130048  }
   0xc   : > { %v959_v1 = vld [vmem:[%s1199_s1 + $0x78] sm:$0xff]  ;;  %526 = vmatpush.bf16.msra.mxu0 %v951_v0  ;;  %v958_v4 = vld [vmem:[%s1199_s1 + $0x70] sm:$0xff]  ;;  %v957_v8 = vld [vmem:[%s1199_s1 + $0x68] sm:$0xff]  ;;  %s927_s10 = sshll.u32 %s1204_s23, 4  ;;  %s748_s6 = sshll.u32 %s1204_s23, 3 }
   0xd   : > { %v967_v2 = vld [vmem:[%s1199_s1 + $0xb8] sm:$0xff]  ;;  %555 = vmatpush.bf16.msra.mxu1 %v959_v1  ;;  %v966_v5 = vld [vmem:[%s1199_s1 + $0xb0] sm:$0xff]  ;;  %v965_v9 = vld [vmem:[%s1199_s1 + $0xa8] sm:$0xff]  ;;  %s1061_s18 = scalar_lea.vmem %s1198_s0, %s927_s10  ;;  %s1163_s9 = scalar_lea.vmem %s1202_s4, %s748_s6 }
   0xe   : > { %584 = vmatpush.bf16.msra.mxu2 %v967_v2  ;;  %v970_v6 = vld [vmem:[%s1199_s1 + $0xd0] sm:$0xff]  ;;  %v969_v10 = vld [vmem:[%s1199_s1 + $0xc8] sm:$0xff]  ;;  %v948_v11 = vld [vmem:[%s1199_s1 + $0x20] sm:$0xff] }
   0xf   : > { %618 = vmatpush.bf16.msra.mxu3 %v970_v6  ;;  %v956_v12 = vld [vmem:[%s1199_s1 + $0x60] sm:$0xff]  ;;  %v929_v15 = vld [vmem:[%s1061_s18 + $0xc] sm:$0xf]  ;;  %v761_v16 = vld [vmem:[%s1061_s18 + $0x18] sm:$0xf0] }
  0x10   : > { %527 = vmatpush.bf16.msra.mxu0 %v950_v3  ;;  %v964_v13 = vld [vmem:[%s1199_s1 + $0xa0] sm:$0xff]  ;;  %v947_v17 = vld [vmem:[%s1199_s1 + $0x18] sm:$0xff]  ;;  %v764_v20 = vor.u32 %v929_v15, %v761_v16  ;;  %v946_v21 = vld [vmem:[%s1199_s1 + $0x10] sm:$0xff] }
  0x11   : > { %556 = vmatpush.bf16.msra.mxu1 %v958_v4  ;;  %v968_v14 = vld [vmem:[%s1199_s1 + $0xc0] sm:$0xff]  ;;  %v955_v18 = vld [vmem:[%s1199_s1 + $0x58] sm:$0xff]  ;;  %v954_v22 = vld [vmem:[%s1199_s1 + $0x50] sm:$0xff] }
  0x12   : > { %585 = vmatpush.bf16.msra.mxu2 %v966_v5  ;;  %v963_v19 = vld [vmem:[%s1199_s1 + $0x98] sm:$0xff]  ;;  %v962_v23 = vld [vmem:[%s1199_s1 + $0x90] sm:$0xff]  ;;  %v945_v24 = vld [vmem:[%s1199_s1 + $0x8] sm:$0xff] }
  0x13   : > { %619 = vmatpush.bf16.msra.mxu3 %v969_v10  ;;  %v953_v25 = vld [vmem:[%s1199_s1 + $0x48] sm:$0xff]  ;;  %v944_v27 = vld [vmem:[%s1199_s1] sm:$0xff]  ;;  %v930_v30 = vld [vmem:[%s1061_s18 + $0xc] sm:$0xf0] }
  0x14   : > { %528 = vmatpush.bf16.msra.mxu0 %v949_v7  ;;  %v961_v26 = vld [vmem:[%s1199_s1 + $0x88] sm:$0xff]  ;;  %v952_v28 = vld [vmem:[%s1199_s1 + $0x40] sm:$0xff]  ;;  %v753_v32 = vld [vmem:[%s1061_s18 + $0x10] sm:$0xf0] }
  0x15   : > { %557 = vmatpush.bf16.msra.mxu1 %v957_v8  ;;  %v751_v29 = vld [vmem:[%s1061_s18] sm:$0xf]  ;;  %v928_v31 = vld [vmem:[%s1061_s18 + $0x4] sm:$0xf]  ;;  %v759_v34 = vld [vmem:[%s1061_s18 + $0x8] sm:$0xf] }
  0x16   : > { %586 = vmatpush.bf16.msra.mxu2 %v965_v9  ;;  %v960_v33 = vld [vmem:[%s1199_s1 + $0x80] sm:$0xff]  ;;  %v931_v35 = vld [vmem:[%s1061_s18 + $0x14] sm:$0xf0]  ;;  %v933_v36 = vld [vmem:[%s1061_s18 + $0x2c] sm:$0xf]  ;;  %v752_v38 = vor.u32 %v930_v30, %v751_v29  ;;  %v756_v39 = vor.u32 %v928_v31, %v753_v32 }
  0x17   : > { %620 = vmatpush.bf16.msra.mxu3 %v968_v14  ;;  %v777_v37 = vld [vmem:[%s1061_s18 + $0x38] sm:$0xf0]  ;;  %v760_v40 = vor.u32 %v931_v35, %v759_v34  ;;  %v767_v42 = vld [vmem:[%s1061_s18 + $0x20] sm:$0xf]  ;;  %v934_v43 = vld [vmem:[%s1061_s18 + $0x2c] sm:$0xf0] }
  0x18   : > { %529 = vmatpush.bf16.msra.mxu0 %v948_v11  ;;  %v780_v41 = vor.u32 %v933_v36, %v777_v37  ;;  %v932_v44 = vld [vmem:[%s1061_s18 + $0x24] sm:$0xf]  ;;  %v769_v45 = vld [vmem:[%s1061_s18 + $0x30] sm:$0xf0]  ;;  %v775_v46 = vld [vmem:[%s1061_s18 + $0x28] sm:$0xf]  ;;  %v768_v50 = vor.u32 %v934_v43, %v767_v42 }
  0x19   : > { %558 = vmatpush.bf16.msra.mxu1 %v956_v12  ;;  %v935_v47 = vld [vmem:[%s1061_s18 + $0x34] sm:$0xf0]  ;;  %v937_v48 = vld [vmem:[%s1061_s18 + $0x4c] sm:$0xf]  ;;  %v793_v49 = vld [vmem:[%s1061_s18 + $0x58] sm:$0xf0]  ;;  %v772_v51 = vor.u32 %v932_v44, %v769_v45 }
  0x1a   : > { %587 = vmatpush.bf16.msra.mxu2 %v964_v13  ;;  %921 = vmatmul.msk.bf16.vlgmr.msra.gmra.mxu3 %vm513_vm0, %v764_v20  ;;  %v776_v52 = vor.u32 %v935_v47, %v775_v46  ;;  %v796_v53 = vor.u32 %v937_v48, %v793_v49  ;;  %v783_v54 = vld [vmem:[%s1061_s18 + $0x40] sm:$0xf]  ;;  %v938_v55 = vld [vmem:[%s1061_s18 + $0x4c] sm:$0xf0]  ;;  %v936_v56 = vld [vmem:[%s1061_s18 + $0x44] sm:$0xf] }
  0x1b   : > { %v785_v57 = vld [vmem:[%s1061_s18 + $0x50] sm:$0xf0]  ;;  %v791_v58 = vld [vmem:[%s1061_s18 + $0x48] sm:$0xf]  ;;  %v939_v59 = vld [vmem:[%s1061_s18 + $0x54] sm:$0xf0]  ;;  %v784_v62 = vor.u32 %v938_v55, %v783_v54 }
  0x1c   : > { %530 = vmatpush.bf16.msra.mxu0 %v947_v17  ;;  %v941_v60 = vld [vmem:[%s1061_s18 + $0x6c] sm:$0xf]  ;;  %v809_v61 = vld [vmem:[%s1061_s18 + $0x78] sm:$0xf0]  ;;  %v788_v63 = vor.u32 %v936_v56, %v785_v57  ;;  %v792_v0 = vor.u32 %v939_v59, %v791_v58  ;;  %v799_v2 = vld [vmem:[%s1061_s18 + $0x60] sm:$0xf] }
  0x1d   : > { %559 = vmatpush.bf16.msra.mxu1 %v955_v18  ;;  %v812_v1 = vor.u32 %v941_v60, %v809_v61  ;;  %v942_v3 = vld [vmem:[%s1061_s18 + $0x6c] sm:$0xf0]  ;;  %v940_v4 = vld [vmem:[%s1061_s18 + $0x64] sm:$0xf]  ;;  %v801_v5 = vld [vmem:[%s1061_s18 + $0x70] sm:$0xf0] }
  0x1e   : > { %588 = vmatpush.bf16.msra.mxu2 %v963_v19  ;;  %v807_v6 = vld [vmem:[%s1061_s18 + $0x68] sm:$0xf]  ;;  %v943_v7 = vld [vmem:[%s1061_s18 + $0x74] sm:$0xf0]  ;;  %v800_v8 = vor.u32 %v942_v3, %v799_v2  ;;  %v804_v9 = vor.u32 %v940_v4, %v801_v5  ;;  %v1150_v18 = vld [vmem:[%s1200_s2] ss:$0 sm:$0xff] }
  0x1f   : > { %v808_v10 = vor.u32 %v943_v7, %v807_v6 }
  0x20   : > { %531 = vmatpush.bf16.msra.mxu0 %v946_v21 }
  0x21   : > { %560 = vmatpush.bf16.msra.mxu1 %v954_v22  ;;  %v1155_v22 = vld [vmem:[%s1201_s3] ss:$0 sm:$0xff] }
  0x22   : > { %589 = vmatpush.bf16.msra.mxu2 %v962_v23 }
  0x24   : > { %532 = vmatpush.bf16.msra.mxu0 %v945_v24 }
  0x25   : > { %561 = vmatpush.bf16.msra.mxu1 %v953_v25 }
  0x26   : > { %590 = vmatpush.bf16.msra.mxu2 %v961_v26 }
  0x28   : > { %533 = vmatpush.bf16.msra.mxu0 %v944_v27 }
  0x29   : > { %562 = vmatpush.bf16.msra.mxu1 %v952_v28 }
  0x2a   : > { %591 = vmatpush.bf16.msra.mxu2 %v960_v33  ;;  %922 = vmatmul.msk.bf16.gmra.mxu3 %vm513_vm0, %v780_v41 }
  0x2b   : > { %534 = vmatmul.bf16.vlgmr.msra.gmra.mxu0 %v752_v38 }
  0x2c   : > { %563 = vmatmul.bf16.vlgmr.msra.gmra.mxu1 %v756_v39 }
  0x2d   : > { %592 = vmatmul.bf16.vlgmr.msra.gmra.mxu2 %v760_v40 }
  0x3a   : > { %923 = vmatmul.msk.bf16.gmra.mxu3 %vm513_vm0, %v796_v53 }
  0x3b   : > { %539 = vmatmul.bf16.gmra.mxu0 %v768_v50 }
  0x3c   : > { %568 = vmatmul.bf16.gmra.mxu1 %v772_v51 }
  0x3d   : > { %597 = vmatmul.bf16.gmra.mxu2 %v776_v52 }
  0x4a   : > { %924 = vmatmul.msk.bf16.gmra.mxu3 %vm513_vm0, %v812_v1 }
  0x4b   : > { %544 = vmatmul.bf16.gmra.mxu0 %v784_v62 }
  0x4c   : > { %573 = vmatmul.bf16.gmra.mxu1 %v788_v63 }
  0x4d   : > { %602 = vmatmul.bf16.gmra.mxu2 %v792_v0 }
  0x5b   : > { %549 = vmatmul.bf16.gmra.mxu0 %v800_v8 }
  0x5c   : > { %578 = vmatmul.bf16.gmra.mxu1 %v804_v9 }
  0x5d   : > { %607 = vmatmul.bf16.gmra.mxu2 %v808_v10 }
  0x9d   : > { %v622_v11 = vpop.f32.mrf.mxu3 }
  0xa5   : > { %v624_v15 = vpop.f32.mrf.mxu3 }
  0xa8   : > { %v535_v12 = vpop.f32.mrf.mxu0 }
  0xa9   : > { %v564_v13 = vpop.f32.mrf.mxu1 }
  0xaa   : > { %v565_v14 = vadd.f32 %v564_v13, %v535_v12 }
  0xad   : > { %v627_v27 = vpop.f32.mrf.mxu3 }
  0xb0   : > { %v593_v16 = vpop.f32.mrf.mxu2  ;;  %v537_v19 = vpop.f32.mrf.mxu0 }
  0xb1   : > { %v594_v17 = vadd.f32 %v593_v16, %v565_v14  ;;  %v566_v20 = vpop.f32.mrf.mxu1 }
  0xb2   : > { %v567_v25 = vadd.f32 %v566_v20, %v537_v19 }
  0xb3   : > { %v623_v21 = vadd.f32 %v622_v11, %v594_v17 }
  0xb5   : > { %v646_v23 = vmul.f32 %v1150_v18, %v623_v21  ;;  %v629_v41 = vpop.f32.mrf.mxu3 }
  0xb7   : > { %v658_v24 = vadd.f32 %v1155_v22, %v646_v23 }
  0xb8   : > { %v595_v26 = vpop.f32.mrf.mxu2  ;;  %v540_v30 = vpop.f32.mrf.mxu0 }
  0xb9   : > { %v666_v28 = vmax.f32 %v658_v24, 0.0  ;;  %v596_v29 = vadd.f32 %v595_v26, %v567_v25  ;;  %v569_v31 = vpop.f32.mrf.mxu1 }
  0xba   : > { %v570_v34 = vadd.f32 %v569_v31, %v540_v30 }
  0xbb   : > { %675 = vst.msk [vmem:[%s1163_s9] sm:$0xff] %vm674_vm1, %v666_v28  ;;  %v625_v32 = vadd.f32 %v624_v15, %v596_v29 }
  0xbd   : > { %v647_v33 = vmul.f32 %v1150_v18, %v625_v32  ;;  %v632_v52 = vpop.f32.mrf.mxu3 }
  0xbf   : > { %v659_v35 = vadd.f32 %v1155_v22, %v647_v33 }
  0xc0   : > { %v598_v36 = vpop.f32.mrf.mxu2  ;;  %v542_v39 = vpop.f32.mrf.mxu0 }
  0xc1   : > { %v667_v37 = vmax.f32 %v659_v35, 0.0  ;;  %v599_v38 = vadd.f32 %v598_v36, %v570_v34  ;;  %v571_v40 = vpop.f32.mrf.mxu1 }
  0xc2   : > { %v572_v45 = vadd.f32 %v571_v40, %v542_v39 }
  0xc3   : > { %676 = vst.msk [vmem:[%s1163_s9 + $0x8] sm:$0xff] %vm674_vm1, %v667_v37  ;;  %v628_v42 = vadd.f32 %v627_v27, %v599_v38 }
  0xc5   : > { %v648_v43 = vmul.f32 %v1150_v18, %v628_v42  ;;  %v634_v63 = vpop.f32.mrf.mxu3 }
  0xc7   : > { %v660_v44 = vadd.f32 %v1155_v22, %v648_v43 }
  0xc8   : > { %v600_v46 = vpop.f32.mrf.mxu2  ;;  %v545_v49 = vpop.f32.mrf.mxu0 }
  0xc9   : > { %v668_v47 = vmax.f32 %v660_v44, 0.0  ;;  %v601_v48 = vadd.f32 %v600_v46, %v572_v45  ;;  %v574_v50 = vpop.f32.mrf.mxu1 }
  0xca   : > { %v575_v54 = vadd.f32 %v574_v50, %v545_v49 }
  0xcb   : > { %677 = vst.msk [vmem:[%s1163_s9 + $0x10] sm:$0xff] %vm674_vm1, %v668_v47  ;;  %v630_v51 = vadd.f32 %v629_v41, %v601_v48 }
  0xcd   : > { %v649_v53 = vmul.f32 %v1150_v18, %v630_v51  ;;  %v637_v11 = vpop.f32.mrf.mxu3 }
  0xcf   : > { %v661_v55 = vadd.f32 %v1155_v22, %v649_v53 }
  0xd0   : > { %v603_v56 = vpop.f32.mrf.mxu2  ;;  %v547_v59 = vpop.f32.mrf.mxu0 }
  0xd1   : > { %v669_v57 = vmax.f32 %v661_v55, 0.0  ;;  %v604_v58 = vadd.f32 %v603_v56, %v575_v54  ;;  %v576_v60 = vpop.f32.mrf.mxu1 }
  0xd2   : > { %v577_v1 = vadd.f32 %v576_v60, %v547_v59 }
  0xd3   : > { %678 = vst.msk [vmem:[%s1163_s9 + $0x18] sm:$0xff] %vm674_vm1, %v669_v57  ;;  %v633_v61 = vadd.f32 %v632_v52, %v604_v58 }
  0xd5   : > { %v650_v62 = vmul.f32 %v1150_v18, %v633_v61  ;;  %v639_v26 = vpop.f32.mrf.mxu3 }
  0xd7   : > { %v662_v0 = vadd.f32 %v1155_v22, %v650_v62 }
  0xd8   : > { %v605_v2 = vpop.f32.mrf.mxu2  ;;  %v550_v5 = vpop.f32.mrf.mxu0 }
  0xd9   : > { %v670_v3 = vmax.f32 %v662_v0, 0.0  ;;  %v606_v4 = vadd.f32 %v605_v2, %v577_v1  ;;  %v579_v6 = vpop.f32.mrf.mxu1 }
  0xda   : > { %v580_v9 = vadd.f32 %v579_v6, %v550_v5 }
  0xdb   : > { %679 = vst.msk [vmem:[%s1163_s9 + $0x20] sm:$0xff] %vm674_vm1, %v670_v3  ;;  %v635_v7 = vadd.f32 %v634_v63, %v606_v4 }
  0xdd   : > { %v651_v8 = vmul.f32 %v1150_v18, %v635_v7 }
  0xdf   : > { %v663_v10 = vadd.f32 %v1155_v22, %v651_v8 }
  0xe0   : > { %v608_v12 = vpop.f32.mrf.mxu2  ;;  %v552_v16 = vpop.f32.mrf.mxu0 }
  0xe1   : > { %v671_v13 = vmax.f32 %v663_v10, 0.0  ;;  %v609_v14 = vadd.f32 %v608_v12, %v580_v9  ;;  %v581_v17 = vpop.f32.mrf.mxu1 }
  0xe2   : > { %v582_v21 = vadd.f32 %v581_v17, %v552_v16 }
  0xe3   : > { %680 = vst.msk [vmem:[%s1163_s9 + $0x28] sm:$0xff] %vm674_vm1, %v671_v13  ;;  %v638_v15 = vadd.f32 %v637_v11, %v609_v14 }
  0xe5   : > { %v652_v19 = vmul.f32 %v1150_v18, %v638_v15 }
  0xe7   : > { %v664_v20 = vadd.f32 %v1155_v22, %v652_v19 }
  0xe8   : > { %v610_v23 = vpop.f32.mrf.mxu2 }
  0xe9   : > { %v672_v24 = vmax.f32 %v664_v20, 0.0  ;;  %v611_v25 = vadd.f32 %v610_v23, %v582_v21 }
  0xeb   : > { %681 = vst.msk [vmem:[%s1163_s9 + $0x30] sm:$0xff] %vm674_vm1, %v672_v24  ;;  %v640_v27 = vadd.f32 %v639_v26, %v611_v25 }
  0xed   : > { %v653_v28 = vmul.f32 %v1150_v18, %v640_v27 }
  0xef   : > { %v665_v29 = vadd.f32 %v1155_v22, %v653_v28 }
  0xf1   : > { %v673_v30 = vmax.f32 %v665_v29, 0.0 }
  0xf3   : > { %682 = vst.msk [vmem:[%s1163_s9 + $0x38] sm:$0xff] %vm674_vm1, %v673_v30 }
  0xf4 PF: > { %s14_s15 = sadd.s32 1, %s987_s15  }
  0xf5   : > { %p11_p4 = scmp.ge.s32.totalorder %s14_s15, 4  }
  0xf7   :  { %13 = sbr.rel (!%p11_p4) target bundleno = 1 (0x1), region = 66 }

// kernel: tile.33
= control target key start
LH: loop header
LB: loop body
LE: loop exit
PB: predicated region body
PF: predicated region fallthrough
CT: control target
= control target key end

     0   :  { %s22_s0 = inlined_call_operand.vmem [shape: f32[16], index: 0, kind: input, shape index: {}]   ;;  %s23_s1 = inlined_call_operand.vmem [shape: f32[8,16], index: 1, kind: output, shape index: {}]  }
   0x1   :  { %v4_v0 = vld [vmem:[%s22_s0] ss:$0 sm:$0xff] }
   0x2   :  { %5 = vst [vmem:[%s23_s1] sm:$0xff] %v4_v0 }

// kernel: tile.38
= control target key start
LH: loop header
LB: loop body
LE: loop exit
PB: predicated region body
PF: predicated region fallthrough
CT: control target
= control target key end

     0   :  { %s67_s10 = smov 112   ;;  %s68_s11 = smov 80   ;;  %vm3_vm0 = vcmask 130048   ;;  %vm9_vm1 = vcmask 1048448   ;;  %vm15_vm2 = vcmask 917248   ;;  %vm21_vm3 = vcmask 786048   ;;  %s111_s0 = inlined_call_operand.vmem [shape: f32[8,16], index: 0, kind: input, shape index: {}]   ;;  %s112_s1 = inlined_call_operand.vmem [shape: f32[1,128], index: 1, kind: output, shape index: {}]  }
   0x1   :  { %v53_v0 = vld [vmem:[%s111_s0 + $0x7] sm:$0x1]   ;;  %v55_v1 = vld [vmem:[%s111_s0 + $0x5] sm:$0x1]   ;;  %v57_v2 = vld [vmem:[%s111_s0 + $0x3] sm:$0x1]  }
   0x2   :  { %7 = vrot.lane.b32.xlu0 %v53_v0, %s67_s10  ;;  %19 = vrot.lane.b32.xlu1 %v55_v1, %s68_s11  ;;  %s69_s14 = smov 48   ;;  %v54_v3 = vld [vmem:[%s111_s0 + $0x6] sm:$0x1]   ;;  %v56_v4 = vld [vmem:[%s111_s0 + $0x4] sm:$0x1]   ;;  %s70_s21 = smov 96  }
   0x3   :  { %31 = vrot.lane.b32.xlu2 %v57_v2, %s69_s14  ;;  %v58_v5 = vld [vmem:[%s111_s0 + $0x2] sm:$0x1]   ;;  %s71_s22 = smov 64   ;;  %s72_s23 = smov 32   ;;  %v59_v6 = vld [vmem:[%s111_s0 + $0x1] sm:$0x1]  }
   0x4   :  { %s73_s26 = smov 16   ;;  %v2_v7 = vld [vmem:[%s111_s0] sm:$0x1]   ;;  %vm27_vm4 = vcmask 654848   ;;  %vm33_vm5 = vcmask 523648   ;;  %vm39_vm6 = vcmask 392448  }
   0x5   :  { %4 = vst.msk [vmem:[#allocation0] sm:$0x1] %vm3_vm0, %v2_v7   ;;  %vm45_vm7 = vcmask 261248  }
   0xa   :  { %13 = vrot.lane.b32.xlu0 %v54_v3, %s70_s21  ;;  %25 = vrot.lane.b32.xlu1 %v56_v4, %s71_s22 }
   0xb   :  { %37 = vrot.lane.b32.xlu2 %v58_v5, %s72_s23 }
  0x12   :  { %43 = vrot.lane.b32.xlu0 %v59_v6, %s73_s26 }
  0x5d   :  { %v32_v8 = vpop.permute.xlu2 %31  }
  0x65   :  { %v38_v9 = vpop.permute.xlu2 %37  }
  0x74   :  { %v8_v10 = vpop.permute.xlu0 %7   ;;  %v20_v11 = vpop.permute.xlu1 %19  }
  0x75   :  { %10 = vst.msk [vmem:[#allocation0] sm:$0x1] %vm9_vm1, %v8_v10  }
  0x7c   :  { %v14_v12 = vpop.permute.xlu0 %13   ;;  %v26_v13 = vpop.permute.xlu1 %25  }
  0x7d   :  { %16 = vst.msk [vmem:[#allocation0] sm:$0x1] %vm15_vm2, %v14_v12  }
  0x7e   :  { %22 = vst.msk [vmem:[#allocation0] sm:$0x1] %vm21_vm3, %v20_v11  }
  0x7f   :  { %28 = vst.msk [vmem:[#allocation0] sm:$0x1] %vm27_vm4, %v26_v13  }
  0x80   :  { %34 = vst.msk [vmem:[#allocation0] sm:$0x1] %vm33_vm5, %v32_v8  }
  0x81   :  { %40 = vst.msk [vmem:[#allocation0] sm:$0x1] %vm39_vm6, %v38_v9  }
  0x84   :  { %v44_v14 = vpop.permute.xlu0 %43  }
  0x85   :  { %46 = vst.msk [vmem:[#allocation0] sm:$0x1] %vm45_vm7, %v44_v14  }
  0x8c   :  { %v49_v15 = vld [vmem:[#allocation0] sm:$0x1] }
  0x8d   :  { %52 = vst [vmem:[%s112_s1] sm:$0x1] %v49_v15 }

// kernel: rec3_forward.24
= control target key start
LH: loop header
LB: loop body
LE: loop exit
PB: predicated region body
PF: predicated region fallthrough
CT: control target
= control target key end

     0   :  { %s356_s15 = smov 0   ;;  %s385_s0 = inlined_call_operand.vmem [shape: bf16[16,32], index: 0, kind: input, shape index: {}]   ;;  %s386_s1 = inlined_call_operand.vmem [shape: bf16[32,128], index: 1, kind: input, shape index: {}]   ;;  %s387_s2 = inlined_call_operand.vmem [shape: f32[1,128], index: 2, kind: input, shape index: {}]   ;;  %s388_s3 = inlined_call_operand.vmem [shape: f32[1,128], index: 3, kind: input, shape index: {}]   ;;  %s389_s4 = inlined_call_operand.vmem [shape: f32[16,128], index: 4, kind: output, shape index: {}]  }
   0x1 LB: > { %s293_s16 = sadd.s32 4294967295, %s329_s15   ;;  %p297_p0 = scmp.ge.s32.totalorder %s329_s15, 1  ;;  %s329_s15 = sphi %s356_s15, %s14_s15  }
   0x2   : > { %p161_p1 = scmp.lt.s32.totalorder %s329_s15, 3 }
   0x4   : > { %p162_p2 = pnand %p297_p0, %p161_p1 }
   0x5   : > { %p185_p3 = scmp.lt.s32.totalorder (!%p162_p2), %s293_s16, 1 }
   0x6   : > { %165 = sbr.rel (%p162_p2) target bundleno = 153 (0x99), region = 36 }
   0xb   : > { %v312_v0 = vld [vmem:[%s386_s1 + $0x8] sm:$0xff]  ;;  %v311_v1 = vld [vmem:[%s386_s1] sm:$0xff]  ;;  %s391_s16 = smov (!%p185_p3, %s293_s16), 1  ;;  %vm211_vm0 = vcmask 261120  }
   0xc   : > { %221 = vmatpush.bf16.msra.mxu0 %v312_v0  ;;  %s298_s21 = sshll.u32 %s391_s16, 2  ;;  %v321_v3 = vld [vmem:[%s387_s2] ss:$0 sm:$0xff]  ;;  %s299_s29 = sshll.u32 %s391_s16, 3 }
   0xd   : > { %s188_s24 = scalar_lea.vmem %s385_s0, %s298_s21  ;;  %v322_v4 = vld [vmem:[%s388_s3] ss:$0 sm:$0xff]  ;;  %s192_s6 = scalar_lea.vmem %s389_s4, %s299_s29 }
   0xe   : > { %v194_v2 = vld [vmem:[%s188_s24] sm:$0xf] }
  0x10   : > { %222 = vmatpush.bf16.msra.mxu0 %v311_v1 }
  0x13   : > { %308 = vmatmul.msk.bf16.vlgmr.msra.gmra.mxu0 %vm211_vm0, %v194_v2 }
  0x90   : > { %v224_v5 = vpop.f32.mrf.mxu0 }
  0x91   : > { %v232_v6 = vmul.f32 %v321_v3, %v224_v5 }
  0x93   : > { %v237_v7 = vadd.f32 %v322_v4, %v232_v6 }
  0x95   : > { %v238_v8 = vmax.f32 %v237_v7, 0.0 }
  0x97   : > { %239 = vst [vmem:[%s192_s6] sm:$0xff] %v238_v8 }
  0x98   : > { %v226_v9 = vpop.f32.mrf.mxu0 }
  0x99 PF: > { %s14_s15 = sadd.s32 1, %s329_s15  }
  0x9a   : > { %p11_p4 = scmp.ge.s32.totalorder %s14_s15, 4  }
  0x9c   :  { %13 = sbr.rel (!%p11_p4) target bundleno = 1 (0x1), region = 66 }

// kernel: rec3_forward.27
= control target key start
LH: loop header
LB: loop body
LE: loop exit
PB: predicated region body
PF: predicated region fallthrough
CT: control target
= control target key end

     0   :  { %12 = vsyncpa [#allocation3], 0  ;;  %s1674_s0 = inlined_call_operand.vmem [shape: bf16[128,432], index: 0, kind: input, shape index: {}]   ;;  %s1675_s1 = inlined_call_operand.vmem [shape: bf16[432,16], index: 1, kind: input, shape index: {}]   ;;  %s1676_s2 = inlined_call_operand.vmem [shape: f32[1,16], index: 2, kind: input, shape index: {}]   ;;  %s1677_s3 = inlined_call_operand.vmem [shape: f32[1,16], index: 3, kind: input, shape index: {}]   ;;  %s1678_s4 = inlined_call_operand.vmem [shape: f32[128,16], index: 4, kind: input, shape index: {}]   ;;  %s1679_s5 = inlined_call_operand.vmem [shape: f32[128,16], index: 5, kind: input, shape index: {}]   ;;  %s1680_s6 = inlined_call_operand.vmem [shape: f32[128,16], index: 6, kind: input, shape index: {}]   ;;  %s1681_s7 = inlined_call_operand.hbm [shape: f32[128,16], index: 7, kind: output, shape index: {}]  }
   0x1   :  { %14 = vsyncpa [#allocation3 + $0x1], 0  ;;  %s1379_s24 = smov 0   ;;  %s1381_s25 = smov 0  }
   0x2   :  { %s1383_s26 = smov 0   ;;  %s1385_s27 = smov 0  }
   0x3 LB: > { %s1400_s28 = sadd.s32 4294967295, %s1335_s27   ;;  %s990_s29 = sadd.s32 4294967294, %s1335_s27   ;;  %s1335_s27 = sphi %s1385_s27, %s1687_s27   ;;  %s1331_s26 = sphi %s1383_s26, %s1686_s26   ;;  %s1327_s25 = sphi %s1381_s25, %s1685_s25   ;;  %s1323_s24 = sphi %s1379_s24, %s1684_s24  }
   0x4   : > { %s1404_s30 = sadd.s32 1, %s1335_s27   ;;  %s194_s8 = sadd.s32 1, %s1331_s26 }
   0x5   : > { %s191_s9 = ssub.s32 %s1335_s27, %s1404_s30  ;;  %p204_p0 = scmp.ne.s32.totalorder %s1331_s26, %s1327_s25 }
   0x6   : > { %p192_p1 = scmp.eq.s32.totalorder %s191_s9, 0  ;;  %p205_p2 = scmp.eq.s32.totalorder %s1400_s28, 1 }
   0x7   : > { %p210_p3 = scmp.ne.s32.totalorder %s1327_s25, %s1323_s24  ;;  %p211_p4 = scmp.eq.s32.totalorder %s990_s29, 1 }
   0x8   : > { %s1415_s10 = scalar_select %p192_p1, %s1331_s26, %s194_s8  }
   0x9   : > { %p1417_p5 = por %p205_p2, %p204_p0  ;;  %p1421_p6 = por %p211_p4, %p210_p3 }
   0xa   : > { %p993_p7 = scmp.ge.s32.totalorder %s1335_s27, 1  ;;  %p275_p8 = scmp.lt.s32.totalorder %s1335_s27, 3 }
   0xc   : > { %p276_p9 = pnand %p993_p7, %p275_p8 }
   0xd   : > { %s995_s19 = sshll.u32 (!%p276_p9), %s1400_s28, 3  ;;  %s320_s23 = sand.u32 (!%p276_p9), 1, %s1327_s25  }
   0xe   : > { %279 = sbr.rel (%p276_p9) target bundleno = 261 (0x105), region = 48  ;;  %p324_p10 = scmp.lt.s32.totalorder (!%p276_p9), %s995_s19, 15 }
   0xf   : > { %s994_s29 = sshll.u32 (!%p276_p9), %s320_s23, 6 }
  0x13   : > { %v1209_v0 = vld [vmem:[%s1675_s1 + $0x38] sm:$0xff]  ;;  %v1208_v3 = vld [vmem:[%s1675_s1 + $0x30] sm:$0xff]  ;;  %s1689_s19 = smov (!%p324_p10, %s995_s19), 15  ;;  %v1207_v7 = vld [vmem:[%s1675_s1 + $0x28] sm:$0xff]  ;;  %vm658_vm0 = vcmask 392192   ;;  %vm867_vm1 = vcmask 130048  }
  0x14   : > { %v1217_v1 = vld [vmem:[%s1675_s1 + $0x78] sm:$0xff]  ;;  %671 = vmatpush.bf16.msra.mxu0 %v1209_v0  ;;  %v1216_v4 = vld [vmem:[%s1675_s1 + $0x70] sm:$0xff]  ;;  %v1215_v8 = vld [vmem:[%s1675_s1 + $0x68] sm:$0xff]  ;;  %s1185_s18 = sshll.u32 %s1689_s19, 4  ;;  %s999_s22 = sshll.u32 %s1689_s19, 3 }
  0x15   : > { %v1225_v2 = vld [vmem:[%s1675_s1 + $0xb8] sm:$0xff]  ;;  %700 = vmatpush.bf16.msra.mxu1 %v1217_v1  ;;  %v1224_v5 = vld [vmem:[%s1675_s1 + $0xb0] sm:$0xff]  ;;  %v1223_v9 = vld [vmem:[%s1675_s1 + $0xa8] sm:$0xff]  ;;  %s1467_s9 = scalar_lea.vmem %s1674_s0, %s1185_s18  ;;  %s1562_s13 = scalar_lea.vmem %s1678_s4, %s999_s22 }
  0x16   : > { %729 = vmatpush.bf16.msra.mxu2 %v1225_v2  ;;  %v1228_v6 = vld [vmem:[%s1675_s1 + $0xd0] sm:$0xff]  ;;  %v1227_v10 = vld [vmem:[%s1675_s1 + $0xc8] sm:$0xff]  ;;  %v1206_v11 = vld [vmem:[%s1675_s1 + $0x20] sm:$0xff]  ;;  %s1572_s17 = scalar_lea.vmem %s1679_s5, %s999_s22  ;;  %s1579_s21 = scalar_lea.vmem %s1680_s6, %s999_s22 }
  0x17   : > { %763 = vmatpush.bf16.msra.mxu3 %v1228_v6  ;;  %v1214_v12 = vld [vmem:[%s1675_s1 + $0x60] sm:$0xff]  ;;  %v1187_v15 = vld [vmem:[%s1467_s9 + $0xc] sm:$0xf]  ;;  %v1016_v16 = vld [vmem:[%s1467_s9 + $0x18] sm:$0xf0]  ;;  %s1591_s22 = scalar_lea.vmem [#allocation2], %s994_s29 }
  0x18   : > { %672 = vmatpush.bf16.msra.mxu0 %v1208_v3  ;;  %v1222_v13 = vld [vmem:[%s1675_s1 + $0xa0] sm:$0xff]  ;;  %v1205_v17 = vld [vmem:[%s1675_s1 + $0x18] sm:$0xff]  ;;  %v1019_v20 = vor.u32 %v1187_v15, %v1016_v16  ;;  %v1204_v21 = vld [vmem:[%s1675_s1 + $0x10] sm:$0xff]  ;;  %s889_s19 = sshll.u32 %s1591_s22, 4  ;;  %s890_s19 = int_to_ptr.vmem [resolvable:$true] %s889_s19 }
  0x19   : > { %701 = vmatpush.bf16.msra.mxu1 %v1216_v4  ;;  %v1226_v14 = vld [vmem:[%s1675_s1 + $0xc0] sm:$0xff]  ;;  %v1213_v18 = vld [vmem:[%s1675_s1 + $0x58] sm:$0xff]  ;;  %v1212_v22 = vld [vmem:[%s1675_s1 + $0x50] sm:$0xff] }
  0x1a   : > { %730 = vmatpush.bf16.msra.mxu2 %v1224_v5  ;;  %v1221_v19 = vld [vmem:[%s1675_s1 + $0x98] sm:$0xff]  ;;  %v1220_v23 = vld [vmem:[%s1675_s1 + $0x90] sm:$0xff]  ;;  %v1203_v24 = vld [vmem:[%s1675_s1 + $0x8] sm:$0xff] }
  0x1b   : > { %764 = vmatpush.bf16.msra.mxu3 %v1227_v10  ;;  %v1211_v25 = vld [vmem:[%s1675_s1 + $0x48] sm:$0xff]  ;;  %v1202_v27 = vld [vmem:[%s1675_s1] sm:$0xff]  ;;  %v1188_v30 = vld [vmem:[%s1467_s9 + $0xc] sm:$0xf0] }
  0x1c   : > { %673 = vmatpush.bf16.msra.mxu0 %v1207_v7  ;;  %v1219_v26 = vld [vmem:[%s1675_s1 + $0x88] sm:$0xff]  ;;  %v1210_v28 = vld [vmem:[%s1675_s1 + $0x40] sm:$0xff]  ;;  %v1008_v32 = vld [vmem:[%s1467_s9 + $0x10] sm:$0xf0] }
  0x1d   : > { %702 = vmatpush.bf16.msra.mxu1 %v1215_v8  ;;  %v1006_v29 = vld [vmem:[%s1467_s9] sm:$0xf]  ;;  %v1186_v31 = vld [vmem:[%s1467_s9 + $0x4] sm:$0xf]  ;;  %v1014_v34 = vld [vmem:[%s1467_s9 + $0x8] sm:$0xf] }
  0x1e   : > { %731 = vmatpush.bf16.msra.mxu2 %v1223_v9  ;;  %v1218_v33 = vld [vmem:[%s1675_s1 + $0x80] sm:$0xff]  ;;  %v1189_v35 = vld [vmem:[%s1467_s9 + $0x14] sm:$0xf0]  ;;  %v1191_v36 = vld [vmem:[%s1467_s9 + $0x2c] sm:$0xf]  ;;  %v1007_v38 = vor.u32 %v1188_v30, %v1006_v29  ;;  %v1011_v39 = vor.u32 %v1186_v31, %v1008_v32 }
  0x1f   : > { %765 = vmatpush.bf16.msra.mxu3 %v1226_v14  ;;  %v1032_v37 = vld [vmem:[%s1467_s9 + $0x38] sm:$0xf0]  ;;  %v1015_v40 = vor.u32 %v1189_v35, %v1014_v34  ;;  %v1022_v42 = vld [vmem:[%s1467_s9 + $0x20] sm:$0xf]  ;;  %v1192_v43 = vld [vmem:[%s1467_s9 + $0x2c] sm:$0xf0] }
  0x20   : > { %674 = vmatpush.bf16.msra.mxu0 %v1206_v11  ;;  %v1035_v41 = vor.u32 %v1191_v36, %v1032_v37  ;;  %v1190_v44 = vld [vmem:[%s1467_s9 + $0x24] sm:$0xf]  ;;  %v1024_v45 = vld [vmem:[%s1467_s9 + $0x30] sm:$0xf0]  ;;  %v1030_v46 = vld [vmem:[%s1467_s9 + $0x28] sm:$0xf]  ;;  %v1023_v50 = vor.u32 %v1192_v43, %v1022_v42 }
  0x21   : > { %703 = vmatpush.bf16.msra.mxu1 %v1214_v12  ;;  %v1193_v47 = vld [vmem:[%s1467_s9 + $0x34] sm:$0xf0]  ;;  %v1195_v48 = vld [vmem:[%s1467_s9 + $0x4c] sm:$0xf]  ;;  %v1048_v49 = vld [vmem:[%s1467_s9 + $0x58] sm:$0xf0]  ;;  %v1027_v51 = vor.u32 %v1190_v44, %v1024_v45 }
  0x22   : > { %732 = vmatpush.bf16.msra.mxu2 %v1222_v13  ;;  %1176 = vmatmul.msk.bf16.vlgmr.msra.gmra.mxu3 %vm658_vm0, %v1019_v20  ;;  %v1031_v52 = vor.u32 %v1193_v47, %v1030_v46  ;;  %v1051_v53 = vor.u32 %v1195_v48, %v1048_v49  ;;  %v1038_v54 = vld [vmem:[%s1467_s9 + $0x40] sm:$0xf]  ;;  %v1196_v55 = vld [vmem:[%s1467_s9 + $0x4c] sm:$0xf0]  ;;  %v1194_v56 = vld [vmem:[%s1467_s9 + $0x44] sm:$0xf] }
  0x23   : > { %v1040_v57 = vld [vmem:[%s1467_s9 + $0x50] sm:$0xf0]  ;;  %v1046_v58 = vld [vmem:[%s1467_s9 + $0x48] sm:$0xf]  ;;  %v1197_v59 = vld [vmem:[%s1467_s9 + $0x54] sm:$0xf0]  ;;  %v1039_v62 = vor.u32 %v1196_v55, %v1038_v54 }
  0x24   : > { %675 = vmatpush.bf16.msra.mxu0 %v1205_v17  ;;  %v1199_v60 = vld [vmem:[%s1467_s9 + $0x6c] sm:$0xf]  ;;  %v1064_v61 = vld [vmem:[%s1467_s9 + $0x78] sm:$0xf0]  ;;  %v1043_v63 = vor.u32 %v1194_v56, %v1040_v57  ;;  %v1047_v0 = vor.u32 %v1197_v59, %v1046_v58  ;;  %v1054_v2 = vld [vmem:[%s1467_s9 + $0x60] sm:$0xf] }
  0x25   : > { %704 = vmatpush.bf16.msra.mxu1 %v1213_v18  ;;  %v1067_v1 = vor.u32 %v1199_v60, %v1064_v61  ;;  %v1200_v3 = vld [vmem:[%s1467_s9 + $0x6c] sm:$0xf0]  ;;  %v1198_v4 = vld [vmem:[%s1467_s9 + $0x64] sm:$0xf]  ;;  %v1056_v5 = vld [vmem:[%s1467_s9 + $0x70] sm:$0xf0] }
  0x26   : > { %733 = vmatpush.bf16.msra.mxu2 %v1221_v19  ;;  %v1062_v6 = vld [vmem:[%s1467_s9 + $0x68] sm:$0xf]  ;;  %v1201_v7 = vld [vmem:[%s1467_s9 + $0x74] sm:$0xf0]  ;;  %v1055_v8 = vor.u32 %v1200_v3, %v1054_v2  ;;  %v1059_v9 = vor.u32 %v1198_v4, %v1056_v5  ;;  %v1557_v18 = vld [vmem:[%s1676_s2] ss:$0 sm:$0xff] }
  0x27   : > { %v1063_v10 = vor.u32 %v1201_v7, %v1062_v6  ;;  %v843_v34 = vld [vmem:[%s1579_s21] sm:$0xff]  ;;  %v828_v43 = vld [vmem:[%s1572_s17 + $0x8] sm:$0xff]  ;;  %v813_v55 = vld [vmem:[%s1562_s13 + $0x10] sm:$0xff]  ;;  %s1229_s9 = sshll.u32 %s1400_s28, 6  ;;  %s877_s28 = scalar_lea.sflag [#allocation3], %s320_s23 }
  0x28   : > { %676 = vmatpush.bf16.msra.mxu0 %v1204_v21  ;;  %v844_v49 = vld [vmem:[%s1579_s21 + $0x8] sm:$0xff]  ;;  %v829_v59 = vld [vmem:[%s1572_s17 + $0x10] sm:$0xff]  ;;  %s888_s15 = scalar_lea.hbm %s1681_s7, %s1229_s9 }
  0x29   : > { %705 = vmatpush.bf16.msra.mxu1 %v1212_v22  ;;  %v1567_v22 = vld [vmem:[%s1677_s3] ss:$0 sm:$0xff]  ;;  %s891_s16 = sshll.u32 %s888_s15, 4  ;;  %s892_s16 = int_to_ptr.hbm [resolvable:$true] %s891_s16 }
  0x2a   : > { %734 = vmatpush.bf16.msra.mxu2 %v1220_v23 }
  0x2c   : > { %677 = vmatpush.bf16.msra.mxu0 %v1203_v24  ;;  %v811_v24 = vld [vmem:[%s1562_s13] sm:$0xff] }
  0x2d   : > { %706 = vmatpush.bf16.msra.mxu1 %v1211_v25 }
  0x2e   : > { %735 = vmatpush.bf16.msra.mxu2 %v1219_v26 }
  0x30   : > { %678 = vmatpush.bf16.msra.mxu0 %v1202_v27  ;;  %v827_v27 = vld [vmem:[%s1572_s17] sm:$0xff] }
  0x31   : > { %707 = vmatpush.bf16.msra.mxu1 %v1210_v28 }
  0x32   : > { %736 = vmatpush.bf16.msra.mxu2 %v1218_v33  ;;  %1177 = vmatmul.msk.bf16.gmra.mxu3 %vm658_vm0, %v1035_v41 }
  0x33   : > { %679 = vmatmul.bf16.vlgmr.msra.gmra.mxu0 %v1007_v38 }
  0x34   : > { %708 = vmatmul.bf16.vlgmr.msra.gmra.mxu1 %v1011_v39 }
  0x35   : > { %737 = vmatmul.bf16.vlgmr.msra.gmra.mxu2 %v1015_v40  ;;  %v812_v40 = vld [vmem:[%s1562_s13 + $0x8] sm:$0xff] }
  0x42   : > { %1178 = vmatmul.msk.bf16.gmra.mxu3 %vm658_vm0, %v1051_v53 }
  0x43   : > { %684 = vmatmul.bf16.gmra.mxu0 %v1023_v50 }
  0x44   : > { %713 = vmatmul.bf16.gmra.mxu1 %v1027_v51 }
  0x45   : > { %742 = vmatmul.bf16.gmra.mxu2 %v1031_v52 }
  0x52   : > { %1179 = vmatmul.msk.bf16.gmra.mxu3 %vm658_vm0, %v1067_v1  ;;  %v845_v1 = vld [vmem:[%s1579_s21 + $0x10] sm:$0xff] }
  0x53   : > { %689 = vmatmul.bf16.gmra.mxu0 %v1039_v62 }
  0x54   : > { %718 = vmatmul.bf16.gmra.mxu1 %v1043_v63 }
  0x55   : > { %747 = vmatmul.bf16.gmra.mxu2 %v1047_v0 }
  0x63   : > { %694 = vmatmul.bf16.gmra.mxu0 %v1055_v8  ;;  %v814_v8 = vld [vmem:[%s1562_s13 + $0x18] sm:$0xff] }
  0x64   : > { %723 = vmatmul.bf16.gmra.mxu1 %v1059_v9 }
  0x65   : > { %752 = vmatmul.bf16.gmra.mxu2 %v1063_v10 }
  0xa5   : > { %v767_v11 = vpop.f32.mrf.mxu3 }
  0xad   : > { %v769_v15 = vpop.f32.mrf.mxu3 }
  0xb0   : > { %v680_v12 = vpop.f32.mrf.mxu0 }
  0xb1   : > { %v709_v13 = vpop.f32.mrf.mxu1 }
  0xb2   : > { %v710_v14 = vadd.f32 %v709_v13, %v680_v12 }
  0xb5   : > { %v772_v29 = vpop.f32.mrf.mxu3 }
  0xb8   : > { %v738_v16 = vpop.f32.mrf.mxu2  ;;  %v682_v19 = vpop.f32.mrf.mxu0 }
  0xb9   : > { %v739_v17 = vadd.f32 %v738_v16, %v710_v14  ;;  %v711_v20 = vpop.f32.mrf.mxu1 }
  0xba   : > { %v712_v26 = vadd.f32 %v711_v20, %v682_v19 }
  0xbb   : > { %v768_v21 = vadd.f32 %v767_v11, %v739_v17  ;;  %v830_v11 = vld [vmem:[%s1572_s17 + $0x18] sm:$0xff] }
  0xbc   : > { %v846_v17 = vld [vmem:[%s1579_s21 + $0x18] sm:$0xff] }
  0xbd   : > { %v791_v23 = vmul.f32 %v1557_v18, %v768_v21  ;;  %v774_v50 = vpop.f32.mrf.mxu3 }
  0xbf   : > { %v803_v25 = vadd.f32 %v1567_v22, %v791_v23 }
  0xc0   : > { %v740_v28 = vpop.f32.mrf.mxu2  ;;  %v685_v32 = vpop.f32.mrf.mxu0 }
  0xc1   : > { %v819_v30 = vadd.f32 %v811_v24, %v803_v25  ;;  %v741_v31 = vadd.f32 %v740_v28, %v712_v26  ;;  %v714_v33 = vpop.f32.mrf.mxu1  ;;  %v815_v24 = vld [vmem:[%s1562_s13 + $0x20] sm:$0xff] }
  0xc2   : > { %v715_v39 = vadd.f32 %v714_v33, %v685_v32  ;;  %v847_v33 = vld [vmem:[%s1579_s21 + $0x20] sm:$0xff] }
  0xc3   : > { %v835_v35 = vadd.f32 %v827_v27, %v819_v30  ;;  %v770_v36 = vadd.f32 %v769_v15, %v741_v31 }
  0xc5   : > { %v851_v37 = vadd.f32 %v843_v34, %v835_v35  ;;  %v792_v38 = vmul.f32 %v1557_v18, %v770_v36  ;;  %v777_v4 = vpop.f32.mrf.mxu3 }
  0xc7   : > { %v859_v41 = vmax.f32 %v851_v37, 0.0  ;;  %v804_v42 = vadd.f32 %v1567_v22, %v792_v38 }
  0xc8   : > { %v743_v44 = vpop.f32.mrf.mxu2  ;;  %v687_v47 = vpop.f32.mrf.mxu0 }
  0xc9   : > { %868 = vst.msk [vmem:[%s1591_s22] sm:$0xff] %vm867_vm1, %v859_v41  ;;  %v820_v45 = vadd.f32 %v812_v40, %v804_v42  ;;  %v744_v46 = vadd.f32 %v743_v44, %v715_v39  ;;  %v716_v48 = vpop.f32.mrf.mxu1  ;;  %v816_v41 = vld [vmem:[%s1562_s13 + $0x28] sm:$0xff] }
  0xca   : > { %v717_v58 = vadd.f32 %v716_v48, %v687_v47  ;;  %v832_v44 = vld [vmem:[%s1572_s17 + $0x28] sm:$0xff] }
  0xcb   : > { %v836_v51 = vadd.f32 %v828_v43, %v820_v45  ;;  %v773_v52 = vadd.f32 %v772_v29, %v744_v46  ;;  %v831_v29 = vld [vmem:[%s1572_s17 + $0x20] sm:$0xff] }
  0xcd   : > { %v852_v53 = vadd.f32 %v844_v49, %v836_v51  ;;  %v793_v54 = vmul.f32 %v1557_v18, %v773_v52  ;;  %v779_v25 = vpop.f32.mrf.mxu3  ;;  %v848_v49 = vld [vmem:[%s1579_s21 + $0x28] sm:$0xff] }
  0xcf   : > { %v860_v56 = vmax.f32 %v852_v53, 0.0  ;;  %v805_v57 = vadd.f32 %v1567_v22, %v793_v54 }
  0xd0   : > { %v745_v60 = vpop.f32.mrf.mxu2  ;;  %v690_v63 = vpop.f32.mrf.mxu0 }
  0xd1   : > { %869 = vst.msk [vmem:[%s1591_s22 + $0x8] sm:$0xff] %vm867_vm1, %v860_v56  ;;  %v821_v61 = vadd.f32 %v813_v55, %v805_v57  ;;  %v746_v62 = vadd.f32 %v745_v60, %v717_v58  ;;  %v719_v0 = vpop.f32.mrf.mxu1  ;;  %v817_v56 = vld [vmem:[%s1562_s13 + $0x30] sm:$0xff] }
  0xd2   : > { %v720_v7 = vadd.f32 %v719_v0, %v690_v63  ;;  %v833_v60 = vld [vmem:[%s1572_s17 + $0x30] sm:$0xff] }
  0xd3   : > { %v837_v2 = vadd.f32 %v829_v59, %v821_v61  ;;  %v775_v3 = vadd.f32 %v774_v50, %v746_v62  ;;  %v849_v0 = vld [vmem:[%s1579_s21 + $0x30] sm:$0xff] }
  0xd5   : > { %v853_v5 = vadd.f32 %v845_v1, %v837_v2  ;;  %v794_v6 = vmul.f32 %v1557_v18, %v775_v3  ;;  %v782_v45 = vpop.f32.mrf.mxu3 }
  0xd7   : > { %v861_v9 = vmax.f32 %v853_v5, 0.0  ;;  %v806_v10 = vadd.f32 %v1567_v22, %v794_v6  ;;  %v818_v6 = vld [vmem:[%s1562_s13 + $0x38] sm:$0xff]  ;;  %s1287_s13 = sshra.s32 %s892_s16, 4  ;;  %s1288_s13 = int_to_ptr.hbm [resolvable:$true] %s1287_s13 }
  0xd8   : > { %v748_v12 = vpop.f32.mrf.mxu2  ;;  %v692_v15 = vpop.f32.mrf.mxu0  ;;  %p1294_p0 = scmp.lt.s32.totalorder %s1288_s13, %s1681_s7 }
  0xd9   : > { %870 = vst.msk [vmem:[%s1591_s22 + $0x10] sm:$0xff] %vm867_vm1, %v861_v9  ;;  %v822_v13 = vadd.f32 %v814_v8, %v806_v10  ;;  %v749_v14 = vadd.f32 %v748_v12, %v720_v7  ;;  %v721_v16 = vpop.f32.mrf.mxu1  ;;  %v834_v9 = vld [vmem:[%s1572_s17 + $0x38] sm:$0xff]  ;;  %s1289_s17 = scalar_lea.hbm %s1288_s13, 64 }
  0xda   : > { %v722_v28 = vadd.f32 %v721_v16, %v692_v15  ;;  %p1290_p11 = scmp.ne.s32.totalorder %s1288_s13, %s1289_s17 }
  0xdb   : > { %v838_v19 = vadd.f32 %v830_v11, %v822_v13  ;;  %v778_v20 = vadd.f32 %v777_v4, %v749_v14  ;;  %v850_v11 = vld [vmem:[%s1579_s21 + $0x38] sm:$0xff]  ;;  %s1293_s21 = scalar_lea.hbm %s1681_s7, 128 }
  0xdc   : > { %p1291_p12 = pnand %p1290_p11, %p1417_p5  ;;  %p1295_p1 = scmp.lt.s32.totalorder %s1293_s21, %s1289_s17 }
  0xdd   : > { %v854_v21 = vadd.f32 %v846_v17, %v838_v19  ;;  %v795_v23 = vmul.f32 %v1557_v18, %v778_v20  ;;  %v784_v1 = vpop.f32.mrf.mxu3 }
  0xde   : > { %p1292_p13 = pneg %p1291_p12  ;;  %p1296_p2 = por %p1295_p1, %p1294_p0 }
  0xdf   : > { %v862_v26 = vmax.f32 %v854_v21, 0.0  ;;  %v807_v27 = vadd.f32 %v1567_v22, %v795_v23 }
  0xe0   : > { %v750_v30 = vpop.f32.mrf.mxu2  ;;  %v695_v34 = vpop.f32.mrf.mxu0  ;;  %p1297_p3 = pnand %p1296_p2, %p1292_p13 }
  0xe1   : > { %871 = vst.msk [vmem:[%s1591_s22 + $0x18] sm:$0xff] %vm867_vm1, %v862_v26  ;;  %v823_v31 = vadd.f32 %v815_v24, %v807_v27  ;;  %v751_v32 = vadd.f32 %v750_v30, %v722_v28  ;;  %v724_v35 = vpop.f32.mrf.mxu1 }
  0xe2   : > { %v725_v40 = vadd.f32 %v724_v35, %v695_v34 }
  0xe3   : > { %v839_v36 = vadd.f32 %v831_v29, %v823_v31  ;;  %v780_v37 = vadd.f32 %v779_v25, %v751_v32 }
  0xe5   : > { %v855_v38 = vadd.f32 %v847_v33, %v839_v36  ;;  %v796_v39 = vmul.f32 %v1557_v18, %v780_v37 }
  0xe7   : > { %v863_v42 = vmax.f32 %v855_v38, 0.0  ;;  %v808_v43 = vadd.f32 %v1567_v22, %v796_v39 }
  0xe8   : > { %v753_v46 = vpop.f32.mrf.mxu2  ;;  %v697_v52 = vpop.f32.mrf.mxu0 }
  0xe9   : > { %872 = vst.msk [vmem:[%s1591_s22 + $0x20] sm:$0xff] %vm867_vm1, %v863_v42  ;;  %v824_v47 = vadd.f32 %v816_v41, %v808_v43  ;;  %v754_v48 = vadd.f32 %v753_v46, %v725_v40  ;;  %v726_v53 = vpop.f32.mrf.mxu1 }
  0xea   : > { %v727_v59 = vadd.f32 %v726_v53, %v697_v52 }
  0xeb   : > { %v840_v50 = vadd.f32 %v832_v44, %v824_v47  ;;  %v783_v51 = vadd.f32 %v782_v45, %v754_v48 }
  0xed   : > { %v856_v54 = vadd.f32 %v848_v49, %v840_v50  ;;  %v797_v55 = vmul.f32 %v1557_v18, %v783_v51 }
  0xef   : > { %v864_v57 = vmax.f32 %v856_v54, 0.0  ;;  %v809_v58 = vadd.f32 %v1567_v22, %v797_v55 }
  0xf0   : > { %v755_v61 = vpop.f32.mrf.mxu2 }
  0xf1   : > { %873 = vst.msk [vmem:[%s1591_s22 + $0x28] sm:$0xff] %vm867_vm1, %v864_v57  ;;  %v825_v62 = vadd.f32 %v817_v56, %v809_v58  ;;  %v756_v63 = vadd.f32 %v755_v61, %v727_v59 }
  0xf3   : > { %v841_v2 = vadd.f32 %v833_v60, %v825_v62  ;;  %v785_v3 = vadd.f32 %v784_v1, %v756_v63 }
  0xf5   : > { %v857_v4 = vadd.f32 %v849_v0, %v841_v2  ;;  %v798_v5 = vmul.f32 %v1557_v18, %v785_v3 }
  0xf7   : > { %v865_v7 = vmax.f32 %v857_v4, 0.0  ;;  %v810_v8 = vadd.f32 %v1567_v22, %v798_v5 }
  0xf9   : > { %874 = vst.msk [vmem:[%s1591_s22 + $0x30] sm:$0xff] %vm867_vm1, %v865_v7  ;;  %v826_v10 = vadd.f32 %v818_v6, %v810_v8 }
  0xfb   : > { %v842_v12 = vadd.f32 %v834_v9, %v826_v10 }
  0xfd   : > { %v858_v18 = vadd.f32 %v850_v11, %v842_v12 }
  0xff   : > { %v866_v13 = vmax.f32 %v858_v18, 0.0 }
 0x101   : > { %875 = vst.msk [vmem:[%s1591_s22 + $0x38] sm:$0xff] %vm867_vm1, %v866_v13 }
 0x102   : > { %1300 = shalt.err (!%p1297_p3)
}
 0x103   : > { %s1337_s23 = smov 128   ;;  %s1338_s22 = smov 8  }
 0x104   : > { %1230 = dma.vmem_to_hbm [thread:$0]  (%p1417_p5), %s890_s19, 1024, %s892_s16, %s877_s28, %s1337_s23, %s1337_s23, %s1338_s22  }
 0x105 PF: > { %p1236_p4 = scmp.ge.s32.totalorder %s1335_s27, 2  ;;  %s906_s8 = sand.u32 1, %s1323_s24  }
 0x106   : > { %s907_s14 = scalar_lea.sflag [#allocation3], %s906_s8 }
 0x107   : > { %p1233_p7 = pnand %p1236_p4, %p1421_p6 }
 0x109   : > { %p1234_p8 = pneg %p1233_p7 }
 0x10b   : > { %1318 = dma.done.wait (%p1234_p8), %s907_s14, 1024  }
 0x10c   : > { %1320 = vsyncadd (%p1234_p8), %s907_s14, 4294966272  ;;  %p17_p9 = scmp.ge.s32.totalorder %s1404_s30, 4   ;;  %s1684_s24 = smov %s1327_s25 }
 0x10d   : > { %s1685_s25 = smov %s1331_s26  ;;  %s1686_s26 = smov %s1415_s10 }
 0x10e   : > { %s1687_s27 = smov %s1404_s30  ;;  %19 = sbr.rel (!%p17_p9) target bundleno = 3 (0x3), region = 92 }
 0x113   :  { %913 = vsyncpa [#allocation3], 1 }
 0x114   :  { %915 = vsyncpa [#allocation3 + $0x1], 1 }

// kernel: rec3_forward.16
= control target key start
LH: loop header
LB: loop body
LE: loop exit
PB: predicated region body
PF: predicated region fallthrough
CT: control target
= control target key end

     0   :  { %s1374_s15 = smov 0   ;;  %s1753_s0 = inlined_call_operand.vmem [shape: bf16[1024,108], index: 0, kind: input, shape index: {}]   ;;  %s1754_s1 = inlined_call_operand.vmem [shape: bf16[108,8], index: 1, kind: input, shape index: {}]   ;;  %s1755_s2 = inlined_call_operand.vmem [shape: f32[1,8], index: 2, kind: input, shape index: {}]   ;;  %s1756_s3 = inlined_call_operand.vmem [shape: f32[1,8], index: 3, kind: input, shape index: {}]   ;;  %s1757_s4 = inlined_call_operand.vmem [shape: f32[1024,8], index: 4, kind: output, shape index: {}]  }
   0x1 LB: > { %s1072_s16 = sadd.s32 4294967295, %s1347_s15   ;;  %p1076_p0 = scmp.ge.s32.totalorder %s1347_s15, 1  ;;  %s1347_s15 = sphi %s1374_s15, %s14_s15  }
   0x2   : > { %p163_p1 = scmp.lt.s32.totalorder %s1347_s15, 3 }
   0x4   : > { %p164_p2 = pnand %p1076_p0, %p163_p1 }
   0x5   : > { %s1077_s25 = sshll.u32 (!%p164_p2), %s1072_s16, 6 }
   0x6   : > { %167 = sbr.rel (%p164_p2) target bundleno = 303 (0x12f), region = 36  ;;  %p190_p3 = scmp.lt.s32.totalorder (!%p164_p2), %s1077_s25, 127 }
   0xb   : > { %v1235_v0 = vld [vmem:[%s1754_s1 + $0x30] sm:$0xf]  ;;  %v1309_v1 = vld [vmem:[%s1754_s1 + $0x30] sm:$0x30]  ;;  %vm578_vm0 = vcmask 1045504   ;;  %v1308_v4 = vld [vmem:[%s1754_s1 + $0x28] sm:$0xff] }
   0xc   : > { %v1236_v2 = vor.u32 %v1309_v1, %v1235_v0  ;;  %v1307_v5 = vld [vmem:[%s1754_s1 + $0x20] sm:$0xff]  ;;  %v1306_v6 = vld [vmem:[%s1754_s1 + $0x18] sm:$0xff]  ;;  %v1305_v7 = vld [vmem:[%s1754_s1 + $0x10] sm:$0xff]  ;;  %s1759_s25 = smov (!%p190_p3, %s1077_s25), 127  ;;  %vm481_vm1 = vcmask 883712   ;;  %vm951_vm2 = vcmask 64512  }
   0xd   : > { %v1304_v8 = vld [vmem:[%s1754_s1 + $0x8] sm:$0xff]  ;;  %s1078_s6 = sshll.u32 %s1759_s25, 2  ;;  %v1303_v9 = vld [vmem:[%s1754_s1] sm:$0xff]  ;;  %s1080_s17 = sshll.u32 %s1759_s25, 3 }
   0xe   : > { %v580_v3 = vsel %vm578_vm0, %v1236_v2, 0  ;;  %s1412_s11 = scalar_lea.vmem %s1753_s0, %s1078_s6  ;;  %v1481_v42 = vld [vmem:[%s1755_s2] ss:$0 sm:$0xff]  ;;  %s1496_s20 = scalar_lea.vmem %s1757_s4, %s1080_s17 }
   0xf   : > { %583 = vmatpush.bf16.msra.mxu0 %v580_v3  ;;  %1310 = vmatpush.bf16.msra.mxu1 %v580_v3  ;;  %v1271_v10 = vld [vmem:[%s1412_s11] sm:$0xff]  ;;  %v1272_v14 = vld [vmem:[%s1412_s11 + $0x8] sm:$0xff]  ;;  %v1273_v18 = vld [vmem:[%s1412_s11 + $0x10] sm:$0xff] }
  0x10   : > { %1311 = vmatpush.bf16.msra.mxu2 %v580_v3  ;;  %1312 = vmatpush.bf16.msra.mxu3 %v580_v3  ;;  %v1279_v11 = vld [vmem:[%s1412_s11 + $0x40] sm:$0xff]  ;;  %v1280_v15 = vld [vmem:[%s1412_s11 + $0x48] sm:$0xff]  ;;  %v1281_v19 = vld [vmem:[%s1412_s11 + $0x50] sm:$0xff] }
  0x11   : > { %v1287_v12 = vld [vmem:[%s1412_s11 + $0x80] sm:$0xff]  ;;  %v1288_v16 = vld [vmem:[%s1412_s11 + $0x88] sm:$0xff]  ;;  %v1289_v20 = vld [vmem:[%s1412_s11 + $0x90] sm:$0xff] }
  0x12   : > { %v1295_v13 = vld [vmem:[%s1412_s11 + $0xc0] sm:$0xff]  ;;  %v1296_v17 = vld [vmem:[%s1412_s11 + $0xc8] sm:$0xff]  ;;  %v1297_v21 = vld [vmem:[%s1412_s11 + $0xd0] sm:$0xff] }
  0x13   : > { %584 = vmatpush.bf16.msra.mxu0 %v1308_v4  ;;  %1313 = vmatpush.bf16.msra.mxu1 %v1308_v4  ;;  %v1274_v22 = vld [vmem:[%s1412_s11 + $0x18] sm:$0xff]  ;;  %v1275_v26 = vld [vmem:[%s1412_s11 + $0x20] sm:$0xff]  ;;  %v1276_v30 = vld [vmem:[%s1412_s11 + $0x28] sm:$0xff] }
  0x14   : > { %1314 = vmatpush.bf16.msra.mxu2 %v1308_v4  ;;  %1315 = vmatpush.bf16.msra.mxu3 %v1308_v4  ;;  %v1282_v23 = vld [vmem:[%s1412_s11 + $0x58] sm:$0xff]  ;;  %v1283_v27 = vld [vmem:[%s1412_s11 + $0x60] sm:$0xff]  ;;  %v1284_v31 = vld [vmem:[%s1412_s11 + $0x68] sm:$0xff] }
  0x15   : > { %v1290_v24 = vld [vmem:[%s1412_s11 + $0x98] sm:$0xff]  ;;  %v1291_v28 = vld [vmem:[%s1412_s11 + $0xa0] sm:$0xff]  ;;  %v1292_v32 = vld [vmem:[%s1412_s11 + $0xa8] sm:$0xff] }
  0x16   : > { %v1298_v25 = vld [vmem:[%s1412_s11 + $0xd8] sm:$0xff]  ;;  %v1299_v29 = vld [vmem:[%s1412_s11 + $0xe0] sm:$0xff]  ;;  %v1300_v33 = vld [vmem:[%s1412_s11 + $0xe8] sm:$0xff] }
  0x17   : > { %585 = vmatpush.bf16.msra.mxu0 %v1307_v5  ;;  %1316 = vmatpush.bf16.msra.mxu1 %v1307_v5  ;;  %v1277_v34 = vld [vmem:[%s1412_s11 + $0x30] sm:$0xff]  ;;  %v1278_v38 = vld [vmem:[%s1412_s11 + $0x38] sm:$0xff]  ;;  %v1486_v43 = vld [vmem:[%s1756_s3] ss:$0 sm:$0xff] }
  0x18   : > { %1317 = vmatpush.bf16.msra.mxu2 %v1307_v5  ;;  %1318 = vmatpush.bf16.msra.mxu3 %v1307_v5  ;;  %v1285_v35 = vld [vmem:[%s1412_s11 + $0x70] sm:$0xff]  ;;  %v1286_v39 = vld [vmem:[%s1412_s11 + $0x78] sm:$0xff] }
  0x19   : > { %v1293_v36 = vld [vmem:[%s1412_s11 + $0xb0] sm:$0xff]  ;;  %v1294_v40 = vld [vmem:[%s1412_s11 + $0xb8] sm:$0xff] }
  0x1a   : > { %v1301_v37 = vld [vmem:[%s1412_s11 + $0xf0] sm:$0xff]  ;;  %v1302_v41 = vld [vmem:[%s1412_s11 + $0xf8] sm:$0xff] }
  0x1b   : > { %586 = vmatpush.bf16.msra.mxu0 %v1306_v6  ;;  %1319 = vmatpush.bf16.msra.mxu1 %v1306_v6 }
  0x1c   : > { %1320 = vmatpush.bf16.msra.mxu2 %v1306_v6  ;;  %1321 = vmatpush.bf16.msra.mxu3 %v1306_v6 }
  0x1f   : > { %587 = vmatpush.bf16.msra.mxu0 %v1305_v7  ;;  %1322 = vmatpush.bf16.msra.mxu1 %v1305_v7 }
  0x20   : > { %1323 = vmatpush.bf16.msra.mxu2 %v1305_v7  ;;  %1324 = vmatpush.bf16.msra.mxu3 %v1305_v7 }
  0x23   : > { %588 = vmatpush.bf16.msra.mxu0 %v1304_v8  ;;  %1325 = vmatpush.bf16.msra.mxu1 %v1304_v8 }
  0x24   : > { %1326 = vmatpush.bf16.msra.mxu2 %v1304_v8  ;;  %1327 = vmatpush.bf16.msra.mxu3 %v1304_v8 }
  0x27   : > { %589 = vmatpush.bf16.msra.mxu0 %v1303_v9  ;;  %1328 = vmatpush.bf16.msra.mxu1 %v1303_v9 }
  0x28   : > { %1329 = vmatpush.bf16.msra.mxu2 %v1303_v9  ;;  %1330 = vmatpush.bf16.msra.mxu3 %v1303_v9 }
  0x2a   : > { %1237 = vmatmul.msk.bf16.vlgmr.msra.gmra.mxu0 %vm481_vm1, %v1271_v10  ;;  %1245 = vmatmul.msk.bf16.vlgmr.msra.gmra.mxu1 %vm481_vm1, %v1279_v11 }
  0x2b   : > { %1253 = vmatmul.msk.bf16.vlgmr.msra.gmra.mxu2 %vm481_vm1, %v1287_v12  ;;  %1261 = vmatmul.msk.bf16.vlgmr.msra.gmra.mxu3 %vm481_vm1, %v1295_v13 }
  0x3a   : > { %1238 = vmatmul.msk.bf16.gmra.mxu0 %vm481_vm1, %v1272_v14  ;;  %1246 = vmatmul.msk.bf16.gmra.mxu1 %vm481_vm1, %v1280_v15 }
  0x3b   : > { %1254 = vmatmul.msk.bf16.gmra.mxu2 %vm481_vm1, %v1288_v16  ;;  %1262 = vmatmul.msk.bf16.gmra.mxu3 %vm481_vm1, %v1296_v17 }
  0x4a   : > { %1239 = vmatmul.msk.bf16.gmra.mxu0 %vm481_vm1, %v1273_v18  ;;  %1247 = vmatmul.msk.bf16.gmra.mxu1 %vm481_vm1, %v1281_v19 }
  0x4b   : > { %1255 = vmatmul.msk.bf16.gmra.mxu2 %vm481_vm1, %v1289_v20  ;;  %1263 = vmatmul.msk.bf16.gmra.mxu3 %vm481_vm1, %v1297_v21 }
  0x5a   : > { %1240 = vmatmul.msk.bf16.gmra.mxu0 %vm481_vm1, %v1274_v22  ;;  %1248 = vmatmul.msk.bf16.gmra.mxu1 %vm481_vm1, %v1282_v23 }
  0x5b   : > { %1256 = vmatmul.msk.bf16.gmra.mxu2 %vm481_vm1, %v1290_v24  ;;  %1264 = vmatmul.msk.bf16.gmra.mxu3 %vm481_vm1, %v1298_v25 }
  0x6a   : > { %1241 = vmatmul.msk.bf16.gmra.mxu0 %vm481_vm1, %v1275_v26  ;;  %1249 = vmatmul.msk.bf16.gmra.mxu1 %vm481_vm1, %v1283_v27 }
  0x6b   : > { %1257 = vmatmul.msk.bf16.gmra.mxu2 %vm481_vm1, %v1291_v28  ;;  %1265 = vmatmul.msk.bf16.gmra.mxu3 %vm481_vm1, %v1299_v29 }
  0x7a   : > { %1242 = vmatmul.msk.bf16.gmra.mxu0 %vm481_vm1, %v1276_v30  ;;  %1250 = vmatmul.msk.bf16.gmra.mxu1 %vm481_vm1, %v1284_v31 }
  0x7b   : > { %1258 = vmatmul.msk.bf16.gmra.mxu2 %vm481_vm1, %v1292_v32  ;;  %1266 = vmatmul.msk.bf16.gmra.mxu3 %vm481_vm1, %v1300_v33 }
  0x8a   : > { %1243 = vmatmul.msk.bf16.gmra.mxu0 %vm481_vm1, %v1277_v34  ;;  %1251 = vmatmul.msk.bf16.gmra.mxu1 %vm481_vm1, %v1285_v35 }
  0x8b   : > { %1259 = vmatmul.msk.bf16.gmra.mxu2 %vm481_vm1, %v1293_v36  ;;  %1267 = vmatmul.msk.bf16.gmra.mxu3 %vm481_vm1, %v1301_v37 }
  0x9a   : > { %1244 = vmatmul.msk.bf16.gmra.mxu0 %vm481_vm1, %v1278_v38  ;;  %1252 = vmatmul.msk.bf16.gmra.mxu1 %vm481_vm1, %v1286_v39 }
  0x9b   : > { %1260 = vmatmul.msk.bf16.gmra.mxu2 %vm481_vm1, %v1294_v40  ;;  %1268 = vmatmul.msk.bf16.gmra.mxu3 %vm481_vm1, %v1302_v41 }
  0xa7   : > { %v591_v44 = vpop.f32.mrf.mxu0  ;;  %v631_v45 = vpop.f32.mrf.mxu1 }
  0xa8   : > { %v755_v46 = vmul.f32 %v1481_v42, %v591_v44  ;;  %v771_v47 = vmul.f32 %v1481_v42, %v631_v45 }
  0xaa   : > { %v823_v48 = vadd.f32 %v1486_v43, %v755_v46  ;;  %v839_v49 = vadd.f32 %v1486_v43, %v771_v47 }
  0xac   : > { %v887_v50 = vmax.f32 %v823_v48, 0.0  ;;  %v903_v51 = vmax.f32 %v839_v49, 0.0 }
  0xae   : > { %952 = vst.msk [vmem:[%s1496_s20] sm:$0xff] %vm951_vm2, %v887_v50  ;;  %v671_v52 = vpop.f32.mrf.mxu2  ;;  %v711_v53 = vpop.f32.mrf.mxu3 }
  0xaf   : > { %968 = vst.msk [vmem:[%s1496_s20 + $0x80] sm:$0xff] %vm951_vm2, %v903_v51  ;;  %v787_v54 = vmul.f32 %v1481_v42, %v671_v52  ;;  %v803_v55 = vmul.f32 %v1481_v42, %v711_v53  ;;  %v593_v56 = vpop.f32.mrf.mxu0  ;;  %v633_v57 = vpop.f32.mrf.mxu1 }
  0xb0   : > { %v756_v58 = vmul.f32 %v1481_v42, %v593_v56  ;;  %v772_v59 = vmul.f32 %v1481_v42, %v633_v57 }
  0xb1   : > { %v855_v60 = vadd.f32 %v1486_v43, %v787_v54  ;;  %v871_v61 = vadd.f32 %v1486_v43, %v803_v55 }
  0xb2   : > { %v824_v62 = vadd.f32 %v1486_v43, %v756_v58  ;;  %v840_v63 = vadd.f32 %v1486_v43, %v772_v59 }
  0xb3   : > { %v919_v0 = vmax.f32 %v855_v60, 0.0  ;;  %v935_v1 = vmax.f32 %v871_v61, 0.0 }
  0xb4   : > { %v888_v2 = vmax.f32 %v824_v62, 0.0  ;;  %v904_v3 = vmax.f32 %v840_v63, 0.0 }
  0xb5   : > { %984 = vst.msk [vmem:[%s1496_s20 + $0x100] sm:$0xff] %vm951_vm2, %v919_v0 }
  0xb6   : > { %1000 = vst.msk [vmem:[%s1496_s20 + $0x180] sm:$0xff] %vm951_vm2, %v935_v1  ;;  %v673_v4 = vpop.f32.mrf.mxu2  ;;  %v713_v5 = vpop.f32.mrf.mxu3 }
  0xb7   : > { %953 = vst.msk [vmem:[%s1496_s20 + $0x8] sm:$0xff] %vm951_vm2, %v888_v2  ;;  %v788_v6 = vmul.f32 %v1481_v42, %v673_v4  ;;  %v804_v7 = vmul.f32 %v1481_v42, %v713_v5  ;;  %v596_v8 = vpop.f32.mrf.mxu0  ;;  %v636_v9 = vpop.f32.mrf.mxu1 }
  0xb8   : > { %969 = vst.msk [vmem:[%s1496_s20 + $0x88] sm:$0xff] %vm951_vm2, %v904_v3  ;;  %v757_v10 = vmul.f32 %v1481_v42, %v596_v8  ;;  %v773_v11 = vmul.f32 %v1481_v42, %v636_v9 }
  0xb9   : > { %v856_v12 = vadd.f32 %v1486_v43, %v788_v6  ;;  %v872_v13 = vadd.f32 %v1486_v43, %v804_v7 }
  0xba   : > { %v825_v14 = vadd.f32 %v1486_v43, %v757_v10  ;;  %v841_v15 = vadd.f32 %v1486_v43, %v773_v11 }
  0xbb   : > { %v920_v16 = vmax.f32 %v856_v12, 0.0  ;;  %v936_v17 = vmax.f32 %v872_v13, 0.0 }
  0xbc   : > { %v889_v18 = vmax.f32 %v825_v14, 0.0  ;;  %v905_v19 = vmax.f32 %v841_v15, 0.0 }
  0xbd   : > { %985 = vst.msk [vmem:[%s1496_s20 + $0x108] sm:$0xff] %vm951_vm2, %v920_v16 }
  0xbe   : > { %1001 = vst.msk [vmem:[%s1496_s20 + $0x188] sm:$0xff] %vm951_vm2, %v936_v17  ;;  %v676_v20 = vpop.f32.mrf.mxu2  ;;  %v716_v21 = vpop.f32.mrf.mxu3 }
  0xbf   : > { %954 = vst.msk [vmem:[%s1496_s20 + $0x10] sm:$0xff] %vm951_vm2, %v889_v18  ;;  %v789_v22 = vmul.f32 %v1481_v42, %v676_v20  ;;  %v805_v23 = vmul.f32 %v1481_v42, %v716_v21  ;;  %v598_v24 = vpop.f32.mrf.mxu0  ;;  %v638_v25 = vpop.f32.mrf.mxu1 }
  0xc0   : > { %970 = vst.msk [vmem:[%s1496_s20 + $0x90] sm:$0xff] %vm951_vm2, %v905_v19  ;;  %v758_v26 = vmul.f32 %v1481_v42, %v598_v24  ;;  %v774_v27 = vmul.f32 %v1481_v42, %v638_v25 }
  0xc1   : > { %v857_v28 = vadd.f32 %v1486_v43, %v789_v22  ;;  %v873_v29 = vadd.f32 %v1486_v43, %v805_v23 }
  0xc2   : > { %v826_v30 = vadd.f32 %v1486_v43, %v758_v26  ;;  %v842_v31 = vadd.f32 %v1486_v43, %v774_v27 }
  0xc3   : > { %v921_v32 = vmax.f32 %v857_v28, 0.0  ;;  %v937_v33 = vmax.f32 %v873_v29, 0.0 }
  0xc4   : > { %v890_v34 = vmax.f32 %v826_v30, 0.0  ;;  %v906_v35 = vmax.f32 %v842_v31, 0.0 }
  0xc5   : > { %986 = vst.msk [vmem:[%s1496_s20 + $0x110] sm:$0xff] %vm951_vm2, %v921_v32 }
  0xc6   : > { %1002 = vst.msk [vmem:[%s1496_s20 + $0x190] sm:$0xff] %vm951_vm2, %v937_v33  ;;  %v678_v36 = vpop.f32.mrf.mxu2  ;;  %v718_v37 = vpop.f32.mrf.mxu3 }
  0xc7   : > { %955 = vst.msk [vmem:[%s1496_s20 + $0x18] sm:$0xff] %vm951_vm2, %v890_v34  ;;  %v790_v38 = vmul.f32 %v1481_v42, %v678_v36  ;;  %v806_v39 = vmul.f32 %v1481_v42, %v718_v37  ;;  %v601_v40 = vpop.f32.mrf.mxu0  ;;  %v641_v41 = vpop.f32.mrf.mxu1 }
  0xc8   : > { %971 = vst.msk [vmem:[%s1496_s20 + $0x98] sm:$0xff] %vm951_vm2, %v906_v35  ;;  %v759_v44 = vmul.f32 %v1481_v42, %v601_v40  ;;  %v775_v45 = vmul.f32 %v1481_v42, %v641_v41 }
  0xc9   : > { %v858_v46 = vadd.f32 %v1486_v43, %v790_v38  ;;  %v874_v47 = vadd.f32 %v1486_v43, %v806_v39 }
  0xca   : > { %v827_v48 = vadd.f32 %v1486_v43, %v759_v44  ;;  %v843_v49 = vadd.f32 %v1486_v43, %v775_v45 }
  0xcb   : > { %v922_v50 = vmax.f32 %v858_v46, 0.0  ;;  %v938_v51 = vmax.f32 %v874_v47, 0.0 }
  0xcc   : > { %v891_v52 = vmax.f32 %v827_v48, 0.0  ;;  %v907_v53 = vmax.f32 %v843_v49, 0.0 }
  0xcd   : > { %987 = vst.msk [vmem:[%s1496_s20 + $0x118] sm:$0xff] %vm951_vm2, %v922_v50 }
  0xce   : > { %1003 = vst.msk [vmem:[%s1496_s20 + $0x198] sm:$0xff] %vm951_vm2, %v938_v51  ;;  %v681_v54 = vpop.f32.mrf.mxu2  ;;  %v721_v55 = vpop.f32.mrf.mxu3 }
  0xcf   : > { %956 = vst.msk [vmem:[%s1496_s20 + $0x20] sm:$0xff] %vm951_vm2, %v891_v52  ;;  %v791_v56 = vmul.f32 %v1481_v42, %v681_v54  ;;  %v807_v57 = vmul.f32 %v1481_v42, %v721_v55  ;;  %v603_v58 = vpop.f32.mrf.mxu0  ;;  %v643_v59 = vpop.f32.mrf.mxu1 }
  0xd0   : > { %972 = vst.msk [vmem:[%s1496_s20 + $0xa0] sm:$0xff] %vm951_vm2, %v907_v53  ;;  %v760_v60 = vmul.f32 %v1481_v42, %v603_v58  ;;  %v776_v61 = vmul.f32 %v1481_v42, %v643_v59 }
  0xd1   : > { %v859_v62 = vadd.f32 %v1486_v43, %v791_v56  ;;  %v875_v63 = vadd.f32 %v1486_v43, %v807_v57 }
  0xd2   : > { %v828_v0 = vadd.f32 %v1486_v43, %v760_v60  ;;  %v844_v1 = vadd.f32 %v1486_v43, %v776_v61 }
  0xd3   : > { %v923_v2 = vmax.f32 %v859_v62, 0.0  ;;  %v939_v3 = vmax.f32 %v875_v63, 0.0 }
  0xd4   : > { %v892_v4 = vmax.f32 %v828_v0, 0.0  ;;  %v908_v5 = vmax.f32 %v844_v1, 0.0 }
  0xd5   : > { %988 = vst.msk [vmem:[%s1496_s20 + $0x120] sm:$0xff] %vm951_vm2, %v923_v2 }
  0xd6   : > { %1004 = vst.msk [vmem:[%s1496_s20 + $0x1a0] sm:$0xff] %vm951_vm2, %v939_v3  ;;  %v683_v6 = vpop.f32.mrf.mxu2  ;;  %v723_v7 = vpop.f32.mrf.mxu3 }
  0xd7   : > { %957 = vst.msk [vmem:[%s1496_s20 + $0x28] sm:$0xff] %vm951_vm2, %v892_v4  ;;  %v792_v8 = vmul.f32 %v1481_v42, %v683_v6  ;;  %v808_v9 = vmul.f32 %v1481_v42, %v723_v7  ;;  %v606_v10 = vpop.f32.mrf.mxu0  ;;  %v646_v11 = vpop.f32.mrf.mxu1 }
  0xd8   : > { %973 = vst.msk [vmem:[%s1496_s20 + $0xa8] sm:$0xff] %vm951_vm2, %v908_v5  ;;  %v761_v12 = vmul.f32 %v1481_v42, %v606_v10  ;;  %v777_v13 = vmul.f32 %v1481_v42, %v646_v11 }
  0xd9   : > { %v860_v14 = vadd.f32 %v1486_v43, %v792_v8  ;;  %v876_v15 = vadd.f32 %v1486_v43, %v808_v9 }
  0xda   : > { %v829_v16 = vadd.f32 %v1486_v43, %v761_v12  ;;  %v845_v17 = vadd.f32 %v1486_v43, %v777_v13 }
  0xdb   : > { %v924_v18 = vmax.f32 %v860_v14, 0.0  ;;  %v940_v19 = vmax.f32 %v876_v15, 0.0 }
  0xdc   : > { %v893_v20 = vmax.f32 %v829_v16, 0.0  ;;  %v909_v21 = vmax.f32 %v845_v17, 0.0 }
  0xdd   : > { %989 = vst.msk [vmem:[%s1496_s20 + $0x128] sm:$0xff] %vm951_vm2, %v924_v18 }
  0xde   : > { %1005 = vst.msk [vmem:[%s1496_s20 + $0x1a8] sm:$0xff] %vm951_vm2, %v940_v19  ;;  %v686_v22 = vpop.f32.mrf.mxu2  ;;  %v726_v23 = vpop.f32.mrf.mxu3 }
  0xdf   : > { %958 = vst.msk [vmem:[%s1496_s20 + $0x30] sm:$0xff] %vm951_vm2, %v893_v20  ;;  %v793_v24 = vmul.f32 %v1481_v42, %v686_v22  ;;  %v809_v25 = vmul.f32 %v1481_v42, %v726_v23  ;;  %v608_v26 = vpop.f32.mrf.mxu0  ;;  %v648_v27 = vpop.f32.mrf.mxu1 }
  0xe0   : > { %974 = vst.msk [vmem:[%s1496_s20 + $0xb0] sm:$0xff] %vm951_vm2, %v909_v21  ;;  %v762_v28 = vmul.f32 %v1481_v42, %v608_v26  ;;  %v778_v29 = vmul.f32 %v1481_v42, %v648_v27 }
  0xe1   : > { %v861_v30 = vadd.f32 %v1486_v43, %v793_v24  ;;  %v877_v31 = vadd.f32 %v1486_v43, %v809_v25 }
  0xe2   : > { %v830_v32 = vadd.f32 %v1486_v43, %v762_v28  ;;  %v846_v33 = vadd.f32 %v1486_v43, %v778_v29 }
  0xe3   : > { %v925_v34 = vmax.f32 %v861_v30, 0.0  ;;  %v941_v35 = vmax.f32 %v877_v31, 0.0 }
  0xe4   : > { %v894_v36 = vmax.f32 %v830_v32, 0.0  ;;  %v910_v37 = vmax.f32 %v846_v33, 0.0 }
  0xe5   : > { %990 = vst.msk [vmem:[%s1496_s20 + $0x130] sm:$0xff] %vm951_vm2, %v925_v34 }
  0xe6   : > { %1006 = vst.msk [vmem:[%s1496_s20 + $0x1b0] sm:$0xff] %vm951_vm2, %v941_v35  ;;  %v688_v38 = vpop.f32.mrf.mxu2  ;;  %v728_v39 = vpop.f32.mrf.mxu3 }
  0xe7   : > { %959 = vst.msk [vmem:[%s1496_s20 + $0x38] sm:$0xff] %vm951_vm2, %v894_v36  ;;  %v794_v40 = vmul.f32 %v1481_v42, %v688_v38  ;;  %v810_v41 = vmul.f32 %v1481_v42, %v728_v39  ;;  %v611_v44 = vpop.f32.mrf.mxu0  ;;  %v651_v45 = vpop.f32.mrf.mxu1 }
  0xe8   : > { %975 = vst.msk [vmem:[%s1496_s20 + $0xb8] sm:$0xff] %vm951_vm2, %v910_v37  ;;  %v763_v46 = vmul.f32 %v1481_v42, %v611_v44  ;;  %v779_v47 = vmul.f32 %v1481_v42, %v651_v45 }
  0xe9   : > { %v862_v48 = vadd.f32 %v1486_v43, %v794_v40  ;;  %v878_v49 = vadd.f32 %v1486_v43, %v810_v41 }
  0xea   : > { %v831_v50 = vadd.f32 %v1486_v43, %v763_v46  ;;  %v847_v51 = vadd.f32 %v1486_v43, %v779_v47 }
  0xeb   : > { %v926_v52 = vmax.f32 %v862_v48, 0.0  ;;  %v942_v53 = vmax.f32 %v878_v49, 0.0 }
  0xec   : > { %v895_v54 = vmax.f32 %v831_v50, 0.0  ;;  %v911_v55 = vmax.f32 %v847_v51, 0.0 }
  0xed   : > { %991 = vst.msk [vmem:[%s1496_s20 + $0x138] sm:$0xff] %vm951_vm2, %v926_v52 }
  0xee   : > { %1007 = vst.msk [vmem:[%s1496_s20 + $0x1b8] sm:$0xff] %vm951_vm2, %v942_v53  ;;  %v691_v56 = vpop.f32.mrf.mxu2  ;;  %v731_v57 = vpop.f32.mrf.mxu3 }
  0xef   : > { %960 = vst.msk [vmem:[%s1496_s20 + $0x40] sm:$0xff] %vm951_vm2, %v895_v54  ;;  %v795_v58 = vmul.f32 %v1481_v42, %v691_v56  ;;  %v811_v59 = vmul.f32 %v1481_v42, %v731_v57  ;;  %v613_v60 = vpop.f32.mrf.mxu0  ;;  %v653_v61 = vpop.f32.mrf.mxu1 }
  0xf0   : > { %976 = vst.msk [vmem:[%s1496_s20 + $0xc0] sm:$0xff] %vm951_vm2, %v911_v55  ;;  %v764_v62 = vmul.f32 %v1481_v42, %v613_v60  ;;  %v780_v63 = vmul.f32 %v1481_v42, %v653_v61 }
  0xf1   : > { %v863_v0 = vadd.f32 %v1486_v43, %v795_v58  ;;  %v879_v1 = vadd.f32 %v1486_v43, %v811_v59 }
  0xf2   : > { %v832_v2 = vadd.f32 %v1486_v43, %v764_v62  ;;  %v848_v3 = vadd.f32 %v1486_v43, %v780_v63 }
  0xf3   : > { %v927_v4 = vmax.f32 %v863_v0, 0.0  ;;  %v943_v5 = vmax.f32 %v879_v1, 0.0 }
  0xf4   : > { %v896_v6 = vmax.f32 %v832_v2, 0.0  ;;  %v912_v7 = vmax.f32 %v848_v3, 0.0 }
  0xf5   : > { %992 = vst.msk [vmem:[%s1496_s20 + $0x140] sm:$0xff] %vm951_vm2, %v927_v4 }
  0xf6   : > { %1008 = vst.msk [vmem:[%s1496_s20 + $0x1c0] sm:$0xff] %vm951_vm2, %v943_v5  ;;  %v693_v8 = vpop.f32.mrf.mxu2  ;;  %v733_v9 = vpop.f32.mrf.mxu3 }
  0xf7   : > { %961 = vst.msk [vmem:[%s1496_s20 + $0x48] sm:$0xff] %vm951_vm2, %v896_v6  ;;  %v796_v10 = vmul.f32 %v1481_v42, %v693_v8  ;;  %v812_v11 = vmul.f32 %v1481_v42, %v733_v9  ;;  %v616_v12 = vpop.f32.mrf.mxu0  ;;  %v656_v13 = vpop.f32.mrf.mxu1 }
  0xf8   : > { %977 = vst.msk [vmem:[%s1496_s20 + $0xc8] sm:$0xff] %vm951_vm2, %v912_v7  ;;  %v765_v14 = vmul.f32 %v1481_v42, %v616_v12  ;;  %v781_v15 = vmul.f32 %v1481_v42, %v656_v13 }
  0xf9   : > { %v864_v16 = vadd.f32 %v1486_v43, %v796_v10  ;;  %v880_v17 = vadd.f32 %v1486_v43, %v812_v11 }
  0xfa   : > { %v833_v18 = vadd.f32 %v1486_v43, %v765_v14  ;;  %v849_v19 = vadd.f32 %v1486_v43, %v781_v15 }
  0xfb   : > { %v928_v20 = vmax.f32 %v864_v16, 0.0  ;;  %v944_v21 = vmax.f32 %v880_v17, 0.0 }
  0xfc   : > { %v897_v22 = vmax.f32 %v833_v18, 0.0  ;;  %v913_v23 = vmax.f32 %v849_v19, 0.0 }
  0xfd   : > { %993 = vst.msk [vmem:[%s1496_s20 + $0x148] sm:$0xff] %vm951_vm2, %v928_v20 }
  0xfe   : > { %1009 = vst.msk [vmem:[%s1496_s20 + $0x1c8] sm:$0xff] %vm951_vm2, %v944_v21  ;;  %v696_v24 = vpop.f32.mrf.mxu2  ;;  %v736_v25 = vpop.f32.mrf.mxu3 }
  0xff   : > { %962 = vst.msk [vmem:[%s1496_s20 + $0x50] sm:$0xff] %vm951_vm2, %v897_v22  ;;  %v797_v26 = vmul.f32 %v1481_v42, %v696_v24  ;;  %v813_v27 = vmul.f32 %v1481_v42, %v736_v25  ;;  %v618_v28 = vpop.f32.mrf.mxu0  ;;  %v658_v29 = vpop.f32.mrf.mxu1 }
 0x100   : > { %978 = vst.msk [vmem:[%s1496_s20 + $0xd0] sm:$0xff] %vm951_vm2, %v913_v23  ;;  %v766_v30 = vmul.f32 %v1481_v42, %v618_v28  ;;  %v782_v31 = vmul.f32 %v1481_v42, %v658_v29 }
 0x101   : > { %v865_v32 = vadd.f32 %v1486_v43, %v797_v26  ;;  %v881_v33 = vadd.f32 %v1486_v43, %v813_v27 }
 0x102   : > { %v834_v34 = vadd.f32 %v1486_v43, %v766_v30  ;;  %v850_v35 = vadd.f32 %v1486_v43, %v782_v31 }
 0x103   : > { %v929_v36 = vmax.f32 %v865_v32, 0.0  ;;  %v945_v37 = vmax.f32 %v881_v33, 0.0 }
 0x104   : > { %v898_v38 = vmax.f32 %v834_v34, 0.0  ;;  %v914_v39 = vmax.f32 %v850_v35, 0.0 }
 0x105   : > { %994 = vst.msk [vmem:[%s1496_s20 + $0x150] sm:$0xff] %vm951_vm2, %v929_v36 }
 0x106   : > { %1010 = vst.msk [vmem:[%s1496_s20 + $0x1d0] sm:$0xff] %vm951_vm2, %v945_v37  ;;  %v698_v40 = vpop.f32.mrf.mxu2  ;;  %v738_v41 = vpop.f32.mrf.mxu3 }
 0x107   : > { %963 = vst.msk [vmem:[%s1496_s20 + $0x58] sm:$0xff] %vm951_vm2, %v898_v38  ;;  %v798_v44 = vmul.f32 %v1481_v42, %v698_v40  ;;  %v814_v45 = vmul.f32 %v1481_v42, %v738_v41  ;;  %v621_v46 = vpop.f32.mrf.mxu0  ;;  %v661_v47 = vpop.f32.mrf.mxu1 }
 0x108   : > { %979 = vst.msk [vmem:[%s1496_s20 + $0xd8] sm:$0xff] %vm951_vm2, %v914_v39  ;;  %v767_v48 = vmul.f32 %v1481_v42, %v621_v46  ;;  %v783_v49 = vmul.f32 %v1481_v42, %v661_v47 }
 0x109   : > { %v866_v50 = vadd.f32 %v1486_v43, %v798_v44  ;;  %v882_v51 = vadd.f32 %v1486_v43, %v814_v45 }
 0x10a   : > { %v835_v52 = vadd.f32 %v1486_v43, %v767_v48  ;;  %v851_v53 = vadd.f32 %v1486_v43, %v783_v49 }
 0x10b   : > { %v930_v54 = vmax.f32 %v866_v50, 0.0  ;;  %v946_v55 = vmax.f32 %v882_v51, 0.0 }
 0x10c   : > { %v899_v56 = vmax.f32 %v835_v52, 0.0  ;;  %v915_v57 = vmax.f32 %v851_v53, 0.0 }
 0x10d   : > { %995 = vst.msk [vmem:[%s1496_s20 + $0x158] sm:$0xff] %vm951_vm2, %v930_v54 }
 0x10e   : > { %1011 = vst.msk [vmem:[%s1496_s20 + $0x1d8] sm:$0xff] %vm951_vm2, %v946_v55  ;;  %v701_v58 = vpop.f32.mrf.mxu2  ;;  %v741_v59 = vpop.f32.mrf.mxu3 }
 0x10f   : > { %964 = vst.msk [vmem:[%s1496_s20 + $0x60] sm:$0xff] %vm951_vm2, %v899_v56  ;;  %v799_v60 = vmul.f32 %v1481_v42, %v701_v58  ;;  %v815_v61 = vmul.f32 %v1481_v42, %v741_v59  ;;  %v623_v62 = vpop.f32.mrf.mxu0  ;;  %v663_v63 = vpop.f32.mrf.mxu1 }
 0x110   : > { %980 = vst.msk [vmem:[%s1496_s20 + $0xe0] sm:$0xff] %vm951_vm2, %v915_v57  ;;  %v768_v0 = vmul.f32 %v1481_v42, %v623_v62  ;;  %v784_v1 = vmul.f32 %v1481_v42, %v663_v63 }
 0x111   : > { %v867_v2 = vadd.f32 %v1486_v43, %v799_v60  ;;  %v883_v3 = vadd.f32 %v1486_v43, %v815_v61 }
 0x112   : > { %v836_v4 = vadd.f32 %v1486_v43, %v768_v0  ;;  %v852_v5 = vadd.f32 %v1486_v43, %v784_v1 }
 0x113   : > { %v931_v6 = vmax.f32 %v867_v2, 0.0  ;;  %v947_v7 = vmax.f32 %v883_v3, 0.0 }
 0x114   : > { %v900_v8 = vmax.f32 %v836_v4, 0.0  ;;  %v916_v9 = vmax.f32 %v852_v5, 0.0 }
 0x115   : > { %996 = vst.msk [vmem:[%s1496_s20 + $0x160] sm:$0xff] %vm951_vm2, %v931_v6 }
 0x116   : > { %1012 = vst.msk [vmem:[%s1496_s20 + $0x1e0] sm:$0xff] %vm951_vm2, %v947_v7  ;;  %v703_v10 = vpop.f32.mrf.mxu2  ;;  %v743_v11 = vpop.f32.mrf.mxu3 }
 0x117   : > { %965 = vst.msk [vmem:[%s1496_s20 + $0x68] sm:$0xff] %vm951_vm2, %v900_v8  ;;  %v800_v12 = vmul.f32 %v1481_v42, %v703_v10  ;;  %v816_v13 = vmul.f32 %v1481_v42, %v743_v11  ;;  %v626_v14 = vpop.f32.mrf.mxu0  ;;  %v666_v15 = vpop.f32.mrf.mxu1 }
 0x118   : > { %981 = vst.msk [vmem:[%s1496_s20 + $0xe8] sm:$0xff] %vm951_vm2, %v916_v9  ;;  %v769_v16 = vmul.f32 %v1481_v42, %v626_v14  ;;  %v785_v17 = vmul.f32 %v1481_v42, %v666_v15 }
 0x119   : > { %v868_v18 = vadd.f32 %v1486_v43, %v800_v12  ;;  %v884_v19 = vadd.f32 %v1486_v43, %v816_v13 }
 0x11a   : > { %v837_v20 = vadd.f32 %v1486_v43, %v769_v16  ;;  %v853_v21 = vadd.f32 %v1486_v43, %v785_v17 }
 0x11b   : > { %v932_v22 = vmax.f32 %v868_v18, 0.0  ;;  %v948_v23 = vmax.f32 %v884_v19, 0.0 }
 0x11c   : > { %v901_v24 = vmax.f32 %v837_v20, 0.0  ;;  %v917_v25 = vmax.f32 %v853_v21, 0.0 }
 0x11d   : > { %997 = vst.msk [vmem:[%s1496_s20 + $0x168] sm:$0xff] %vm951_vm2, %v932_v22 }
 0x11e   : > { %1013 = vst.msk [vmem:[%s1496_s20 + $0x1e8] sm:$0xff] %vm951_vm2, %v948_v23  ;;  %v706_v26 = vpop.f32.mrf.mxu2  ;;  %v746_v27 = vpop.f32.mrf.mxu3 }
 0x11f   : > { %966 = vst.msk [vmem:[%s1496_s20 + $0x70] sm:$0xff] %vm951_vm2, %v901_v24  ;;  %v801_v28 = vmul.f32 %v1481_v42, %v706_v26  ;;  %v817_v29 = vmul.f32 %v1481_v42, %v746_v27  ;;  %v628_v30 = vpop.f32.mrf.mxu0  ;;  %v668_v31 = vpop.f32.mrf.mxu1 }
 0x120   : > { %982 = vst.msk [vmem:[%s1496_s20 + $0xf0] sm:$0xff] %vm951_vm2, %v917_v25  ;;  %v770_v32 = vmul.f32 %v1481_v42, %v628_v30  ;;  %v786_v33 = vmul.f32 %v1481_v42, %v668_v31 }
 0x121   : > { %v869_v34 = vadd.f32 %v1486_v43, %v801_v28  ;;  %v885_v35 = vadd.f32 %v1486_v43, %v817_v29 }
 0x122   : > { %v838_v36 = vadd.f32 %v1486_v43, %v770_v32  ;;  %v854_v37 = vadd.f32 %v1486_v43, %v786_v33 }
 0x123   : > { %v933_v38 = vmax.f32 %v869_v34, 0.0  ;;  %v949_v39 = vmax.f32 %v885_v35, 0.0 }
 0x124   : > { %v902_v40 = vmax.f32 %v838_v36, 0.0  ;;  %v918_v41 = vmax.f32 %v854_v37, 0.0 }
 0x125   : > { %998 = vst.msk [vmem:[%s1496_s20 + $0x170] sm:$0xff] %vm951_vm2, %v933_v38 }
 0x126   : > { %1014 = vst.msk [vmem:[%s1496_s20 + $0x1f0] sm:$0xff] %vm951_vm2, %v949_v39  ;;  %v708_v44 = vpop.f32.mrf.mxu2  ;;  %v748_v45 = vpop.f32.mrf.mxu3 }
 0x127   : > { %967 = vst.msk [vmem:[%s1496_s20 + $0x78] sm:$0xff] %vm951_vm2, %v902_v40  ;;  %v802_v46 = vmul.f32 %v1481_v42, %v708_v44  ;;  %v818_v47 = vmul.f32 %v1481_v42, %v748_v45 }
 0x128   : > { %983 = vst.msk [vmem:[%s1496_s20 + $0xf8] sm:$0xff] %vm951_vm2, %v918_v41 }
 0x129   : > { %v870_v48 = vadd.f32 %v1486_v43, %v802_v46  ;;  %v886_v49 = vadd.f32 %v1486_v43, %v818_v47 }
 0x12b   : > { %v934_v50 = vmax.f32 %v870_v48, 0.0  ;;  %v950_v51 = vmax.f32 %v886_v49, 0.0 }
 0x12d   : > { %999 = vst.msk [vmem:[%s1496_s20 + $0x178] sm:$0xff] %vm951_vm2, %v934_v50 }
 0x12e   : > { %1015 = vst.msk [vmem:[%s1496_s20 + $0x1f8] sm:$0xff] %vm951_vm2, %v950_v51 }
 0x12f PF: > { %s14_s15 = sadd.s32 1, %s1347_s15  }
 0x130   : > { %p11_p4 = scmp.ge.s32.totalorder %s14_s15, 4  }
 0x132   :  { %13 = sbr.rel (!%p11_p4) target bundleno = 1 (0x1), region = 66 }

// kernel: rec3_forward.17
= control target key start
LH: loop header
LB: loop body
LE: loop exit
PB: predicated region body
PF: predicated region fallthrough
CT: control target
= control target key end

     0   :  { %s1848_s15 = smov 0   ;;  %s2350_s0 = inlined_call_operand.vmem [shape: bf16[1024,216], index: 0, kind: input, shape index: {}]   ;;  %s2351_s1 = inlined_call_operand.vmem [shape: bf16[216,8], index: 1, kind: input, shape index: {}]   ;;  %s2352_s2 = inlined_call_operand.vmem [shape: f32[1,8], index: 2, kind: input, shape index: {}]   ;;  %s2353_s3 = inlined_call_operand.vmem [shape: f32[1,8], index: 3, kind: input, shape index: {}]   ;;  %s2354_s4 = inlined_call_operand.vmem [shape: f32[1024,8], index: 4, kind: output, shape index: {}]  }
   0x1 LB: > { %s1361_s16 = sadd.s32 4294967295, %s1821_s15   ;;  %p1365_p0 = scmp.ge.s32.totalorder %s1821_s15, 1  ;;  %s1821_s15 = sphi %s1848_s15, %s14_s15  }
   0x2   : > { %p164_p1 = scmp.lt.s32.totalorder %s1821_s15, 3 }
   0x4   : > { %p165_p2 = pnand %p1365_p0, %p164_p1 }
   0x5   : > { %s1366_s23 = sshll.u32 (!%p165_p2), %s1361_s16, 6 }
   0x6   : > { %168 = sbr.rel (%p165_p2) target bundleno = 437 (0x1b5), region = 36  ;;  %p192_p3 = scmp.lt.s32.totalorder (!%p165_p2), %s1366_s23, 127 }
   0xb   : > { %v1785_v0 = vld [vmem:[%s2351_s1 + $0x38] sm:$0xff]  ;;  %v295_v1 = vld [vmem:[%s2351_s1 + $0x68] sm:$0xf]  ;;  %vm762_vm0 = vcmask 1043456   ;;  %v1784_v3 = vld [vmem:[%s2351_s1 + $0x30] sm:$0xff]  ;;  %s2356_s23 = smov (!%p192_p3, %s1366_s23), 127 }
   0xc   : > { %v637_v2 = vunpack.c.l.b16 %v295_v1  ;;  %766 = vmatpush.bf16.msra.mxu0 %v1785_v0  ;;  %1791 = vmatpush.bf16.msra.mxu2 %v1785_v0  ;;  %v1790_v6 = vld [vmem:[%s2351_s1 + $0x60] sm:$0xff]  ;;  %v1783_v7 = vld [vmem:[%s2351_s1 + $0x28] sm:$0xff]  ;;  %v1789_v8 = vld [vmem:[%s2351_s1 + $0x58] sm:$0xff]  ;;  %s1713_s10 = sshll.u32 %s2356_s23, 3  ;;  %vm665_vm1 = vcmask 719872   ;;  %vm1240_vm2 = vcmask 64512  }
   0xd   : > { %v1782_v9 = vld [vmem:[%s2351_s1 + $0x20] sm:$0xff]  ;;  %v1788_v10 = vld [vmem:[%s2351_s1 + $0x50] sm:$0xff]  ;;  %v1781_v11 = vld [vmem:[%s2351_s1 + $0x18] sm:$0xff]  ;;  %s1897_s18 = scalar_lea.vmem %s2350_s0, %s1713_s10  ;;  %s2014_s6 = scalar_lea.vmem %s2354_s4, %s1713_s10 }
   0xe   : > { %v651_v4 = vpack.c.b16 %v637_v2, %v637_v2  ;;  %v1787_v12 = vld [vmem:[%s2351_s1 + $0x48] sm:$0xff]  ;;  %v1780_v13 = vld [vmem:[%s2351_s1 + $0x10] sm:$0xff]  ;;  %v1786_v14 = vld [vmem:[%s2351_s1 + $0x40] sm:$0xff] }
   0xf   : > { %v1779_v15 = vld [vmem:[%s2351_s1 + $0x8] sm:$0xff]  ;;  %v1714_v16 = vld [vmem:[%s1897_s18 + $0x4] sm:$0xf]  ;;  %v1748_v18 = vld [vmem:[%s1897_s18 + $0x114] sm:$0xf] }
  0x10   : > { %v764_v5 = vsel %vm762_vm0, %v651_v4, 0  ;;  %767 = vmatpush.bf16.msra.mxu0 %v1784_v3  ;;  %1792 = vmatpush.bf16.msra.mxu2 %v1784_v3  ;;  %v1375_v17 = vld [vmem:[%s1897_s18 + $0x8] sm:$0xf0]  ;;  %v1511_v19 = vld [vmem:[%s1897_s18 + $0x118] sm:$0xf0]  ;;  %v1778_v21 = vld [vmem:[%s2351_s1] sm:$0xff] }
  0x11   : > { %937 = vmatpush.bf16.msra.mxu1 %v764_v5  ;;  %1799 = vmatpush.bf16.msra.mxu3 %v764_v5  ;;  %v1378_v20 = vor.u32 %v1714_v16, %v1375_v17  ;;  %v1373_v22 = vld [vmem:[%s1897_s18] sm:$0xf]  ;;  %v1715_v23 = vld [vmem:[%s1897_s18 + $0x4] sm:$0xf0]  ;;  %v1514_v24 = vor.u32 %v1748_v18, %v1511_v19  ;;  %v1716_v29 = vld [vmem:[%s1897_s18 + $0x14] sm:$0xf] }
  0x12   : > { %v1501_v25 = vld [vmem:[%s1897_s18 + $0x100] sm:$0xf]  ;;  %v1747_v26 = vld [vmem:[%s1897_s18 + $0x104] sm:$0xf0]  ;;  %v1374_v27 = vor.u32 %v1715_v23, %v1373_v22  ;;  %v1383_v30 = vld [vmem:[%s1897_s18 + $0x18] sm:$0xf0] }
  0x13   : > { %v1502_v28 = vor.u32 %v1747_v26, %v1501_v25  ;;  %v1750_v31 = vld [vmem:[%s1897_s18 + $0x124] sm:$0xf]  ;;  %v1519_v32 = vld [vmem:[%s1897_s18 + $0x128] sm:$0xf0]  ;;  %v1386_v33 = vor.u32 %v1716_v29, %v1383_v30  ;;  %v1381_v34 = vld [vmem:[%s1897_s18 + $0x10] sm:$0xf] }
  0x14   : > { %768 = vmatpush.bf16.msra.mxu0 %v1783_v7  ;;  %1793 = vmatpush.bf16.msra.mxu2 %v1783_v7  ;;  %v1717_v35 = vld [vmem:[%s1897_s18 + $0x14] sm:$0xf0]  ;;  %v1522_v36 = vor.u32 %v1750_v31, %v1519_v32  ;;  %v1509_v37 = vld [vmem:[%s1897_s18 + $0x110] sm:$0xf]  ;;  %v1718_v41 = vld [vmem:[%s1897_s18 + $0x24] sm:$0xf] }
  0x15   : > { %938 = vmatpush.bf16.msra.mxu1 %v1790_v6  ;;  %1800 = vmatpush.bf16.msra.mxu3 %v1790_v6  ;;  %v1749_v38 = vld [vmem:[%s1897_s18 + $0x114] sm:$0xf0]  ;;  %v1382_v39 = vor.u32 %v1717_v35, %v1381_v34  ;;  %v1391_v42 = vld [vmem:[%s1897_s18 + $0x28] sm:$0xf0]  ;;  %v1752_v43 = vld [vmem:[%s1897_s18 + $0x134] sm:$0xf] }
  0x16   : > { %v1510_v40 = vor.u32 %v1749_v38, %v1509_v37  ;;  %v1527_v44 = vld [vmem:[%s1897_s18 + $0x138] sm:$0xf0]  ;;  %v1394_v45 = vor.u32 %v1718_v41, %v1391_v42  ;;  %v1389_v46 = vld [vmem:[%s1897_s18 + $0x20] sm:$0xf]  ;;  %v1719_v47 = vld [vmem:[%s1897_s18 + $0x24] sm:$0xf0] }
  0x17   : > { %v1530_v48 = vor.u32 %v1752_v43, %v1527_v44  ;;  %v1517_v49 = vld [vmem:[%s1897_s18 + $0x120] sm:$0xf]  ;;  %v1751_v50 = vld [vmem:[%s1897_s18 + $0x124] sm:$0xf0]  ;;  %v1390_v51 = vor.u32 %v1719_v47, %v1389_v46  ;;  %v1720_v53 = vld [vmem:[%s1897_s18 + $0x34] sm:$0xf] }
  0x18   : > { %769 = vmatpush.bf16.msra.mxu0 %v1782_v9  ;;  %1794 = vmatpush.bf16.msra.mxu2 %v1782_v9  ;;  %v1518_v52 = vor.u32 %v1751_v50, %v1517_v49  ;;  %v1399_v54 = vld [vmem:[%s1897_s18 + $0x38] sm:$0xf0]  ;;  %v1754_v55 = vld [vmem:[%s1897_s18 + $0x144] sm:$0xf]  ;;  %v1535_v56 = vld [vmem:[%s1897_s18 + $0x148] sm:$0xf0] }
  0x19   : > { %939 = vmatpush.bf16.msra.mxu1 %v1789_v8  ;;  %1801 = vmatpush.bf16.msra.mxu3 %v1789_v8  ;;  %v1402_v57 = vor.u32 %v1720_v53, %v1399_v54  ;;  %v1397_v58 = vld [vmem:[%s1897_s18 + $0x30] sm:$0xf]  ;;  %v1721_v59 = vld [vmem:[%s1897_s18 + $0x34] sm:$0xf0]  ;;  %v1538_v60 = vor.u32 %v1754_v55, %v1535_v56  ;;  %v1722_v1 = vld [vmem:[%s1897_s18 + $0x44] sm:$0xf] }
  0x1a   : > { %v1525_v61 = vld [vmem:[%s1897_s18 + $0x130] sm:$0xf]  ;;  %v1753_v62 = vld [vmem:[%s1897_s18 + $0x134] sm:$0xf0]  ;;  %v1398_v63 = vor.u32 %v1721_v59, %v1397_v58  ;;  %v1407_v2 = vld [vmem:[%s1897_s18 + $0x48] sm:$0xf0] }
  0x1b   : > { %v1526_v0 = vor.u32 %v1753_v62, %v1525_v61  ;;  %v1756_v3 = vld [vmem:[%s1897_s18 + $0x154] sm:$0xf]  ;;  %v1543_v4 = vld [vmem:[%s1897_s18 + $0x158] sm:$0xf0]  ;;  %v1410_v5 = vor.u32 %v1722_v1, %v1407_v2  ;;  %v1405_v6 = vld [vmem:[%s1897_s18 + $0x40] sm:$0xf] }
  0x1c   : > { %770 = vmatpush.bf16.msra.mxu0 %v1781_v11  ;;  %1795 = vmatpush.bf16.msra.mxu2 %v1781_v11  ;;  %v1723_v7 = vld [vmem:[%s1897_s18 + $0x44] sm:$0xf0]  ;;  %v1546_v8 = vor.u32 %v1756_v3, %v1543_v4  ;;  %v1533_v9 = vld [vmem:[%s1897_s18 + $0x140] sm:$0xf]  ;;  %v1551_v16 = vld [vmem:[%s1897_s18 + $0x168] sm:$0xf0] }
  0x1d   : > { %940 = vmatpush.bf16.msra.mxu1 %v1788_v10  ;;  %1802 = vmatpush.bf16.msra.mxu3 %v1788_v10  ;;  %v1755_v10 = vld [vmem:[%s1897_s18 + $0x144] sm:$0xf0]  ;;  %v1406_v11 = vor.u32 %v1723_v7, %v1405_v6  ;;  %v1413_v18 = vld [vmem:[%s1897_s18 + $0x50] sm:$0xf]  ;;  %v1725_v19 = vld [vmem:[%s1897_s18 + $0x54] sm:$0xf0] }
  0x1e   : > { %v1757_v22 = vld [vmem:[%s1897_s18 + $0x154] sm:$0xf0]  ;;  %v1414_v23 = vor.u32 %v1725_v19, %v1413_v18  ;;  %v1726_v25 = vld [vmem:[%s1897_s18 + $0x64] sm:$0xf]  ;;  %v1423_v26 = vld [vmem:[%s1897_s18 + $0x68] sm:$0xf0] }
  0x1f   : > { %v1426_v29 = vor.u32 %v1726_v25, %v1423_v26  ;;  %v1421_v30 = vld [vmem:[%s1897_s18 + $0x60] sm:$0xf]  ;;  %v1727_v31 = vld [vmem:[%s1897_s18 + $0x64] sm:$0xf0]  ;;  %v1728_v37 = vld [vmem:[%s1897_s18 + $0x74] sm:$0xf] }
  0x20   : > { %771 = vmatpush.bf16.msra.mxu0 %v1780_v13  ;;  %1796 = vmatpush.bf16.msra.mxu2 %v1780_v13  ;;  %v1724_v13 = vld [vmem:[%s1897_s18 + $0x54] sm:$0xf]  ;;  %v1759_v34 = vld [vmem:[%s1897_s18 + $0x164] sm:$0xf0]  ;;  %v1422_v35 = vor.u32 %v1727_v31, %v1421_v30  ;;  %v1431_v38 = vld [vmem:[%s1897_s18 + $0x78] sm:$0xf0] }
  0x21   : > { %941 = vmatpush.bf16.msra.mxu1 %v1787_v12  ;;  %1803 = vmatpush.bf16.msra.mxu3 %v1787_v12  ;;  %v1534_v12 = vor.u32 %v1755_v10, %v1533_v9  ;;  %v1434_v41 = vor.u32 %v1728_v37, %v1431_v38  ;;  %v1429_v42 = vld [vmem:[%s1897_s18 + $0x70] sm:$0xf]  ;;  %v1729_v43 = vld [vmem:[%s1897_s18 + $0x74] sm:$0xf0]  ;;  %v1730_v49 = vld [vmem:[%s1897_s18 + $0x84] sm:$0xf] }
  0x22   : > { %v1761_v46 = vld [vmem:[%s1897_s18 + $0x174] sm:$0xf0]  ;;  %v1430_v47 = vor.u32 %v1729_v43, %v1429_v42  ;;  %v1439_v50 = vld [vmem:[%s1897_s18 + $0x88] sm:$0xf0]  ;;  %v1437_v55 = vld [vmem:[%s1897_s18 + $0x80] sm:$0xf] }
  0x23   : > { %v1442_v53 = vor.u32 %v1730_v49, %v1439_v50  ;;  %v1731_v56 = vld [vmem:[%s1897_s18 + $0x84] sm:$0xf0]  ;;  %v1565_v58 = vld [vmem:[%s1897_s18 + $0x180] sm:$0xf]  ;;  %v1447_v9 = vld [vmem:[%s1897_s18 + $0x98] sm:$0xf0] }
  0x24   : > { %772 = vmatpush.bf16.msra.mxu0 %v1779_v15  ;;  %1797 = vmatpush.bf16.msra.mxu2 %v1779_v15  ;;  %v1758_v15 = vld [vmem:[%s1897_s18 + $0x164] sm:$0xf]  ;;  %v1763_v59 = vld [vmem:[%s1897_s18 + $0x184] sm:$0xf0]  ;;  %v1438_v61 = vor.u32 %v1731_v56, %v1437_v55  ;;  %v2006_v1 = vld [vmem:[%s2353_s3] ss:$0 sm:$0xff] }
  0x25   : > { %942 = vmatpush.bf16.msra.mxu1 %v1786_v14  ;;  %1804 = vmatpush.bf16.msra.mxu3 %v1786_v14  ;;  %v1415_v14 = vld [vmem:[%s1897_s18 + $0x58] sm:$0xf0]  ;;  %v1733_v18 = vld [vmem:[%s1897_s18 + $0x94] sm:$0xf0]  ;;  %v1768_v38 = vld [vmem:[%s1897_s18 + $0x1b4] sm:$0xf] }
  0x26   : > { %v1418_v17 = vor.u32 %v1724_v13, %v1415_v14  ;;  %v1581_v50 = vld [vmem:[%s1897_s18 + $0x1a0] sm:$0xf] }
  0x28   : > { %1679 = vmatmul.msk.bf16.vlgmr.msra.gmra.mxu1 %vm665_vm1, %v1378_v20  ;;  %773 = vmatpush.bf16.msra.mxu0 %v1778_v21  ;;  %v1554_v20 = vor.u32 %v1758_v15, %v1551_v16 }
  0x29   : > { %1696 = vmatmul.msk.bf16.vlgmr.msra.gmra.mxu3 %vm665_vm1, %v1514_v24  ;;  %1798 = vmatpush.bf16.msra.mxu2 %v1778_v21  ;;  %v1541_v21 = vld [vmem:[%s1897_s18 + $0x150] sm:$0xf] }
  0x2a   : > { %v1542_v24 = vor.u32 %v1757_v22, %v1541_v21  ;;  %v1573_v21 = vld [vmem:[%s1897_s18 + $0x190] sm:$0xf]  ;;  %v1765_v22 = vld [vmem:[%s1897_s18 + $0x194] sm:$0xf0] }
  0x2b   : > { %774 = vmatmul.bf16.vlgmr.msra.gmra.mxu0 %v1374_v27  ;;  %v1760_v27 = vld [vmem:[%s1897_s18 + $0x174] sm:$0xf]  ;;  %v1574_v26 = vor.u32 %v1765_v22, %v1573_v21  ;;  %v1589_v21 = vld [vmem:[%s1897_s18 + $0x1b0] sm:$0xf]  ;;  %v1769_v22 = vld [vmem:[%s1897_s18 + $0x1b4] sm:$0xf0] }
  0x2c   : > { %854 = vmatmul.bf16.vlgmr.msra.gmra.mxu2 %v1502_v28  ;;  %v1559_v28 = vld [vmem:[%s1897_s18 + $0x178] sm:$0xf0] }
  0x2d   : > { %v1562_v32 = vor.u32 %v1760_v27, %v1559_v28 }
  0x38   : > { %1680 = vmatmul.msk.bf16.gmra.mxu1 %vm665_vm1, %v1386_v33  ;;  %v1549_v33 = vld [vmem:[%s1897_s18 + $0x160] sm:$0xf] }
  0x39   : > { %1697 = vmatmul.msk.bf16.gmra.mxu3 %vm665_vm1, %v1522_v36  ;;  %v1550_v36 = vor.u32 %v1759_v34, %v1549_v33 }
  0x3b   : > { %779 = vmatmul.bf16.gmra.mxu0 %v1382_v39  ;;  %v1762_v39 = vld [vmem:[%s1897_s18 + $0x184] sm:$0xf] }
  0x3c   : > { %859 = vmatmul.bf16.gmra.mxu2 %v1510_v40  ;;  %v1567_v40 = vld [vmem:[%s1897_s18 + $0x188] sm:$0xf0] }
  0x3d   : > { %v1570_v44 = vor.u32 %v1762_v39, %v1567_v40  ;;  %v1591_v39 = vld [vmem:[%s1897_s18 + $0x1b8] sm:$0xf0] }
  0x48   : > { %1681 = vmatmul.msk.bf16.gmra.mxu1 %vm665_vm1, %v1394_v45  ;;  %v1557_v45 = vld [vmem:[%s1897_s18 + $0x170] sm:$0xf] }
  0x49   : > { %1698 = vmatmul.msk.bf16.gmra.mxu3 %vm665_vm1, %v1530_v48  ;;  %v1558_v48 = vor.u32 %v1761_v46, %v1557_v45  ;;  %v1453_v46 = vld [vmem:[%s1897_s18 + $0xa0] sm:$0xf] }
  0x4b   : > { %784 = vmatmul.bf16.gmra.mxu0 %v1390_v51  ;;  %v1764_v51 = vld [vmem:[%s1897_s18 + $0x194] sm:$0xf] }
  0x4c   : > { %864 = vmatmul.bf16.gmra.mxu2 %v1518_v52  ;;  %v1575_v52 = vld [vmem:[%s1897_s18 + $0x198] sm:$0xf0] }
  0x58   : > { %1682 = vmatmul.msk.bf16.gmra.mxu1 %vm665_vm1, %v1402_v57  ;;  %v1578_v57 = vor.u32 %v1764_v51, %v1575_v52  ;;  %v1767_v51 = vld [vmem:[%s1897_s18 + $0x1a4] sm:$0xf0] }
  0x59   : > { %1699 = vmatmul.msk.bf16.gmra.mxu3 %vm665_vm1, %v1538_v60  ;;  %v2000_v60 = vld [vmem:[%s2352_s2] ss:$0 sm:$0xff]  ;;  %v1582_v56 = vor.u32 %v1767_v51, %v1581_v50  ;;  %v1739_v51 = vld [vmem:[%s1897_s18 + $0xc4] sm:$0xf0] }
  0x5a   : > { %v1469_v50 = vld [vmem:[%s1897_s18 + $0xc0] sm:$0xf] }
  0x5b   : > { %789 = vmatmul.bf16.gmra.mxu0 %v1398_v63  ;;  %v1566_v63 = vor.u32 %v1763_v59, %v1565_v58 }
  0x5c   : > { %869 = vmatmul.bf16.gmra.mxu2 %v1526_v0 }
  0x68   : > { %1683 = vmatmul.msk.bf16.gmra.mxu1 %vm665_vm1, %v1410_v5 }
  0x69   : > { %1700 = vmatmul.msk.bf16.gmra.mxu3 %vm665_vm1, %v1546_v8  ;;  %v1732_v8 = vld [vmem:[%s1897_s18 + $0x94] sm:$0xf] }
  0x6a   : > { %v1450_v14 = vor.u32 %v1732_v8, %v1447_v9  ;;  %v1770_v9 = vld [vmem:[%s1897_s18 + $0x1c4] sm:$0xf] }
  0x6b   : > { %794 = vmatmul.bf16.gmra.mxu0 %v1406_v11  ;;  %v1766_v11 = vld [vmem:[%s1897_s18 + $0x1a4] sm:$0xf] }
  0x6c   : > { %874 = vmatmul.bf16.gmra.mxu2 %v1534_v12  ;;  %v1583_v12 = vld [vmem:[%s1897_s18 + $0x1a8] sm:$0xf0] }
  0x6d   : > { %v1586_v19 = vor.u32 %v1766_v11, %v1583_v12 }
  0x78   : > { %1684 = vmatmul.msk.bf16.gmra.mxu1 %vm665_vm1, %v1418_v17  ;;  %v1445_v17 = vld [vmem:[%s1897_s18 + $0x90] sm:$0xf] }
  0x79   : > { %1701 = vmatmul.msk.bf16.gmra.mxu3 %vm665_vm1, %v1554_v20 }
  0x7b   : > { %799 = vmatmul.bf16.gmra.mxu0 %v1414_v23 }
  0x7c   : > { %879 = vmatmul.bf16.gmra.mxu2 %v1542_v24  ;;  %v1446_v24 = vor.u32 %v1733_v18, %v1445_v17  ;;  %v1461_v17 = vld [vmem:[%s1897_s18 + $0xb0] sm:$0xf]  ;;  %v1737_v18 = vld [vmem:[%s1897_s18 + $0xb4] sm:$0xf0] }
  0x88   : > { %1685 = vmatmul.msk.bf16.gmra.mxu1 %vm665_vm1, %v1426_v29 }
  0x89   : > { %1702 = vmatmul.msk.bf16.gmra.mxu3 %vm665_vm1, %v1562_v32 }
  0x8b   : > { %804 = vmatmul.bf16.gmra.mxu0 %v1422_v35  ;;  %v1734_v35 = vld [vmem:[%s1897_s18 + $0xa4] sm:$0xf] }
  0x8c   : > { %884 = vmatmul.bf16.gmra.mxu2 %v1550_v36  ;;  %v1455_v36 = vld [vmem:[%s1897_s18 + $0xa8] sm:$0xf0] }
  0x8d   : > { %v1458_v42 = vor.u32 %v1734_v35, %v1455_v36 }
  0x98   : > { %1686 = vmatmul.msk.bf16.gmra.mxu1 %vm665_vm1, %v1434_v41 }
  0x99   : > { %1703 = vmatmul.msk.bf16.gmra.mxu3 %vm665_vm1, %v1570_v44 }
  0x9b   : > { %809 = vmatmul.bf16.gmra.mxu0 %v1430_v47  ;;  %v1735_v47 = vld [vmem:[%s1897_s18 + $0xa4] sm:$0xf0] }
  0x9c   : > { %889 = vmatmul.bf16.gmra.mxu2 %v1558_v48  ;;  %v1594_v48 = vor.u32 %v1768_v38, %v1591_v39  ;;  %v1738_v39 = vld [vmem:[%s1897_s18 + $0xc4] sm:$0xf] }
  0xa5   : > { %v944_v54 = vpop.f32.mrf.mxu1 }
  0xa8   : > { %1687 = vmatmul.msk.bf16.gmra.mxu1 %vm665_vm1, %v1442_v53  ;;  %v775_v62 = vpop.f32.mrf.mxu0  ;;  %v1454_v53 = vor.u32 %v1735_v47, %v1453_v46 }
  0xa9   : > { %1704 = vmatmul.msk.bf16.gmra.mxu3 %vm665_vm1, %v1578_v57  ;;  %v945_v0 = vadd.f32 %v944_v54, %v775_v62 }
  0xab   : > { %v1108_v2 = vmul.f32 %v2000_v60, %v945_v0  ;;  %814 = vmatmul.bf16.gmra.mxu0 %v1438_v61 }
  0xac   : > { %v1029_v3 = vpop.f32.mrf.mxu3  ;;  %894 = vmatmul.bf16.gmra.mxu2 %v1566_v63 }
  0xad   : > { %v946_v4 = vpop.f32.mrf.mxu1  ;;  %v1176_v5 = vadd.f32 %v2006_v1, %v1108_v2 }
  0xaf   : > { %1241 = vst.msk [vmem:[%s2014_s6] sm:$0xff] %vm1240_vm2, %v1176_v5  ;;  %v2019_v6 = vpop.f32.mrf.mxu2  ;;  %v1736_v5 = vld [vmem:[%s1897_s18 + $0xb4] sm:$0xf] }
  0xb0   : > { %v777_v7 = vpop.f32.mrf.mxu0 }
  0xb1   : > { %v947_v10 = vadd.f32 %v946_v4, %v777_v7  ;;  %v1463_v7 = vld [vmem:[%s1897_s18 + $0xb8] sm:$0xf0] }
  0xb3   : > { %v1109_v13 = vmul.f32 %v2000_v60, %v947_v10  ;;  %v1599_v10 = vld [vmem:[%s1897_s18 + $0x1c8] sm:$0xf0] }
  0xb4   : > { %v1031_v15 = vpop.f32.mrf.mxu3 }
  0xb5   : > { %v949_v16 = vpop.f32.mrf.mxu1  ;;  %v1177_v20 = vadd.f32 %v2006_v1, %v1109_v13  ;;  %v1466_v13 = vor.u32 %v1736_v5, %v1463_v7 }
  0xb7   : > { %1242 = vst.msk [vmem:[%s2014_s6 + $0x8] sm:$0xff] %vm1240_vm2, %v1177_v20  ;;  %v2033_v23 = vpop.f32.mrf.mxu2 }
  0xb8   : > { %1688 = vmatmul.msk.bf16.gmra.mxu1 %vm665_vm1, %v1450_v14  ;;  %v780_v25 = vpop.f32.mrf.mxu0 }
  0xb9   : > { %1705 = vmatmul.msk.bf16.gmra.mxu3 %vm665_vm1, %v1586_v19  ;;  %v950_v27 = vadd.f32 %v949_v16, %v780_v25  ;;  %v1602_v19 = vor.u32 %v1770_v9, %v1599_v10  ;;  %v1462_v25 = vor.u32 %v1737_v18, %v1461_v17  ;;  %v1740_v10 = vld [vmem:[%s1897_s18 + $0xd4] sm:$0xf] }
  0xbb   : > { %v1110_v28 = vmul.f32 %v2000_v60, %v950_v27  ;;  %819 = vmatmul.bf16.gmra.mxu0 %v1446_v24 }
  0xbc   : > { %v1034_v29 = vpop.f32.mrf.mxu3  ;;  %899 = vmatmul.bf16.gmra.mxu2 %v1574_v26 }
  0xbd   : > { %v951_v30 = vpop.f32.mrf.mxu1  ;;  %v1178_v31 = vadd.f32 %v2006_v1, %v1110_v28  ;;  %v1590_v28 = vor.u32 %v1769_v22, %v1589_v21  ;;  %v1477_v21 = vld [vmem:[%s1897_s18 + $0xd0] sm:$0xf]  ;;  %v1741_v22 = vld [vmem:[%s1897_s18 + $0xd4] sm:$0xf0] }
  0xbf   : > { %1243 = vst.msk [vmem:[%s2014_s6 + $0x10] sm:$0xff] %vm1240_vm2, %v1178_v31  ;;  %v860_v32 = vpop.f32.mrf.mxu2 }
  0xc0   : > { %v1030_v33 = vadd.f32 %v1029_v3, %v860_v32  ;;  %v782_v34 = vpop.f32.mrf.mxu0 }
  0xc1   : > { %v952_v37 = vadd.f32 %v951_v30, %v782_v34 }
  0xc2   : > { %v1142_v40 = vmul.f32 %v2000_v60, %v1030_v33 }
  0xc3   : > { %v1111_v41 = vmul.f32 %v2000_v60, %v952_v37 }
  0xc4   : > { %v1036_v43 = vpop.f32.mrf.mxu3  ;;  %v1210_v44 = vadd.f32 %v2006_v1, %v1142_v40  ;;  %v1471_v40 = vld [vmem:[%s1897_s18 + $0xc8] sm:$0xf0] }
  0xc5   : > { %v954_v45 = vpop.f32.mrf.mxu1  ;;  %v1179_v49 = vadd.f32 %v2006_v1, %v1111_v41  ;;  %v1474_v46 = vor.u32 %v1738_v39, %v1471_v40 }
  0xc6   : > { %1275 = vst.msk [vmem:[%s2014_s6 + $0x110] sm:$0xff] %vm1240_vm2, %v1210_v44 }
  0xc7   : > { %1244 = vst.msk [vmem:[%s2014_s6 + $0x18] sm:$0xff] %vm1240_vm2, %v1179_v49  ;;  %v862_v52 = vpop.f32.mrf.mxu2 }
  0xc8   : > { %1689 = vmatmul.msk.bf16.gmra.mxu1 %vm665_vm1, %v1458_v42  ;;  %v1032_v54 = vadd.f32 %v1031_v15, %v862_v52  ;;  %v785_v55 = vpop.f32.mrf.mxu0  ;;  %v1772_v42 = vld [vmem:[%s1897_s18 + $0x1d4] sm:$0xf] }
  0xc9   : > { %1706 = vmatmul.msk.bf16.gmra.mxu3 %vm665_vm1, %v1594_v48  ;;  %v955_v57 = vadd.f32 %v954_v45, %v785_v55  ;;  %v1771_v55 = vld [vmem:[%s1897_s18 + $0x1c4] sm:$0xf0] }
  0xca   : > { %v1143_v58 = vmul.f32 %v2000_v60, %v1032_v54  ;;  %v1597_v54 = vld [vmem:[%s1897_s18 + $0x1c0] sm:$0xf] }
  0xcb   : > { %v1112_v59 = vmul.f32 %v2000_v60, %v955_v57  ;;  %824 = vmatmul.bf16.gmra.mxu0 %v1454_v53  ;;  %v1470_v57 = vor.u32 %v1739_v51, %v1469_v50 }
  0xcc   : > { %v1039_v61 = vpop.f32.mrf.mxu3  ;;  %v1211_v62 = vadd.f32 %v2006_v1, %v1143_v58  ;;  %904 = vmatmul.bf16.gmra.mxu2 %v1582_v56 }
  0xcd   : > { %v956_v63 = vpop.f32.mrf.mxu1  ;;  %v1180_v0 = vadd.f32 %v2006_v1, %v1112_v59 }
  0xce   : > { %1276 = vst.msk [vmem:[%s2014_s6 + $0x118] sm:$0xff] %vm1240_vm2, %v1211_v62 }
  0xcf   : > { %1245 = vst.msk [vmem:[%s2014_s6 + $0x20] sm:$0xff] %vm1240_vm2, %v1180_v0  ;;  %v865_v2 = vpop.f32.mrf.mxu2 }
  0xd0   : > { %v1035_v3 = vadd.f32 %v1034_v29, %v865_v2  ;;  %v787_v4 = vpop.f32.mrf.mxu0 }
  0xd1   : > { %v957_v8 = vadd.f32 %v956_v63, %v787_v4 }
  0xd2   : > { %v1144_v11 = vmul.f32 %v2000_v60, %v1035_v3 }
  0xd3   : > { %v1113_v12 = vmul.f32 %v2000_v60, %v957_v8 }
  0xd4   : > { %v1041_v14 = vpop.f32.mrf.mxu3  ;;  %v1212_v15 = vadd.f32 %v2006_v1, %v1144_v11  ;;  %v1479_v11 = vld [vmem:[%s1897_s18 + $0xd8] sm:$0xf0] }
  0xd5   : > { %v959_v16 = vpop.f32.mrf.mxu1  ;;  %v1181_v20 = vadd.f32 %v2006_v1, %v1113_v12  ;;  %v1482_v17 = vor.u32 %v1740_v10, %v1479_v11 }
  0xd6   : > { %1277 = vst.msk [vmem:[%s2014_s6 + $0x120] sm:$0xff] %vm1240_vm2, %v1212_v15 }
  0xd7   : > { %1246 = vst.msk [vmem:[%s2014_s6 + $0x28] sm:$0xff] %vm1240_vm2, %v1181_v20  ;;  %v867_v24 = vpop.f32.mrf.mxu2 }
  0xd8   : > { %1690 = vmatmul.msk.bf16.gmra.mxu1 %vm665_vm1, %v1466_v13  ;;  %v1037_v26 = vadd.f32 %v1036_v43, %v867_v24  ;;  %v790_v27 = vpop.f32.mrf.mxu0  ;;  %v1607_v43 = vld [vmem:[%s1897_s18 + $0x1d8] sm:$0xf0]  ;;  %v1774_v13 = vld [vmem:[%s1897_s18 + $0x1e4] sm:$0xf] }
  0xd9   : > { %1707 = vmatmul.msk.bf16.gmra.mxu3 %vm665_vm1, %v1602_v19  ;;  %v960_v29 = vadd.f32 %v959_v16, %v790_v27  ;;  %v1610_v52 = vor.u32 %v1772_v42, %v1607_v43  ;;  %v1773_v27 = vld [vmem:[%s1897_s18 + $0x1d4] sm:$0xf0]  ;;  %v1742_v43 = vld [vmem:[%s1897_s18 + $0xe4] sm:$0xf] }
  0xda   : > { %v1145_v30 = vmul.f32 %v2000_v60, %v1037_v26  ;;  %v1605_v26 = vld [vmem:[%s1897_s18 + $0x1d0] sm:$0xf] }
  0xdb   : > { %v1114_v31 = vmul.f32 %v2000_v60, %v960_v29  ;;  %829 = vmatmul.bf16.gmra.mxu0 %v1462_v25  ;;  %v1478_v29 = vor.u32 %v1741_v22, %v1477_v21 }
  0xdc   : > { %v1044_v32 = vpop.f32.mrf.mxu3  ;;  %v1213_v33 = vadd.f32 %v2006_v1, %v1145_v30  ;;  %909 = vmatmul.bf16.gmra.mxu2 %v1590_v28 }
  0xdd   : > { %v961_v34 = vpop.f32.mrf.mxu1  ;;  %v1182_v35 = vadd.f32 %v2006_v1, %v1114_v31 }
  0xde   : > { %1278 = vst.msk [vmem:[%s2014_s6 + $0x128] sm:$0xff] %vm1240_vm2, %v1213_v33 }
  0xdf   : > { %1247 = vst.msk [vmem:[%s2014_s6 + $0x30] sm:$0xff] %vm1240_vm2, %v1182_v35  ;;  %v870_v36 = vpop.f32.mrf.mxu2 }
  0xe0   : > { %v1040_v37 = vadd.f32 %v1039_v61, %v870_v36  ;;  %v792_v38 = vpop.f32.mrf.mxu0  ;;  %v1598_v61 = vor.u32 %v1771_v55, %v1597_v54  ;;  %v1485_v54 = vld [vmem:[%s1897_s18 + $0xe0] sm:$0xf]  ;;  %v1743_v55 = vld [vmem:[%s1897_s18 + $0xe4] sm:$0xf0] }
  0xe1   : > { %v962_v41 = vadd.f32 %v961_v34, %v792_v38 }
  0xe2   : > { %v1146_v44 = vmul.f32 %v2000_v60, %v1040_v37 }
  0xe3   : > { %v1115_v45 = vmul.f32 %v2000_v60, %v962_v41 }
  0xe4   : > { %v1046_v47 = vpop.f32.mrf.mxu3  ;;  %v1214_v48 = vadd.f32 %v2006_v1, %v1146_v44  ;;  %v1487_v44 = vld [vmem:[%s1897_s18 + $0xe8] sm:$0xf0] }
  0xe5   : > { %v964_v49 = vpop.f32.mrf.mxu1  ;;  %v1183_v53 = vadd.f32 %v2006_v1, %v1115_v45  ;;  %v1490_v50 = vor.u32 %v1742_v43, %v1487_v44  ;;  %v1746_v44 = vld [vmem:[%s1897_s18 + $0x104] sm:$0xf] }
  0xe6   : > { %1279 = vst.msk [vmem:[%s2014_s6 + $0x130] sm:$0xff] %vm1240_vm2, %v1214_v48 }
  0xe7   : > { %1248 = vst.msk [vmem:[%s2014_s6 + $0x38] sm:$0xff] %vm1240_vm2, %v1183_v53  ;;  %v872_v56 = vpop.f32.mrf.mxu2 }
  0xe8   : > { %1691 = vmatmul.msk.bf16.gmra.mxu1 %vm665_vm1, %v1474_v46  ;;  %v1042_v58 = vadd.f32 %v1041_v14, %v872_v56  ;;  %v795_v59 = vpop.f32.mrf.mxu0  ;;  %v1615_v14 = vld [vmem:[%s1897_s18 + $0x1e8] sm:$0xf0]  ;;  %v1776_v46 = vld [vmem:[%s1897_s18 + $0x1f4] sm:$0xf] }
  0xe9   : > { %1708 = vmatmul.msk.bf16.gmra.mxu3 %vm665_vm1, %v1610_v52  ;;  %v965_v62 = vadd.f32 %v964_v49, %v795_v59  ;;  %v1618_v24 = vor.u32 %v1774_v13, %v1615_v14  ;;  %v1775_v59 = vld [vmem:[%s1897_s18 + $0x1e4] sm:$0xf0]  ;;  %v1744_v14 = vld [vmem:[%s1897_s18 + $0xf4] sm:$0xf] }
  0xea   : > { %v1147_v63 = vmul.f32 %v2000_v60, %v1042_v58  ;;  %v1613_v58 = vld [vmem:[%s1897_s18 + $0x1e0] sm:$0xf] }
  0xeb   : > { %v1116_v0 = vmul.f32 %v2000_v60, %v965_v62  ;;  %834 = vmatmul.bf16.gmra.mxu0 %v1470_v57  ;;  %v1486_v62 = vor.u32 %v1743_v55, %v1485_v54 }
  0xec   : > { %v1049_v2 = vpop.f32.mrf.mxu3  ;;  %v1215_v3 = vadd.f32 %v2006_v1, %v1147_v63  ;;  %914 = vmatmul.bf16.gmra.mxu2 %v1598_v61 }
  0xed   : > { %v966_v4 = vpop.f32.mrf.mxu1  ;;  %v1184_v5 = vadd.f32 %v2006_v1, %v1116_v0 }
  0xee   : > { %1280 = vst.msk [vmem:[%s2014_s6 + $0x138] sm:$0xff] %vm1240_vm2, %v1215_v3 }
  0xef   : > { %1249 = vst.msk [vmem:[%s2014_s6 + $0x40] sm:$0xff] %vm1240_vm2, %v1184_v5  ;;  %v875_v7 = vpop.f32.mrf.mxu2 }
  0xf0   : > { %v1045_v8 = vadd.f32 %v1044_v32, %v875_v7  ;;  %v797_v9 = vpop.f32.mrf.mxu0  ;;  %v1606_v32 = vor.u32 %v1773_v27, %v1605_v26  ;;  %v1621_v27 = vld [vmem:[%s1897_s18 + $0x1f0] sm:$0xf] }
  0xf1   : > { %v967_v12 = vadd.f32 %v966_v4, %v797_v9 }
  0xf2   : > { %v1148_v15 = vmul.f32 %v2000_v60, %v1045_v8 }
  0xf3   : > { %v1117_v16 = vmul.f32 %v2000_v60, %v967_v12 }
  0xf4   : > { %v1051_v18 = vpop.f32.mrf.mxu3  ;;  %v1216_v19 = vadd.f32 %v2006_v1, %v1148_v15  ;;  %v1495_v15 = vld [vmem:[%s1897_s18 + $0xf8] sm:$0xf0] }
  0xf5   : > { %v969_v20 = vpop.f32.mrf.mxu1  ;;  %v1185_v25 = vadd.f32 %v2006_v1, %v1117_v16 }
  0xf6   : > { %1281 = vst.msk [vmem:[%s2014_s6 + $0x140] sm:$0xff] %vm1240_vm2, %v1216_v19  ;;  %v1498_v19 = vor.u32 %v1744_v14, %v1495_v15 }
  0xf7   : > { %1250 = vst.msk [vmem:[%s2014_s6 + $0x48] sm:$0xff] %vm1240_vm2, %v1185_v25  ;;  %v877_v28 = vpop.f32.mrf.mxu2  ;;  %v1745_v25 = vld [vmem:[%s1897_s18 + $0xf4] sm:$0xf0] }
  0xf8   : > { %1692 = vmatmul.msk.bf16.gmra.mxu1 %vm665_vm1, %v1482_v17  ;;  %v1047_v30 = vadd.f32 %v1046_v47, %v877_v28  ;;  %v800_v31 = vpop.f32.mrf.mxu0  ;;  %v1623_v47 = vld [vmem:[%s1897_s18 + $0x1f8] sm:$0xf0]  ;;  %v1777_v28 = vld [vmem:[%s1897_s18 + $0x1f4] sm:$0xf0] }
  0xf9   : > { %1709 = vmatmul.msk.bf16.gmra.mxu3 %vm665_vm1, %v1618_v24  ;;  %v970_v33 = vadd.f32 %v969_v20, %v800_v31  ;;  %v1626_v56 = vor.u32 %v1776_v46, %v1623_v47  ;;  %v1493_v24 = vld [vmem:[%s1897_s18 + $0xf0] sm:$0xf] }
  0xfa   : > { %v1149_v34 = vmul.f32 %v2000_v60, %v1047_v30  ;;  %v1494_v30 = vor.u32 %v1745_v25, %v1493_v24 }
  0xfb   : > { %v1118_v35 = vmul.f32 %v2000_v60, %v970_v33  ;;  %839 = vmatmul.bf16.gmra.mxu0 %v1478_v29  ;;  %v1622_v33 = vor.u32 %v1777_v28, %v1621_v27 }
  0xfc   : > { %v1054_v36 = vpop.f32.mrf.mxu3  ;;  %v1217_v37 = vadd.f32 %v2006_v1, %v1149_v34  ;;  %919 = vmatmul.bf16.gmra.mxu2 %v1606_v32 }
  0xfd   : > { %v971_v38 = vpop.f32.mrf.mxu1  ;;  %v1186_v39 = vadd.f32 %v2006_v1, %v1118_v35 }
  0xfe   : > { %1282 = vst.msk [vmem:[%s2014_s6 + $0x148] sm:$0xff] %vm1240_vm2, %v1217_v37 }
  0xff   : > { %1251 = vst.msk [vmem:[%s2014_s6 + $0x50] sm:$0xff] %vm1240_vm2, %v1186_v39  ;;  %v880_v40 = vpop.f32.mrf.mxu2 }
 0x100   : > { %v1050_v41 = vadd.f32 %v1049_v2, %v880_v40  ;;  %v802_v42 = vpop.f32.mrf.mxu0  ;;  %v1614_v2 = vor.u32 %v1775_v59, %v1613_v58 }
 0x101   : > { %v972_v45 = vadd.f32 %v971_v38, %v802_v42 }
 0x102   : > { %v1150_v48 = vmul.f32 %v2000_v60, %v1050_v41 }
 0x103   : > { %v1119_v49 = vmul.f32 %v2000_v60, %v972_v45  ;;  %v1503_v45 = vld [vmem:[%s1897_s18 + $0x108] sm:$0xf0] }
 0x104   : > { %v1056_v51 = vpop.f32.mrf.mxu3  ;;  %v1218_v52 = vadd.f32 %v2006_v1, %v1150_v48 }
 0x105   : > { %v974_v53 = vpop.f32.mrf.mxu1  ;;  %v1187_v57 = vadd.f32 %v2006_v1, %v1119_v49  ;;  %v1506_v49 = vor.u32 %v1746_v44, %v1503_v45 }
 0x106   : > { %1283 = vst.msk [vmem:[%s2014_s6 + $0x150] sm:$0xff] %vm1240_vm2, %v1218_v52 }
 0x107   : > { %1252 = vst.msk [vmem:[%s2014_s6 + $0x58] sm:$0xff] %vm1240_vm2, %v1187_v57  ;;  %v882_v61 = vpop.f32.mrf.mxu2 }
 0x108   : > { %1693 = vmatmul.msk.bf16.gmra.mxu1 %vm665_vm1, %v1490_v50  ;;  %v1052_v63 = vadd.f32 %v1051_v18, %v882_v61  ;;  %v805_v0 = vpop.f32.mrf.mxu0 }
 0x109   : > { %1710 = vmatmul.msk.bf16.gmra.mxu3 %vm665_vm1, %v1626_v56  ;;  %v975_v3 = vadd.f32 %v974_v53, %v805_v0 }
 0x10a   : > { %v1151_v4 = vmul.f32 %v2000_v60, %v1052_v63 }
 0x10b   : > { %v1120_v5 = vmul.f32 %v2000_v60, %v975_v3  ;;  %844 = vmatmul.bf16.gmra.mxu0 %v1486_v62 }
 0x10c   : > { %v1059_v7 = vpop.f32.mrf.mxu3  ;;  %v1219_v8 = vadd.f32 %v2006_v1, %v1151_v4  ;;  %924 = vmatmul.bf16.gmra.mxu2 %v1614_v2 }
 0x10d   : > { %v976_v9 = vpop.f32.mrf.mxu1  ;;  %v1188_v10 = vadd.f32 %v2006_v1, %v1120_v5 }
 0x10e   : > { %1284 = vst.msk [vmem:[%s2014_s6 + $0x158] sm:$0xff] %vm1240_vm2, %v1219_v8 }
 0x10f   : > { %1253 = vst.msk [vmem:[%s2014_s6 + $0x60] sm:$0xff] %vm1240_vm2, %v1188_v10  ;;  %v885_v11 = vpop.f32.mrf.mxu2 }
 0x110   : > { %v1055_v12 = vadd.f32 %v1054_v36, %v885_v11  ;;  %v807_v13 = vpop.f32.mrf.mxu0 }
 0x111   : > { %v977_v16 = vadd.f32 %v976_v9, %v807_v13 }
 0x112   : > { %v1152_v17 = vmul.f32 %v2000_v60, %v1055_v12 }
 0x113   : > { %v1121_v18 = vmul.f32 %v2000_v60, %v977_v16 }
 0x114   : > { %v1061_v20 = vpop.f32.mrf.mxu3  ;;  %v1220_v21 = vadd.f32 %v2006_v1, %v1152_v17 }
 0x115   : > { %v979_v22 = vpop.f32.mrf.mxu1  ;;  %v1189_v26 = vadd.f32 %v2006_v1, %v1121_v18 }
 0x116   : > { %1285 = vst.msk [vmem:[%s2014_s6 + $0x160] sm:$0xff] %vm1240_vm2, %v1220_v21 }
 0x117   : > { %1254 = vst.msk [vmem:[%s2014_s6 + $0x68] sm:$0xff] %vm1240_vm2, %v1189_v26  ;;  %v887_v29 = vpop.f32.mrf.mxu2 }
 0x118   : > { %1694 = vmatmul.msk.bf16.gmra.mxu1 %vm665_vm1, %v1498_v19  ;;  %v1057_v31 = vadd.f32 %v1056_v51, %v887_v29  ;;  %v810_v32 = vpop.f32.mrf.mxu0 }
 0x119   : > { %v980_v34 = vadd.f32 %v979_v22, %v810_v32 }
 0x11a   : > { %v1153_v35 = vmul.f32 %v2000_v60, %v1057_v31 }
 0x11b   : > { %v1122_v36 = vmul.f32 %v2000_v60, %v980_v34  ;;  %849 = vmatmul.bf16.gmra.mxu0 %v1494_v30 }
 0x11c   : > { %v1064_v37 = vpop.f32.mrf.mxu3  ;;  %v1221_v38 = vadd.f32 %v2006_v1, %v1153_v35  ;;  %929 = vmatmul.bf16.gmra.mxu2 %v1622_v33 }
 0x11d   : > { %v981_v39 = vpop.f32.mrf.mxu1  ;;  %v1190_v40 = vadd.f32 %v2006_v1, %v1122_v36 }
 0x11e   : > { %1286 = vst.msk [vmem:[%s2014_s6 + $0x168] sm:$0xff] %vm1240_vm2, %v1221_v38 }
 0x11f   : > { %1255 = vst.msk [vmem:[%s2014_s6 + $0x70] sm:$0xff] %vm1240_vm2, %v1190_v40  ;;  %v890_v41 = vpop.f32.mrf.mxu2 }
 0x120   : > { %v1060_v42 = vadd.f32 %v1059_v7, %v890_v41  ;;  %v812_v43 = vpop.f32.mrf.mxu0 }
 0x121   : > { %v982_v46 = vadd.f32 %v981_v39, %v812_v43 }
 0x122   : > { %v1154_v47 = vmul.f32 %v2000_v60, %v1060_v42 }
 0x123   : > { %v1123_v48 = vmul.f32 %v2000_v60, %v982_v46 }
 0x124   : > { %v1066_v50 = vpop.f32.mrf.mxu3  ;;  %v1222_v51 = vadd.f32 %v2006_v1, %v1154_v47 }
 0x125   : > { %v984_v52 = vpop.f32.mrf.mxu1  ;;  %v1191_v53 = vadd.f32 %v2006_v1, %v1123_v48 }
 0x126   : > { %1287 = vst.msk [vmem:[%s2014_s6 + $0x170] sm:$0xff] %vm1240_vm2, %v1222_v51 }
 0x127   : > { %1256 = vst.msk [vmem:[%s2014_s6 + $0x78] sm:$0xff] %vm1240_vm2, %v1191_v53  ;;  %v892_v54 = vpop.f32.mrf.mxu2 }
 0x128   : > { %1695 = vmatmul.msk.bf16.gmra.mxu1 %vm665_vm1, %v1506_v49  ;;  %v1062_v55 = vadd.f32 %v1061_v20, %v892_v54  ;;  %v815_v56 = vpop.f32.mrf.mxu0 }
 0x129   : > { %v985_v57 = vadd.f32 %v984_v52, %v815_v56 }
 0x12a   : > { %v1155_v58 = vmul.f32 %v2000_v60, %v1062_v55 }
 0x12b   : > { %v1124_v59 = vmul.f32 %v2000_v60, %v985_v57 }
 0x12c   : > { %v1069_v61 = vpop.f32.mrf.mxu3  ;;  %v1223_v62 = vadd.f32 %v2006_v1, %v1155_v58 }
 0x12d   : > { %v986_v63 = vpop.f32.mrf.mxu1  ;;  %v1192_v0 = vadd.f32 %v2006_v1, %v1124_v59 }
 0x12e   : > { %1288 = vst.msk [vmem:[%s2014_s6 + $0x178] sm:$0xff] %vm1240_vm2, %v1223_v62 }
 0x12f   : > { %1257 = vst.msk [vmem:[%s2014_s6 + $0x80] sm:$0xff] %vm1240_vm2, %v1192_v0  ;;  %v895_v2 = vpop.f32.mrf.mxu2 }
 0x130   : > { %v1065_v3 = vadd.f32 %v1064_v37, %v895_v2  ;;  %v817_v4 = vpop.f32.mrf.mxu0 }
 0x131   : > { %v987_v5 = vadd.f32 %v986_v63, %v817_v4 }
 0x132   : > { %v1156_v7 = vmul.f32 %v2000_v60, %v1065_v3 }
 0x133   : > { %v1125_v8 = vmul.f32 %v2000_v60, %v987_v5 }
 0x134   : > { %v1071_v9 = vpop.f32.mrf.mxu3  ;;  %v1224_v10 = vadd.f32 %v2006_v1, %v1156_v7 }
 0x135   : > { %v989_v11 = vpop.f32.mrf.mxu1  ;;  %v1193_v12 = vadd.f32 %v2006_v1, %v1125_v8 }
 0x136   : > { %1289 = vst.msk [vmem:[%s2014_s6 + $0x180] sm:$0xff] %vm1240_vm2, %v1224_v10 }
 0x137   : > { %1258 = vst.msk [vmem:[%s2014_s6 + $0x88] sm:$0xff] %vm1240_vm2, %v1193_v12  ;;  %v897_v13 = vpop.f32.mrf.mxu2 }
 0x138   : > { %v1067_v14 = vadd.f32 %v1066_v50, %v897_v13  ;;  %v820_v15 = vpop.f32.mrf.mxu0 }
 0x139   : > { %v990_v16 = vadd.f32 %v989_v11, %v820_v15 }
 0x13a   : > { %v1157_v17 = vmul.f32 %v2000_v60, %v1067_v14 }
 0x13b   : > { %v1126_v18 = vmul.f32 %v2000_v60, %v990_v16 }
 0x13c   : > { %v1074_v19 = vpop.f32.mrf.mxu3  ;;  %v1225_v20 = vadd.f32 %v2006_v1, %v1157_v17 }
 0x13d   : > { %v991_v21 = vpop.f32.mrf.mxu1  ;;  %v1194_v22 = vadd.f32 %v2006_v1, %v1126_v18 }
 0x13e   : > { %1290 = vst.msk [vmem:[%s2014_s6 + $0x188] sm:$0xff] %vm1240_vm2, %v1225_v20 }
 0x13f   : > { %1259 = vst.msk [vmem:[%s2014_s6 + $0x90] sm:$0xff] %vm1240_vm2, %v1194_v22  ;;  %v900_v24 = vpop.f32.mrf.mxu2 }
 0x140   : > { %v1070_v25 = vadd.f32 %v1069_v61, %v900_v24  ;;  %v822_v26 = vpop.f32.mrf.mxu0 }
 0x141   : > { %v992_v27 = vadd.f32 %v991_v21, %v822_v26 }
 0x142   : > { %v1158_v28 = vmul.f32 %v2000_v60, %v1070_v25 }
 0x143   : > { %v1127_v29 = vmul.f32 %v2000_v60, %v992_v27 }
 0x144   : > { %v1076_v30 = vpop.f32.mrf.mxu3  ;;  %v1226_v31 = vadd.f32 %v2006_v1, %v1158_v28 }
 0x145   : > { %v994_v32 = vpop.f32.mrf.mxu1  ;;  %v1195_v33 = vadd.f32 %v2006_v1, %v1127_v29 }
 0x146   : > { %1291 = vst.msk [vmem:[%s2014_s6 + $0x190] sm:$0xff] %vm1240_vm2, %v1226_v31 }
 0x147   : > { %1260 = vst.msk [vmem:[%s2014_s6 + $0x98] sm:$0xff] %vm1240_vm2, %v1195_v33  ;;  %v902_v34 = vpop.f32.mrf.mxu2 }
 0x148   : > { %v1072_v35 = vadd.f32 %v1071_v9, %v902_v34  ;;  %v825_v36 = vpop.f32.mrf.mxu0 }
 0x149   : > { %v995_v37 = vadd.f32 %v994_v32, %v825_v36 }
 0x14a   : > { %v1159_v38 = vmul.f32 %v2000_v60, %v1072_v35 }
 0x14b   : > { %v1128_v39 = vmul.f32 %v2000_v60, %v995_v37 }
 0x14c   : > { %v1227_v40 = vadd.f32 %v2006_v1, %v1159_v38  ;;  %v1079_v43 = vpop.f32.mrf.mxu3 }
 0x14d   : > { %v996_v41 = vpop.f32.mrf.mxu1  ;;  %v1196_v42 = vadd.f32 %v2006_v1, %v1128_v39 }
 0x14e   : > { %1292 = vst.msk [vmem:[%s2014_s6 + $0x198] sm:$0xff] %vm1240_vm2, %v1227_v40 }
 0x14f   : > { %1261 = vst.msk [vmem:[%s2014_s6 + $0xa0] sm:$0xff] %vm1240_vm2, %v1196_v42  ;;  %v905_v44 = vpop.f32.mrf.mxu2 }
 0x150   : > { %v1075_v45 = vadd.f32 %v1074_v19, %v905_v44  ;;  %v827_v46 = vpop.f32.mrf.mxu0 }
 0x151   : > { %v997_v47 = vadd.f32 %v996_v41, %v827_v46 }
 0x152   : > { %v1160_v48 = vmul.f32 %v2000_v60, %v1075_v45 }
 0x153   : > { %v1129_v49 = vmul.f32 %v2000_v60, %v997_v47 }
 0x154   : > { %v1228_v50 = vadd.f32 %v2006_v1, %v1160_v48  ;;  %v1081_v54 = vpop.f32.mrf.mxu3 }
 0x155   : > { %v999_v51 = vpop.f32.mrf.mxu1  ;;  %v1197_v52 = vadd.f32 %v2006_v1, %v1129_v49 }
 0x156   : > { %1293 = vst.msk [vmem:[%s2014_s6 + $0x1a0] sm:$0xff] %vm1240_vm2, %v1228_v50 }
 0x157   : > { %1262 = vst.msk [vmem:[%s2014_s6 + $0xa8] sm:$0xff] %vm1240_vm2, %v1197_v52  ;;  %v907_v53 = vpop.f32.mrf.mxu2 }
 0x158   : > { %v1077_v55 = vadd.f32 %v1076_v30, %v907_v53  ;;  %v830_v56 = vpop.f32.mrf.mxu0 }
 0x159   : > { %v1000_v57 = vadd.f32 %v999_v51, %v830_v56 }
 0x15a   : > { %v1161_v58 = vmul.f32 %v2000_v60, %v1077_v55 }
 0x15b   : > { %v1130_v59 = vmul.f32 %v2000_v60, %v1000_v57 }
 0x15c   : > { %v1229_v61 = vadd.f32 %v2006_v1, %v1161_v58  ;;  %v1084_v5 = vpop.f32.mrf.mxu3 }
 0x15d   : > { %v1001_v62 = vpop.f32.mrf.mxu1  ;;  %v1198_v63 = vadd.f32 %v2006_v1, %v1130_v59 }
 0x15e   : > { %1294 = vst.msk [vmem:[%s2014_s6 + $0x1a8] sm:$0xff] %vm1240_vm2, %v1229_v61 }
 0x15f   : > { %1263 = vst.msk [vmem:[%s2014_s6 + $0xb0] sm:$0xff] %vm1240_vm2, %v1198_v63  ;;  %v910_v0 = vpop.f32.mrf.mxu2 }
 0x160   : > { %v1080_v2 = vadd.f32 %v1079_v43, %v910_v0  ;;  %v832_v3 = vpop.f32.mrf.mxu0 }
 0x161   : > { %v1002_v4 = vadd.f32 %v1001_v62, %v832_v3 }
 0x162   : > { %v1162_v7 = vmul.f32 %v2000_v60, %v1080_v2 }
 0x163   : > { %v1131_v8 = vmul.f32 %v2000_v60, %v1002_v4 }
 0x164   : > { %v1230_v9 = vadd.f32 %v2006_v1, %v1162_v7  ;;  %v1086_v18 = vpop.f32.mrf.mxu3 }
 0x165   : > { %v1004_v10 = vpop.f32.mrf.mxu1  ;;  %v1199_v11 = vadd.f32 %v2006_v1, %v1131_v8 }
 0x166   : > { %1295 = vst.msk [vmem:[%s2014_s6 + $0x1b0] sm:$0xff] %vm1240_vm2, %v1230_v9 }
 0x167   : > { %1264 = vst.msk [vmem:[%s2014_s6 + $0xb8] sm:$0xff] %vm1240_vm2, %v1199_v11  ;;  %v912_v12 = vpop.f32.mrf.mxu2 }
 0x168   : > { %v1082_v13 = vadd.f32 %v1081_v54, %v912_v12  ;;  %v835_v14 = vpop.f32.mrf.mxu0 }
 0x169   : > { %v1005_v15 = vadd.f32 %v1004_v10, %v835_v14 }
 0x16a   : > { %v1163_v16 = vmul.f32 %v2000_v60, %v1082_v13 }
 0x16b   : > { %v1132_v17 = vmul.f32 %v2000_v60, %v1005_v15 }
 0x16c   : > { %v1231_v19 = vadd.f32 %v2006_v1, %v1163_v16  ;;  %v1089_v32 = vpop.f32.mrf.mxu3 }
 0x16d   : > { %v1006_v20 = vpop.f32.mrf.mxu1  ;;  %v1200_v21 = vadd.f32 %v2006_v1, %v1132_v17 }
 0x16e   : > { %1296 = vst.msk [vmem:[%s2014_s6 + $0x1b8] sm:$0xff] %vm1240_vm2, %v1231_v19 }
 0x16f   : > { %1265 = vst.msk [vmem:[%s2014_s6 + $0xc0] sm:$0xff] %vm1240_vm2, %v1200_v21  ;;  %v915_v22 = vpop.f32.mrf.mxu2 }
 0x170   : > { %v1085_v24 = vadd.f32 %v1084_v5, %v915_v22  ;;  %v837_v25 = vpop.f32.mrf.mxu0 }
 0x171   : > { %v1007_v26 = vadd.f32 %v1006_v20, %v837_v25 }
 0x172   : > { %v1164_v27 = vmul.f32 %v2000_v60, %v1085_v24 }
 0x173   : > { %v1133_v28 = vmul.f32 %v2000_v60, %v1007_v26 }
 0x174   : > { %v1232_v29 = vadd.f32 %v2006_v1, %v1164_v27  ;;  %v1091_v43 = vpop.f32.mrf.mxu3 }
 0x175   : > { %v1009_v30 = vpop.f32.mrf.mxu1  ;;  %v1201_v31 = vadd.f32 %v2006_v1, %v1133_v28 }
 0x176   : > { %1297 = vst.msk [vmem:[%s2014_s6 + $0x1c0] sm:$0xff] %vm1240_vm2, %v1232_v29 }
 0x177   : > { %1266 = vst.msk [vmem:[%s2014_s6 + $0xc8] sm:$0xff] %vm1240_vm2, %v1201_v31  ;;  %v917_v33 = vpop.f32.mrf.mxu2 }
 0x178   : > { %v1087_v34 = vadd.f32 %v1086_v18, %v917_v33  ;;  %v840_v35 = vpop.f32.mrf.mxu0 }
 0x179   : > { %v1010_v36 = vadd.f32 %v1009_v30, %v840_v35 }
 0x17a   : > { %v1165_v37 = vmul.f32 %v2000_v60, %v1087_v34 }
 0x17b   : > { %v1134_v38 = vmul.f32 %v2000_v60, %v1010_v36 }
 0x17c   : > { %v1233_v39 = vadd.f32 %v2006_v1, %v1165_v37  ;;  %v1094_v56 = vpop.f32.mrf.mxu3 }
 0x17d   : > { %v1011_v40 = vpop.f32.mrf.mxu1  ;;  %v1202_v41 = vadd.f32 %v2006_v1, %v1134_v38 }
 0x17e   : > { %1298 = vst.msk [vmem:[%s2014_s6 + $0x1c8] sm:$0xff] %vm1240_vm2, %v1233_v39 }
 0x17f   : > { %1267 = vst.msk [vmem:[%s2014_s6 + $0xd0] sm:$0xff] %vm1240_vm2, %v1202_v41  ;;  %v920_v42 = vpop.f32.mrf.mxu2 }
 0x180   : > { %v1090_v44 = vadd.f32 %v1089_v32, %v920_v42  ;;  %v842_v45 = vpop.f32.mrf.mxu0 }
 0x181   : > { %v1012_v46 = vadd.f32 %v1011_v40, %v842_v45 }
 0x182   : > { %v1166_v47 = vmul.f32 %v2000_v60, %v1090_v44 }
 0x183   : > { %v1135_v48 = vmul.f32 %v2000_v60, %v1012_v46 }
 0x184   : > { %v1234_v49 = vadd.f32 %v2006_v1, %v1166_v47  ;;  %v1096_v7 = vpop.f32.mrf.mxu3 }
 0x185   : > { %v1014_v50 = vpop.f32.mrf.mxu1  ;;  %v1203_v51 = vadd.f32 %v2006_v1, %v1135_v48 }
 0x186   : > { %1299 = vst.msk [vmem:[%s2014_s6 + $0x1d0] sm:$0xff] %vm1240_vm2, %v1234_v49 }
 0x187   : > { %1268 = vst.msk [vmem:[%s2014_s6 + $0xd8] sm:$0xff] %vm1240_vm2, %v1203_v51  ;;  %v922_v52 = vpop.f32.mrf.mxu2 }
 0x188   : > { %v1092_v53 = vadd.f32 %v1091_v43, %v922_v52  ;;  %v845_v54 = vpop.f32.mrf.mxu0 }
 0x189   : > { %v1015_v55 = vadd.f32 %v1014_v50, %v845_v54 }
 0x18a   : > { %v1167_v57 = vmul.f32 %v2000_v60, %v1092_v53 }
 0x18b   : > { %v1136_v58 = vmul.f32 %v2000_v60, %v1015_v55 }
 0x18c   : > { %v1235_v59 = vadd.f32 %v2006_v1, %v1167_v57  ;;  %v1099_v20 = vpop.f32.mrf.mxu3 }
 0x18d   : > { %v1016_v61 = vpop.f32.mrf.mxu1  ;;  %v1204_v62 = vadd.f32 %v2006_v1, %v1136_v58 }
 0x18e   : > { %1300 = vst.msk [vmem:[%s2014_s6 + $0x1d8] sm:$0xff] %vm1240_vm2, %v1235_v59 }
 0x18f   : > { %1269 = vst.msk [vmem:[%s2014_s6 + $0xe0] sm:$0xff] %vm1240_vm2, %v1204_v62  ;;  %v925_v63 = vpop.f32.mrf.mxu2 }
 0x190   : > { %v1095_v0 = vadd.f32 %v1094_v56, %v925_v63  ;;  %v847_v2 = vpop.f32.mrf.mxu0 }
 0x191   : > { %v1017_v3 = vadd.f32 %v1016_v61, %v847_v2 }
 0x192   : > { %v1168_v4 = vmul.f32 %v2000_v60, %v1095_v0 }
 0x193   : > { %v1137_v5 = vmul.f32 %v2000_v60, %v1017_v3 }
 0x194   : > { %v1236_v8 = vadd.f32 %v2006_v1, %v1168_v4  ;;  %v1101_v33 = vpop.f32.mrf.mxu3 }
 0x195   : > { %v1019_v9 = vpop.f32.mrf.mxu1  ;;  %v1205_v10 = vadd.f32 %v2006_v1, %v1137_v5 }
 0x196   : > { %1301 = vst.msk [vmem:[%s2014_s6 + $0x1e0] sm:$0xff] %vm1240_vm2, %v1236_v8 }
 0x197   : > { %1270 = vst.msk [vmem:[%s2014_s6 + $0xe8] sm:$0xff] %vm1240_vm2, %v1205_v10  ;;  %v927_v11 = vpop.f32.mrf.mxu2 }
 0x198   : > { %v1097_v12 = vadd.f32 %v1096_v7, %v927_v11  ;;  %v850_v13 = vpop.f32.mrf.mxu0 }
 0x199   : > { %v1020_v14 = vadd.f32 %v1019_v9, %v850_v13 }
 0x19a   : > { %v1169_v15 = vmul.f32 %v2000_v60, %v1097_v12 }
 0x19b   : > { %v1138_v16 = vmul.f32 %v2000_v60, %v1020_v14 }
 0x19c   : > { %v1237_v17 = vadd.f32 %v2006_v1, %v1169_v15 }
 0x19d   : > { %v1021_v18 = vpop.f32.mrf.mxu1  ;;  %v1206_v19 = vadd.f32 %v2006_v1, %v1138_v16 }
 0x19e   : > { %1302 = vst.msk [vmem:[%s2014_s6 + $0x1e8] sm:$0xff] %vm1240_vm2, %v1237_v17 }
 0x19f   : > { %1271 = vst.msk [vmem:[%s2014_s6 + $0xf0] sm:$0xff] %vm1240_vm2, %v1206_v19  ;;  %v930_v21 = vpop.f32.mrf.mxu2 }
 0x1a0   : > { %v1100_v22 = vadd.f32 %v1099_v20, %v930_v21  ;;  %v852_v24 = vpop.f32.mrf.mxu0 }
 0x1a1   : > { %v1022_v25 = vadd.f32 %v1021_v18, %v852_v24 }
 0x1a2   : > { %v1170_v26 = vmul.f32 %v2000_v60, %v1100_v22 }
 0x1a3   : > { %v1139_v27 = vmul.f32 %v2000_v60, %v1022_v25 }
 0x1a4   : > { %v1238_v28 = vadd.f32 %v2006_v1, %v1170_v26 }
 0x1a5   : > { %v1024_v29 = vpop.f32.mrf.mxu1  ;;  %v1207_v30 = vadd.f32 %v2006_v1, %v1139_v27 }
 0x1a6   : > { %v1025_v31 = vadd.f32 %v1024_v29, %v2019_v6  ;;  %1303 = vst.msk [vmem:[%s2014_s6 + $0x1f0] sm:$0xff] %vm1240_vm2, %v1238_v28 }
 0x1a7   : > { %1272 = vst.msk [vmem:[%s2014_s6 + $0xf8] sm:$0xff] %vm1240_vm2, %v1207_v30  ;;  %v932_v34 = vpop.f32.mrf.mxu2 }
 0x1a8   : > { %v1140_v32 = vmul.f32 %v2000_v60, %v1025_v31  ;;  %v1102_v35 = vadd.f32 %v1101_v33, %v932_v34 }
 0x1aa   : > { %v1208_v36 = vadd.f32 %v2006_v1, %v1140_v32  ;;  %v1171_v37 = vmul.f32 %v2000_v60, %v1102_v35 }
 0x1ac   : > { %1273 = vst.msk [vmem:[%s2014_s6 + $0x100] sm:$0xff] %vm1240_vm2, %v1208_v36  ;;  %v1239_v38 = vadd.f32 %v2006_v1, %v1171_v37 }
 0x1ad   : > { %v1026_v39 = vpop.f32.mrf.mxu1 }
 0x1ae   : > { %v1027_v6 = vadd.f32 %v1026_v39, %v2033_v23  ;;  %1304 = vst.msk [vmem:[%s2014_s6 + $0x1f8] sm:$0xff] %vm1240_vm2, %v1239_v38 }
 0x1b0   : > { %v1141_v40 = vmul.f32 %v2000_v60, %v1027_v6 }
 0x1b2   : > { %v1209_v41 = vadd.f32 %v2006_v1, %v1141_v40 }
 0x1b4   : > { %1274 = vst.msk [vmem:[%s2014_s6 + $0x108] sm:$0xff] %vm1240_vm2, %v1209_v41 }
 0x1b5 PF: > { %s14_s15 = sadd.s32 1, %s1821_s15  }
 0x1b6   : > { %p11_p4 = scmp.ge.s32.totalorder %s14_s15, 4  }
 0x1b8   :  { %13 = sbr.rel (!%p11_p4) target bundleno = 1 (0x1), region = 66 }

// kernel: tile.23
= control target key start
LH: loop header
LB: loop body
LE: loop exit
PB: predicated region body
PF: predicated region fallthrough
CT: control target
= control target key end

     0   :  { %s22_s0 = inlined_call_operand.vmem [shape: f32[8], index: 0, kind: input, shape index: {}]   ;;  %s23_s1 = inlined_call_operand.vmem [shape: f32[8,8], index: 1, kind: output, shape index: {}]  }
   0x1   :  { %v4_v0 = vld [vmem:[%s22_s0] ss:$0 sm:$0xff] }
   0x2   :  { %5 = vst [vmem:[%s23_s1] sm:$0xff] %v4_v0 }

// kernel: tile.28
= control target key start
LH: loop header
LB: loop body
LE: loop exit
PB: predicated region body
PF: predicated region fallthrough
CT: control target
= control target key end

     0   :  { %s67_s10 = smov 56   ;;  %s68_s11 = smov 40   ;;  %vm3_vm0 = vcmask 64512   ;;  %vm9_vm1 = vcmask 523712   ;;  %vm15_vm2 = vcmask 458112   ;;  %vm21_vm3 = vcmask 392512   ;;  %s111_s0 = inlined_call_operand.vmem [shape: f32[8,8], index: 0, kind: input, shape index: {}]   ;;  %s112_s1 = inlined_call_operand.vmem [shape: f32[1,64], index: 1, kind: output, shape index: {}]  }
   0x1   :  { %v53_v0 = vld [vmem:[%s111_s0 + $0x7] sm:$0x1]   ;;  %v55_v1 = vld [vmem:[%s111_s0 + $0x5] sm:$0x1]   ;;  %v57_v2 = vld [vmem:[%s111_s0 + $0x3] sm:$0x1]  }
   0x2   :  { %7 = vrot.lane.b32.xlu0 %v53_v0, %s67_s10  ;;  %19 = vrot.lane.b32.xlu1 %v55_v1, %s68_s11  ;;  %s69_s14 = smov 24   ;;  %v54_v3 = vld [vmem:[%s111_s0 + $0x6] sm:$0x1]   ;;  %v56_v4 = vld [vmem:[%s111_s0 + $0x4] sm:$0x1]   ;;  %s70_s21 = smov 48  }
   0x3   :  { %31 = vrot.lane.b32.xlu2 %v57_v2, %s69_s14  ;;  %v58_v5 = vld [vmem:[%s111_s0 + $0x2] sm:$0x1]   ;;  %s71_s22 = smov 32   ;;  %s72_s23 = smov 16   ;;  %v59_v6 = vld [vmem:[%s111_s0 + $0x1] sm:$0x1]  }
   0x4   :  { %s73_s26 = smov 8   ;;  %v2_v7 = vld [vmem:[%s111_s0] sm:$0x1]   ;;  %vm27_vm4 = vcmask 326912   ;;  %vm33_vm5 = vcmask 261312   ;;  %vm39_vm6 = vcmask 195712  }
   0x5   :  { %4 = vst.msk [vmem:[#allocation0] sm:$0x1] %vm3_vm0, %v2_v7   ;;  %vm45_vm7 = vcmask 130112  }
   0xa   :  { %13 = vrot.lane.b32.xlu0 %v54_v3, %s70_s21  ;;  %25 = vrot.lane.b32.xlu1 %v56_v4, %s71_s22 }
   0xb   :  { %37 = vrot.lane.b32.xlu2 %v58_v5, %s72_s23 }
  0x12   :  { %43 = vrot.lane.b32.xlu0 %v59_v6, %s73_s26 }
  0x5d   :  { %v32_v8 = vpop.permute.xlu2 %31  }
  0x65   :  { %v38_v9 = vpop.permute.xlu2 %37  }
  0x74   :  { %v8_v10 = vpop.permute.xlu0 %7   ;;  %v20_v11 = vpop.permute.xlu1 %19  }
  0x75   :  { %10 = vst.msk [vmem:[#allocation0] sm:$0x1] %vm9_vm1, %v8_v10  }
  0x7c   :  { %v14_v12 = vpop.permute.xlu0 %13   ;;  %v26_v13 = vpop.permute.xlu1 %25  }
  0x7d   :  { %16 = vst.msk [vmem:[#allocation0] sm:$0x1] %vm15_vm2, %v14_v12  }
  0x7e   :  { %22 = vst.msk [vmem:[#allocation0] sm:$0x1] %vm21_vm3, %v20_v11  }
  0x7f   :  { %28 = vst.msk [vmem:[#allocation0] sm:$0x1] %vm27_vm4, %v26_v13  }
  0x80   :  { %34 = vst.msk [vmem:[#allocation0] sm:$0x1] %vm33_vm5, %v32_v8  }
  0x81   :  { %40 = vst.msk [vmem:[#allocation0] sm:$0x1] %vm39_vm6, %v38_v9  }
  0x84   :  { %v44_v14 = vpop.permute.xlu0 %43  }
  0x85   :  { %46 = vst.msk [vmem:[#allocation0] sm:$0x1] %vm45_vm7, %v44_v14  }
  0x8c   :  { %v49_v15 = vld [vmem:[#allocation0] sm:$0x1] }
  0x8d   :  { %52 = vst [vmem:[%s112_s1] sm:$0x1] %v49_v15 }

// kernel: rec3_forward.20
= control target key start
LH: loop header
LB: loop body
LE: loop exit
PB: predicated region body
PF: predicated region fallthrough
CT: control target
= control target key end

     0   :  { %s1914_s15 = smov 0   ;;  %s2405_s0 = inlined_call_operand.vmem [shape: bf16[1024,216], index: 0, kind: input, shape index: {}]   ;;  %s2406_s1 = inlined_call_operand.vmem [shape: bf16[216,8], index: 1, kind: input, shape index: {}]   ;;  %s2407_s2 = inlined_call_operand.vmem [shape: f32[1,8], index: 2, kind: input, shape index: {}]   ;;  %s2408_s3 = inlined_call_operand.vmem [shape: f32[1,8], index: 3, kind: input, shape index: {}]   ;;  %s2409_s4 = inlined_call_operand.vmem [shape: f32[1024,8], index: 4, kind: output, shape index: {}]  }
   0x1 LB: > { %s1425_s16 = sadd.s32 4294967295, %s1887_s15   ;;  %p1429_p0 = scmp.ge.s32.totalorder %s1887_s15, 1  ;;  %s1887_s15 = sphi %s1914_s15, %s14_s15  }
   0x2   : > { %p164_p1 = scmp.lt.s32.totalorder %s1887_s15, 3 }
   0x4   : > { %p165_p2 = pnand %p1429_p0, %p164_p1 }
   0x5   : > { %s1430_s23 = sshll.u32 (!%p165_p2), %s1425_s16, 6 }
   0x6   : > { %168 = sbr.rel (%p165_p2) target bundleno = 439 (0x1b7), region = 36  ;;  %p192_p3 = scmp.lt.s32.totalorder (!%p165_p2), %s1430_s23, 127 }
   0xb   : > { %v1849_v0 = vld [vmem:[%s2406_s1 + $0x38] sm:$0xff]  ;;  %v295_v1 = vld [vmem:[%s2406_s1 + $0x68] sm:$0xf]  ;;  %vm762_vm0 = vcmask 1043456   ;;  %v1848_v3 = vld [vmem:[%s2406_s1 + $0x30] sm:$0xff]  ;;  %s2411_s23 = smov (!%p192_p3, %s1430_s23), 127 }
   0xc   : > { %v637_v2 = vunpack.c.l.b16 %v295_v1  ;;  %766 = vmatpush.bf16.msra.mxu0 %v1849_v0  ;;  %1855 = vmatpush.bf16.msra.mxu2 %v1849_v0  ;;  %v1854_v6 = vld [vmem:[%s2406_s1 + $0x60] sm:$0xff]  ;;  %v1847_v7 = vld [vmem:[%s2406_s1 + $0x28] sm:$0xff]  ;;  %v1853_v8 = vld [vmem:[%s2406_s1 + $0x58] sm:$0xff]  ;;  %s1777_s10 = sshll.u32 %s2411_s23, 3  ;;  %vm665_vm1 = vcmask 719872   ;;  %vm1304_vm2 = vcmask 64512  }
   0xd   : > { %v1846_v9 = vld [vmem:[%s2406_s1 + $0x20] sm:$0xff]  ;;  %v1852_v10 = vld [vmem:[%s2406_s1 + $0x50] sm:$0xff]  ;;  %v1845_v11 = vld [vmem:[%s2406_s1 + $0x18] sm:$0xff]  ;;  %s1963_s18 = scalar_lea.vmem %s2405_s0, %s1777_s10  ;;  %s2081_s6 = scalar_lea.vmem %s2409_s4, %s1777_s10 }
   0xe   : > { %v651_v4 = vpack.c.b16 %v637_v2, %v637_v2  ;;  %v1851_v12 = vld [vmem:[%s2406_s1 + $0x48] sm:$0xff]  ;;  %v1844_v13 = vld [vmem:[%s2406_s1 + $0x10] sm:$0xff]  ;;  %v1850_v14 = vld [vmem:[%s2406_s1 + $0x40] sm:$0xff] }
   0xf   : > { %v1843_v15 = vld [vmem:[%s2406_s1 + $0x8] sm:$0xff]  ;;  %v1778_v16 = vld [vmem:[%s1963_s18 + $0x4] sm:$0xf]  ;;  %v1812_v18 = vld [vmem:[%s1963_s18 + $0x114] sm:$0xf] }
  0x10   : > { %v764_v5 = vsel %vm762_vm0, %v651_v4, 0  ;;  %767 = vmatpush.bf16.msra.mxu0 %v1848_v3  ;;  %1856 = vmatpush.bf16.msra.mxu2 %v1848_v3  ;;  %v1439_v17 = vld [vmem:[%s1963_s18 + $0x8] sm:$0xf0]  ;;  %v1575_v19 = vld [vmem:[%s1963_s18 + $0x118] sm:$0xf0]  ;;  %v1842_v21 = vld [vmem:[%s2406_s1] sm:$0xff] }
  0x11   : > { %937 = vmatpush.bf16.msra.mxu1 %v764_v5  ;;  %1863 = vmatpush.bf16.msra.mxu3 %v764_v5  ;;  %v1442_v20 = vor.u32 %v1778_v16, %v1439_v17  ;;  %v1437_v22 = vld [vmem:[%s1963_s18] sm:$0xf]  ;;  %v1779_v23 = vld [vmem:[%s1963_s18 + $0x4] sm:$0xf0]  ;;  %v1578_v24 = vor.u32 %v1812_v18, %v1575_v19  ;;  %v1780_v29 = vld [vmem:[%s1963_s18 + $0x14] sm:$0xf] }
  0x12   : > { %v1565_v25 = vld [vmem:[%s1963_s18 + $0x100] sm:$0xf]  ;;  %v1811_v26 = vld [vmem:[%s1963_s18 + $0x104] sm:$0xf0]  ;;  %v1438_v27 = vor.u32 %v1779_v23, %v1437_v22  ;;  %v1447_v30 = vld [vmem:[%s1963_s18 + $0x18] sm:$0xf0] }
  0x13   : > { %v1566_v28 = vor.u32 %v1811_v26, %v1565_v25  ;;  %v1814_v31 = vld [vmem:[%s1963_s18 + $0x124] sm:$0xf]  ;;  %v1583_v32 = vld [vmem:[%s1963_s18 + $0x128] sm:$0xf0]  ;;  %v1450_v33 = vor.u32 %v1780_v29, %v1447_v30  ;;  %v1445_v34 = vld [vmem:[%s1963_s18 + $0x10] sm:$0xf] }
  0x14   : > { %768 = vmatpush.bf16.msra.mxu0 %v1847_v7  ;;  %1857 = vmatpush.bf16.msra.mxu2 %v1847_v7  ;;  %v1781_v35 = vld [vmem:[%s1963_s18 + $0x14] sm:$0xf0]  ;;  %v1586_v36 = vor.u32 %v1814_v31, %v1583_v32  ;;  %v1573_v37 = vld [vmem:[%s1963_s18 + $0x110] sm:$0xf]  ;;  %v1782_v41 = vld [vmem:[%s1963_s18 + $0x24] sm:$0xf] }
  0x15   : > { %938 = vmatpush.bf16.msra.mxu1 %v1854_v6  ;;  %1864 = vmatpush.bf16.msra.mxu3 %v1854_v6  ;;  %v1813_v38 = vld [vmem:[%s1963_s18 + $0x114] sm:$0xf0]  ;;  %v1446_v39 = vor.u32 %v1781_v35, %v1445_v34  ;;  %v1455_v42 = vld [vmem:[%s1963_s18 + $0x28] sm:$0xf0]  ;;  %v1816_v43 = vld [vmem:[%s1963_s18 + $0x134] sm:$0xf] }
  0x16   : > { %v1574_v40 = vor.u32 %v1813_v38, %v1573_v37  ;;  %v1591_v44 = vld [vmem:[%s1963_s18 + $0x138] sm:$0xf0]  ;;  %v1458_v45 = vor.u32 %v1782_v41, %v1455_v42  ;;  %v1453_v46 = vld [vmem:[%s1963_s18 + $0x20] sm:$0xf]  ;;  %v1783_v47 = vld [vmem:[%s1963_s18 + $0x24] sm:$0xf0] }
  0x17   : > { %v1594_v48 = vor.u32 %v1816_v43, %v1591_v44  ;;  %v1581_v49 = vld [vmem:[%s1963_s18 + $0x120] sm:$0xf]  ;;  %v1815_v50 = vld [vmem:[%s1963_s18 + $0x124] sm:$0xf0]  ;;  %v1454_v51 = vor.u32 %v1783_v47, %v1453_v46  ;;  %v1784_v53 = vld [vmem:[%s1963_s18 + $0x34] sm:$0xf] }
  0x18   : > { %769 = vmatpush.bf16.msra.mxu0 %v1846_v9  ;;  %1858 = vmatpush.bf16.msra.mxu2 %v1846_v9  ;;  %v1582_v52 = vor.u32 %v1815_v50, %v1581_v49  ;;  %v1463_v54 = vld [vmem:[%s1963_s18 + $0x38] sm:$0xf0]  ;;  %v1818_v55 = vld [vmem:[%s1963_s18 + $0x144] sm:$0xf]  ;;  %v1599_v56 = vld [vmem:[%s1963_s18 + $0x148] sm:$0xf0] }
  0x19   : > { %939 = vmatpush.bf16.msra.mxu1 %v1853_v8  ;;  %1865 = vmatpush.bf16.msra.mxu3 %v1853_v8  ;;  %v1466_v57 = vor.u32 %v1784_v53, %v1463_v54  ;;  %v1461_v58 = vld [vmem:[%s1963_s18 + $0x30] sm:$0xf]  ;;  %v1785_v59 = vld [vmem:[%s1963_s18 + $0x34] sm:$0xf0]  ;;  %v1602_v60 = vor.u32 %v1818_v55, %v1599_v56  ;;  %v1786_v1 = vld [vmem:[%s1963_s18 + $0x44] sm:$0xf] }
  0x1a   : > { %v1589_v61 = vld [vmem:[%s1963_s18 + $0x130] sm:$0xf]  ;;  %v1817_v62 = vld [vmem:[%s1963_s18 + $0x134] sm:$0xf0]  ;;  %v1462_v63 = vor.u32 %v1785_v59, %v1461_v58  ;;  %v1471_v2 = vld [vmem:[%s1963_s18 + $0x48] sm:$0xf0] }
  0x1b   : > { %v1590_v0 = vor.u32 %v1817_v62, %v1589_v61  ;;  %v1820_v3 = vld [vmem:[%s1963_s18 + $0x154] sm:$0xf]  ;;  %v1607_v4 = vld [vmem:[%s1963_s18 + $0x158] sm:$0xf0]  ;;  %v1474_v5 = vor.u32 %v1786_v1, %v1471_v2  ;;  %v1469_v6 = vld [vmem:[%s1963_s18 + $0x40] sm:$0xf] }
  0x1c   : > { %770 = vmatpush.bf16.msra.mxu0 %v1845_v11  ;;  %1859 = vmatpush.bf16.msra.mxu2 %v1845_v11  ;;  %v1787_v7 = vld [vmem:[%s1963_s18 + $0x44] sm:$0xf0]  ;;  %v1610_v8 = vor.u32 %v1820_v3, %v1607_v4  ;;  %v1597_v9 = vld [vmem:[%s1963_s18 + $0x140] sm:$0xf]  ;;  %v1615_v16 = vld [vmem:[%s1963_s18 + $0x168] sm:$0xf0] }
  0x1d   : > { %940 = vmatpush.bf16.msra.mxu1 %v1852_v10  ;;  %1866 = vmatpush.bf16.msra.mxu3 %v1852_v10  ;;  %v1819_v10 = vld [vmem:[%s1963_s18 + $0x144] sm:$0xf0]  ;;  %v1470_v11 = vor.u32 %v1787_v7, %v1469_v6  ;;  %v1477_v18 = vld [vmem:[%s1963_s18 + $0x50] sm:$0xf]  ;;  %v1789_v19 = vld [vmem:[%s1963_s18 + $0x54] sm:$0xf0] }
  0x1e   : > { %v1821_v22 = vld [vmem:[%s1963_s18 + $0x154] sm:$0xf0]  ;;  %v1478_v23 = vor.u32 %v1789_v19, %v1477_v18  ;;  %v1790_v25 = vld [vmem:[%s1963_s18 + $0x64] sm:$0xf]  ;;  %v1487_v26 = vld [vmem:[%s1963_s18 + $0x68] sm:$0xf0] }
  0x1f   : > { %v1490_v29 = vor.u32 %v1790_v25, %v1487_v26  ;;  %v1485_v30 = vld [vmem:[%s1963_s18 + $0x60] sm:$0xf]  ;;  %v1791_v31 = vld [vmem:[%s1963_s18 + $0x64] sm:$0xf0]  ;;  %v1792_v37 = vld [vmem:[%s1963_s18 + $0x74] sm:$0xf] }
  0x20   : > { %771 = vmatpush.bf16.msra.mxu0 %v1844_v13  ;;  %1860 = vmatpush.bf16.msra.mxu2 %v1844_v13  ;;  %v1788_v13 = vld [vmem:[%s1963_s18 + $0x54] sm:$0xf]  ;;  %v1823_v34 = vld [vmem:[%s1963_s18 + $0x164] sm:$0xf0]  ;;  %v1486_v35 = vor.u32 %v1791_v31, %v1485_v30  ;;  %v1495_v38 = vld [vmem:[%s1963_s18 + $0x78] sm:$0xf0] }
  0x21   : > { %941 = vmatpush.bf16.msra.mxu1 %v1851_v12  ;;  %1867 = vmatpush.bf16.msra.mxu3 %v1851_v12  ;;  %v1598_v12 = vor.u32 %v1819_v10, %v1597_v9  ;;  %v1498_v41 = vor.u32 %v1792_v37, %v1495_v38  ;;  %v1493_v42 = vld [vmem:[%s1963_s18 + $0x70] sm:$0xf]  ;;  %v1793_v43 = vld [vmem:[%s1963_s18 + $0x74] sm:$0xf0]  ;;  %v1794_v49 = vld [vmem:[%s1963_s18 + $0x84] sm:$0xf] }
  0x22   : > { %v1825_v46 = vld [vmem:[%s1963_s18 + $0x174] sm:$0xf0]  ;;  %v1494_v47 = vor.u32 %v1793_v43, %v1493_v42  ;;  %v1503_v50 = vld [vmem:[%s1963_s18 + $0x88] sm:$0xf0]  ;;  %v1501_v55 = vld [vmem:[%s1963_s18 + $0x80] sm:$0xf] }
  0x23   : > { %v1506_v53 = vor.u32 %v1794_v49, %v1503_v50  ;;  %v1795_v56 = vld [vmem:[%s1963_s18 + $0x84] sm:$0xf0]  ;;  %v1629_v58 = vld [vmem:[%s1963_s18 + $0x180] sm:$0xf]  ;;  %v1796_v9 = vld [vmem:[%s1963_s18 + $0x94] sm:$0xf] }
  0x24   : > { %772 = vmatpush.bf16.msra.mxu0 %v1843_v15  ;;  %1861 = vmatpush.bf16.msra.mxu2 %v1843_v15  ;;  %v1822_v15 = vld [vmem:[%s1963_s18 + $0x164] sm:$0xf]  ;;  %v1827_v59 = vld [vmem:[%s1963_s18 + $0x184] sm:$0xf0]  ;;  %v1502_v61 = vor.u32 %v1795_v56, %v1501_v55  ;;  %v2072_v1 = vld [vmem:[%s2408_s3] ss:$0 sm:$0xff] }
  0x25   : > { %942 = vmatpush.bf16.msra.mxu1 %v1850_v14  ;;  %1868 = vmatpush.bf16.msra.mxu3 %v1850_v14  ;;  %v1479_v14 = vld [vmem:[%s1963_s18 + $0x58] sm:$0xf0]  ;;  %v1509_v18 = vld [vmem:[%s1963_s18 + $0x90] sm:$0xf]  ;;  %v1797_v19 = vld [vmem:[%s1963_s18 + $0x94] sm:$0xf0] }
  0x26   : > { %v1482_v17 = vor.u32 %v1788_v13, %v1479_v14  ;;  %v1511_v10 = vld [vmem:[%s1963_s18 + $0x98] sm:$0xf0]  ;;  %v1647_v13 = vld [vmem:[%s1963_s18 + $0x1a8] sm:$0xf0]  ;;  %v1510_v26 = vor.u32 %v1797_v19, %v1509_v18  ;;  %v1798_v38 = vld [vmem:[%s1963_s18 + $0xa4] sm:$0xf] }
  0x27   : > { %v1655_v42 = vld [vmem:[%s1963_s18 + $0x1b8] sm:$0xf0]  ;;  %v1517_v49 = vld [vmem:[%s1963_s18 + $0xa0] sm:$0xf]  ;;  %v1799_v50 = vld [vmem:[%s1963_s18 + $0xa4] sm:$0xf0] }
  0x28   : > { %1743 = vmatmul.msk.bf16.vlgmr.msra.gmra.mxu1 %vm665_vm1, %v1442_v20  ;;  %773 = vmatpush.bf16.msra.mxu0 %v1842_v21  ;;  %v1618_v20 = vor.u32 %v1822_v15, %v1615_v16  ;;  %v1514_v15 = vor.u32 %v1796_v9, %v1511_v10 }
  0x29   : > { %1760 = vmatmul.msk.bf16.vlgmr.msra.gmra.mxu3 %vm665_vm1, %v1578_v24  ;;  %1862 = vmatpush.bf16.msra.mxu2 %v1842_v21  ;;  %v1605_v21 = vld [vmem:[%s1963_s18 + $0x150] sm:$0xf] }
  0x2a   : > { %v1606_v24 = vor.u32 %v1821_v22, %v1605_v21  ;;  %v1637_v22 = vld [vmem:[%s1963_s18 + $0x190] sm:$0xf] }
  0x2b   : > { %774 = vmatmul.bf16.vlgmr.msra.gmra.mxu0 %v1438_v27  ;;  %v1824_v27 = vld [vmem:[%s1963_s18 + $0x174] sm:$0xf] }
  0x2c   : > { %854 = vmatmul.bf16.vlgmr.msra.gmra.mxu2 %v1566_v28  ;;  %v1623_v28 = vld [vmem:[%s1963_s18 + $0x178] sm:$0xf0] }
  0x2d   : > { %v1626_v32 = vor.u32 %v1824_v27, %v1623_v28 }
  0x38   : > { %1744 = vmatmul.msk.bf16.gmra.mxu1 %vm665_vm1, %v1450_v33  ;;  %v1613_v33 = vld [vmem:[%s1963_s18 + $0x160] sm:$0xf] }
  0x39   : > { %1761 = vmatmul.msk.bf16.gmra.mxu3 %vm665_vm1, %v1586_v36  ;;  %v1614_v36 = vor.u32 %v1823_v34, %v1613_v33 }
  0x3b   : > { %779 = vmatmul.bf16.gmra.mxu0 %v1446_v39  ;;  %v1826_v39 = vld [vmem:[%s1963_s18 + $0x184] sm:$0xf] }
  0x3c   : > { %859 = vmatmul.bf16.gmra.mxu2 %v1574_v40  ;;  %v1631_v40 = vld [vmem:[%s1963_s18 + $0x188] sm:$0xf0] }
  0x3d   : > { %v1634_v44 = vor.u32 %v1826_v39, %v1631_v40  ;;  %v1519_v39 = vld [vmem:[%s1963_s18 + $0xa8] sm:$0xf0] }
  0x48   : > { %1745 = vmatmul.msk.bf16.gmra.mxu1 %vm665_vm1, %v1458_v45  ;;  %v1621_v45 = vld [vmem:[%s1963_s18 + $0x170] sm:$0xf] }
  0x49   : > { %1762 = vmatmul.msk.bf16.gmra.mxu3 %vm665_vm1, %v1594_v48  ;;  %v1622_v48 = vor.u32 %v1825_v46, %v1621_v45  ;;  %v1522_v45 = vor.u32 %v1798_v38, %v1519_v39 }
  0x4b   : > { %784 = vmatmul.bf16.gmra.mxu0 %v1454_v51  ;;  %v1828_v51 = vld [vmem:[%s1963_s18 + $0x194] sm:$0xf] }
  0x4c   : > { %864 = vmatmul.bf16.gmra.mxu2 %v1582_v52  ;;  %v1639_v52 = vld [vmem:[%s1963_s18 + $0x198] sm:$0xf0] }
  0x58   : > { %1746 = vmatmul.msk.bf16.gmra.mxu1 %vm665_vm1, %v1466_v57  ;;  %v1642_v57 = vor.u32 %v1828_v51, %v1639_v52 }
  0x59   : > { %1763 = vmatmul.msk.bf16.gmra.mxu3 %vm665_vm1, %v1602_v60  ;;  %v2066_v60 = vld [vmem:[%s2407_s2] ss:$0 sm:$0xff] }
  0x5b   : > { %789 = vmatmul.bf16.gmra.mxu0 %v1462_v63  ;;  %v1630_v63 = vor.u32 %v1827_v59, %v1629_v58  ;;  %v1518_v58 = vor.u32 %v1799_v50, %v1517_v49  ;;  %v1802_v50 = vld [vmem:[%s1963_s18 + $0xc4] sm:$0xf] }
  0x5c   : > { %869 = vmatmul.bf16.gmra.mxu2 %v1590_v0 }
  0x68   : > { %1747 = vmatmul.msk.bf16.gmra.mxu1 %vm665_vm1, %v1474_v5 }
  0x69   : > { %1764 = vmatmul.msk.bf16.gmra.mxu3 %vm665_vm1, %v1610_v8 }
  0x6b   : > { %794 = vmatmul.bf16.gmra.mxu0 %v1470_v11 }
  0x6c   : > { %874 = vmatmul.bf16.gmra.mxu2 %v1598_v12  ;;  %v1830_v12 = vld [vmem:[%s1963_s18 + $0x1a4] sm:$0xf] }
  0x78   : > { %1748 = vmatmul.msk.bf16.gmra.mxu1 %vm665_vm1, %v1482_v17 }
  0x79   : > { %1765 = vmatmul.msk.bf16.gmra.mxu3 %vm665_vm1, %v1618_v20  ;;  %v1650_v20 = vor.u32 %v1830_v12, %v1647_v13  ;;  %v1800_v13 = vld [vmem:[%s1963_s18 + $0xb4] sm:$0xf] }
  0x7b   : > { %799 = vmatmul.bf16.gmra.mxu0 %v1478_v23  ;;  %v1829_v23 = vld [vmem:[%s1963_s18 + $0x194] sm:$0xf0] }
  0x7c   : > { %879 = vmatmul.bf16.gmra.mxu2 %v1606_v24  ;;  %v1638_v28 = vor.u32 %v1829_v23, %v1637_v22 }
  0x88   : > { %1749 = vmatmul.msk.bf16.gmra.mxu1 %vm665_vm1, %v1490_v29 }
  0x89   : > { %1766 = vmatmul.msk.bf16.gmra.mxu3 %vm665_vm1, %v1626_v32 }
  0x8b   : > { %804 = vmatmul.bf16.gmra.mxu0 %v1486_v35 }
  0x8c   : > { %884 = vmatmul.bf16.gmra.mxu2 %v1614_v36 }
  0x98   : > { %1750 = vmatmul.msk.bf16.gmra.mxu1 %vm665_vm1, %v1498_v41  ;;  %v1832_v41 = vld [vmem:[%s1963_s18 + $0x1b4] sm:$0xf] }
  0x99   : > { %1767 = vmatmul.msk.bf16.gmra.mxu3 %vm665_vm1, %v1634_v44  ;;  %v1658_v51 = vor.u32 %v1832_v41, %v1655_v42 }
  0x9b   : > { %809 = vmatmul.bf16.gmra.mxu0 %v1494_v47 }
  0x9c   : > { %889 = vmatmul.bf16.gmra.mxu2 %v1622_v48 }
  0xa5   : > { %v944_v54 = vpop.f32.mrf.mxu1 }
  0xa8   : > { %1751 = vmatmul.msk.bf16.gmra.mxu1 %vm665_vm1, %v1506_v53  ;;  %v775_v62 = vpop.f32.mrf.mxu0  ;;  %v1645_v53 = vld [vmem:[%s1963_s18 + $0x1a0] sm:$0xf] }
  0xa9   : > { %1768 = vmatmul.msk.bf16.gmra.mxu3 %vm665_vm1, %v1642_v57  ;;  %v945_v0 = vadd.f32 %v944_v54, %v775_v62  ;;  %v1831_v54 = vld [vmem:[%s1963_s18 + $0x1a4] sm:$0xf0] }
  0xaa   : > { %v1646_v62 = vor.u32 %v1831_v54, %v1645_v53  ;;  %v1836_v53 = vld [vmem:[%s1963_s18 + $0x1d4] sm:$0xf]  ;;  %v1671_v54 = vld [vmem:[%s1963_s18 + $0x1d8] sm:$0xf0] }
  0xab   : > { %v1108_v2 = vmul.f32 %v2066_v60, %v945_v0  ;;  %814 = vmatmul.bf16.gmra.mxu0 %v1502_v61 }
  0xac   : > { %v1029_v3 = vpop.f32.mrf.mxu3  ;;  %894 = vmatmul.bf16.gmra.mxu2 %v1630_v63 }
  0xad   : > { %v946_v4 = vpop.f32.mrf.mxu1  ;;  %v1176_v5 = vadd.f32 %v2072_v1, %v1108_v2 }
  0xaf   : > { %v1240_v6 = vmax.f32 %v1176_v5, 0.0  ;;  %v2083_v7 = vpop.f32.mrf.mxu2 }
  0xb0   : > { %v777_v8 = vpop.f32.mrf.mxu0 }
  0xb1   : > { %1305 = vst.msk [vmem:[%s2081_s6] sm:$0xff] %vm1304_vm2, %v1240_v6  ;;  %v947_v11 = vadd.f32 %v946_v4, %v777_v8 }
  0xb3   : > { %v1109_v14 = vmul.f32 %v2066_v60, %v947_v11 }
  0xb4   : > { %v1031_v16 = vpop.f32.mrf.mxu3 }
  0xb5   : > { %v949_v17 = vpop.f32.mrf.mxu1  ;;  %v1177_v21 = vadd.f32 %v2072_v1, %v1109_v14  ;;  %v1527_v14 = vld [vmem:[%s1963_s18 + $0xb8] sm:$0xf0] }
  0xb7   : > { %v1241_v24 = vmax.f32 %v1177_v21, 0.0  ;;  %v2097_v25 = vpop.f32.mrf.mxu2 }
  0xb8   : > { %1752 = vmatmul.msk.bf16.gmra.mxu1 %vm665_vm1, %v1514_v15  ;;  %v780_v27 = vpop.f32.mrf.mxu0 }
  0xb9   : > { %1769 = vmatmul.msk.bf16.gmra.mxu3 %vm665_vm1, %v1650_v20  ;;  %1306 = vst.msk [vmem:[%s2081_s6 + $0x8] sm:$0xff] %vm1304_vm2, %v1241_v24  ;;  %v950_v29 = vadd.f32 %v949_v17, %v780_v27  ;;  %v1663_v17 = vld [vmem:[%s1963_s18 + $0x1c8] sm:$0xf0]  ;;  %v1530_v20 = vor.u32 %v1800_v13, %v1527_v14  ;;  %v1525_v24 = vld [vmem:[%s1963_s18 + $0xb0] sm:$0xf] }
  0xbb   : > { %v1110_v30 = vmul.f32 %v2066_v60, %v950_v29  ;;  %819 = vmatmul.bf16.gmra.mxu0 %v1510_v26  ;;  %v1801_v26 = vld [vmem:[%s1963_s18 + $0xb4] sm:$0xf0]  ;;  %v1653_v29 = vld [vmem:[%s1963_s18 + $0x1b0] sm:$0xf] }
  0xbc   : > { %v1034_v31 = vpop.f32.mrf.mxu3  ;;  %899 = vmatmul.bf16.gmra.mxu2 %v1638_v28 }
  0xbd   : > { %v951_v32 = vpop.f32.mrf.mxu1  ;;  %v1178_v33 = vadd.f32 %v2072_v1, %v1110_v30  ;;  %v1833_v30 = vld [vmem:[%s1963_s18 + $0x1b4] sm:$0xf0] }
  0xbf   : > { %v1242_v34 = vmax.f32 %v1178_v33, 0.0  ;;  %v860_v35 = vpop.f32.mrf.mxu2 }
  0xc0   : > { %v1030_v36 = vadd.f32 %v1029_v3, %v860_v35  ;;  %v782_v37 = vpop.f32.mrf.mxu0 }
  0xc1   : > { %1307 = vst.msk [vmem:[%s2081_s6 + $0x10] sm:$0xff] %vm1304_vm2, %v1242_v34  ;;  %v952_v40 = vadd.f32 %v951_v32, %v782_v37  ;;  %v1526_v34 = vor.u32 %v1801_v26, %v1525_v24  ;;  %v1654_v37 = vor.u32 %v1833_v30, %v1653_v29  ;;  %v1804_v26 = vld [vmem:[%s1963_s18 + $0xd4] sm:$0xf]  ;;  %v1838_v29 = vld [vmem:[%s1963_s18 + $0x1e4] sm:$0xf] }
  0xc2   : > { %v1142_v43 = vmul.f32 %v2066_v60, %v1030_v36  ;;  %v1679_v30 = vld [vmem:[%s1963_s18 + $0x1e8] sm:$0xf0] }
  0xc3   : > { %v1111_v44 = vmul.f32 %v2066_v60, %v952_v40 }
  0xc4   : > { %v1036_v46 = vpop.f32.mrf.mxu3  ;;  %v1210_v47 = vadd.f32 %v2072_v1, %v1142_v43 }
  0xc5   : > { %v954_v48 = vpop.f32.mrf.mxu1  ;;  %v1179_v52 = vadd.f32 %v2072_v1, %v1111_v44 }
  0xc6   : > { %v1274_v55 = vmax.f32 %v1210_v47, 0.0 }
  0xc7   : > { %v1243_v56 = vmax.f32 %v1179_v52, 0.0  ;;  %v862_v57 = vpop.f32.mrf.mxu2 }
  0xc8   : > { %1753 = vmatmul.msk.bf16.gmra.mxu1 %vm665_vm1, %v1522_v45  ;;  %1339 = vst.msk [vmem:[%s2081_s6 + $0x110] sm:$0xff] %vm1304_vm2, %v1274_v55  ;;  %v1032_v59 = vadd.f32 %v1031_v16, %v862_v57  ;;  %v785_v61 = vpop.f32.mrf.mxu0  ;;  %v1834_v16 = vld [vmem:[%s1963_s18 + $0x1c4] sm:$0xf] }
  0xc9   : > { %1770 = vmatmul.msk.bf16.gmra.mxu3 %vm665_vm1, %v1658_v51  ;;  %1308 = vst.msk [vmem:[%s2081_s6 + $0x18] sm:$0xff] %vm1304_vm2, %v1243_v56  ;;  %v955_v63 = vadd.f32 %v954_v48, %v785_v61  ;;  %v1666_v27 = vor.u32 %v1834_v16, %v1663_v17  ;;  %v1535_v51 = vld [vmem:[%s1963_s18 + $0xc8] sm:$0xf0] }
  0xca   : > { %v1143_v0 = vmul.f32 %v2066_v60, %v1032_v59  ;;  %v1538_v57 = vor.u32 %v1802_v50, %v1535_v51 }
  0xcb   : > { %v1112_v2 = vmul.f32 %v2066_v60, %v955_v63  ;;  %824 = vmatmul.bf16.gmra.mxu0 %v1518_v58  ;;  %v1803_v63 = vld [vmem:[%s1963_s18 + $0xc4] sm:$0xf0] }
  0xcc   : > { %v1039_v3 = vpop.f32.mrf.mxu3  ;;  %v1211_v4 = vadd.f32 %v2072_v1, %v1143_v0  ;;  %904 = vmatmul.bf16.gmra.mxu2 %v1646_v62  ;;  %v1533_v62 = vld [vmem:[%s1963_s18 + $0xc0] sm:$0xf]  ;;  %v1674_v0 = vor.u32 %v1836_v53, %v1671_v54 }
  0xcd   : > { %v956_v5 = vpop.f32.mrf.mxu1  ;;  %v1180_v6 = vadd.f32 %v2072_v1, %v1112_v2 }
  0xce   : > { %v1275_v8 = vmax.f32 %v1211_v4, 0.0  ;;  %v1835_v4 = vld [vmem:[%s1963_s18 + $0x1c4] sm:$0xf0] }
  0xcf   : > { %v1244_v9 = vmax.f32 %v1180_v6, 0.0  ;;  %v865_v10 = vpop.f32.mrf.mxu2 }
  0xd0   : > { %1340 = vst.msk [vmem:[%s2081_s6 + $0x118] sm:$0xff] %vm1304_vm2, %v1275_v8  ;;  %v1035_v11 = vadd.f32 %v1034_v31, %v865_v10  ;;  %v787_v12 = vpop.f32.mrf.mxu0 }
  0xd1   : > { %1309 = vst.msk [vmem:[%s2081_s6 + $0x20] sm:$0xff] %vm1304_vm2, %v1244_v9  ;;  %v957_v15 = vadd.f32 %v956_v5, %v787_v12  ;;  %v1534_v9 = vor.u32 %v1803_v63, %v1533_v62  ;;  %v1806_v63 = vld [vmem:[%s1963_s18 + $0xe4] sm:$0xf] }
  0xd2   : > { %v1144_v18 = vmul.f32 %v2066_v60, %v1035_v11 }
  0xd3   : > { %v1113_v19 = vmul.f32 %v2066_v60, %v957_v15 }
  0xd4   : > { %v1041_v21 = vpop.f32.mrf.mxu3  ;;  %v1212_v22 = vadd.f32 %v2072_v1, %v1144_v18 }
  0xd5   : > { %v959_v23 = vpop.f32.mrf.mxu1  ;;  %v1181_v28 = vadd.f32 %v2072_v1, %v1113_v19 }
  0xd6   : > { %v1276_v31 = vmax.f32 %v1212_v22, 0.0 }
  0xd7   : > { %v1245_v32 = vmax.f32 %v1181_v28, 0.0  ;;  %v867_v33 = vpop.f32.mrf.mxu2 }
  0xd8   : > { %1754 = vmatmul.msk.bf16.gmra.mxu1 %vm665_vm1, %v1530_v20  ;;  %1341 = vst.msk [vmem:[%s2081_s6 + $0x120] sm:$0xff] %vm1304_vm2, %v1276_v31  ;;  %v1037_v35 = vadd.f32 %v1036_v46, %v867_v33  ;;  %v790_v36 = vpop.f32.mrf.mxu0 }
  0xd9   : > { %1771 = vmatmul.msk.bf16.gmra.mxu3 %vm665_vm1, %v1666_v27  ;;  %1310 = vst.msk [vmem:[%s2081_s6 + $0x28] sm:$0xff] %vm1304_vm2, %v1245_v32  ;;  %v960_v38 = vadd.f32 %v959_v23, %v790_v36  ;;  %v1543_v27 = vld [vmem:[%s1963_s18 + $0xd8] sm:$0xf0] }
  0xda   : > { %v1145_v39 = vmul.f32 %v2066_v60, %v1037_v35  ;;  %v1546_v33 = vor.u32 %v1804_v26, %v1543_v27 }
  0xdb   : > { %v1114_v40 = vmul.f32 %v2066_v60, %v960_v38  ;;  %829 = vmatmul.bf16.gmra.mxu0 %v1526_v34  ;;  %v1805_v38 = vld [vmem:[%s1963_s18 + $0xd4] sm:$0xf0] }
  0xdc   : > { %v1044_v41 = vpop.f32.mrf.mxu3  ;;  %v1213_v42 = vadd.f32 %v2072_v1, %v1145_v39  ;;  %909 = vmatmul.bf16.gmra.mxu2 %v1654_v37  ;;  %v1541_v37 = vld [vmem:[%s1963_s18 + $0xd0] sm:$0xf]  ;;  %v1682_v39 = vor.u32 %v1838_v29, %v1679_v30 }
  0xdd   : > { %v961_v43 = vpop.f32.mrf.mxu1  ;;  %v1182_v44 = vadd.f32 %v2072_v1, %v1114_v40 }
  0xde   : > { %v1277_v45 = vmax.f32 %v1213_v42, 0.0  ;;  %v1837_v42 = vld [vmem:[%s1963_s18 + $0x1d4] sm:$0xf0] }
  0xdf   : > { %v1246_v46 = vmax.f32 %v1182_v44, 0.0  ;;  %v870_v47 = vpop.f32.mrf.mxu2 }
  0xe0   : > { %1342 = vst.msk [vmem:[%s2081_s6 + $0x128] sm:$0xff] %vm1304_vm2, %v1277_v45  ;;  %v1040_v48 = vadd.f32 %v1039_v3, %v870_v47  ;;  %v792_v49 = vpop.f32.mrf.mxu0  ;;  %v1661_v3 = vld [vmem:[%s1963_s18 + $0x1c0] sm:$0xf] }
  0xe1   : > { %1311 = vst.msk [vmem:[%s2081_s6 + $0x30] sm:$0xff] %vm1304_vm2, %v1246_v46  ;;  %v962_v52 = vadd.f32 %v961_v43, %v792_v49  ;;  %v1662_v12 = vor.u32 %v1835_v4, %v1661_v3  ;;  %v1542_v46 = vor.u32 %v1805_v38, %v1541_v37  ;;  %v1840_v3 = vld [vmem:[%s1963_s18 + $0x1f4] sm:$0xf]  ;;  %v1687_v4 = vld [vmem:[%s1963_s18 + $0x1f8] sm:$0xf0] }
  0xe2   : > { %v1146_v55 = vmul.f32 %v2066_v60, %v1040_v48  ;;  %v1808_v38 = vld [vmem:[%s1963_s18 + $0xf4] sm:$0xf] }
  0xe3   : > { %v1115_v56 = vmul.f32 %v2066_v60, %v962_v52 }
  0xe4   : > { %v1046_v58 = vpop.f32.mrf.mxu3  ;;  %v1214_v59 = vadd.f32 %v2072_v1, %v1146_v55 }
  0xe5   : > { %v964_v61 = vpop.f32.mrf.mxu1  ;;  %v1183_v2 = vadd.f32 %v2072_v1, %v1115_v56 }
  0xe6   : > { %v1278_v5 = vmax.f32 %v1214_v59, 0.0 }
  0xe7   : > { %v1247_v6 = vmax.f32 %v1183_v2, 0.0  ;;  %v872_v8 = vpop.f32.mrf.mxu2 }
  0xe8   : > { %1755 = vmatmul.msk.bf16.gmra.mxu1 %vm665_vm1, %v1538_v57  ;;  %1343 = vst.msk [vmem:[%s2081_s6 + $0x130] sm:$0xff] %vm1304_vm2, %v1278_v5  ;;  %v1042_v10 = vadd.f32 %v1041_v21, %v872_v8  ;;  %v795_v11 = vpop.f32.mrf.mxu0 }
  0xe9   : > { %1772 = vmatmul.msk.bf16.gmra.mxu3 %vm665_vm1, %v1674_v0  ;;  %1312 = vst.msk [vmem:[%s2081_s6 + $0x38] sm:$0xff] %vm1304_vm2, %v1247_v6  ;;  %v965_v13 = vadd.f32 %v964_v61, %v795_v11  ;;  %v1551_v0 = vld [vmem:[%s1963_s18 + $0xe8] sm:$0xf0] }
  0xea   : > { %v1147_v14 = vmul.f32 %v2066_v60, %v1042_v10  ;;  %v1554_v8 = vor.u32 %v1806_v63, %v1551_v0 }
  0xeb   : > { %v1116_v15 = vmul.f32 %v2066_v60, %v965_v13  ;;  %834 = vmatmul.bf16.gmra.mxu0 %v1534_v9  ;;  %v1807_v13 = vld [vmem:[%s1963_s18 + $0xe4] sm:$0xf0] }
  0xec   : > { %v1049_v16 = vpop.f32.mrf.mxu3  ;;  %v1215_v17 = vadd.f32 %v2072_v1, %v1147_v14  ;;  %914 = vmatmul.bf16.gmra.mxu2 %v1662_v12  ;;  %v1549_v12 = vld [vmem:[%s1963_s18 + $0xe0] sm:$0xf]  ;;  %v1690_v14 = vor.u32 %v1840_v3, %v1687_v4 }
  0xed   : > { %v966_v18 = vpop.f32.mrf.mxu1  ;;  %v1184_v19 = vadd.f32 %v2072_v1, %v1116_v15 }
  0xee   : > { %v1279_v20 = vmax.f32 %v1215_v17, 0.0  ;;  %v1839_v17 = vld [vmem:[%s1963_s18 + $0x1e4] sm:$0xf0] }
  0xef   : > { %v1248_v21 = vmax.f32 %v1184_v19, 0.0  ;;  %v875_v22 = vpop.f32.mrf.mxu2 }
  0xf0   : > { %1344 = vst.msk [vmem:[%s2081_s6 + $0x138] sm:$0xff] %vm1304_vm2, %v1279_v20  ;;  %v1045_v23 = vadd.f32 %v1044_v41, %v875_v22  ;;  %v797_v24 = vpop.f32.mrf.mxu0  ;;  %v1669_v41 = vld [vmem:[%s1963_s18 + $0x1d0] sm:$0xf] }
  0xf1   : > { %1313 = vst.msk [vmem:[%s2081_s6 + $0x40] sm:$0xff] %vm1304_vm2, %v1248_v21  ;;  %v967_v28 = vadd.f32 %v966_v18, %v797_v24  ;;  %v1670_v49 = vor.u32 %v1837_v42, %v1669_v41  ;;  %v1550_v21 = vor.u32 %v1807_v13, %v1549_v12 }
  0xf2   : > { %v1148_v31 = vmul.f32 %v2066_v60, %v1045_v23 }
  0xf3   : > { %v1117_v32 = vmul.f32 %v2066_v60, %v967_v28 }
  0xf4   : > { %v1051_v34 = vpop.f32.mrf.mxu3  ;;  %v1216_v35 = vadd.f32 %v2072_v1, %v1148_v31 }
  0xf5   : > { %v969_v36 = vpop.f32.mrf.mxu1  ;;  %v1185_v40 = vadd.f32 %v2072_v1, %v1117_v32 }
  0xf6   : > { %v1280_v43 = vmax.f32 %v1216_v35, 0.0 }
  0xf7   : > { %v1249_v44 = vmax.f32 %v1185_v40, 0.0  ;;  %v877_v45 = vpop.f32.mrf.mxu2 }
  0xf8   : > { %1756 = vmatmul.msk.bf16.gmra.mxu1 %vm665_vm1, %v1546_v33  ;;  %1345 = vst.msk [vmem:[%s2081_s6 + $0x140] sm:$0xff] %vm1304_vm2, %v1280_v43  ;;  %v1047_v47 = vadd.f32 %v1046_v58, %v877_v45  ;;  %v800_v48 = vpop.f32.mrf.mxu0 }
  0xf9   : > { %1773 = vmatmul.msk.bf16.gmra.mxu3 %vm665_vm1, %v1682_v39  ;;  %1314 = vst.msk [vmem:[%s2081_s6 + $0x48] sm:$0xff] %vm1304_vm2, %v1249_v44  ;;  %v970_v50 = vadd.f32 %v969_v36, %v800_v48  ;;  %v1559_v39 = vld [vmem:[%s1963_s18 + $0xf8] sm:$0xf0]  ;;  %v1809_v48 = vld [vmem:[%s1963_s18 + $0xf4] sm:$0xf0] }
  0xfa   : > { %v1149_v51 = vmul.f32 %v2066_v60, %v1047_v47  ;;  %v1562_v43 = vor.u32 %v1808_v38, %v1559_v39  ;;  %v1557_v47 = vld [vmem:[%s1963_s18 + $0xf0] sm:$0xf] }
  0xfb   : > { %v1118_v52 = vmul.f32 %v2066_v60, %v970_v50  ;;  %839 = vmatmul.bf16.gmra.mxu0 %v1542_v46  ;;  %v1685_v50 = vld [vmem:[%s1963_s18 + $0x1f0] sm:$0xf] }
  0xfc   : > { %v1054_v53 = vpop.f32.mrf.mxu3  ;;  %v1217_v54 = vadd.f32 %v2072_v1, %v1149_v51  ;;  %919 = vmatmul.bf16.gmra.mxu2 %v1670_v49  ;;  %v1841_v51 = vld [vmem:[%s1963_s18 + $0x1f4] sm:$0xf0] }
  0xfd   : > { %v971_v55 = vpop.f32.mrf.mxu1  ;;  %v1186_v56 = vadd.f32 %v2072_v1, %v1118_v52 }
  0xfe   : > { %v1281_v57 = vmax.f32 %v1217_v54, 0.0 }
  0xff   : > { %v1250_v58 = vmax.f32 %v1186_v56, 0.0  ;;  %v880_v59 = vpop.f32.mrf.mxu2 }
 0x100   : > { %1346 = vst.msk [vmem:[%s2081_s6 + $0x148] sm:$0xff] %vm1304_vm2, %v1281_v57  ;;  %v1050_v61 = vadd.f32 %v1049_v16, %v880_v59  ;;  %v802_v62 = vpop.f32.mrf.mxu0  ;;  %v1677_v16 = vld [vmem:[%s1963_s18 + $0x1e0] sm:$0xf] }
 0x101   : > { %1315 = vst.msk [vmem:[%s2081_s6 + $0x50] sm:$0xff] %vm1304_vm2, %v1250_v58  ;;  %v972_v2 = vadd.f32 %v971_v55, %v802_v62  ;;  %v1678_v24 = vor.u32 %v1839_v17, %v1677_v16  ;;  %v1558_v55 = vor.u32 %v1809_v48, %v1557_v47  ;;  %v1686_v58 = vor.u32 %v1841_v51, %v1685_v50 }
 0x102   : > { %v1150_v5 = vmul.f32 %v2066_v60, %v1050_v61 }
 0x103   : > { %v1119_v6 = vmul.f32 %v2066_v60, %v972_v2 }
 0x104   : > { %v1056_v9 = vpop.f32.mrf.mxu3  ;;  %v1218_v10 = vadd.f32 %v2072_v1, %v1150_v5 }
 0x105   : > { %v974_v11 = vpop.f32.mrf.mxu1  ;;  %v1187_v15 = vadd.f32 %v2072_v1, %v1119_v6 }
 0x106   : > { %v1282_v18 = vmax.f32 %v1218_v10, 0.0  ;;  %v1810_v10 = vld [vmem:[%s1963_s18 + $0x104] sm:$0xf] }
 0x107   : > { %v1251_v19 = vmax.f32 %v1187_v15, 0.0  ;;  %v882_v20 = vpop.f32.mrf.mxu2 }
 0x108   : > { %1757 = vmatmul.msk.bf16.gmra.mxu1 %vm665_vm1, %v1554_v8  ;;  %1347 = vst.msk [vmem:[%s2081_s6 + $0x150] sm:$0xff] %vm1304_vm2, %v1282_v18  ;;  %v1052_v22 = vadd.f32 %v1051_v34, %v882_v20  ;;  %v805_v23 = vpop.f32.mrf.mxu0 }
 0x109   : > { %1774 = vmatmul.msk.bf16.gmra.mxu3 %vm665_vm1, %v1690_v14  ;;  %1316 = vst.msk [vmem:[%s2081_s6 + $0x58] sm:$0xff] %vm1304_vm2, %v1251_v19  ;;  %v975_v26 = vadd.f32 %v974_v11, %v805_v23  ;;  %v1567_v11 = vld [vmem:[%s1963_s18 + $0x108] sm:$0xf0] }
 0x10a   : > { %v1151_v27 = vmul.f32 %v2066_v60, %v1052_v22  ;;  %v1570_v15 = vor.u32 %v1810_v10, %v1567_v11 }
 0x10b   : > { %v1120_v28 = vmul.f32 %v2066_v60, %v975_v26  ;;  %844 = vmatmul.bf16.gmra.mxu0 %v1550_v21 }
 0x10c   : > { %v1059_v29 = vpop.f32.mrf.mxu3  ;;  %v1219_v30 = vadd.f32 %v2072_v1, %v1151_v27  ;;  %924 = vmatmul.bf16.gmra.mxu2 %v1678_v24 }
 0x10d   : > { %v976_v31 = vpop.f32.mrf.mxu1  ;;  %v1188_v32 = vadd.f32 %v2072_v1, %v1120_v28 }
 0x10e   : > { %v1283_v33 = vmax.f32 %v1219_v30, 0.0 }
 0x10f   : > { %v1252_v34 = vmax.f32 %v1188_v32, 0.0  ;;  %v885_v35 = vpop.f32.mrf.mxu2 }
 0x110   : > { %1348 = vst.msk [vmem:[%s2081_s6 + $0x158] sm:$0xff] %vm1304_vm2, %v1283_v33  ;;  %v1055_v36 = vadd.f32 %v1054_v53, %v885_v35  ;;  %v807_v37 = vpop.f32.mrf.mxu0 }
 0x111   : > { %1317 = vst.msk [vmem:[%s2081_s6 + $0x60] sm:$0xff] %vm1304_vm2, %v1252_v34  ;;  %v977_v40 = vadd.f32 %v976_v31, %v807_v37 }
 0x112   : > { %v1152_v41 = vmul.f32 %v2066_v60, %v1055_v36 }
 0x113   : > { %v1121_v42 = vmul.f32 %v2066_v60, %v977_v40 }
 0x114   : > { %v1061_v44 = vpop.f32.mrf.mxu3  ;;  %v1220_v45 = vadd.f32 %v2072_v1, %v1152_v41 }
 0x115   : > { %v979_v46 = vpop.f32.mrf.mxu1  ;;  %v1189_v49 = vadd.f32 %v2072_v1, %v1121_v42 }
 0x116   : > { %v1284_v52 = vmax.f32 %v1220_v45, 0.0 }
 0x117   : > { %v1253_v53 = vmax.f32 %v1189_v49, 0.0  ;;  %v887_v54 = vpop.f32.mrf.mxu2 }
 0x118   : > { %1758 = vmatmul.msk.bf16.gmra.mxu1 %vm665_vm1, %v1562_v43  ;;  %1349 = vst.msk [vmem:[%s2081_s6 + $0x160] sm:$0xff] %vm1304_vm2, %v1284_v52  ;;  %v1057_v56 = vadd.f32 %v1056_v9, %v887_v54  ;;  %v810_v57 = vpop.f32.mrf.mxu0 }
 0x119   : > { %1318 = vst.msk [vmem:[%s2081_s6 + $0x68] sm:$0xff] %vm1304_vm2, %v1253_v53  ;;  %v980_v59 = vadd.f32 %v979_v46, %v810_v57 }
 0x11a   : > { %v1153_v61 = vmul.f32 %v2066_v60, %v1057_v56 }
 0x11b   : > { %v1122_v62 = vmul.f32 %v2066_v60, %v980_v59  ;;  %849 = vmatmul.bf16.gmra.mxu0 %v1558_v55 }
 0x11c   : > { %v1064_v63 = vpop.f32.mrf.mxu3  ;;  %v1221_v0 = vadd.f32 %v2072_v1, %v1153_v61  ;;  %929 = vmatmul.bf16.gmra.mxu2 %v1686_v58 }
 0x11d   : > { %v981_v2 = vpop.f32.mrf.mxu1  ;;  %v1190_v3 = vadd.f32 %v2072_v1, %v1122_v62 }
 0x11e   : > { %v1285_v4 = vmax.f32 %v1221_v0, 0.0 }
 0x11f   : > { %v1254_v5 = vmax.f32 %v1190_v3, 0.0  ;;  %v890_v6 = vpop.f32.mrf.mxu2 }
 0x120   : > { %1350 = vst.msk [vmem:[%s2081_s6 + $0x168] sm:$0xff] %vm1304_vm2, %v1285_v4  ;;  %v1060_v8 = vadd.f32 %v1059_v29, %v890_v6  ;;  %v812_v9 = vpop.f32.mrf.mxu0 }
 0x121   : > { %1319 = vst.msk [vmem:[%s2081_s6 + $0x70] sm:$0xff] %vm1304_vm2, %v1254_v5  ;;  %v982_v12 = vadd.f32 %v981_v2, %v812_v9 }
 0x122   : > { %v1154_v13 = vmul.f32 %v2066_v60, %v1060_v8 }
 0x123   : > { %v1123_v14 = vmul.f32 %v2066_v60, %v982_v12 }
 0x124   : > { %v1066_v16 = vpop.f32.mrf.mxu3  ;;  %v1222_v17 = vadd.f32 %v2072_v1, %v1154_v13 }
 0x125   : > { %v984_v18 = vpop.f32.mrf.mxu1  ;;  %v1191_v19 = vadd.f32 %v2072_v1, %v1123_v14 }
 0x126   : > { %v1286_v20 = vmax.f32 %v1222_v17, 0.0 }
 0x127   : > { %v1255_v21 = vmax.f32 %v1191_v19, 0.0  ;;  %v892_v22 = vpop.f32.mrf.mxu2 }
 0x128   : > { %1759 = vmatmul.msk.bf16.gmra.mxu1 %vm665_vm1, %v1570_v15  ;;  %1351 = vst.msk [vmem:[%s2081_s6 + $0x170] sm:$0xff] %vm1304_vm2, %v1286_v20  ;;  %v1062_v23 = vadd.f32 %v1061_v44, %v892_v22  ;;  %v815_v24 = vpop.f32.mrf.mxu0 }
 0x129   : > { %1320 = vst.msk [vmem:[%s2081_s6 + $0x78] sm:$0xff] %vm1304_vm2, %v1255_v21  ;;  %v985_v26 = vadd.f32 %v984_v18, %v815_v24 }
 0x12a   : > { %v1155_v27 = vmul.f32 %v2066_v60, %v1062_v23 }
 0x12b   : > { %v1124_v28 = vmul.f32 %v2066_v60, %v985_v26 }
 0x12c   : > { %v1069_v29 = vpop.f32.mrf.mxu3  ;;  %v1223_v30 = vadd.f32 %v2072_v1, %v1155_v27 }
 0x12d   : > { %v986_v31 = vpop.f32.mrf.mxu1  ;;  %v1192_v32 = vadd.f32 %v2072_v1, %v1124_v28 }
 0x12e   : > { %v1287_v33 = vmax.f32 %v1223_v30, 0.0 }
 0x12f   : > { %v1256_v34 = vmax.f32 %v1192_v32, 0.0  ;;  %v895_v35 = vpop.f32.mrf.mxu2 }
 0x130   : > { %1352 = vst.msk [vmem:[%s2081_s6 + $0x178] sm:$0xff] %vm1304_vm2, %v1287_v33  ;;  %v1065_v36 = vadd.f32 %v1064_v63, %v895_v35  ;;  %v817_v37 = vpop.f32.mrf.mxu0 }
 0x131   : > { %1321 = vst.msk [vmem:[%s2081_s6 + $0x80] sm:$0xff] %vm1304_vm2, %v1256_v34  ;;  %v987_v38 = vadd.f32 %v986_v31, %v817_v37 }
 0x132   : > { %v1156_v39 = vmul.f32 %v2066_v60, %v1065_v36 }
 0x133   : > { %v1125_v40 = vmul.f32 %v2066_v60, %v987_v38 }
 0x134   : > { %v1071_v41 = vpop.f32.mrf.mxu3  ;;  %v1224_v42 = vadd.f32 %v2072_v1, %v1156_v39 }
 0x135   : > { %v989_v43 = vpop.f32.mrf.mxu1  ;;  %v1193_v44 = vadd.f32 %v2072_v1, %v1125_v40 }
 0x136   : > { %v1288_v45 = vmax.f32 %v1224_v42, 0.0 }
 0x137   : > { %v1257_v46 = vmax.f32 %v1193_v44, 0.0  ;;  %v897_v47 = vpop.f32.mrf.mxu2 }
 0x138   : > { %1353 = vst.msk [vmem:[%s2081_s6 + $0x180] sm:$0xff] %vm1304_vm2, %v1288_v45  ;;  %v1067_v48 = vadd.f32 %v1066_v16, %v897_v47  ;;  %v820_v49 = vpop.f32.mrf.mxu0 }
 0x139   : > { %1322 = vst.msk [vmem:[%s2081_s6 + $0x88] sm:$0xff] %vm1304_vm2, %v1257_v46  ;;  %v990_v50 = vadd.f32 %v989_v43, %v820_v49 }
 0x13a   : > { %v1157_v51 = vmul.f32 %v2066_v60, %v1067_v48 }
 0x13b   : > { %v1126_v52 = vmul.f32 %v2066_v60, %v990_v50 }
 0x13c   : > { %v1074_v53 = vpop.f32.mrf.mxu3  ;;  %v1225_v54 = vadd.f32 %v2072_v1, %v1157_v51 }
 0x13d   : > { %v991_v55 = vpop.f32.mrf.mxu1  ;;  %v1194_v56 = vadd.f32 %v2072_v1, %v1126_v52 }
 0x13e   : > { %v1289_v57 = vmax.f32 %v1225_v54, 0.0 }
 0x13f   : > { %v1258_v58 = vmax.f32 %v1194_v56, 0.0  ;;  %v900_v59 = vpop.f32.mrf.mxu2 }
 0x140   : > { %1354 = vst.msk [vmem:[%s2081_s6 + $0x188] sm:$0xff] %vm1304_vm2, %v1289_v57  ;;  %v1070_v61 = vadd.f32 %v1069_v29, %v900_v59  ;;  %v822_v62 = vpop.f32.mrf.mxu0 }
 0x141   : > { %1323 = vst.msk [vmem:[%s2081_s6 + $0x90] sm:$0xff] %vm1304_vm2, %v1258_v58  ;;  %v992_v63 = vadd.f32 %v991_v55, %v822_v62 }
 0x142   : > { %v1158_v0 = vmul.f32 %v2066_v60, %v1070_v61 }
 0x143   : > { %v1127_v2 = vmul.f32 %v2066_v60, %v992_v63 }
 0x144   : > { %v1076_v3 = vpop.f32.mrf.mxu3  ;;  %v1226_v4 = vadd.f32 %v2072_v1, %v1158_v0 }
 0x145   : > { %v994_v5 = vpop.f32.mrf.mxu1  ;;  %v1195_v6 = vadd.f32 %v2072_v1, %v1127_v2 }
 0x146   : > { %v1290_v8 = vmax.f32 %v1226_v4, 0.0 }
 0x147   : > { %v1259_v9 = vmax.f32 %v1195_v6, 0.0  ;;  %v902_v10 = vpop.f32.mrf.mxu2 }
 0x148   : > { %1355 = vst.msk [vmem:[%s2081_s6 + $0x190] sm:$0xff] %vm1304_vm2, %v1290_v8  ;;  %v1072_v11 = vadd.f32 %v1071_v41, %v902_v10  ;;  %v825_v12 = vpop.f32.mrf.mxu0 }
 0x149   : > { %1324 = vst.msk [vmem:[%s2081_s6 + $0x98] sm:$0xff] %vm1304_vm2, %v1259_v9  ;;  %v995_v13 = vadd.f32 %v994_v5, %v825_v12 }
 0x14a   : > { %v1159_v14 = vmul.f32 %v2066_v60, %v1072_v11 }
 0x14b   : > { %v1128_v15 = vmul.f32 %v2066_v60, %v995_v13 }
 0x14c   : > { %v1227_v16 = vadd.f32 %v2072_v1, %v1159_v14  ;;  %v1079_v19 = vpop.f32.mrf.mxu3 }
 0x14d   : > { %v996_v17 = vpop.f32.mrf.mxu1  ;;  %v1196_v18 = vadd.f32 %v2072_v1, %v1128_v15 }
 0x14e   : > { %v1291_v20 = vmax.f32 %v1227_v16, 0.0 }
 0x14f   : > { %v1260_v21 = vmax.f32 %v1196_v18, 0.0  ;;  %v905_v22 = vpop.f32.mrf.mxu2 }
 0x150   : > { %1356 = vst.msk [vmem:[%s2081_s6 + $0x198] sm:$0xff] %vm1304_vm2, %v1291_v20  ;;  %v1075_v23 = vadd.f32 %v1074_v53, %v905_v22  ;;  %v827_v24 = vpop.f32.mrf.mxu0 }
 0x151   : > { %1325 = vst.msk [vmem:[%s2081_s6 + $0xa0] sm:$0xff] %vm1304_vm2, %v1260_v21  ;;  %v997_v26 = vadd.f32 %v996_v17, %v827_v24 }
 0x152   : > { %v1160_v27 = vmul.f32 %v2066_v60, %v1075_v23 }
 0x153   : > { %v1129_v28 = vmul.f32 %v2066_v60, %v997_v26 }
 0x154   : > { %v1228_v29 = vadd.f32 %v2072_v1, %v1160_v27  ;;  %v1081_v35 = vpop.f32.mrf.mxu3 }
 0x155   : > { %v999_v30 = vpop.f32.mrf.mxu1  ;;  %v1197_v31 = vadd.f32 %v2072_v1, %v1129_v28 }
 0x156   : > { %v1292_v32 = vmax.f32 %v1228_v29, 0.0 }
 0x157   : > { %v1261_v33 = vmax.f32 %v1197_v31, 0.0  ;;  %v907_v34 = vpop.f32.mrf.mxu2 }
 0x158   : > { %1357 = vst.msk [vmem:[%s2081_s6 + $0x1a0] sm:$0xff] %vm1304_vm2, %v1292_v32  ;;  %v1077_v36 = vadd.f32 %v1076_v3, %v907_v34  ;;  %v830_v37 = vpop.f32.mrf.mxu0 }
 0x159   : > { %1326 = vst.msk [vmem:[%s2081_s6 + $0xa8] sm:$0xff] %vm1304_vm2, %v1261_v33  ;;  %v1000_v38 = vadd.f32 %v999_v30, %v830_v37 }
 0x15a   : > { %v1161_v39 = vmul.f32 %v2066_v60, %v1077_v36 }
 0x15b   : > { %v1130_v40 = vmul.f32 %v2066_v60, %v1000_v38 }
 0x15c   : > { %v1229_v41 = vadd.f32 %v2072_v1, %v1161_v39  ;;  %v1084_v50 = vpop.f32.mrf.mxu3 }
 0x15d   : > { %v1001_v42 = vpop.f32.mrf.mxu1  ;;  %v1198_v43 = vadd.f32 %v2072_v1, %v1130_v40 }
 0x15e   : > { %v1293_v44 = vmax.f32 %v1229_v41, 0.0 }
 0x15f   : > { %v1262_v45 = vmax.f32 %v1198_v43, 0.0  ;;  %v910_v46 = vpop.f32.mrf.mxu2 }
 0x160   : > { %1358 = vst.msk [vmem:[%s2081_s6 + $0x1a8] sm:$0xff] %vm1304_vm2, %v1293_v44  ;;  %v1080_v47 = vadd.f32 %v1079_v19, %v910_v46  ;;  %v832_v48 = vpop.f32.mrf.mxu0 }
 0x161   : > { %1327 = vst.msk [vmem:[%s2081_s6 + $0xb0] sm:$0xff] %vm1304_vm2, %v1262_v45  ;;  %v1002_v49 = vadd.f32 %v1001_v42, %v832_v48 }
 0x162   : > { %v1162_v51 = vmul.f32 %v2066_v60, %v1080_v47 }
 0x163   : > { %v1131_v52 = vmul.f32 %v2066_v60, %v1002_v49 }
 0x164   : > { %v1230_v53 = vadd.f32 %v2072_v1, %v1162_v51  ;;  %v1086_v2 = vpop.f32.mrf.mxu3 }
 0x165   : > { %v1004_v54 = vpop.f32.mrf.mxu1  ;;  %v1199_v55 = vadd.f32 %v2072_v1, %v1131_v52 }
 0x166   : > { %v1294_v56 = vmax.f32 %v1230_v53, 0.0 }
 0x167   : > { %v1263_v57 = vmax.f32 %v1199_v55, 0.0  ;;  %v912_v58 = vpop.f32.mrf.mxu2 }
 0x168   : > { %1359 = vst.msk [vmem:[%s2081_s6 + $0x1b0] sm:$0xff] %vm1304_vm2, %v1294_v56  ;;  %v1082_v59 = vadd.f32 %v1081_v35, %v912_v58  ;;  %v835_v61 = vpop.f32.mrf.mxu0 }
 0x169   : > { %1328 = vst.msk [vmem:[%s2081_s6 + $0xb8] sm:$0xff] %vm1304_vm2, %v1263_v57  ;;  %v1005_v62 = vadd.f32 %v1004_v54, %v835_v61 }
 0x16a   : > { %v1163_v63 = vmul.f32 %v2066_v60, %v1082_v59 }
 0x16b   : > { %v1132_v0 = vmul.f32 %v2066_v60, %v1005_v62 }
 0x16c   : > { %v1231_v3 = vadd.f32 %v2072_v1, %v1163_v63  ;;  %v1089_v18 = vpop.f32.mrf.mxu3 }
 0x16d   : > { %v1006_v4 = vpop.f32.mrf.mxu1  ;;  %v1200_v5 = vadd.f32 %v2072_v1, %v1132_v0 }
 0x16e   : > { %v1295_v6 = vmax.f32 %v1231_v3, 0.0 }
 0x16f   : > { %v1264_v8 = vmax.f32 %v1200_v5, 0.0  ;;  %v915_v9 = vpop.f32.mrf.mxu2 }
 0x170   : > { %1360 = vst.msk [vmem:[%s2081_s6 + $0x1b8] sm:$0xff] %vm1304_vm2, %v1295_v6  ;;  %v1085_v10 = vadd.f32 %v1084_v50, %v915_v9  ;;  %v837_v11 = vpop.f32.mrf.mxu0 }
 0x171   : > { %1329 = vst.msk [vmem:[%s2081_s6 + $0xc0] sm:$0xff] %vm1304_vm2, %v1264_v8  ;;  %v1007_v12 = vadd.f32 %v1006_v4, %v837_v11  ;;  %v1880_v4 = vld [vmem:[%s2408_s3] ss:$0 sm:$0xff] }
 0x172   : > { %v1164_v13 = vmul.f32 %v2066_v60, %v1085_v10 }
 0x173   : > { %v1133_v14 = vmul.f32 %v2066_v60, %v1007_v12 }
 0x174   : > { %v1232_v15 = vadd.f32 %v2072_v1, %v1164_v13  ;;  %v1091_v34 = vpop.f32.mrf.mxu3 }
 0x175   : > { %v1009_v16 = vpop.f32.mrf.mxu1  ;;  %v1201_v17 = vadd.f32 %v2072_v1, %v1133_v14 }
 0x176   : > { %v1296_v19 = vmax.f32 %v1232_v15, 0.0 }
 0x177   : > { %v1265_v20 = vmax.f32 %v1201_v17, 0.0  ;;  %v917_v21 = vpop.f32.mrf.mxu2 }
 0x178   : > { %1361 = vst.msk [vmem:[%s2081_s6 + $0x1c0] sm:$0xff] %vm1304_vm2, %v1296_v19  ;;  %v1087_v22 = vadd.f32 %v1086_v2, %v917_v21  ;;  %v840_v23 = vpop.f32.mrf.mxu0 }
 0x179   : > { %1330 = vst.msk [vmem:[%s2081_s6 + $0xc8] sm:$0xff] %vm1304_vm2, %v1265_v20  ;;  %v1010_v24 = vadd.f32 %v1009_v16, %v840_v23 }
 0x17a   : > { %v1165_v26 = vmul.f32 %v2066_v60, %v1087_v22 }
 0x17b   : > { %v1134_v27 = vmul.f32 %v2066_v60, %v1010_v24 }
 0x17c   : > { %v1233_v28 = vadd.f32 %v2072_v1, %v1165_v26  ;;  %v1094_v49 = vpop.f32.mrf.mxu3 }
 0x17d   : > { %v1011_v29 = vpop.f32.mrf.mxu1  ;;  %v1202_v30 = vadd.f32 %v2072_v1, %v1134_v27 }
 0x17e   : > { %v1297_v31 = vmax.f32 %v1233_v28, 0.0 }
 0x17f   : > { %v1266_v32 = vmax.f32 %v1202_v30, 0.0  ;;  %v920_v33 = vpop.f32.mrf.mxu2 }
 0x180   : > { %1362 = vst.msk [vmem:[%s2081_s6 + $0x1c8] sm:$0xff] %vm1304_vm2, %v1297_v31  ;;  %v1090_v35 = vadd.f32 %v1089_v18, %v920_v33  ;;  %v842_v36 = vpop.f32.mrf.mxu0 }
 0x181   : > { %1331 = vst.msk [vmem:[%s2081_s6 + $0xd0] sm:$0xff] %vm1304_vm2, %v1266_v32  ;;  %v1012_v37 = vadd.f32 %v1011_v29, %v842_v36 }
 0x182   : > { %v1166_v38 = vmul.f32 %v2066_v60, %v1090_v35 }
 0x183   : > { %v1135_v39 = vmul.f32 %v2066_v60, %v1012_v37 }
 0x184   : > { %v1234_v40 = vadd.f32 %v2072_v1, %v1166_v38  ;;  %v1096_v0 = vpop.f32.mrf.mxu3 }
 0x185   : > { %v1014_v41 = vpop.f32.mrf.mxu1  ;;  %v1203_v42 = vadd.f32 %v2072_v1, %v1135_v39 }
 0x186   : > { %v1298_v43 = vmax.f32 %v1234_v40, 0.0 }
 0x187   : > { %v1267_v44 = vmax.f32 %v1203_v42, 0.0  ;;  %v922_v45 = vpop.f32.mrf.mxu2 }
 0x188   : > { %1363 = vst.msk [vmem:[%s2081_s6 + $0x1d0] sm:$0xff] %vm1304_vm2, %v1298_v43  ;;  %v1092_v46 = vadd.f32 %v1091_v34, %v922_v45  ;;  %v845_v47 = vpop.f32.mrf.mxu0 }
 0x189   : > { %1332 = vst.msk [vmem:[%s2081_s6 + $0xd8] sm:$0xff] %vm1304_vm2, %v1267_v44  ;;  %v1015_v48 = vadd.f32 %v1014_v41, %v845_v47 }
 0x18a   : > { %v1167_v50 = vmul.f32 %v2066_v60, %v1092_v46 }
 0x18b   : > { %v1136_v51 = vmul.f32 %v2066_v60, %v1015_v48  ;;  %v1879_v60 = vld [vmem:[%s2407_s2] ss:$0 sm:$0xff] }
 0x18c   : > { %v1235_v52 = vadd.f32 %v2072_v1, %v1167_v50  ;;  %v1099_v17 = vpop.f32.mrf.mxu3 }
 0x18d   : > { %v1016_v53 = vpop.f32.mrf.mxu1  ;;  %v1204_v54 = vadd.f32 %v2072_v1, %v1136_v51 }
 0x18e   : > { %v1299_v55 = vmax.f32 %v1235_v52, 0.0 }
 0x18f   : > { %v1268_v56 = vmax.f32 %v1204_v54, 0.0  ;;  %v925_v57 = vpop.f32.mrf.mxu2 }
 0x190   : > { %1364 = vst.msk [vmem:[%s2081_s6 + $0x1d8] sm:$0xff] %vm1304_vm2, %v1299_v55  ;;  %v1095_v58 = vadd.f32 %v1094_v49, %v925_v57  ;;  %v847_v59 = vpop.f32.mrf.mxu0 }
 0x191   : > { %1333 = vst.msk [vmem:[%s2081_s6 + $0xe0] sm:$0xff] %vm1304_vm2, %v1268_v56  ;;  %v1017_v61 = vadd.f32 %v1016_v53, %v847_v59 }
 0x192   : > { %v1168_v62 = vmul.f32 %v1879_v60, %v1095_v58 }
 0x193   : > { %v1137_v63 = vmul.f32 %v1879_v60, %v1017_v61 }
 0x194   : > { %v1236_v2 = vadd.f32 %v2072_v1, %v1168_v62  ;;  %v1101_v34 = vpop.f32.mrf.mxu3 }
 0x195   : > { %v1019_v3 = vpop.f32.mrf.mxu1  ;;  %v1205_v5 = vadd.f32 %v1880_v4, %v1137_v63 }
 0x196   : > { %v1300_v6 = vmax.f32 %v1236_v2, 0.0 }
 0x197   : > { %v1269_v8 = vmax.f32 %v1205_v5, 0.0  ;;  %v927_v9 = vpop.f32.mrf.mxu2 }
 0x198   : > { %1365 = vst.msk [vmem:[%s2081_s6 + $0x1e0] sm:$0xff] %vm1304_vm2, %v1300_v6  ;;  %v1097_v10 = vadd.f32 %v1096_v0, %v927_v9  ;;  %v850_v11 = vpop.f32.mrf.mxu0 }
 0x199   : > { %1334 = vst.msk [vmem:[%s2081_s6 + $0xe8] sm:$0xff] %vm1304_vm2, %v1269_v8  ;;  %v1020_v12 = vadd.f32 %v1019_v3, %v850_v11 }
 0x19a   : > { %v1169_v13 = vmul.f32 %v1879_v60, %v1097_v10 }
 0x19b   : > { %v1138_v1 = vmul.f32 %v1879_v60, %v1020_v12 }
 0x19c   : > { %v1237_v14 = vadd.f32 %v1880_v4, %v1169_v13 }
 0x19d   : > { %v1021_v15 = vpop.f32.mrf.mxu1  ;;  %v1206_v16 = vadd.f32 %v1880_v4, %v1138_v1 }
 0x19e   : > { %v1301_v18 = vmax.f32 %v1237_v14, 0.0 }
 0x19f   : > { %v1270_v19 = vmax.f32 %v1206_v16, 0.0  ;;  %v930_v20 = vpop.f32.mrf.mxu2 }
 0x1a0   : > { %1366 = vst.msk [vmem:[%s2081_s6 + $0x1e8] sm:$0xff] %vm1304_vm2, %v1301_v18  ;;  %v1100_v21 = vadd.f32 %v1099_v17, %v930_v20  ;;  %v852_v22 = vpop.f32.mrf.mxu0 }
 0x1a1   : > { %1335 = vst.msk [vmem:[%s2081_s6 + $0xf0] sm:$0xff] %vm1304_vm2, %v1270_v19  ;;  %v1022_v23 = vadd.f32 %v1021_v15, %v852_v22 }
 0x1a2   : > { %v1170_v24 = vmul.f32 %v1879_v60, %v1100_v21 }
 0x1a3   : > { %v1139_v26 = vmul.f32 %v1879_v60, %v1022_v23 }
 0x1a4   : > { %v1238_v27 = vadd.f32 %v1880_v4, %v1170_v24 }
 0x1a5   : > { %v1024_v28 = vpop.f32.mrf.mxu1  ;;  %v1207_v29 = vadd.f32 %v1880_v4, %v1139_v26 }
 0x1a6   : > { %v1025_v30 = vadd.f32 %v1024_v28, %v2083_v7  ;;  %v1302_v31 = vmax.f32 %v1238_v27, 0.0 }
 0x1a7   : > { %v1271_v32 = vmax.f32 %v1207_v29, 0.0  ;;  %v932_v35 = vpop.f32.mrf.mxu2 }
 0x1a8   : > { %v1140_v33 = vmul.f32 %v1879_v60, %v1025_v30  ;;  %1367 = vst.msk [vmem:[%s2081_s6 + $0x1f0] sm:$0xff] %vm1304_vm2, %v1302_v31  ;;  %v1102_v36 = vadd.f32 %v1101_v34, %v932_v35 }
 0x1a9   : > { %1336 = vst.msk [vmem:[%s2081_s6 + $0xf8] sm:$0xff] %vm1304_vm2, %v1271_v32 }
 0x1aa   : > { %v1208_v37 = vadd.f32 %v1880_v4, %v1140_v33  ;;  %v1171_v38 = vmul.f32 %v1879_v60, %v1102_v36 }
 0x1ac   : > { %v1272_v39 = vmax.f32 %v1208_v37, 0.0  ;;  %v1239_v40 = vadd.f32 %v1880_v4, %v1171_v38 }
 0x1ad   : > { %v1026_v41 = vpop.f32.mrf.mxu1 }
 0x1ae   : > { %1337 = vst.msk [vmem:[%s2081_s6 + $0x100] sm:$0xff] %vm1304_vm2, %v1272_v39  ;;  %v1027_v7 = vadd.f32 %v1026_v41, %v2097_v25  ;;  %v1303_v42 = vmax.f32 %v1239_v40, 0.0 }
 0x1b0   : > { %v1141_v43 = vmul.f32 %v1879_v60, %v1027_v7  ;;  %1368 = vst.msk [vmem:[%s2081_s6 + $0x1f8] sm:$0xff] %vm1304_vm2, %v1303_v42 }
 0x1b2   : > { %v1209_v44 = vadd.f32 %v1880_v4, %v1141_v43 }
 0x1b4   : > { %v1273_v45 = vmax.f32 %v1209_v44, 0.0 }
 0x1b6   : > { %1338 = vst.msk [vmem:[%s2081_s6 + $0x108] sm:$0xff] %vm1304_vm2, %v1273_v45 }
 0x1b7 PF: > { %s14_s15 = sadd.s32 1, %s1887_s15  }
 0x1b8   : > { %p11_p4 = scmp.ge.s32.totalorder %s14_s15, 4  }
 0x1ba   :  { %13 = sbr.rel (!%p11_p4) target bundleno = 1 (0x1), region = 66 }

// kernel: rec3_forward.18
= control target key start
LH: loop header
LB: loop body
LE: loop exit
PB: predicated region body
PF: predicated region fallthrough
CT: control target
= control target key end

     0   :  { %s463_s15 = smov 0   ;;  %s507_s0 = inlined_call_operand.vmem [shape: bf16[128,16], index: 0, kind: input, shape index: {}]   ;;  %s508_s1 = inlined_call_operand.vmem [shape: bf16[16,64], index: 1, kind: input, shape index: {}]   ;;  %s509_s2 = inlined_call_operand.vmem [shape: f32[1,64], index: 2, kind: input, shape index: {}]   ;;  %s510_s3 = inlined_call_operand.vmem [shape: f32[1,64], index: 3, kind: input, shape index: {}]   ;;  %s511_s4 = inlined_call_operand.vmem [shape: f32[128,64], index: 4, kind: output, shape index: {}]  }
   0x1 LB: > { %s377_s16 = sadd.s32 4294967295, %s436_s15   ;;  %p381_p0 = scmp.ge.s32.totalorder %s436_s15, 1  ;;  %s436_s15 = sphi %s463_s15, %s14_s15  }
   0x2   : > { %p163_p1 = scmp.lt.s32.totalorder %s436_s15, 3 }
   0x4   : > { %p164_p2 = pnand %p381_p0, %p163_p1 }
   0x5   : > { %s382_s19 = sshll.u32 (!%p164_p2), %s377_s16, 3 }
   0x6   : > { %167 = sbr.rel (%p164_p2) target bundleno = 164 (0xa4), region = 36  ;;  %p190_p3 = scmp.lt.s32.totalorder (!%p164_p2), %s382_s19, 15 }
   0xb   : > { %v416_v0 = vld [vmem:[%s508_s1] sm:$0xff]  ;;  %s513_s19 = smov (!%p190_p3, %s382_s19), 15  ;;  %vm238_vm0 = vcmask 130048   ;;  %vm312_vm1 = vcmask 523264  }
   0xc   : > { %258 = vmatpush.bf16.msra.mxu0 %v416_v0  ;;  %417 = vmatpush.bf16.msra.mxu1 %v416_v0  ;;  %s383_s20 = sshll.u32 %s513_s19, 2  ;;  %v428_v5 = vld [vmem:[%s509_s2] ss:$0 sm:$0xff]  ;;  %s385_s28 = sshll.u32 %s513_s19, 3 }
   0xd   : > { %418 = vmatpush.bf16.msra.mxu2 %v416_v0  ;;  %419 = vmatpush.bf16.msra.mxu3 %v416_v0  ;;  %s193_s23 = scalar_lea.vmem %s507_s0, %s383_s20  ;;  %v429_v6 = vld [vmem:[%s510_s3] ss:$0 sm:$0xff]  ;;  %s486_s5 = scalar_lea.vmem %s511_s4, %s385_s28 }
   0xe   : > { %v412_v1 = vld [vmem:[%s193_s23] sm:$0xff]  ;;  %v413_v2 = vld [vmem:[%s193_s23 + $0x8] sm:$0xff]  ;;  %v414_v3 = vld [vmem:[%s193_s23 + $0x10] sm:$0xff] }
   0xf   : > { %v415_v4 = vld [vmem:[%s193_s23 + $0x18] sm:$0xff]  ;;  %406 = vmatmul.msk.bf16.vlgmr.msra.gmra.mxu0 %vm238_vm0, %v412_v1  ;;  %407 = vmatmul.msk.bf16.vlgmr.msra.gmra.mxu1 %vm238_vm0, %v413_v2 }
  0x10   : > { %408 = vmatmul.msk.bf16.vlgmr.msra.gmra.mxu2 %vm238_vm0, %v414_v3  ;;  %409 = vmatmul.msk.bf16.vlgmr.msra.gmra.mxu3 %vm238_vm0, %v415_v4 }
  0x8c   : > { %v260_v7 = vpop.f32.mrf.mxu0  ;;  %v265_v8 = vpop.f32.mrf.mxu1 }
  0x8d   : > { %v284_v9 = vmul.f32 %v428_v5, %v260_v7  ;;  %v286_v10 = vmul.f32 %v428_v5, %v265_v8 }
  0x8f   : > { %v296_v11 = vadd.f32 %v429_v6, %v284_v9  ;;  %v298_v12 = vadd.f32 %v429_v6, %v286_v10 }
  0x91   : > { %v304_v13 = vmax.f32 %v296_v11, 0.0  ;;  %v306_v14 = vmax.f32 %v298_v12, 0.0 }
  0x93   : > { %313 = vst.msk [vmem:[%s486_s5] sm:$0xff] %vm312_vm1, %v304_v13  ;;  %v270_v15 = vpop.f32.mrf.mxu2  ;;  %v275_v16 = vpop.f32.mrf.mxu3 }
  0x94   : > { %315 = vst.msk [vmem:[%s486_s5 + $0x10] sm:$0xff] %vm312_vm1, %v306_v14  ;;  %v288_v17 = vmul.f32 %v428_v5, %v270_v15  ;;  %v290_v18 = vmul.f32 %v428_v5, %v275_v16  ;;  %v262_v19 = vpop.f32.mrf.mxu0  ;;  %v267_v20 = vpop.f32.mrf.mxu1 }
  0x95   : > { %v285_v21 = vmul.f32 %v428_v5, %v262_v19  ;;  %v287_v22 = vmul.f32 %v428_v5, %v267_v20 }
  0x96   : > { %v300_v23 = vadd.f32 %v429_v6, %v288_v17  ;;  %v302_v24 = vadd.f32 %v429_v6, %v290_v18 }
  0x97   : > { %v297_v25 = vadd.f32 %v429_v6, %v285_v21  ;;  %v299_v26 = vadd.f32 %v429_v6, %v287_v22 }
  0x98   : > { %v308_v27 = vmax.f32 %v300_v23, 0.0  ;;  %v310_v28 = vmax.f32 %v302_v24, 0.0 }
  0x99   : > { %v305_v29 = vmax.f32 %v297_v25, 0.0  ;;  %v307_v30 = vmax.f32 %v299_v26, 0.0 }
  0x9a   : > { %317 = vst.msk [vmem:[%s486_s5 + $0x20] sm:$0xff] %vm312_vm1, %v308_v27 }
  0x9b   : > { %319 = vst.msk [vmem:[%s486_s5 + $0x30] sm:$0xff] %vm312_vm1, %v310_v28  ;;  %v272_v31 = vpop.f32.mrf.mxu2  ;;  %v277_v32 = vpop.f32.mrf.mxu3 }
  0x9c   : > { %314 = vst.msk [vmem:[%s486_s5 + $0x8] sm:$0xff] %vm312_vm1, %v305_v29  ;;  %v289_v33 = vmul.f32 %v428_v5, %v272_v31  ;;  %v291_v34 = vmul.f32 %v428_v5, %v277_v32 }
  0x9d   : > { %316 = vst.msk [vmem:[%s486_s5 + $0x18] sm:$0xff] %vm312_vm1, %v307_v30 }
  0x9e   : > { %v301_v35 = vadd.f32 %v429_v6, %v289_v33  ;;  %v303_v36 = vadd.f32 %v429_v6, %v291_v34 }
  0xa0   : > { %v309_v37 = vmax.f32 %v301_v35, 0.0  ;;  %v311_v38 = vmax.f32 %v303_v36, 0.0 }
  0xa2   : > { %318 = vst.msk [vmem:[%s486_s5 + $0x28] sm:$0xff] %vm312_vm1, %v309_v37 }
  0xa3   : > { %320 = vst.msk [vmem:[%s486_s5 + $0x38] sm:$0xff] %vm312_vm1, %v311_v38 }
  0xa4 PF: > { %s14_s15 = sadd.s32 1, %s436_s15  }
  0xa5   : > { %p11_p4 = scmp.ge.s32.totalorder %s14_s15, 4  }
  0xa7   :  { %13 = sbr.rel (!%p11_p4) target bundleno = 1 (0x1), region = 66 }

// kernel: rec3_forward.21
= control target key start
LH: loop header
LB: loop body
LE: loop exit
PB: predicated region body
PF: predicated region fallthrough
CT: control target
= control target key end

     0   :  { %s2502_s24 = smov 0   ;;  %s3278_s0 = inlined_call_operand.vmem [shape: bf16[1024,216], index: 0, kind: input, shape index: {}]   ;;  %s3279_s1 = inlined_call_operand.vmem [shape: bf16[216,8], index: 1, kind: input, shape index: {}]   ;;  %s3280_s2 = inlined_call_operand.vmem [shape: f32[1,8], index: 2, kind: input, shape index: {}]   ;;  %s3281_s3 = inlined_call_operand.vmem [shape: f32[1,8], index: 3, kind: input, shape index: {}]   ;;  %s3282_s4 = inlined_call_operand.vmem [shape: f32[1024,8], index: 4, kind: input, shape index: {}]   ;;  %s3283_s5 = inlined_call_operand.vmem [shape: f32[1024,8], index: 5, kind: input, shape index: {}]   ;;  %s3284_s6 = inlined_call_operand.vmem [shape: f32[1024,8], index: 6, kind: input, shape index: {}]   ;;  %s3285_s7 = inlined_call_operand.vmem [shape: f32[1024,8], index: 7, kind: output, shape index: {}]  }
   0x1 LB: > { %s1992_s25 = sadd.s32 4294967295, %s2460_s24   ;;  %p1996_p0 = scmp.ge.s32.totalorder %s2460_s24, 1  ;;  %s2460_s24 = sphi %s2502_s24, %s17_s24  }
   0x2   : > { %p272_p1 = scmp.lt.s32.totalorder %s2460_s24, 3 }
   0x4   : > { %p273_p2 = pnand %p1996_p0, %p272_p1 }
   0x5   : > { %s1997_s9 = sshll.u32 (!%p273_p2), %s1992_s25, 6 }
   0x6   : > { %276 = sbr.rel (%p273_p2) target bundleno = 445 (0x1bd), region = 48  ;;  %p321_p3 = scmp.lt.s32.totalorder (!%p273_p2), %s1997_s9, 127 }
   0xb   : > { %v2422_v0 = vld [vmem:[%s3279_s1 + $0x38] sm:$0xff]  ;;  %v442_v1 = vld [vmem:[%s3279_s1 + $0x68] sm:$0xf]  ;;  %vm909_vm0 = vcmask 1043456   ;;  %v2421_v3 = vld [vmem:[%s3279_s1 + $0x30] sm:$0xff]  ;;  %s3287_s9 = smov (!%p321_p3, %s1997_s9), 127 }
   0xc   : > { %v784_v2 = vunpack.c.l.b16 %v442_v1  ;;  %913 = vmatpush.bf16.msra.mxu0 %v2422_v0  ;;  %2428 = vmatpush.bf16.msra.mxu2 %v2422_v0  ;;  %v2427_v6 = vld [vmem:[%s3279_s1 + $0x60] sm:$0xff]  ;;  %v2420_v7 = vld [vmem:[%s3279_s1 + $0x28] sm:$0xff]  ;;  %v2426_v8 = vld [vmem:[%s3279_s1 + $0x58] sm:$0xff]  ;;  %s2537_s22 = sshll.u32 %s3287_s9, 3  ;;  %vm812_vm1 = vcmask 719872   ;;  %vm1835_vm2 = vcmask 64512  }
   0xd   : > { %v2419_v9 = vld [vmem:[%s3279_s1 + $0x20] sm:$0xff]  ;;  %v2425_v10 = vld [vmem:[%s3279_s1 + $0x50] sm:$0xff]  ;;  %v2418_v11 = vld [vmem:[%s3279_s1 + $0x18] sm:$0xff]  ;;  %s2549_s30 = scalar_lea.vmem %s3278_s0, %s2537_s22  ;;  %s2659_s18 = scalar_lea.vmem %s3282_s4, %s2537_s22 }
   0xe   : > { %v798_v4 = vpack.c.b16 %v784_v2, %v784_v2  ;;  %v2424_v12 = vld [vmem:[%s3279_s1 + $0x48] sm:$0xff]  ;;  %v2417_v13 = vld [vmem:[%s3279_s1 + $0x10] sm:$0xff]  ;;  %v2423_v14 = vld [vmem:[%s3279_s1 + $0x40] sm:$0xff]  ;;  %s2670_s25 = scalar_lea.vmem %s3283_s5, %s2537_s22  ;;  %s2678_s28 = scalar_lea.vmem %s3284_s6, %s2537_s22 }
   0xf   : > { %v2416_v15 = vld [vmem:[%s3279_s1 + $0x8] sm:$0xff]  ;;  %v2351_v16 = vld [vmem:[%s2549_s30 + $0x4] sm:$0xf]  ;;  %v2385_v18 = vld [vmem:[%s2549_s30 + $0x114] sm:$0xf]  ;;  %s2696_s9 = scalar_lea.vmem %s3285_s7, %s2537_s22 }
  0x10   : > { %v911_v5 = vsel %vm909_vm0, %v798_v4, 0  ;;  %914 = vmatpush.bf16.msra.mxu0 %v2421_v3  ;;  %2429 = vmatpush.bf16.msra.mxu2 %v2421_v3  ;;  %v2012_v17 = vld [vmem:[%s2549_s30 + $0x8] sm:$0xf0]  ;;  %v2148_v19 = vld [vmem:[%s2549_s30 + $0x118] sm:$0xf0]  ;;  %v2415_v21 = vld [vmem:[%s3279_s1] sm:$0xff] }
  0x11   : > { %1084 = vmatpush.bf16.msra.mxu1 %v911_v5  ;;  %2436 = vmatpush.bf16.msra.mxu3 %v911_v5  ;;  %v2015_v20 = vor.u32 %v2351_v16, %v2012_v17  ;;  %v2010_v22 = vld [vmem:[%s2549_s30] sm:$0xf]  ;;  %v2352_v23 = vld [vmem:[%s2549_s30 + $0x4] sm:$0xf0]  ;;  %v2151_v24 = vor.u32 %v2385_v18, %v2148_v19  ;;  %v2353_v29 = vld [vmem:[%s2549_s30 + $0x14] sm:$0xf] }
  0x12   : > { %v2138_v25 = vld [vmem:[%s2549_s30 + $0x100] sm:$0xf]  ;;  %v2384_v26 = vld [vmem:[%s2549_s30 + $0x104] sm:$0xf0]  ;;  %v2011_v27 = vor.u32 %v2352_v23, %v2010_v22  ;;  %v2020_v30 = vld [vmem:[%s2549_s30 + $0x18] sm:$0xf0] }
  0x13   : > { %v2139_v28 = vor.u32 %v2384_v26, %v2138_v25  ;;  %v2387_v31 = vld [vmem:[%s2549_s30 + $0x124] sm:$0xf]  ;;  %v2156_v32 = vld [vmem:[%s2549_s30 + $0x128] sm:$0xf0]  ;;  %v2023_v33 = vor.u32 %v2353_v29, %v2020_v30  ;;  %v2018_v34 = vld [vmem:[%s2549_s30 + $0x10] sm:$0xf] }
  0x14   : > { %915 = vmatpush.bf16.msra.mxu0 %v2420_v7  ;;  %2430 = vmatpush.bf16.msra.mxu2 %v2420_v7  ;;  %v2354_v35 = vld [vmem:[%s2549_s30 + $0x14] sm:$0xf0]  ;;  %v2159_v36 = vor.u32 %v2387_v31, %v2156_v32  ;;  %v2146_v37 = vld [vmem:[%s2549_s30 + $0x110] sm:$0xf]  ;;  %v2355_v41 = vld [vmem:[%s2549_s30 + $0x24] sm:$0xf] }
  0x15   : > { %1085 = vmatpush.bf16.msra.mxu1 %v2427_v6  ;;  %2437 = vmatpush.bf16.msra.mxu3 %v2427_v6  ;;  %v2386_v38 = vld [vmem:[%s2549_s30 + $0x114] sm:$0xf0]  ;;  %v2019_v39 = vor.u32 %v2354_v35, %v2018_v34  ;;  %v2028_v42 = vld [vmem:[%s2549_s30 + $0x28] sm:$0xf0]  ;;  %v2389_v43 = vld [vmem:[%s2549_s30 + $0x134] sm:$0xf] }
  0x16   : > { %v2147_v40 = vor.u32 %v2386_v38, %v2146_v37  ;;  %v2164_v44 = vld [vmem:[%s2549_s30 + $0x138] sm:$0xf0]  ;;  %v2031_v45 = vor.u32 %v2355_v41, %v2028_v42  ;;  %v2026_v46 = vld [vmem:[%s2549_s30 + $0x20] sm:$0xf]  ;;  %v2356_v47 = vld [vmem:[%s2549_s30 + $0x24] sm:$0xf0] }
  0x17   : > { %v2167_v48 = vor.u32 %v2389_v43, %v2164_v44  ;;  %v2154_v49 = vld [vmem:[%s2549_s30 + $0x120] sm:$0xf]  ;;  %v2388_v50 = vld [vmem:[%s2549_s30 + $0x124] sm:$0xf0]  ;;  %v2027_v51 = vor.u32 %v2356_v47, %v2026_v46  ;;  %v2357_v53 = vld [vmem:[%s2549_s30 + $0x34] sm:$0xf] }
  0x18   : > { %916 = vmatpush.bf16.msra.mxu0 %v2419_v9  ;;  %2431 = vmatpush.bf16.msra.mxu2 %v2419_v9  ;;  %v2155_v52 = vor.u32 %v2388_v50, %v2154_v49  ;;  %v2036_v54 = vld [vmem:[%s2549_s30 + $0x38] sm:$0xf0]  ;;  %v2391_v55 = vld [vmem:[%s2549_s30 + $0x144] sm:$0xf]  ;;  %v2172_v56 = vld [vmem:[%s2549_s30 + $0x148] sm:$0xf0] }
  0x19   : > { %1086 = vmatpush.bf16.msra.mxu1 %v2426_v8  ;;  %2438 = vmatpush.bf16.msra.mxu3 %v2426_v8  ;;  %v2039_v57 = vor.u32 %v2357_v53, %v2036_v54  ;;  %v2034_v58 = vld [vmem:[%s2549_s30 + $0x30] sm:$0xf]  ;;  %v2358_v59 = vld [vmem:[%s2549_s30 + $0x34] sm:$0xf0]  ;;  %v2175_v60 = vor.u32 %v2391_v55, %v2172_v56  ;;  %v2359_v1 = vld [vmem:[%s2549_s30 + $0x44] sm:$0xf] }
  0x1a   : > { %v2162_v61 = vld [vmem:[%s2549_s30 + $0x130] sm:$0xf]  ;;  %v2390_v62 = vld [vmem:[%s2549_s30 + $0x134] sm:$0xf0]  ;;  %v2035_v63 = vor.u32 %v2358_v59, %v2034_v58  ;;  %v2044_v2 = vld [vmem:[%s2549_s30 + $0x48] sm:$0xf0] }
  0x1b   : > { %v2163_v0 = vor.u32 %v2390_v62, %v2162_v61  ;;  %v2393_v3 = vld [vmem:[%s2549_s30 + $0x154] sm:$0xf]  ;;  %v2180_v4 = vld [vmem:[%s2549_s30 + $0x158] sm:$0xf0]  ;;  %v2047_v5 = vor.u32 %v2359_v1, %v2044_v2  ;;  %v2042_v6 = vld [vmem:[%s2549_s30 + $0x40] sm:$0xf] }
  0x1c   : > { %917 = vmatpush.bf16.msra.mxu0 %v2418_v11  ;;  %2432 = vmatpush.bf16.msra.mxu2 %v2418_v11  ;;  %v2360_v7 = vld [vmem:[%s2549_s30 + $0x44] sm:$0xf0]  ;;  %v2183_v8 = vor.u32 %v2393_v3, %v2180_v4  ;;  %v2170_v9 = vld [vmem:[%s2549_s30 + $0x140] sm:$0xf]  ;;  %v2188_v16 = vld [vmem:[%s2549_s30 + $0x168] sm:$0xf0] }
  0x1d   : > { %1087 = vmatpush.bf16.msra.mxu1 %v2425_v10  ;;  %2439 = vmatpush.bf16.msra.mxu3 %v2425_v10  ;;  %v2392_v10 = vld [vmem:[%s2549_s30 + $0x144] sm:$0xf0]  ;;  %v2043_v11 = vor.u32 %v2360_v7, %v2042_v6  ;;  %v2050_v18 = vld [vmem:[%s2549_s30 + $0x50] sm:$0xf]  ;;  %v2362_v19 = vld [vmem:[%s2549_s30 + $0x54] sm:$0xf0] }
  0x1e   : > { %v2394_v22 = vld [vmem:[%s2549_s30 + $0x154] sm:$0xf0]  ;;  %v2051_v23 = vor.u32 %v2362_v19, %v2050_v18  ;;  %v2363_v25 = vld [vmem:[%s2549_s30 + $0x64] sm:$0xf]  ;;  %v2060_v26 = vld [vmem:[%s2549_s30 + $0x68] sm:$0xf0] }
  0x1f   : > { %v2063_v29 = vor.u32 %v2363_v25, %v2060_v26  ;;  %v2058_v30 = vld [vmem:[%s2549_s30 + $0x60] sm:$0xf]  ;;  %v2364_v31 = vld [vmem:[%s2549_s30 + $0x64] sm:$0xf0]  ;;  %v2365_v37 = vld [vmem:[%s2549_s30 + $0x74] sm:$0xf] }
  0x20   : > { %918 = vmatpush.bf16.msra.mxu0 %v2417_v13  ;;  %2433 = vmatpush.bf16.msra.mxu2 %v2417_v13  ;;  %v2361_v13 = vld [vmem:[%s2549_s30 + $0x54] sm:$0xf]  ;;  %v2396_v34 = vld [vmem:[%s2549_s30 + $0x164] sm:$0xf0]  ;;  %v2059_v35 = vor.u32 %v2364_v31, %v2058_v30  ;;  %v2068_v38 = vld [vmem:[%s2549_s30 + $0x78] sm:$0xf0] }
  0x21   : > { %1088 = vmatpush.bf16.msra.mxu1 %v2424_v12  ;;  %2440 = vmatpush.bf16.msra.mxu3 %v2424_v12  ;;  %v2171_v12 = vor.u32 %v2392_v10, %v2170_v9  ;;  %v2071_v41 = vor.u32 %v2365_v37, %v2068_v38  ;;  %v2066_v42 = vld [vmem:[%s2549_s30 + $0x70] sm:$0xf]  ;;  %v2366_v43 = vld [vmem:[%s2549_s30 + $0x74] sm:$0xf0]  ;;  %v2367_v49 = vld [vmem:[%s2549_s30 + $0x84] sm:$0xf] }
  0x22   : > { %v2398_v46 = vld [vmem:[%s2549_s30 + $0x174] sm:$0xf0]  ;;  %v2067_v47 = vor.u32 %v2366_v43, %v2066_v42  ;;  %v2076_v50 = vld [vmem:[%s2549_s30 + $0x88] sm:$0xf0]  ;;  %v2074_v55 = vld [vmem:[%s2549_s30 + $0x80] sm:$0xf] }
  0x23   : > { %v2079_v53 = vor.u32 %v2367_v49, %v2076_v50  ;;  %v2368_v56 = vld [vmem:[%s2549_s30 + $0x84] sm:$0xf0]  ;;  %v2202_v58 = vld [vmem:[%s2549_s30 + $0x180] sm:$0xf]  ;;  %v2370_v25 = vld [vmem:[%s2549_s30 + $0x94] sm:$0xf0] }
  0x24   : > { %919 = vmatpush.bf16.msra.mxu0 %v2416_v15  ;;  %2434 = vmatpush.bf16.msra.mxu2 %v2416_v15  ;;  %v2395_v15 = vld [vmem:[%s2549_s30 + $0x164] sm:$0xf]  ;;  %v2400_v59 = vld [vmem:[%s2549_s30 + $0x184] sm:$0xf0]  ;;  %v2075_v61 = vor.u32 %v2368_v56, %v2074_v55  ;;  %v2664_v1 = vld [vmem:[%s3281_s3] ss:$0 sm:$0xff] }
  0x25   : > { %1089 = vmatpush.bf16.msra.mxu1 %v2423_v14  ;;  %2441 = vmatpush.bf16.msra.mxu3 %v2423_v14  ;;  %v2052_v14 = vld [vmem:[%s2549_s30 + $0x58] sm:$0xf0]  ;;  %v1387_v4 = vld [vmem:[%s2659_s18] sm:$0xff]  ;;  %v2402_v30 = vld [vmem:[%s2549_s30 + $0x194] sm:$0xf0] }
  0x26   : > { %v2055_v17 = vor.u32 %v2361_v13, %v2052_v14  ;;  %v1515_v7 = vld [vmem:[%s2670_s25] sm:$0xff]  ;;  %v2084_v13 = vld [vmem:[%s2549_s30 + $0x98] sm:$0xf0]  ;;  %v1516_v31 = vld [vmem:[%s2670_s25 + $0x8] sm:$0xff] }
  0x27   : > { %v1643_v10 = vld [vmem:[%s2678_s28] sm:$0xff]  ;;  %v1389_v43 = vld [vmem:[%s2659_s18 + $0x10] sm:$0xff] }
  0x28   : > { %2316 = vmatmul.msk.bf16.vlgmr.msra.gmra.mxu1 %vm812_vm1, %v2015_v20  ;;  %920 = vmatpush.bf16.msra.mxu0 %v2415_v21  ;;  %v2191_v20 = vor.u32 %v2395_v15, %v2188_v16  ;;  %v2403_v16 = vld [vmem:[%s2549_s30 + $0x1a4] sm:$0xf]  ;;  %v1645_v50 = vld [vmem:[%s2678_s28 + $0x10] sm:$0xff] }
  0x29   : > { %2333 = vmatmul.msk.bf16.vlgmr.msra.gmra.mxu3 %vm812_vm1, %v2151_v24  ;;  %2435 = vmatpush.bf16.msra.mxu2 %v2415_v21  ;;  %v2178_v21 = vld [vmem:[%s2549_s30 + $0x150] sm:$0xf] }
  0x2a   : > { %v2179_v24 = vor.u32 %v2394_v22, %v2178_v21  ;;  %v1388_v22 = vld [vmem:[%s2659_s18 + $0x8] sm:$0xff] }
  0x2b   : > { %921 = vmatmul.bf16.vlgmr.msra.gmra.mxu0 %v2011_v27  ;;  %v2397_v27 = vld [vmem:[%s2549_s30 + $0x174] sm:$0xf] }
  0x2c   : > { %1001 = vmatmul.bf16.vlgmr.msra.gmra.mxu2 %v2139_v28  ;;  %v2196_v28 = vld [vmem:[%s2549_s30 + $0x178] sm:$0xf0] }
  0x2d   : > { %v2199_v32 = vor.u32 %v2397_v27, %v2196_v28 }
  0x38   : > { %2317 = vmatmul.msk.bf16.gmra.mxu1 %vm812_vm1, %v2023_v33  ;;  %v2186_v33 = vld [vmem:[%s2549_s30 + $0x160] sm:$0xf] }
  0x39   : > { %2334 = vmatmul.msk.bf16.gmra.mxu3 %vm812_vm1, %v2159_v36  ;;  %v2187_v36 = vor.u32 %v2396_v34, %v2186_v33 }
  0x3b   : > { %926 = vmatmul.bf16.gmra.mxu0 %v2019_v39  ;;  %v2399_v39 = vld [vmem:[%s2549_s30 + $0x184] sm:$0xf] }
  0x3c   : > { %1006 = vmatmul.bf16.gmra.mxu2 %v2147_v40  ;;  %v2204_v40 = vld [vmem:[%s2549_s30 + $0x188] sm:$0xf0] }
  0x3d   : > { %v2207_v44 = vor.u32 %v2399_v39, %v2204_v40 }
  0x48   : > { %2318 = vmatmul.msk.bf16.gmra.mxu1 %vm812_vm1, %v2031_v45  ;;  %v2194_v45 = vld [vmem:[%s2549_s30 + $0x170] sm:$0xf] }
  0x49   : > { %2335 = vmatmul.msk.bf16.gmra.mxu3 %vm812_vm1, %v2167_v48  ;;  %v2195_v48 = vor.u32 %v2398_v46, %v2194_v45 }
  0x4b   : > { %931 = vmatmul.bf16.gmra.mxu0 %v2027_v51  ;;  %v2401_v51 = vld [vmem:[%s2549_s30 + $0x194] sm:$0xf] }
  0x4c   : > { %1011 = vmatmul.bf16.gmra.mxu2 %v2155_v52  ;;  %v2212_v52 = vld [vmem:[%s2549_s30 + $0x198] sm:$0xf0] }
  0x58   : > { %2319 = vmatmul.msk.bf16.gmra.mxu1 %vm812_vm1, %v2039_v57  ;;  %v2215_v57 = vor.u32 %v2401_v51, %v2212_v52 }
  0x59   : > { %2336 = vmatmul.msk.bf16.gmra.mxu3 %vm812_vm1, %v2175_v60  ;;  %v2652_v60 = vld [vmem:[%s3280_s2] ss:$0 sm:$0xff] }
  0x5b   : > { %936 = vmatmul.bf16.gmra.mxu0 %v2035_v63  ;;  %v2203_v63 = vor.u32 %v2400_v59, %v2202_v58  ;;  %v2228_v58 = vld [vmem:[%s2549_s30 + $0x1b8] sm:$0xf0] }
  0x5c   : > { %1016 = vmatmul.bf16.gmra.mxu2 %v2163_v0 }
  0x68   : > { %2320 = vmatmul.msk.bf16.gmra.mxu1 %vm812_vm1, %v2047_v5 }
  0x69   : > { %2337 = vmatmul.msk.bf16.gmra.mxu3 %vm812_vm1, %v2183_v8 }
  0x6b   : > { %941 = vmatmul.bf16.gmra.mxu0 %v2043_v11 }
  0x6c   : > { %1021 = vmatmul.bf16.gmra.mxu2 %v2171_v12  ;;  %v2369_v12 = vld [vmem:[%s2549_s30 + $0x94] sm:$0xf] }
  0x78   : > { %2321 = vmatmul.msk.bf16.gmra.mxu1 %vm812_vm1, %v2055_v17  ;;  %v2220_v17 = vld [vmem:[%s2549_s30 + $0x1a8] sm:$0xf0] }
  0x79   : > { %2338 = vmatmul.msk.bf16.gmra.mxu3 %vm812_vm1, %v2191_v20  ;;  %v2087_v20 = vor.u32 %v2369_v12, %v2084_v13  ;;  %v2223_v26 = vor.u32 %v2403_v16, %v2220_v17  ;;  %v2218_v13 = vld [vmem:[%s2549_s30 + $0x1a0] sm:$0xf]  ;;  %v1518_v16 = vld [vmem:[%s2670_s25 + $0x18] sm:$0xff]  ;;  %v1677_v17 = vld [vmem:[%s2678_s28 + $0x110] sm:$0xff] }
  0x7b   : > { %946 = vmatmul.bf16.gmra.mxu0 %v2051_v23 }
  0x7c   : > { %1026 = vmatmul.bf16.gmra.mxu2 %v2179_v24  ;;  %v2082_v24 = vld [vmem:[%s2549_s30 + $0x90] sm:$0xf] }
  0x7d   : > { %v2083_v34 = vor.u32 %v2370_v25, %v2082_v24 }
  0x88   : > { %2322 = vmatmul.msk.bf16.gmra.mxu1 %vm812_vm1, %v2063_v29  ;;  %v2210_v29 = vld [vmem:[%s2549_s30 + $0x190] sm:$0xf] }
  0x89   : > { %2339 = vmatmul.msk.bf16.gmra.mxu3 %vm812_vm1, %v2199_v32  ;;  %v2211_v37 = vor.u32 %v2402_v30, %v2210_v29 }
  0x8b   : > { %951 = vmatmul.bf16.gmra.mxu0 %v2059_v35  ;;  %v1644_v35 = vld [vmem:[%s2678_s28 + $0x8] sm:$0xff] }
  0x8c   : > { %1031 = vmatmul.bf16.gmra.mxu2 %v2187_v36 }
  0x98   : > { %2323 = vmatmul.msk.bf16.gmra.mxu1 %vm812_vm1, %v2071_v41 }
  0x99   : > { %2340 = vmatmul.msk.bf16.gmra.mxu3 %vm812_vm1, %v2207_v44 }
  0x9b   : > { %956 = vmatmul.bf16.gmra.mxu0 %v2067_v47  ;;  %v1517_v47 = vld [vmem:[%s2670_s25 + $0x10] sm:$0xff] }
  0x9c   : > { %1036 = vmatmul.bf16.gmra.mxu2 %v2195_v48 }
  0xa5   : > { %v1091_v54 = vpop.f32.mrf.mxu1 }
  0xa8   : > { %2324 = vmatmul.msk.bf16.gmra.mxu1 %vm812_vm1, %v2079_v53  ;;  %v922_v62 = vpop.f32.mrf.mxu0  ;;  %v2371_v53 = vld [vmem:[%s2549_s30 + $0xa4] sm:$0xf] }
  0xa9   : > { %2341 = vmatmul.msk.bf16.gmra.mxu3 %vm812_vm1, %v2215_v57  ;;  %v1092_v0 = vadd.f32 %v1091_v54, %v922_v62  ;;  %v2092_v54 = vld [vmem:[%s2549_s30 + $0xa8] sm:$0xf0]  ;;  %v2405_v57 = vld [vmem:[%s2549_s30 + $0x1b4] sm:$0xf] }
  0xaa   : > { %v1421_v62 = vld [vmem:[%s2659_s18 + $0x110] sm:$0xff] }
  0xab   : > { %v1255_v2 = vmul.f32 %v2652_v60, %v1092_v0  ;;  %961 = vmatmul.bf16.gmra.mxu0 %v2075_v61  ;;  %v2095_v0 = vor.u32 %v2371_v53, %v2092_v54  ;;  %v2100_v53 = vld [vmem:[%s2549_s30 + $0xb8] sm:$0xf0] }
  0xac   : > { %v1176_v3 = vpop.f32.mrf.mxu3  ;;  %1041 = vmatmul.bf16.gmra.mxu2 %v2203_v63 }
  0xad   : > { %v1093_v5 = vpop.f32.mrf.mxu1  ;;  %v1323_v6 = vadd.f32 %v2664_v1, %v1255_v2 }
  0xaf   : > { %v1451_v8 = vadd.f32 %v1387_v4, %v1323_v6  ;;  %v2682_v9 = vpop.f32.mrf.mxu2  ;;  %v1390_v4 = vld [vmem:[%s2659_s18 + $0x18] sm:$0xff]  ;;  %v2090_v6 = vld [vmem:[%s2549_s30 + $0xa0] sm:$0xf] }
  0xb0   : > { %v924_v11 = vpop.f32.mrf.mxu0 }
  0xb1   : > { %v1579_v14 = vadd.f32 %v1515_v7, %v1451_v8  ;;  %v1094_v15 = vadd.f32 %v1093_v5, %v924_v11  ;;  %v2372_v7 = vld [vmem:[%s2549_s30 + $0xa4] sm:$0xf0]  ;;  %v2231_v8 = vor.u32 %v2405_v57, %v2228_v58  ;;  %v1549_v11 = vld [vmem:[%s2670_s25 + $0x110] sm:$0xff]  ;;  %v2236_v57 = vld [vmem:[%s2549_s30 + $0x1c8] sm:$0xf0] }
  0xb3   : > { %v1707_v18 = vadd.f32 %v1643_v10, %v1579_v14  ;;  %v1256_v19 = vmul.f32 %v2652_v60, %v1094_v15  ;;  %v2404_v14 = vld [vmem:[%s2549_s30 + $0x1a4] sm:$0xf0] }
  0xb4   : > { %v2690_v21 = vpop.f32.mrf.mxu3 }
  0xb5   : > { %v1096_v23 = vpop.f32.mrf.mxu1  ;;  %v1771_v27 = vmax.f32 %v1707_v18, 0.0  ;;  %v1324_v28 = vadd.f32 %v2664_v1, %v1256_v19 }
  0xb7   : > { %1836 = vst.msk [vmem:[%s2696_s9] sm:$0xff] %vm1835_vm2, %v1771_v27  ;;  %v1452_v32 = vadd.f32 %v1388_v22, %v1324_v28  ;;  %v2707_v33 = vpop.f32.mrf.mxu2 }
  0xb8   : > { %2325 = vmatmul.msk.bf16.gmra.mxu1 %vm812_vm1, %v2087_v20  ;;  %v927_v36 = vpop.f32.mrf.mxu0  ;;  %v2091_v20 = vor.u32 %v2372_v7, %v2090_v6  ;;  %v2098_v7 = vld [vmem:[%s2549_s30 + $0xb0] sm:$0xf] }
  0xb9   : > { %2342 = vmatmul.msk.bf16.gmra.mxu3 %vm812_vm1, %v2223_v26  ;;  %v1580_v38 = vadd.f32 %v1516_v31, %v1452_v32  ;;  %v1097_v39 = vadd.f32 %v1096_v23, %v927_v36  ;;  %v1646_v23 = vld [vmem:[%s2678_s28 + $0x18] sm:$0xff]  ;;  %v2219_v26 = vor.u32 %v2404_v14, %v2218_v13  ;;  %v2226_v14 = vld [vmem:[%s2549_s30 + $0x1b0] sm:$0xf] }
  0xba   : > { %v1422_v32 = vld [vmem:[%s2659_s18 + $0x118] sm:$0xff] }
  0xbb   : > { %v1708_v40 = vadd.f32 %v1644_v35, %v1580_v38  ;;  %v1257_v41 = vmul.f32 %v2652_v60, %v1097_v39  ;;  %966 = vmatmul.bf16.gmra.mxu0 %v2083_v34 }
  0xbc   : > { %v2713_v42 = vpop.f32.mrf.mxu3  ;;  %1046 = vmatmul.bf16.gmra.mxu2 %v2211_v37  ;;  %v1391_v37 = vld [vmem:[%s2659_s18 + $0x20] sm:$0xff] }
  0xbd   : > { %v1098_v44 = vpop.f32.mrf.mxu1  ;;  %v1772_v45 = vmax.f32 %v1708_v40, 0.0  ;;  %v1325_v46 = vadd.f32 %v2664_v1, %v1257_v41  ;;  %v1550_v40 = vld [vmem:[%s2670_s25 + $0x118] sm:$0xff] }
  0xbf   : > { %1837 = vst.msk [vmem:[%s2696_s9 + $0x8] sm:$0xff] %vm1835_vm2, %v1772_v45  ;;  %v1453_v48 = vadd.f32 %v1389_v43, %v1325_v46  ;;  %v1007_v49 = vpop.f32.mrf.mxu2  ;;  %v1678_v45 = vld [vmem:[%s2678_s28 + $0x118] sm:$0xff] }
  0xc0   : > { %v1177_v51 = vadd.f32 %v1176_v3, %v1007_v49  ;;  %v929_v52 = vpop.f32.mrf.mxu0  ;;  %v1647_v49 = vld [vmem:[%s2678_s28 + $0x20] sm:$0xff] }
  0xc1   : > { %v1581_v55 = vadd.f32 %v1517_v47, %v1453_v48  ;;  %v1099_v56 = vadd.f32 %v1098_v44, %v929_v52  ;;  %v1519_v44 = vld [vmem:[%s2670_s25 + $0x20] sm:$0xff]  ;;  %v2373_v52 = vld [vmem:[%s2549_s30 + $0xb4] sm:$0xf] }
  0xc2   : > { %v1289_v59 = vmul.f32 %v2652_v60, %v1177_v51 }
  0xc3   : > { %v1709_v61 = vadd.f32 %v1645_v50, %v1581_v55  ;;  %v1258_v63 = vmul.f32 %v2652_v60, %v1099_v56  ;;  %v2407_v56 = vld [vmem:[%s2549_s30 + $0x1c4] sm:$0xf] }
  0xc4   : > { %v2728_v2 = vpop.f32.mrf.mxu3  ;;  %v1357_v3 = vadd.f32 %v2664_v1, %v1289_v59 }
  0xc5   : > { %v1101_v5 = vpop.f32.mrf.mxu1  ;;  %v1773_v10 = vmax.f32 %v1709_v61, 0.0  ;;  %v1326_v12 = vadd.f32 %v2664_v1, %v1258_v63  ;;  %v2103_v63 = vor.u32 %v2373_v52, %v2100_v53  ;;  %v2375_v53 = vld [vmem:[%s2549_s30 + $0xc4] sm:$0xf] }
  0xc6   : > { %v1485_v15 = vadd.f32 %v1421_v62, %v1357_v3  ;;  %v1423_v62 = vld [vmem:[%s2659_s18 + $0x120] sm:$0xff] }
  0xc7   : > { %1838 = vst.msk [vmem:[%s2696_s9 + $0x10] sm:$0xff] %vm1835_vm2, %v1773_v10  ;;  %v1454_v18 = vadd.f32 %v1390_v4, %v1326_v12  ;;  %v1009_v19 = vpop.f32.mrf.mxu2  ;;  %v2239_v10 = vor.u32 %v2407_v56, %v2236_v57  ;;  %v1551_v12 = vld [vmem:[%s2670_s25 + $0x120] sm:$0xff]  ;;  %v2409_v57 = vld [vmem:[%s2549_s30 + $0x1d4] sm:$0xf] }
  0xc8   : > { %2326 = vmatmul.msk.bf16.gmra.mxu1 %vm812_vm1, %v2095_v0  ;;  %v1613_v22 = vadd.f32 %v1549_v11, %v1485_v15  ;;  %v1179_v24 = vadd.f32 %v2690_v21, %v1009_v19  ;;  %v932_v25 = vpop.f32.mrf.mxu0  ;;  %v2406_v15 = vld [vmem:[%s2549_s30 + $0x1b4] sm:$0xf0] }
  0xc9   : > { %2343 = vmatmul.msk.bf16.gmra.mxu3 %vm812_vm1, %v2231_v8  ;;  %v1582_v27 = vadd.f32 %v1518_v16, %v1454_v18  ;;  %v1102_v28 = vadd.f32 %v1101_v5, %v932_v25  ;;  %v1392_v5 = vld [vmem:[%s2659_s18 + $0x28] sm:$0xff]  ;;  %v2374_v8 = vld [vmem:[%s2549_s30 + $0xb4] sm:$0xf0]  ;;  %v1679_v18 = vld [vmem:[%s2678_s28 + $0x120] sm:$0xff] }
  0xca   : > { %v1741_v29 = vadd.f32 %v1677_v17, %v1613_v22  ;;  %v1290_v30 = vmul.f32 %v2652_v60, %v1179_v24  ;;  %v1520_v17 = vld [vmem:[%s2670_s25 + $0x28] sm:$0xff]  ;;  %v2099_v22 = vor.u32 %v2374_v8, %v2098_v7  ;;  %v2106_v8 = vld [vmem:[%s2549_s30 + $0xc0] sm:$0xf] }
  0xcb   : > { %v1710_v31 = vadd.f32 %v1646_v23, %v1582_v27  ;;  %v1259_v34 = vmul.f32 %v2652_v60, %v1102_v28  ;;  %971 = vmatmul.bf16.gmra.mxu0 %v2091_v20  ;;  %v1648_v24 = vld [vmem:[%s2678_s28 + $0x28] sm:$0xff]  ;;  %v2227_v27 = vor.u32 %v2406_v15, %v2226_v14  ;;  %v2234_v15 = vld [vmem:[%s2549_s30 + $0x1c0] sm:$0xf] }
  0xcc   : > { %v2749_v21 = vpop.f32.mrf.mxu3  ;;  %v1805_v35 = vmax.f32 %v1741_v29, 0.0  ;;  %v1358_v36 = vadd.f32 %v2664_v1, %v1290_v30  ;;  %1051 = vmatmul.bf16.gmra.mxu2 %v2219_v26 }
  0xcd   : > { %v1103_v38 = vpop.f32.mrf.mxu1  ;;  %v1774_v39 = vmax.f32 %v1710_v31, 0.0  ;;  %v1327_v41 = vadd.f32 %v2664_v1, %v1259_v34  ;;  %v1424_v34 = vld [vmem:[%s2659_s18 + $0x128] sm:$0xff] }
  0xce   : > { %1870 = vst.msk [vmem:[%s2696_s9 + $0x110] sm:$0xff] %vm1835_vm2, %v1805_v35  ;;  %v1486_v43 = vadd.f32 %v1422_v32, %v1358_v36 }
  0xcf   : > { %1839 = vst.msk [vmem:[%s2696_s9 + $0x18] sm:$0xff] %vm1835_vm2, %v1774_v39  ;;  %v1455_v46 = vadd.f32 %v1391_v37, %v1327_v41  ;;  %v1012_v47 = vpop.f32.mrf.mxu2  ;;  %v1552_v41 = vld [vmem:[%s2670_s25 + $0x128] sm:$0xff] }
  0xd0   : > { %v1614_v48 = vadd.f32 %v1550_v40, %v1486_v43  ;;  %v1182_v50 = vadd.f32 %v2713_v42, %v1012_v47  ;;  %v934_v51 = vpop.f32.mrf.mxu0 }
  0xd1   : > { %v1583_v54 = vadd.f32 %v1519_v44, %v1455_v46  ;;  %v1104_v55 = vadd.f32 %v1103_v38, %v934_v51  ;;  %v1393_v38 = vld [vmem:[%s2659_s18 + $0x30] sm:$0xff]  ;;  %v1680_v46 = vld [vmem:[%s2678_s28 + $0x128] sm:$0xff] }
  0xd2   : > { %v1742_v58 = vadd.f32 %v1678_v45, %v1614_v48  ;;  %v1291_v59 = vmul.f32 %v2652_v60, %v1182_v50  ;;  %v1521_v45 = vld [vmem:[%s2670_s25 + $0x30] sm:$0xff] }
  0xd3   : > { %v1711_v61 = vadd.f32 %v1647_v49, %v1583_v54  ;;  %v1260_v42 = vmul.f32 %v2652_v60, %v1104_v55  ;;  %v1649_v50 = vld [vmem:[%s2678_s28 + $0x30] sm:$0xff]  ;;  %v2108_v54 = vld [vmem:[%s2549_s30 + $0xc8] sm:$0xf0] }
  0xd4   : > { %v2770_v0 = vpop.f32.mrf.mxu3  ;;  %v1806_v3 = vmax.f32 %v1742_v58, 0.0  ;;  %v1359_v4 = vadd.f32 %v2664_v1, %v1291_v59  ;;  %v2244_v58 = vld [vmem:[%s2549_s30 + $0x1d8] sm:$0xf0] }
  0xd5   : > { %v1106_v6 = vpop.f32.mrf.mxu1  ;;  %v1775_v11 = vmax.f32 %v1711_v61, 0.0  ;;  %v1328_v13 = vadd.f32 %v2664_v1, %v1260_v42  ;;  %v1425_v42 = vld [vmem:[%s2659_s18 + $0x130] sm:$0xff] }
  0xd6   : > { %1871 = vst.msk [vmem:[%s2696_s9 + $0x118] sm:$0xff] %vm1835_vm2, %v1806_v3  ;;  %v1487_v16 = vadd.f32 %v1423_v62, %v1359_v4 }
  0xd7   : > { %1840 = vst.msk [vmem:[%s2696_s9 + $0x20] sm:$0xff] %vm1835_vm2, %v1775_v11  ;;  %v1456_v19 = vadd.f32 %v1392_v5, %v1328_v13  ;;  %v1014_v20 = vpop.f32.mrf.mxu2  ;;  %v2247_v11 = vor.u32 %v2409_v57, %v2244_v58  ;;  %v1553_v13 = vld [vmem:[%s2670_s25 + $0x130] sm:$0xff]  ;;  %v2411_v58 = vld [vmem:[%s2549_s30 + $0x1e4] sm:$0xf] }
  0xd8   : > { %2327 = vmatmul.msk.bf16.gmra.mxu1 %vm812_vm1, %v2103_v63  ;;  %v1615_v23 = vadd.f32 %v1551_v12, %v1487_v16  ;;  %v1184_v25 = vadd.f32 %v2728_v2, %v1014_v20  ;;  %v937_v26 = vpop.f32.mrf.mxu0  ;;  %v2111_v63 = vor.u32 %v2375_v53, %v2108_v54  ;;  %v2408_v16 = vld [vmem:[%s2549_s30 + $0x1c4] sm:$0xf0]  ;;  %v2377_v54 = vld [vmem:[%s2549_s30 + $0xd4] sm:$0xf] }
  0xd9   : > { %2344 = vmatmul.msk.bf16.gmra.mxu3 %vm812_vm1, %v2239_v10  ;;  %v1584_v28 = vadd.f32 %v1520_v17, %v1456_v19  ;;  %v1107_v29 = vadd.f32 %v1106_v6, %v937_v26  ;;  %v1394_v6 = vld [vmem:[%s2659_s18 + $0x38] sm:$0xff]  ;;  %v2376_v10 = vld [vmem:[%s2549_s30 + $0xc4] sm:$0xf0]  ;;  %v1681_v19 = vld [vmem:[%s2678_s28 + $0x130] sm:$0xff] }
  0xda   : > { %v1743_v30 = vadd.f32 %v1679_v18, %v1615_v23  ;;  %v1292_v31 = vmul.f32 %v2652_v60, %v1184_v25  ;;  %v1522_v18 = vld [vmem:[%s2670_s25 + $0x38] sm:$0xff]  ;;  %v2107_v23 = vor.u32 %v2376_v10, %v2106_v8  ;;  %v2114_v10 = vld [vmem:[%s2549_s30 + $0xd0] sm:$0xf] }
  0xdb   : > { %v1712_v32 = vadd.f32 %v1648_v24, %v1584_v28  ;;  %v1261_v35 = vmul.f32 %v2652_v60, %v1107_v29  ;;  %976 = vmatmul.bf16.gmra.mxu0 %v2099_v22  ;;  %v1650_v25 = vld [vmem:[%s2678_s28 + $0x38] sm:$0xff]  ;;  %v2235_v28 = vor.u32 %v2408_v16, %v2234_v15  ;;  %v2242_v16 = vld [vmem:[%s2549_s30 + $0x1d0] sm:$0xf] }
  0xdc   : > { %v2793_v2 = vpop.f32.mrf.mxu3  ;;  %v1807_v36 = vmax.f32 %v1743_v30, 0.0  ;;  %v1360_v37 = vadd.f32 %v2664_v1, %v1292_v31  ;;  %1056 = vmatmul.bf16.gmra.mxu2 %v2227_v27 }
  0xdd   : > { %v1108_v39 = vpop.f32.mrf.mxu1  ;;  %v1776_v40 = vmax.f32 %v1712_v32, 0.0  ;;  %v1329_v43 = vadd.f32 %v2664_v1, %v1261_v35  ;;  %v1426_v35 = vld [vmem:[%s2659_s18 + $0x138] sm:$0xff] }
  0xde   : > { %1872 = vst.msk [vmem:[%s2696_s9 + $0x120] sm:$0xff] %vm1835_vm2, %v1807_v36  ;;  %v1488_v44 = vadd.f32 %v1424_v34, %v1360_v37 }
  0xdf   : > { %1841 = vst.msk [vmem:[%s2696_s9 + $0x28] sm:$0xff] %vm1835_vm2, %v1776_v40  ;;  %v1457_v47 = vadd.f32 %v1393_v38, %v1329_v43  ;;  %v1017_v48 = vpop.f32.mrf.mxu2  ;;  %v1554_v43 = vld [vmem:[%s2670_s25 + $0x138] sm:$0xff] }
  0xe0   : > { %v1616_v49 = vadd.f32 %v1552_v41, %v1488_v44  ;;  %v1187_v51 = vadd.f32 %v2749_v21, %v1017_v48  ;;  %v939_v52 = vpop.f32.mrf.mxu0 }
  0xe1   : > { %v1585_v55 = vadd.f32 %v1521_v45, %v1457_v47  ;;  %v1109_v56 = vadd.f32 %v1108_v39, %v939_v52  ;;  %v1395_v39 = vld [vmem:[%s2659_s18 + $0x40] sm:$0xff]  ;;  %v1682_v47 = vld [vmem:[%s2678_s28 + $0x138] sm:$0xff] }
  0xe2   : > { %v1744_v59 = vadd.f32 %v1680_v46, %v1616_v49  ;;  %v1293_v61 = vmul.f32 %v2652_v60, %v1187_v51  ;;  %v1523_v46 = vld [vmem:[%s2670_s25 + $0x40] sm:$0xff] }
  0xe3   : > { %v1713_v62 = vadd.f32 %v1649_v50, %v1585_v55  ;;  %v1262_v21 = vmul.f32 %v2652_v60, %v1109_v56  ;;  %v1651_v51 = vld [vmem:[%s2678_s28 + $0x40] sm:$0xff]  ;;  %v2116_v55 = vld [vmem:[%s2549_s30 + $0xd8] sm:$0xf0] }
  0xe4   : > { %v2814_v3 = vpop.f32.mrf.mxu3  ;;  %v1808_v4 = vmax.f32 %v1744_v59, 0.0  ;;  %v1361_v5 = vadd.f32 %v2664_v1, %v1293_v61  ;;  %v2252_v59 = vld [vmem:[%s2549_s30 + $0x1e8] sm:$0xf0] }
  0xe5   : > { %v1111_v7 = vpop.f32.mrf.mxu1  ;;  %v1777_v12 = vmax.f32 %v1713_v62, 0.0  ;;  %v1330_v14 = vadd.f32 %v2664_v1, %v1262_v21  ;;  %v1427_v21 = vld [vmem:[%s2659_s18 + $0x140] sm:$0xff] }
  0xe6   : > { %1873 = vst.msk [vmem:[%s2696_s9 + $0x128] sm:$0xff] %vm1835_vm2, %v1808_v4  ;;  %v1489_v17 = vadd.f32 %v1425_v42, %v1361_v5 }
  0xe7   : > { %1842 = vst.msk [vmem:[%s2696_s9 + $0x30] sm:$0xff] %vm1835_vm2, %v1777_v12  ;;  %v1458_v20 = vadd.f32 %v1394_v6, %v1330_v14  ;;  %v1019_v22 = vpop.f32.mrf.mxu2  ;;  %v2255_v12 = vor.u32 %v2411_v58, %v2252_v59  ;;  %v1555_v14 = vld [vmem:[%s2670_s25 + $0x140] sm:$0xff]  ;;  %v2413_v59 = vld [vmem:[%s2549_s30 + $0x1f4] sm:$0xf] }
  0xe8   : > { %2328 = vmatmul.msk.bf16.gmra.mxu1 %vm812_vm1, %v2111_v63  ;;  %v1617_v24 = vadd.f32 %v1553_v13, %v1489_v17  ;;  %v1189_v26 = vadd.f32 %v2770_v0, %v1019_v22  ;;  %v942_v27 = vpop.f32.mrf.mxu0  ;;  %v2119_v63 = vor.u32 %v2377_v54, %v2116_v55  ;;  %v2410_v17 = vld [vmem:[%s2549_s30 + $0x1d4] sm:$0xf0]  ;;  %v2379_v55 = vld [vmem:[%s2549_s30 + $0xe4] sm:$0xf] }
  0xe9   : > { %2345 = vmatmul.msk.bf16.gmra.mxu3 %vm812_vm1, %v2247_v11  ;;  %v1586_v29 = vadd.f32 %v1522_v18, %v1458_v20  ;;  %v1112_v30 = vadd.f32 %v1111_v7, %v942_v27  ;;  %v1396_v7 = vld [vmem:[%s2659_s18 + $0x48] sm:$0xff]  ;;  %v2378_v11 = vld [vmem:[%s2549_s30 + $0xd4] sm:$0xf0]  ;;  %v1683_v20 = vld [vmem:[%s2678_s28 + $0x140] sm:$0xff] }
  0xea   : > { %v1745_v31 = vadd.f32 %v1681_v19, %v1617_v24  ;;  %v1294_v32 = vmul.f32 %v2652_v60, %v1189_v26  ;;  %v1524_v19 = vld [vmem:[%s2670_s25 + $0x48] sm:$0xff]  ;;  %v2115_v24 = vor.u32 %v2378_v11, %v2114_v10  ;;  %v2122_v11 = vld [vmem:[%s2549_s30 + $0xe0] sm:$0xf] }
  0xeb   : > { %v1714_v34 = vadd.f32 %v1650_v25, %v1586_v29  ;;  %v1263_v36 = vmul.f32 %v2652_v60, %v1112_v30  ;;  %981 = vmatmul.bf16.gmra.mxu0 %v2107_v23  ;;  %v1652_v26 = vld [vmem:[%s2678_s28 + $0x48] sm:$0xff]  ;;  %v2243_v29 = vor.u32 %v2410_v17, %v2242_v16  ;;  %v2250_v17 = vld [vmem:[%s2549_s30 + $0x1e0] sm:$0xf] }
  0xec   : > { %v2837_v0 = vpop.f32.mrf.mxu3  ;;  %v1809_v37 = vmax.f32 %v1745_v31, 0.0  ;;  %v1362_v38 = vadd.f32 %v2664_v1, %v1294_v32  ;;  %1061 = vmatmul.bf16.gmra.mxu2 %v2235_v28 }
  0xed   : > { %v1113_v40 = vpop.f32.mrf.mxu1  ;;  %v1778_v41 = vmax.f32 %v1714_v34, 0.0  ;;  %v1331_v44 = vadd.f32 %v2664_v1, %v1263_v36  ;;  %v1428_v36 = vld [vmem:[%s2659_s18 + $0x148] sm:$0xff] }
  0xee   : > { %1874 = vst.msk [vmem:[%s2696_s9 + $0x130] sm:$0xff] %vm1835_vm2, %v1809_v37  ;;  %v1490_v45 = vadd.f32 %v1426_v35, %v1362_v38 }
  0xef   : > { %1843 = vst.msk [vmem:[%s2696_s9 + $0x38] sm:$0xff] %vm1835_vm2, %v1778_v41  ;;  %v1459_v48 = vadd.f32 %v1395_v39, %v1331_v44  ;;  %v1022_v49 = vpop.f32.mrf.mxu2  ;;  %v1556_v44 = vld [vmem:[%s2670_s25 + $0x148] sm:$0xff] }
  0xf0   : > { %v1618_v50 = vadd.f32 %v1554_v43, %v1490_v45  ;;  %v1192_v52 = vadd.f32 %v2793_v2, %v1022_v49  ;;  %v944_v53 = vpop.f32.mrf.mxu0 }
  0xf1   : > { %v1587_v56 = vadd.f32 %v1523_v46, %v1459_v48  ;;  %v1114_v57 = vadd.f32 %v1113_v40, %v944_v53  ;;  %v1397_v40 = vld [vmem:[%s2659_s18 + $0x50] sm:$0xff]  ;;  %v1684_v48 = vld [vmem:[%s2678_s28 + $0x148] sm:$0xff] }
  0xf2   : > { %v1746_v61 = vadd.f32 %v1682_v47, %v1618_v50  ;;  %v1295_v62 = vmul.f32 %v2652_v60, %v1192_v52  ;;  %v1525_v47 = vld [vmem:[%s2670_s25 + $0x50] sm:$0xff] }
  0xf3   : > { %v1715_v42 = vadd.f32 %v1651_v51, %v1587_v56  ;;  %v1264_v2 = vmul.f32 %v2652_v60, %v1114_v57  ;;  %v1653_v52 = vld [vmem:[%s2678_s28 + $0x50] sm:$0xff]  ;;  %v2124_v56 = vld [vmem:[%s2549_s30 + $0xe8] sm:$0xf0] }
  0xf4   : > { %v2858_v4 = vpop.f32.mrf.mxu3  ;;  %v1810_v5 = vmax.f32 %v1746_v61, 0.0  ;;  %v1363_v6 = vadd.f32 %v2664_v1, %v1295_v62  ;;  %v2260_v61 = vld [vmem:[%s2549_s30 + $0x1f8] sm:$0xf0] }
  0xf5   : > { %v1116_v8 = vpop.f32.mrf.mxu1  ;;  %v1779_v13 = vmax.f32 %v1715_v42, 0.0  ;;  %v1332_v15 = vadd.f32 %v2664_v1, %v1264_v2  ;;  %v1429_v2 = vld [vmem:[%s2659_s18 + $0x150] sm:$0xff] }
  0xf6   : > { %1875 = vst.msk [vmem:[%s2696_s9 + $0x138] sm:$0xff] %vm1835_vm2, %v1810_v5  ;;  %v1491_v18 = vadd.f32 %v1427_v21, %v1363_v6 }
  0xf7   : > { %1844 = vst.msk [vmem:[%s2696_s9 + $0x40] sm:$0xff] %vm1835_vm2, %v1779_v13  ;;  %v1460_v22 = vadd.f32 %v1396_v7, %v1332_v15  ;;  %v1024_v23 = vpop.f32.mrf.mxu2  ;;  %v2263_v13 = vor.u32 %v2413_v59, %v2260_v61  ;;  %v1557_v15 = vld [vmem:[%s2670_s25 + $0x150] sm:$0xff] }
  0xf8   : > { %2329 = vmatmul.msk.bf16.gmra.mxu1 %vm812_vm1, %v2119_v63  ;;  %v1619_v25 = vadd.f32 %v1555_v14, %v1491_v18  ;;  %v1194_v27 = vadd.f32 %v2814_v3, %v1024_v23  ;;  %v947_v28 = vpop.f32.mrf.mxu0  ;;  %v2127_v63 = vor.u32 %v2379_v55, %v2124_v56  ;;  %v2412_v18 = vld [vmem:[%s2549_s30 + $0x1e4] sm:$0xf0]  ;;  %v2381_v56 = vld [vmem:[%s2549_s30 + $0xf4] sm:$0xf] }
  0xf9   : > { %2346 = vmatmul.msk.bf16.gmra.mxu3 %vm812_vm1, %v2255_v12  ;;  %v1588_v30 = vadd.f32 %v1524_v19, %v1460_v22  ;;  %v1117_v31 = vadd.f32 %v1116_v8, %v947_v28  ;;  %v1398_v8 = vld [vmem:[%s2659_s18 + $0x58] sm:$0xff]  ;;  %v2380_v12 = vld [vmem:[%s2549_s30 + $0xe4] sm:$0xf0]  ;;  %v1685_v22 = vld [vmem:[%s2678_s28 + $0x150] sm:$0xff] }
  0xfa   : > { %v1747_v32 = vadd.f32 %v1683_v20, %v1619_v25  ;;  %v1296_v34 = vmul.f32 %v2652_v60, %v1194_v27  ;;  %v1526_v20 = vld [vmem:[%s2670_s25 + $0x58] sm:$0xff]  ;;  %v2123_v25 = vor.u32 %v2380_v12, %v2122_v11 }
  0xfb   : > { %v1716_v35 = vadd.f32 %v1652_v26, %v1588_v30  ;;  %v1265_v37 = vmul.f32 %v2652_v60, %v1117_v31  ;;  %986 = vmatmul.bf16.gmra.mxu0 %v2115_v24  ;;  %v1654_v27 = vld [vmem:[%s2678_s28 + $0x58] sm:$0xff]  ;;  %v2251_v30 = vor.u32 %v2412_v18, %v2250_v17  ;;  %v1528_v18 = vld [vmem:[%s2670_s25 + $0x68] sm:$0xff] }
  0xfc   : > { %v2881_v3 = vpop.f32.mrf.mxu3  ;;  %v1811_v38 = vmax.f32 %v1747_v32, 0.0  ;;  %v1364_v39 = vadd.f32 %v2664_v1, %v1296_v34  ;;  %1066 = vmatmul.bf16.gmra.mxu2 %v2243_v29  ;;  %v2382_v11 = vld [vmem:[%s2549_s30 + $0xf4] sm:$0xf0] }
  0xfd   : > { %v1118_v41 = vpop.f32.mrf.mxu1  ;;  %v1780_v43 = vmax.f32 %v1716_v35, 0.0  ;;  %v1333_v45 = vadd.f32 %v2664_v1, %v1265_v37  ;;  %v1430_v37 = vld [vmem:[%s2659_s18 + $0x158] sm:$0xff] }
  0xfe   : > { %1876 = vst.msk [vmem:[%s2696_s9 + $0x140] sm:$0xff] %vm1835_vm2, %v1811_v38  ;;  %v1492_v46 = vadd.f32 %v1428_v36, %v1364_v39 }
  0xff   : > { %1845 = vst.msk [vmem:[%s2696_s9 + $0x48] sm:$0xff] %vm1835_vm2, %v1780_v43  ;;  %v1461_v49 = vadd.f32 %v1397_v40, %v1333_v45  ;;  %v1027_v50 = vpop.f32.mrf.mxu2  ;;  %v1558_v45 = vld [vmem:[%s2670_s25 + $0x158] sm:$0xff] }
 0x100   : > { %v1620_v51 = vadd.f32 %v1556_v44, %v1492_v46  ;;  %v1197_v53 = vadd.f32 %v2837_v0, %v1027_v50  ;;  %v949_v54 = vpop.f32.mrf.mxu0 }
 0x101   : > { %v1589_v57 = vadd.f32 %v1525_v47, %v1461_v49  ;;  %v1119_v58 = vadd.f32 %v1118_v41, %v949_v54  ;;  %v1399_v41 = vld [vmem:[%s2659_s18 + $0x60] sm:$0xff]  ;;  %v1686_v49 = vld [vmem:[%s2678_s28 + $0x158] sm:$0xff] }
 0x102   : > { %v1748_v62 = vadd.f32 %v1684_v48, %v1620_v51  ;;  %v1297_v42 = vmul.f32 %v2652_v60, %v1197_v53  ;;  %v1527_v48 = vld [vmem:[%s2670_s25 + $0x60] sm:$0xff] }
 0x103   : > { %v1717_v21 = vadd.f32 %v1653_v52, %v1589_v57  ;;  %v1266_v0 = vmul.f32 %v2652_v60, %v1119_v58  ;;  %v1655_v53 = vld [vmem:[%s2678_s28 + $0x60] sm:$0xff]  ;;  %v2132_v57 = vld [vmem:[%s2549_s30 + $0xf8] sm:$0xf0] }
 0x104   : > { %v2902_v5 = vpop.f32.mrf.mxu3  ;;  %v1812_v6 = vmax.f32 %v1748_v62, 0.0  ;;  %v1365_v7 = vadd.f32 %v2664_v1, %v1297_v42 }
 0x105   : > { %v1121_v10 = vpop.f32.mrf.mxu1  ;;  %v1781_v14 = vmax.f32 %v1717_v21, 0.0  ;;  %v1334_v16 = vadd.f32 %v2664_v1, %v1266_v0  ;;  %v1431_v21 = vld [vmem:[%s2659_s18 + $0x160] sm:$0xff] }
 0x106   : > { %1877 = vst.msk [vmem:[%s2696_s9 + $0x148] sm:$0xff] %vm1835_vm2, %v1812_v6  ;;  %v1493_v19 = vadd.f32 %v1429_v2, %v1365_v7  ;;  %v1400_v7 = vld [vmem:[%s2659_s18 + $0x68] sm:$0xff] }
 0x107   : > { %1846 = vst.msk [vmem:[%s2696_s9 + $0x50] sm:$0xff] %vm1835_vm2, %v1781_v14  ;;  %v1462_v23 = vadd.f32 %v1398_v8, %v1334_v16  ;;  %v1029_v24 = vpop.f32.mrf.mxu2  ;;  %v2414_v16 = vld [vmem:[%s2549_s30 + $0x1f4] sm:$0xf0] }
 0x108   : > { %2330 = vmatmul.msk.bf16.gmra.mxu1 %vm812_vm1, %v2127_v63  ;;  %v1621_v26 = vadd.f32 %v1557_v15, %v1493_v19  ;;  %v1199_v28 = vadd.f32 %v2858_v4, %v1029_v24  ;;  %v952_v29 = vpop.f32.mrf.mxu0  ;;  %v2258_v15 = vld [vmem:[%s2549_s30 + $0x1f0] sm:$0xf]  ;;  %v1687_v19 = vld [vmem:[%s2678_s28 + $0x160] sm:$0xff] }
 0x109   : > { %2347 = vmatmul.msk.bf16.gmra.mxu3 %vm812_vm1, %v2263_v13  ;;  %v1590_v31 = vadd.f32 %v1526_v20, %v1462_v23  ;;  %v1122_v32 = vadd.f32 %v1121_v10, %v952_v29  ;;  %v2130_v10 = vld [vmem:[%s2549_s30 + $0xf0] sm:$0xf]  ;;  %v1559_v13 = vld [vmem:[%s2670_s25 + $0x160] sm:$0xff] }
 0x10a   : > { %v1749_v34 = vadd.f32 %v1685_v22, %v1621_v26  ;;  %v1298_v35 = vmul.f32 %v2652_v60, %v1199_v28  ;;  %v2131_v23 = vor.u32 %v2382_v11, %v2130_v10  ;;  %v2259_v28 = vor.u32 %v2414_v16, %v2258_v15 }
 0x10b   : > { %v1718_v36 = vadd.f32 %v1654_v27, %v1590_v31  ;;  %v1267_v38 = vmul.f32 %v2652_v60, %v1122_v32  ;;  %991 = vmatmul.bf16.gmra.mxu0 %v2123_v25  ;;  %v1656_v25 = vld [vmem:[%s2678_s28 + $0x68] sm:$0xff] }
 0x10c   : > { %v2925_v4 = vpop.f32.mrf.mxu3  ;;  %v1813_v39 = vmax.f32 %v1749_v34, 0.0  ;;  %v1366_v40 = vadd.f32 %v2664_v1, %v1298_v35  ;;  %1071 = vmatmul.bf16.gmra.mxu2 %v2251_v30  ;;  %v1432_v35 = vld [vmem:[%s2659_s18 + $0x168] sm:$0xff] }
 0x10d   : > { %v1123_v43 = vpop.f32.mrf.mxu1  ;;  %v1782_v44 = vmax.f32 %v1718_v36, 0.0  ;;  %v1335_v46 = vadd.f32 %v2664_v1, %v1267_v38 }
 0x10e   : > { %1878 = vst.msk [vmem:[%s2696_s9 + $0x150] sm:$0xff] %vm1835_vm2, %v1813_v39  ;;  %v1494_v47 = vadd.f32 %v1430_v37, %v1366_v40  ;;  %v1401_v39 = vld [vmem:[%s2659_s18 + $0x70] sm:$0xff] }
 0x10f   : > { %1847 = vst.msk [vmem:[%s2696_s9 + $0x58] sm:$0xff] %vm1835_vm2, %v1782_v44  ;;  %v1463_v50 = vadd.f32 %v1399_v41, %v1335_v46  ;;  %v1032_v51 = vpop.f32.mrf.mxu2  ;;  %v1529_v46 = vld [vmem:[%s2670_s25 + $0x70] sm:$0xff] }
 0x110   : > { %v1622_v52 = vadd.f32 %v1558_v45, %v1494_v47  ;;  %v1202_v54 = vadd.f32 %v2881_v3, %v1032_v51  ;;  %v954_v55 = vpop.f32.mrf.mxu0  ;;  %v2135_v3 = vor.u32 %v2381_v56, %v2132_v57  ;;  %v1688_v47 = vld [vmem:[%s2678_s28 + $0x168] sm:$0xff]  ;;  %v1657_v51 = vld [vmem:[%s2678_s28 + $0x70] sm:$0xff] }
 0x111   : > { %v1591_v58 = vadd.f32 %v1527_v48, %v1463_v50  ;;  %v1124_v59 = vadd.f32 %v1123_v43, %v954_v55  ;;  %v1560_v43 = vld [vmem:[%s2670_s25 + $0x168] sm:$0xff] }
 0x112   : > { %v1750_v61 = vadd.f32 %v1686_v49, %v1622_v52  ;;  %v1299_v62 = vmul.f32 %v2652_v60, %v1202_v54  ;;  %v2383_v54 = vld [vmem:[%s2549_s30 + $0x104] sm:$0xf]  ;;  %v2140_v55 = vld [vmem:[%s2549_s30 + $0x108] sm:$0xf0] }
 0x113   : > { %v1719_v42 = vadd.f32 %v1655_v53, %v1591_v58  ;;  %v1268_v2 = vmul.f32 %v2652_v60, %v1124_v59 }
 0x114   : > { %v2944_v0 = vpop.f32.mrf.mxu3  ;;  %v1814_v63 = vmax.f32 %v1750_v61, 0.0  ;;  %v1367_v6 = vadd.f32 %v2664_v1, %v1299_v62  ;;  %v1433_v62 = vld [vmem:[%s2659_s18 + $0x170] sm:$0xff] }
 0x115   : > { %v1126_v8 = vpop.f32.mrf.mxu1  ;;  %v1783_v12 = vmax.f32 %v1719_v42, 0.0  ;;  %v1336_v14 = vadd.f32 %v2664_v1, %v1268_v2 }
 0x116   : > { %1879 = vst.msk [vmem:[%s2696_s9 + $0x158] sm:$0xff] %vm1835_vm2, %v1814_v63  ;;  %v1495_v17 = vadd.f32 %v1431_v21, %v1367_v6  ;;  %v2143_v21 = vor.u32 %v2383_v54, %v2140_v55  ;;  %v1402_v63 = vld [vmem:[%s2659_s18 + $0x78] sm:$0xff]  ;;  %v1404_v55 = vld [vmem:[%s2659_s18 + $0x88] sm:$0xff] }
 0x117   : > { %1848 = vst.msk [vmem:[%s2696_s9 + $0x60] sm:$0xff] %vm1835_vm2, %v1783_v12  ;;  %v1464_v20 = vadd.f32 %v1400_v7, %v1336_v14  ;;  %v1034_v22 = vpop.f32.mrf.mxu2  ;;  %v1530_v12 = vld [vmem:[%s2670_s25 + $0x78] sm:$0xff] }
 0x118   : > { %2331 = vmatmul.msk.bf16.gmra.mxu1 %vm812_vm1, %v2135_v3  ;;  %v1623_v24 = vadd.f32 %v1559_v13, %v1495_v17  ;;  %v1204_v26 = vadd.f32 %v2902_v5, %v1034_v22  ;;  %v957_v27 = vpop.f32.mrf.mxu0  ;;  %v1689_v13 = vld [vmem:[%s2678_s28 + $0x170] sm:$0xff]  ;;  %v1658_v17 = vld [vmem:[%s2678_s28 + $0x78] sm:$0xff] }
 0x119   : > { %v1592_v29 = vadd.f32 %v1528_v18, %v1464_v20  ;;  %v1127_v30 = vadd.f32 %v1126_v8, %v957_v27  ;;  %v1561_v8 = vld [vmem:[%s2670_s25 + $0x170] sm:$0xff] }
 0x11a   : > { %v1751_v31 = vadd.f32 %v1687_v19, %v1623_v24  ;;  %v1300_v32 = vmul.f32 %v2652_v60, %v1204_v26  ;;  %v1434_v26 = vld [vmem:[%s2659_s18 + $0x178] sm:$0xff] }
 0x11b   : > { %v1720_v34 = vadd.f32 %v1656_v25, %v1592_v29  ;;  %v1269_v36 = vmul.f32 %v2652_v60, %v1127_v30  ;;  %996 = vmatmul.bf16.gmra.mxu0 %v2131_v23  ;;  %v1403_v30 = vld [vmem:[%s2659_s18 + $0x80] sm:$0xff] }
 0x11c   : > { %v2966_v37 = vpop.f32.mrf.mxu3  ;;  %v1815_v5 = vmax.f32 %v1751_v31, 0.0  ;;  %v1368_v38 = vadd.f32 %v2664_v1, %v1300_v32  ;;  %1076 = vmatmul.bf16.gmra.mxu2 %v2259_v28 }
 0x11d   : > { %v1128_v40 = vpop.f32.mrf.mxu1  ;;  %v1784_v41 = vmax.f32 %v1720_v34, 0.0  ;;  %v1337_v44 = vadd.f32 %v2664_v1, %v1269_v36  ;;  %v1562_v34 = vld [vmem:[%s2670_s25 + $0x178] sm:$0xff] }
 0x11e   : > { %1880 = vst.msk [vmem:[%s2696_s9 + $0x160] sm:$0xff] %vm1835_vm2, %v1815_v5  ;;  %v1496_v45 = vadd.f32 %v1432_v35, %v1368_v38  ;;  %v1531_v5 = vld [vmem:[%s2670_s25 + $0x80] sm:$0xff] }
 0x11f   : > { %1849 = vst.msk [vmem:[%s2696_s9 + $0x68] sm:$0xff] %vm1835_vm2, %v1784_v41  ;;  %v1465_v48 = vadd.f32 %v1401_v39, %v1337_v44  ;;  %v1037_v49 = vpop.f32.mrf.mxu2  ;;  %v1659_v41 = vld [vmem:[%s2678_s28 + $0x80] sm:$0xff] }
 0x120   : > { %v1624_v50 = vadd.f32 %v1560_v43, %v1496_v45  ;;  %v1207_v52 = vadd.f32 %v2925_v4, %v1037_v49  ;;  %v959_v53 = vpop.f32.mrf.mxu0 }
 0x121   : > { %v1593_v56 = vadd.f32 %v1529_v46, %v1465_v48  ;;  %v1129_v57 = vadd.f32 %v1128_v40, %v959_v53  ;;  %v3030_v53 = vld [vmem:[%s3281_s3] ss:$0 sm:$0xff] }
 0x122   : > { %v1752_v58 = vadd.f32 %v1688_v47, %v1624_v50  ;;  %v1301_v59 = vmul.f32 %v2652_v60, %v1207_v52  ;;  %v3020_v47 = vld [vmem:[%s3280_s2] ss:$0 sm:$0xff] }
 0x123   : > { %v1721_v61 = vadd.f32 %v1657_v51, %v1593_v56  ;;  %v1270_v42 = vmul.f32 %v2652_v60, %v1129_v57  ;;  %v1435_v50 = vld [vmem:[%s2659_s18 + $0x180] sm:$0xff] }
 0x124   : > { %v2985_v2 = vpop.f32.mrf.mxu3  ;;  %v1816_v4 = vmax.f32 %v1752_v58, 0.0  ;;  %v1369_v3 = vadd.f32 %v2664_v1, %v1301_v59  ;;  %v1563_v58 = vld [vmem:[%s2670_s25 + $0x180] sm:$0xff] }
 0x125   : > { %v1131_v6 = vpop.f32.mrf.mxu1  ;;  %v1785_v7 = vmax.f32 %v1721_v61, 0.0  ;;  %v1338_v10 = vadd.f32 %v2664_v1, %v1270_v42  ;;  %v1691_v42 = vld [vmem:[%s2678_s28 + $0x180] sm:$0xff] }
 0x126   : > { %1881 = vst.msk [vmem:[%s2696_s9 + $0x168] sm:$0xff] %vm1835_vm2, %v1816_v4  ;;  %v1497_v11 = vadd.f32 %v1433_v62, %v1369_v3  ;;  %v1532_v62 = vld [vmem:[%s2670_s25 + $0x88] sm:$0xff] }
 0x127   : > { %1850 = vst.msk [vmem:[%s2696_s9 + $0x70] sm:$0xff] %vm1835_vm2, %v1785_v7  ;;  %v1466_v14 = vadd.f32 %v1402_v63, %v1338_v10  ;;  %v1039_v15 = vpop.f32.mrf.mxu2  ;;  %v1660_v63 = vld [vmem:[%s2678_s28 + $0x88] sm:$0xff] }
 0x128   : > { %2332 = vmatmul.msk.bf16.gmra.mxu1 %vm812_vm1, %v2143_v21  ;;  %v1625_v16 = vadd.f32 %v1561_v8, %v1497_v11  ;;  %v1209_v18 = vadd.f32 %v2944_v0, %v1039_v15  ;;  %v962_v19 = vpop.f32.mrf.mxu0 }
 0x129   : > { %v1594_v20 = vadd.f32 %v1530_v12, %v1466_v14  ;;  %v1132_v22 = vadd.f32 %v1131_v6, %v962_v19  ;;  %v1436_v14 = vld [vmem:[%s2659_s18 + $0x188] sm:$0xff] }
 0x12a   : > { %v1753_v23 = vadd.f32 %v1689_v13, %v1625_v16  ;;  %v1302_v24 = vmul.f32 %v2652_v60, %v1209_v18  ;;  %v1405_v18 = vld [vmem:[%s2659_s18 + $0x90] sm:$0xff] }
 0x12b   : > { %v1722_v25 = vadd.f32 %v1658_v17, %v1594_v20  ;;  %v1271_v27 = vmul.f32 %v2652_v60, %v1132_v22  ;;  %v1690_v60 = vld [vmem:[%s2678_s28 + $0x178] sm:$0xff]  ;;  %v1564_v22 = vld [vmem:[%s2670_s25 + $0x188] sm:$0xff] }
 0x12c   : > { %v3003_v28 = vpop.f32.mrf.mxu3  ;;  %v1817_v29 = vmax.f32 %v1753_v23, 0.0  ;;  %v1370_v0 = vadd.f32 %v2664_v1, %v1302_v24 }
 0x12d   : > { %v1133_v31 = vpop.f32.mrf.mxu1  ;;  %v1786_v32 = vmax.f32 %v1722_v25, 0.0  ;;  %v1339_v35 = vadd.f32 %v2664_v1, %v1271_v27  ;;  %v1533_v25 = vld [vmem:[%s2670_s25 + $0x90] sm:$0xff] }
 0x12e   : > { %1882 = vst.msk [vmem:[%s2696_s9 + $0x170] sm:$0xff] %vm1835_vm2, %v1817_v29  ;;  %v1498_v36 = vadd.f32 %v1434_v26, %v1370_v0  ;;  %v1692_v26 = vld [vmem:[%s2678_s28 + $0x188] sm:$0xff] }
 0x12f   : > { %1851 = vst.msk [vmem:[%s2696_s9 + $0x78] sm:$0xff] %vm1835_vm2, %v1786_v32  ;;  %v1467_v38 = vadd.f32 %v1403_v30, %v1339_v35  ;;  %v1042_v39 = vpop.f32.mrf.mxu2  ;;  %v1661_v30 = vld [vmem:[%s2678_s28 + $0x90] sm:$0xff] }
 0x130   : > { %v1626_v40 = vadd.f32 %v1562_v34, %v1498_v36  ;;  %v1212_v43 = vadd.f32 %v2966_v37, %v1042_v39  ;;  %v964_v44 = vpop.f32.mrf.mxu0 }
 0x131   : > { %v1595_v45 = vadd.f32 %v1531_v5, %v1467_v38  ;;  %v1134_v46 = vadd.f32 %v1133_v31, %v964_v44  ;;  %v1437_v38 = vld [vmem:[%s2659_s18 + $0x190] sm:$0xff] }
 0x132   : > { %v1754_v1 = vadd.f32 %v1690_v60, %v1626_v40  ;;  %v1303_v48 = vmul.f32 %v3020_v47, %v1212_v43  ;;  %v1406_v43 = vld [vmem:[%s2659_s18 + $0x98] sm:$0xff] }
 0x133   : > { %v1723_v49 = vadd.f32 %v1659_v41, %v1595_v45  ;;  %v1272_v37 = vmul.f32 %v3020_v47, %v1134_v46  ;;  %v1565_v46 = vld [vmem:[%s2670_s25 + $0x190] sm:$0xff] }
 0x134   : > { %v3025_v51 = vpop.f32.mrf.mxu3  ;;  %v1818_v52 = vmax.f32 %v1754_v1, 0.0  ;;  %v1371_v54 = vadd.f32 %v3030_v53, %v1303_v48 }
 0x135   : > { %v1136_v56 = vpop.f32.mrf.mxu1  ;;  %v1787_v57 = vmax.f32 %v1723_v49, 0.0  ;;  %v1340_v59 = vadd.f32 %v3030_v53, %v1272_v37  ;;  %v1534_v49 = vld [vmem:[%s2670_s25 + $0x98] sm:$0xff] }
 0x136   : > { %1883 = vst.msk [vmem:[%s2696_s9 + $0x178] sm:$0xff] %vm1835_vm2, %v1818_v52  ;;  %v1499_v61 = vadd.f32 %v1435_v50, %v1371_v54  ;;  %v1693_v50 = vld [vmem:[%s2678_s28 + $0x190] sm:$0xff] }
 0x137   : > { %1852 = vst.msk [vmem:[%s2696_s9 + $0x80] sm:$0xff] %vm1835_vm2, %v1787_v57  ;;  %v1468_v21 = vadd.f32 %v1404_v55, %v1340_v59  ;;  %v1044_v4 = vpop.f32.mrf.mxu2  ;;  %v1662_v55 = vld [vmem:[%s2678_s28 + $0x98] sm:$0xff] }
 0x138   : > { %v1627_v3 = vadd.f32 %v1563_v58, %v1499_v61  ;;  %v1214_v6 = vadd.f32 %v2985_v2, %v1044_v4  ;;  %v967_v7 = vpop.f32.mrf.mxu0 }
 0x139   : > { %v1596_v8 = vadd.f32 %v1532_v62, %v1468_v21  ;;  %v1137_v10 = vadd.f32 %v1136_v56, %v967_v7  ;;  %v1438_v21 = vld [vmem:[%s2659_s18 + $0x198] sm:$0xff] }
 0x13a   : > { %v1755_v11 = vadd.f32 %v1691_v42, %v1627_v3  ;;  %v1304_v12 = vmul.f32 %v3020_v47, %v1214_v6  ;;  %v1407_v6 = vld [vmem:[%s2659_s18 + $0xa0] sm:$0xff] }
 0x13b   : > { %v1724_v13 = vadd.f32 %v1660_v63, %v1596_v8  ;;  %v1273_v15 = vmul.f32 %v3020_v47, %v1137_v10  ;;  %v1566_v8 = vld [vmem:[%s2670_s25 + $0x198] sm:$0xff] }
 0x13c   : > { %v3047_v16 = vpop.f32.mrf.mxu3  ;;  %v1819_v17 = vmax.f32 %v1755_v11, 0.0  ;;  %v1372_v2 = vadd.f32 %v3030_v53, %v1304_v12 }
 0x13d   : > { %v1138_v19 = vpop.f32.mrf.mxu1  ;;  %v1788_v20 = vmax.f32 %v1724_v13, 0.0  ;;  %v1341_v23 = vadd.f32 %v3030_v53, %v1273_v15  ;;  %v1535_v13 = vld [vmem:[%s2670_s25 + $0xa0] sm:$0xff] }
 0x13e   : > { %1884 = vst.msk [vmem:[%s2696_s9 + $0x180] sm:$0xff] %vm1835_vm2, %v1819_v17  ;;  %v1500_v24 = vadd.f32 %v1436_v14, %v1372_v2  ;;  %v1694_v14 = vld [vmem:[%s2678_s28 + $0x198] sm:$0xff] }
 0x13f   : > { %1853 = vst.msk [vmem:[%s2696_s9 + $0x88] sm:$0xff] %vm1835_vm2, %v1788_v20  ;;  %v1469_v27 = vadd.f32 %v1405_v18, %v1341_v23  ;;  %v1047_v29 = vpop.f32.mrf.mxu2  ;;  %v1663_v18 = vld [vmem:[%s2678_s28 + $0xa0] sm:$0xff] }
 0x140   : > { %v1628_v0 = vadd.f32 %v1564_v22, %v1500_v24  ;;  %v1217_v31 = vadd.f32 %v3003_v28, %v1047_v29  ;;  %v969_v32 = vpop.f32.mrf.mxu0 }
 0x141   : > { %v1597_v34 = vadd.f32 %v1533_v25, %v1469_v27  ;;  %v1139_v35 = vadd.f32 %v1138_v19, %v969_v32  ;;  %v1439_v27 = vld [vmem:[%s2659_s18 + $0x1a0] sm:$0xff] }
 0x142   : > { %v1756_v36 = vadd.f32 %v1692_v26, %v1628_v0  ;;  %v1305_v5 = vmul.f32 %v3020_v47, %v1217_v31  ;;  %v1408_v31 = vld [vmem:[%s2659_s18 + $0xa8] sm:$0xff] }
 0x143   : > { %v1725_v60 = vadd.f32 %v1661_v30, %v1597_v34  ;;  %v1274_v39 = vmul.f32 %v3020_v47, %v1139_v35  ;;  %v1567_v34 = vld [vmem:[%s2670_s25 + $0x1a0] sm:$0xff] }
 0x144   : > { %v3064_v40 = vpop.f32.mrf.mxu3  ;;  %v1820_v41 = vmax.f32 %v1756_v36, 0.0  ;;  %v1373_v28 = vadd.f32 %v3030_v53, %v1305_v5  ;;  %v1536_v5 = vld [vmem:[%s2670_s25 + $0xa8] sm:$0xff] }
 0x145   : > { %v1141_v44 = vpop.f32.mrf.mxu1  ;;  %v1789_v45 = vmax.f32 %v1725_v60, 0.0  ;;  %v1342_v1 = vadd.f32 %v3030_v53, %v1274_v39  ;;  %v1695_v60 = vld [vmem:[%s2678_s28 + $0x1a0] sm:$0xff] }
 0x146   : > { %1885 = vst.msk [vmem:[%s2696_s9 + $0x188] sm:$0xff] %vm1835_vm2, %v1820_v41  ;;  %v1501_v48 = vadd.f32 %v1437_v38, %v1373_v28 }
 0x147   : > { %1854 = vst.msk [vmem:[%s2696_s9 + $0x90] sm:$0xff] %vm1835_vm2, %v1789_v45  ;;  %v1470_v37 = vadd.f32 %v1406_v43, %v1342_v1  ;;  %v1049_v52 = vpop.f32.mrf.mxu2  ;;  %v1664_v43 = vld [vmem:[%s2678_s28 + $0xa8] sm:$0xff] }
 0x148   : > { %v1629_v54 = vadd.f32 %v1565_v46, %v1501_v48  ;;  %v1219_v56 = vadd.f32 %v3025_v51, %v1049_v52  ;;  %v972_v57 = vpop.f32.mrf.mxu0 }
 0x149   : > { %v1598_v58 = vadd.f32 %v1534_v49, %v1470_v37  ;;  %v1142_v59 = vadd.f32 %v1141_v44, %v972_v57  ;;  %v1440_v37 = vld [vmem:[%s2659_s18 + $0x1a8] sm:$0xff] }
 0x14a   : > { %v1757_v61 = vadd.f32 %v1693_v50, %v1629_v54  ;;  %v1306_v62 = vmul.f32 %v3020_v47, %v1219_v56  ;;  %v1409_v56 = vld [vmem:[%s2659_s18 + $0xb0] sm:$0xff] }
 0x14b   : > { %v1726_v42 = vadd.f32 %v1662_v55, %v1598_v58  ;;  %v1275_v4 = vmul.f32 %v3020_v47, %v1142_v59  ;;  %v1568_v58 = vld [vmem:[%s2670_s25 + $0x1a8] sm:$0xff] }
 0x14c   : > { %v1821_v3 = vmax.f32 %v1757_v61, 0.0  ;;  %v1374_v63 = vadd.f32 %v3030_v53, %v1306_v62  ;;  %v1226_v11 = vpop.f32.mrf.mxu3  ;;  %v1537_v62 = vld [vmem:[%s2670_s25 + $0xb0] sm:$0xff] }
 0x14d   : > { %v1143_v51 = vpop.f32.mrf.mxu1  ;;  %v1790_v7 = vmax.f32 %v1726_v42, 0.0  ;;  %v1343_v10 = vadd.f32 %v3030_v53, %v1275_v4  ;;  %v1696_v42 = vld [vmem:[%s2678_s28 + $0x1a8] sm:$0xff] }
 0x14e   : > { %1886 = vst.msk [vmem:[%s2696_s9 + $0x190] sm:$0xff] %vm1835_vm2, %v1821_v3  ;;  %v1502_v12 = vadd.f32 %v1438_v21, %v1374_v63  ;;  %v1665_v63 = vld [vmem:[%s2678_s28 + $0xb0] sm:$0xff] }
 0x14f   : > { %1855 = vst.msk [vmem:[%s2696_s9 + $0x98] sm:$0xff] %vm1835_vm2, %v1790_v7  ;;  %v1471_v15 = vadd.f32 %v1407_v6, %v1343_v10  ;;  %v1052_v17 = vpop.f32.mrf.mxu2 }
 0x150   : > { %v1630_v2 = vadd.f32 %v1566_v8, %v1502_v12  ;;  %v1222_v19 = vadd.f32 %v3047_v16, %v1052_v17  ;;  %v974_v20 = vpop.f32.mrf.mxu0 }
 0x151   : > { %v1599_v22 = vadd.f32 %v1535_v13, %v1471_v15  ;;  %v1144_v23 = vadd.f32 %v1143_v51, %v974_v20  ;;  %v1441_v15 = vld [vmem:[%s2659_s18 + $0x1b0] sm:$0xff] }
 0x152   : > { %v1758_v24 = vadd.f32 %v1694_v14, %v1630_v2  ;;  %v1307_v25 = vmul.f32 %v3020_v47, %v1222_v19 }
 0x153   : > { %v1727_v26 = vadd.f32 %v1663_v18, %v1599_v22  ;;  %v1276_v29 = vmul.f32 %v3020_v47, %v1144_v23  ;;  %v1569_v22 = vld [vmem:[%s2670_s25 + $0x1b0] sm:$0xff] }
 0x154   : > { %v1822_v0 = vmax.f32 %v1758_v24, 0.0  ;;  %v1375_v30 = vadd.f32 %v3030_v53, %v1307_v25  ;;  %v1228_v41 = vpop.f32.mrf.mxu3  ;;  %v1538_v25 = vld [vmem:[%s2670_s25 + $0xb8] sm:$0xff] }
 0x155   : > { %v1146_v16 = vpop.f32.mrf.mxu1  ;;  %v1791_v32 = vmax.f32 %v1727_v26, 0.0  ;;  %v1344_v35 = vadd.f32 %v3030_v53, %v1276_v29  ;;  %v1697_v26 = vld [vmem:[%s2678_s28 + $0x1b0] sm:$0xff] }
 0x156   : > { %1887 = vst.msk [vmem:[%s2696_s9 + $0x198] sm:$0xff] %vm1835_vm2, %v1822_v0  ;;  %v1503_v36 = vadd.f32 %v1439_v27, %v1375_v30  ;;  %v1666_v30 = vld [vmem:[%s2678_s28 + $0xb8] sm:$0xff] }
 0x157   : > { %1856 = vst.msk [vmem:[%s2696_s9 + $0xa0] sm:$0xff] %vm1835_vm2, %v1791_v32  ;;  %v1472_v38 = vadd.f32 %v1408_v31, %v1344_v35  ;;  %v1054_v39 = vpop.f32.mrf.mxu2 }
 0x158   : > { %v1631_v28 = vadd.f32 %v1567_v34, %v1503_v36  ;;  %v1224_v44 = vadd.f32 %v3064_v40, %v1054_v39  ;;  %v977_v45 = vpop.f32.mrf.mxu0 }
 0x159   : > { %v1600_v46 = vadd.f32 %v1536_v5, %v1472_v38  ;;  %v1147_v1 = vadd.f32 %v1146_v16, %v977_v45 }
 0x15a   : > { %v1759_v48 = vadd.f32 %v1695_v60, %v1631_v28  ;;  %v1308_v49 = vmul.f32 %v3020_v47, %v1224_v44  ;;  %v1442_v60 = vld [vmem:[%s2659_s18 + $0x1b8] sm:$0xff] }
 0x15b   : > { %v1728_v50 = vadd.f32 %v1664_v43, %v1600_v46  ;;  %v1277_v52 = vmul.f32 %v3020_v47, %v1147_v1  ;;  %v1570_v46 = vld [vmem:[%s2670_s25 + $0x1b8] sm:$0xff] }
 0x15c   : > { %v1823_v54 = vmax.f32 %v1759_v48, 0.0  ;;  %v1376_v55 = vadd.f32 %v3030_v53, %v1308_v49  ;;  %v1231_v10 = vpop.f32.mrf.mxu3  ;;  %v1539_v49 = vld [vmem:[%s2670_s25 + $0xc0] sm:$0xff] }
 0x15d   : > { %v1148_v40 = vpop.f32.mrf.mxu1  ;;  %v1792_v57 = vmax.f32 %v1728_v50, 0.0  ;;  %v1345_v59 = vadd.f32 %v3030_v53, %v1277_v52  ;;  %v1698_v50 = vld [vmem:[%s2678_s28 + $0x1b8] sm:$0xff] }
 0x15e   : > { %1888 = vst.msk [vmem:[%s2696_s9 + $0x1a0] sm:$0xff] %vm1835_vm2, %v1823_v54  ;;  %v1504_v61 = vadd.f32 %v1440_v37, %v1376_v55  ;;  %v1667_v55 = vld [vmem:[%s2678_s28 + $0xc0] sm:$0xff] }
 0x15f   : > { %1857 = vst.msk [vmem:[%s2696_s9 + $0xa8] sm:$0xff] %vm1835_vm2, %v1792_v57  ;;  %v1473_v21 = vadd.f32 %v1409_v56, %v1345_v59  ;;  %v1057_v4 = vpop.f32.mrf.mxu2 }
 0x160   : > { %v1632_v3 = vadd.f32 %v1568_v58, %v1504_v61  ;;  %v1227_v6 = vadd.f32 %v1226_v11, %v1057_v4  ;;  %v979_v51 = vpop.f32.mrf.mxu0  ;;  %v1410_v11 = vld [vmem:[%s2659_s18 + $0xb8] sm:$0xff] }
 0x161   : > { %v1601_v7 = vadd.f32 %v1537_v62, %v1473_v21  ;;  %v1149_v8 = vadd.f32 %v1148_v40, %v979_v51 }
 0x162   : > { %v1760_v12 = vadd.f32 %v1696_v42, %v1632_v3  ;;  %v1309_v13 = vmul.f32 %v3020_v47, %v1227_v6  ;;  %v1443_v42 = vld [vmem:[%s2659_s18 + $0x1c0] sm:$0xff] }
 0x163   : > { %v1729_v14 = vadd.f32 %v1665_v63, %v1601_v7  ;;  %v1278_v17 = vmul.f32 %v3020_v47, %v1149_v8  ;;  %v1412_v63 = vld [vmem:[%s2659_s18 + $0xc8] sm:$0xff]  ;;  %v1571_v7 = vld [vmem:[%s2670_s25 + $0x1c0] sm:$0xff] }
 0x164   : > { %v1824_v2 = vmax.f32 %v1760_v12, 0.0  ;;  %v1377_v18 = vadd.f32 %v3030_v53, %v1309_v13  ;;  %v1233_v39 = vpop.f32.mrf.mxu3  ;;  %v1540_v13 = vld [vmem:[%s2670_s25 + $0xc8] sm:$0xff] }
 0x165   : > { %v1151_v19 = vpop.f32.mrf.mxu1  ;;  %v1793_v20 = vmax.f32 %v1729_v14, 0.0  ;;  %v1346_v23 = vadd.f32 %v3030_v53, %v1278_v17  ;;  %v1699_v14 = vld [vmem:[%s2678_s28 + $0x1c0] sm:$0xff] }
 0x166   : > { %1889 = vst.msk [vmem:[%s2696_s9 + $0x1a8] sm:$0xff] %vm1835_vm2, %v1824_v2  ;;  %v1505_v24 = vadd.f32 %v1441_v15, %v1377_v18  ;;  %v1668_v18 = vld [vmem:[%s2678_s28 + $0xc8] sm:$0xff] }
 0x167   : > { %1858 = vst.msk [vmem:[%s2696_s9 + $0xb0] sm:$0xff] %vm1835_vm2, %v1793_v20  ;;  %v1474_v27 = vadd.f32 %v1410_v11, %v1346_v23  ;;  %v1059_v29 = vpop.f32.mrf.mxu2 }
 0x168   : > { %v1633_v0 = vadd.f32 %v1569_v22, %v1505_v24  ;;  %v1229_v31 = vadd.f32 %v1228_v41, %v1059_v29  ;;  %v982_v16 = vpop.f32.mrf.mxu0  ;;  %v1411_v41 = vld [vmem:[%s2659_s18 + $0xc0] sm:$0xff] }
 0x169   : > { %v1602_v32 = vadd.f32 %v1538_v25, %v1474_v27  ;;  %v1152_v34 = vadd.f32 %v1151_v19, %v982_v16 }
 0x16a   : > { %v1761_v35 = vadd.f32 %v1697_v26, %v1633_v0  ;;  %v1310_v36 = vmul.f32 %v3020_v47, %v1229_v31  ;;  %v1444_v26 = vld [vmem:[%s2659_s18 + $0x1c8] sm:$0xff] }
 0x16b   : > { %v1730_v5 = vadd.f32 %v1666_v30, %v1602_v32  ;;  %v1279_v38 = vmul.f32 %v3020_v47, %v1152_v34  ;;  %v1413_v30 = vld [vmem:[%s2659_s18 + $0xd0] sm:$0xff]  ;;  %v1572_v32 = vld [vmem:[%s2670_s25 + $0x1c8] sm:$0xff] }
 0x16c   : > { %v1825_v28 = vmax.f32 %v1761_v35, 0.0  ;;  %v1378_v43 = vadd.f32 %v3030_v53, %v1310_v36  ;;  %v1541_v36 = vld [vmem:[%s2670_s25 + $0xd0] sm:$0xff] }
 0x16d   : > { %v1153_v44 = vpop.f32.mrf.mxu1  ;;  %v1794_v45 = vmax.f32 %v1730_v5, 0.0  ;;  %v1347_v1 = vadd.f32 %v3030_v53, %v1279_v38  ;;  %v1700_v5 = vld [vmem:[%s2678_s28 + $0x1c8] sm:$0xff] }
 0x16e   : > { %1890 = vst.msk [vmem:[%s2696_s9 + $0x1b0] sm:$0xff] %vm1835_vm2, %v1825_v28  ;;  %v1506_v48 = vadd.f32 %v1442_v60, %v1378_v43  ;;  %v1669_v43 = vld [vmem:[%s2678_s28 + $0xd0] sm:$0xff] }
 0x16f   : > { %1859 = vst.msk [vmem:[%s2696_s9 + $0xb8] sm:$0xff] %vm1835_vm2, %v1794_v45  ;;  %v1475_v37 = vadd.f32 %v1411_v41, %v1347_v1  ;;  %v1062_v52 = vpop.f32.mrf.mxu2 }
 0x170   : > { %v1634_v54 = vadd.f32 %v1570_v46, %v1506_v48  ;;  %v1232_v56 = vadd.f32 %v1231_v10, %v1062_v52  ;;  %v984_v40 = vpop.f32.mrf.mxu0  ;;  %v1236_v10 = vpop.f32.mrf.mxu3 }
 0x171   : > { %v1603_v57 = vadd.f32 %v1539_v49, %v1475_v37  ;;  %v1154_v58 = vadd.f32 %v1153_v44, %v984_v40 }
 0x172   : > { %v1762_v59 = vadd.f32 %v1698_v50, %v1634_v54  ;;  %v1311_v61 = vmul.f32 %v3020_v47, %v1232_v56  ;;  %v1445_v50 = vld [vmem:[%s2659_s18 + $0x1d0] sm:$0xff] }
 0x173   : > { %v1731_v62 = vadd.f32 %v1667_v55, %v1603_v57  ;;  %v1280_v21 = vmul.f32 %v3020_v47, %v1154_v58  ;;  %v1414_v55 = vld [vmem:[%s2659_s18 + $0xd8] sm:$0xff]  ;;  %v1573_v57 = vld [vmem:[%s2670_s25 + $0x1d0] sm:$0xff] }
 0x174   : > { %v1826_v4 = vmax.f32 %v1762_v59, 0.0  ;;  %v1379_v3 = vadd.f32 %v3030_v53, %v1311_v61  ;;  %v1542_v61 = vld [vmem:[%s2670_s25 + $0xd8] sm:$0xff] }
 0x175   : > { %v1156_v6 = vpop.f32.mrf.mxu1  ;;  %v1795_v51 = vmax.f32 %v1731_v62, 0.0  ;;  %v1348_v8 = vadd.f32 %v3030_v53, %v1280_v21  ;;  %v1701_v62 = vld [vmem:[%s2678_s28 + $0x1d0] sm:$0xff] }
 0x176   : > { %1891 = vst.msk [vmem:[%s2696_s9 + $0x1b8] sm:$0xff] %vm1835_vm2, %v1826_v4  ;;  %v1507_v12 = vadd.f32 %v1443_v42, %v1379_v3  ;;  %v1670_v3 = vld [vmem:[%s2678_s28 + $0xd8] sm:$0xff] }
 0x177   : > { %1860 = vst.msk [vmem:[%s2696_s9 + $0xc0] sm:$0xff] %vm1835_vm2, %v1795_v51  ;;  %v1476_v15 = vadd.f32 %v1412_v63, %v1348_v8  ;;  %v1064_v17 = vpop.f32.mrf.mxu2 }
 0x178   : > { %v1635_v2 = vadd.f32 %v1571_v7, %v1507_v12  ;;  %v1234_v11 = vadd.f32 %v1233_v39, %v1064_v17  ;;  %v987_v19 = vpop.f32.mrf.mxu0  ;;  %v1238_v39 = vpop.f32.mrf.mxu3 }
 0x179   : > { %v1604_v20 = vadd.f32 %v1540_v13, %v1476_v15  ;;  %v1157_v22 = vadd.f32 %v1156_v6, %v987_v19 }
 0x17a   : > { %v1763_v23 = vadd.f32 %v1699_v14, %v1635_v2  ;;  %v1312_v24 = vmul.f32 %v3020_v47, %v1234_v11  ;;  %v1446_v14 = vld [vmem:[%s2659_s18 + $0x1d8] sm:$0xff] }
 0x17b   : > { %v1732_v25 = vadd.f32 %v1668_v18, %v1604_v20  ;;  %v1281_v27 = vmul.f32 %v3020_v47, %v1157_v22  ;;  %v1415_v18 = vld [vmem:[%s2659_s18 + $0xe0] sm:$0xff]  ;;  %v1574_v20 = vld [vmem:[%s2670_s25 + $0x1d8] sm:$0xff] }
 0x17c   : > { %v1827_v29 = vmax.f32 %v1763_v23, 0.0  ;;  %v1380_v0 = vadd.f32 %v3030_v53, %v1312_v24  ;;  %v1543_v24 = vld [vmem:[%s2670_s25 + $0xe0] sm:$0xff] }
 0x17d   : > { %v1158_v31 = vpop.f32.mrf.mxu1  ;;  %v1796_v16 = vmax.f32 %v1732_v25, 0.0  ;;  %v1349_v34 = vadd.f32 %v3030_v53, %v1281_v27  ;;  %v1702_v25 = vld [vmem:[%s2678_s28 + $0x1d8] sm:$0xff] }
 0x17e   : > { %1892 = vst.msk [vmem:[%s2696_s9 + $0x1c0] sm:$0xff] %vm1835_vm2, %v1827_v29  ;;  %v1508_v35 = vadd.f32 %v1444_v26, %v1380_v0  ;;  %v1671_v0 = vld [vmem:[%s2678_s28 + $0xe0] sm:$0xff] }
 0x17f   : > { %1861 = vst.msk [vmem:[%s2696_s9 + $0xc8] sm:$0xff] %vm1835_vm2, %v1796_v16  ;;  %v1477_v60 = vadd.f32 %v1413_v30, %v1349_v34  ;;  %v1067_v38 = vpop.f32.mrf.mxu2 }
 0x180   : > { %v1636_v28 = vadd.f32 %v1572_v32, %v1508_v35  ;;  %v1237_v41 = vadd.f32 %v1236_v10, %v1067_v38  ;;  %v989_v44 = vpop.f32.mrf.mxu0  ;;  %v1241_v8 = vpop.f32.mrf.mxu3 }
 0x181   : > { %v1605_v45 = vadd.f32 %v1541_v36, %v1477_v60  ;;  %v1159_v46 = vadd.f32 %v1158_v31, %v989_v44 }
 0x182   : > { %v1764_v1 = vadd.f32 %v1700_v5, %v1636_v28  ;;  %v1313_v48 = vmul.f32 %v3020_v47, %v1237_v41  ;;  %v1447_v5 = vld [vmem:[%s2659_s18 + $0x1e0] sm:$0xff] }
 0x183   : > { %v1733_v49 = vadd.f32 %v1669_v43, %v1605_v45  ;;  %v1282_v37 = vmul.f32 %v3020_v47, %v1159_v46  ;;  %v1416_v43 = vld [vmem:[%s2659_s18 + $0xe8] sm:$0xff]  ;;  %v1575_v45 = vld [vmem:[%s2670_s25 + $0x1e0] sm:$0xff] }
 0x184   : > { %v1828_v52 = vmax.f32 %v1764_v1, 0.0  ;;  %v1381_v54 = vadd.f32 %v3030_v53, %v1313_v48  ;;  %v1544_v48 = vld [vmem:[%s2670_s25 + $0xe8] sm:$0xff] }
 0x185   : > { %v1161_v56 = vpop.f32.mrf.mxu1  ;;  %v1797_v40 = vmax.f32 %v1733_v49, 0.0  ;;  %v1350_v58 = vadd.f32 %v3030_v53, %v1282_v37  ;;  %v1703_v49 = vld [vmem:[%s2678_s28 + $0x1e0] sm:$0xff] }
 0x186   : > { %1893 = vst.msk [vmem:[%s2696_s9 + $0x1c8] sm:$0xff] %vm1835_vm2, %v1828_v52  ;;  %v1509_v59 = vadd.f32 %v1445_v50, %v1381_v54  ;;  %v1672_v54 = vld [vmem:[%s2678_s28 + $0xe8] sm:$0xff] }
 0x187   : > { %1862 = vst.msk [vmem:[%s2696_s9 + $0xd0] sm:$0xff] %vm1835_vm2, %v1797_v40  ;;  %v1478_v42 = vadd.f32 %v1414_v55, %v1350_v58  ;;  %v1069_v21 = vpop.f32.mrf.mxu2 }
 0x188   : > { %v1637_v4 = vadd.f32 %v1573_v57, %v1509_v59  ;;  %v1239_v63 = vadd.f32 %v1238_v39, %v1069_v21  ;;  %v992_v6 = vpop.f32.mrf.mxu0  ;;  %v1243_v38 = vpop.f32.mrf.mxu3 }
 0x189   : > { %v1606_v51 = vadd.f32 %v1542_v61, %v1478_v42  ;;  %v1162_v7 = vadd.f32 %v1161_v56, %v992_v6 }
 0x18a   : > { %v1765_v10 = vadd.f32 %v1701_v62, %v1637_v4  ;;  %v1314_v12 = vmul.f32 %v3020_v47, %v1239_v63  ;;  %v1448_v62 = vld [vmem:[%s2659_s18 + $0x1e8] sm:$0xff] }
 0x18b   : > { %v1734_v13 = vadd.f32 %v1670_v3, %v1606_v51  ;;  %v1283_v15 = vmul.f32 %v3020_v47, %v1162_v7  ;;  %v1417_v3 = vld [vmem:[%s2659_s18 + $0xf0] sm:$0xff]  ;;  %v1576_v51 = vld [vmem:[%s2670_s25 + $0x1e8] sm:$0xff] }
 0x18c   : > { %v1829_v17 = vmax.f32 %v1765_v10, 0.0  ;;  %v1382_v2 = vadd.f32 %v3030_v53, %v1314_v12  ;;  %v1545_v12 = vld [vmem:[%s2670_s25 + $0xf0] sm:$0xff] }
 0x18d   : > { %v1163_v11 = vpop.f32.mrf.mxu1  ;;  %v1798_v19 = vmax.f32 %v1734_v13, 0.0  ;;  %v1351_v22 = vadd.f32 %v3030_v53, %v1283_v15  ;;  %v1704_v13 = vld [vmem:[%s2678_s28 + $0x1e8] sm:$0xff] }
 0x18e   : > { %1894 = vst.msk [vmem:[%s2696_s9 + $0x1d0] sm:$0xff] %vm1835_vm2, %v1829_v17  ;;  %v1510_v23 = vadd.f32 %v1446_v14, %v1382_v2  ;;  %v1673_v2 = vld [vmem:[%s2678_s28 + $0xf0] sm:$0xff] }
 0x18f   : > { %1863 = vst.msk [vmem:[%s2696_s9 + $0xd8] sm:$0xff] %vm1835_vm2, %v1798_v19  ;;  %v1479_v26 = vadd.f32 %v1415_v18, %v1351_v22  ;;  %v1072_v27 = vpop.f32.mrf.mxu2 }
 0x190   : > { %v1638_v29 = vadd.f32 %v1574_v20, %v1510_v23  ;;  %v1242_v30 = vadd.f32 %v1241_v8, %v1072_v27  ;;  %v994_v31 = vpop.f32.mrf.mxu0  ;;  %v1246_v8 = vpop.f32.mrf.mxu3 }
 0x191   : > { %v1607_v16 = vadd.f32 %v1543_v24, %v1479_v26  ;;  %v1164_v32 = vadd.f32 %v1163_v11, %v994_v31 }
 0x192   : > { %v1766_v34 = vadd.f32 %v1702_v25, %v1638_v29  ;;  %v1315_v35 = vmul.f32 %v3020_v47, %v1242_v30  ;;  %v1449_v25 = vld [vmem:[%s2659_s18 + $0x1f0] sm:$0xff] }
 0x193   : > { %v1735_v36 = vadd.f32 %v1671_v0, %v1607_v16  ;;  %v1284_v60 = vmul.f32 %v3020_v47, %v1164_v32  ;;  %v1418_v0 = vld [vmem:[%s2659_s18 + $0xf8] sm:$0xff]  ;;  %v1577_v16 = vld [vmem:[%s2670_s25 + $0x1f0] sm:$0xff] }
 0x194   : > { %v1830_v39 = vmax.f32 %v1766_v34, 0.0  ;;  %v1383_v28 = vadd.f32 %v3030_v53, %v1315_v35 }
 0x195   : > { %v1166_v41 = vpop.f32.mrf.mxu1  ;;  %v1799_v44 = vmax.f32 %v1735_v36, 0.0  ;;  %v1352_v46 = vadd.f32 %v3030_v53, %v1284_v60  ;;  %v1546_v36 = vld [vmem:[%s2670_s25 + $0xf8] sm:$0xff] }
 0x196   : > { %1895 = vst.msk [vmem:[%s2696_s9 + $0x1d8] sm:$0xff] %vm1835_vm2, %v1830_v39  ;;  %v1511_v1 = vadd.f32 %v1447_v5, %v1383_v28  ;;  %v1705_v5 = vld [vmem:[%s2678_s28 + $0x1f0] sm:$0xff] }
 0x197   : > { %1864 = vst.msk [vmem:[%s2696_s9 + $0xe0] sm:$0xff] %vm1835_vm2, %v1799_v44  ;;  %v1480_v50 = vadd.f32 %v1416_v43, %v1352_v46  ;;  %v1074_v37 = vpop.f32.mrf.mxu2  ;;  %v1419_v44 = vld [vmem:[%s2659_s18 + $0x100] sm:$0xff] }
 0x198   : > { %v1639_v52 = vadd.f32 %v1575_v45, %v1511_v1  ;;  %v1244_v55 = vadd.f32 %v1243_v38, %v1074_v37  ;;  %v997_v56 = vpop.f32.mrf.mxu0  ;;  %v1248_v39 = vpop.f32.mrf.mxu3 }
 0x199   : > { %v1608_v40 = vadd.f32 %v1544_v48, %v1480_v50  ;;  %v1167_v57 = vadd.f32 %v1166_v41, %v997_v56  ;;  %v1674_v41 = vld [vmem:[%s2678_s28 + $0xf8] sm:$0xff]  ;;  %v1547_v48 = vld [vmem:[%s2670_s25 + $0x100] sm:$0xff] }
 0x19a   : > { %v1767_v58 = vadd.f32 %v1703_v49, %v1639_v52  ;;  %v1316_v59 = vmul.f32 %v3020_v47, %v1244_v55  ;;  %v1450_v52 = vld [vmem:[%s2659_s18 + $0x1f8] sm:$0xff]  ;;  %v1675_v55 = vld [vmem:[%s2678_s28 + $0x100] sm:$0xff] }
 0x19b   : > { %v1736_v61 = vadd.f32 %v1672_v54, %v1608_v40  ;;  %v1285_v42 = vmul.f32 %v3020_v47, %v1167_v57 }
 0x19c   : > { %v1831_v21 = vmax.f32 %v1767_v58, 0.0  ;;  %v1384_v4 = vadd.f32 %v3030_v53, %v1316_v59  ;;  %v1578_v59 = vld [vmem:[%s2670_s25 + $0x1f8] sm:$0xff] }
 0x19d   : > { %v1168_v63 = vpop.f32.mrf.mxu1  ;;  %v1800_v6 = vmax.f32 %v1736_v61, 0.0  ;;  %v1353_v7 = vadd.f32 %v3030_v53, %v1285_v42 }
 0x19e   : > { %1896 = vst.msk [vmem:[%s2696_s9 + $0x1e0] sm:$0xff] %vm1835_vm2, %v1831_v21  ;;  %v1512_v10 = vadd.f32 %v1448_v62, %v1384_v4  ;;  %v1706_v21 = vld [vmem:[%s2678_s28 + $0x1f8] sm:$0xff] }
 0x19f   : > { %1865 = vst.msk [vmem:[%s2696_s9 + $0xe8] sm:$0xff] %vm1835_vm2, %v1800_v6  ;;  %v1481_v14 = vadd.f32 %v1417_v3, %v1353_v7  ;;  %v1077_v15 = vpop.f32.mrf.mxu2 }
 0x1a0   : > { %v1640_v17 = vadd.f32 %v1576_v51, %v1512_v10  ;;  %v1247_v18 = vadd.f32 %v1246_v8, %v1077_v15  ;;  %v999_v11 = vpop.f32.mrf.mxu0  ;;  %v1548_v8 = vld [vmem:[%s2670_s25 + $0x108] sm:$0xff] }
 0x1a1   : > { %v1609_v19 = vadd.f32 %v1545_v12, %v1481_v14  ;;  %v1169_v20 = vadd.f32 %v1168_v63, %v999_v11  ;;  %v1420_v63 = vld [vmem:[%s2659_s18 + $0x108] sm:$0xff] }
 0x1a2   : > { %v1768_v22 = vadd.f32 %v1704_v13, %v1640_v17  ;;  %v1317_v23 = vmul.f32 %v3020_v47, %v1247_v18  ;;  %v1676_v12 = vld [vmem:[%s2678_s28 + $0x108] sm:$0xff] }
 0x1a3   : > { %v1737_v24 = vadd.f32 %v1673_v2, %v1609_v19  ;;  %v1286_v26 = vmul.f32 %v3020_v47, %v1169_v20 }
 0x1a4   : > { %v1832_v27 = vmax.f32 %v1768_v22, 0.0  ;;  %v1385_v29 = vadd.f32 %v3030_v53, %v1317_v23 }
 0x1a5   : > { %v1171_v30 = vpop.f32.mrf.mxu1  ;;  %v1801_v31 = vmax.f32 %v1737_v24, 0.0  ;;  %v1354_v32 = vadd.f32 %v3030_v53, %v1286_v26 }
 0x1a6   : > { %v1172_v34 = vadd.f32 %v1171_v30, %v2682_v9  ;;  %1897 = vst.msk [vmem:[%s2696_s9 + $0x1e8] sm:$0xff] %vm1835_vm2, %v1832_v27  ;;  %v1513_v35 = vadd.f32 %v1449_v25, %v1385_v29 }
 0x1a7   : > { %1866 = vst.msk [vmem:[%s2696_s9 + $0xf0] sm:$0xff] %vm1835_vm2, %v1801_v31  ;;  %v1482_v60 = vadd.f32 %v1418_v0, %v1354_v32  ;;  %v1079_v28 = vpop.f32.mrf.mxu2 }
 0x1a8   : > { %v1287_v38 = vmul.f32 %v3020_v47, %v1172_v34  ;;  %v1641_v43 = vadd.f32 %v1577_v16, %v1513_v35  ;;  %v1249_v9 = vadd.f32 %v1248_v39, %v1079_v28 }
 0x1a9   : > { %v1610_v45 = vadd.f32 %v1546_v36, %v1482_v60 }
 0x1aa   : > { %v1355_v46 = vadd.f32 %v3030_v53, %v1287_v38  ;;  %v1769_v1 = vadd.f32 %v1705_v5, %v1641_v43  ;;  %v1318_v49 = vmul.f32 %v3020_v47, %v1249_v9 }
 0x1ab   : > { %v1738_v50 = vadd.f32 %v1674_v41, %v1610_v45 }
 0x1ac   : > { %v1483_v37 = vadd.f32 %v1419_v44, %v1355_v46  ;;  %v1833_v54 = vmax.f32 %v1769_v1, 0.0  ;;  %v1386_v56 = vadd.f32 %v3030_v53, %v1318_v49 }
 0x1ad   : > { %v1173_v40 = vpop.f32.mrf.mxu1  ;;  %v1802_v57 = vmax.f32 %v1738_v50, 0.0 }
 0x1ae   : > { %v1611_v58 = vadd.f32 %v1547_v48, %v1483_v37  ;;  %v1174_v61 = vadd.f32 %v1173_v40, %v2707_v33  ;;  %1898 = vst.msk [vmem:[%s2696_s9 + $0x1f0] sm:$0xff] %vm1835_vm2, %v1833_v54  ;;  %v1514_v62 = vadd.f32 %v1450_v52, %v1386_v56 }
 0x1af   : > { %1867 = vst.msk [vmem:[%s2696_s9 + $0xf8] sm:$0xff] %vm1835_vm2, %v1802_v57 }
 0x1b0   : > { %v1739_v42 = vadd.f32 %v1675_v55, %v1611_v58  ;;  %v1288_v4 = vmul.f32 %v3020_v47, %v1174_v61  ;;  %v1642_v3 = vadd.f32 %v1578_v59, %v1514_v62 }
 0x1b2   : > { %v1803_v6 = vmax.f32 %v1739_v42, 0.0  ;;  %v1356_v51 = vadd.f32 %v3030_v53, %v1288_v4  ;;  %v1770_v7 = vadd.f32 %v1706_v21, %v1642_v3 }
 0x1b4   : > { %1868 = vst.msk [vmem:[%s2696_s9 + $0x100] sm:$0xff] %vm1835_vm2, %v1803_v6  ;;  %v1484_v33 = vadd.f32 %v1420_v63, %v1356_v51  ;;  %v1834_v10 = vmax.f32 %v1770_v7, 0.0 }
 0x1b6   : > { %v1612_v13 = vadd.f32 %v1548_v8, %v1484_v33  ;;  %1899 = vst.msk [vmem:[%s2696_s9 + $0x1f8] sm:$0xff] %vm1835_vm2, %v1834_v10 }
 0x1b8   : > { %v1740_v14 = vadd.f32 %v1676_v12, %v1612_v13 }
 0x1ba   : > { %v1804_v15 = vmax.f32 %v1740_v14, 0.0 }
 0x1bc   : > { %1869 = vst.msk [vmem:[%s2696_s9 + $0x108] sm:$0xff] %vm1835_vm2, %v1804_v15 }
 0x1bd PF: > { %s17_s24 = sadd.s32 1, %s2460_s24  }
 0x1be   : > { %p14_p4 = scmp.ge.s32.totalorder %s17_s24, 4  }
 0x1c0   :  { %16 = sbr.rel (!%p14_p4) target bundleno = 1 (0x1), region = 87 }

// kernel: rec3_forward.28
= control target key start
LH: loop header
LB: loop body
LE: loop exit
PB: predicated region body
PF: predicated region fallthrough
CT: control target
= control target key end

     0   :  { %s740_s15 = smov 0   ;;  %s852_s0 = inlined_call_operand.vmem [shape: bf16[16,432], index: 0, kind: input, shape index: {}]   ;;  %s853_s1 = inlined_call_operand.vmem [shape: bf16[432,32], index: 1, kind: input, shape index: {}]   ;;  %s854_s2 = inlined_call_operand.vmem [shape: f32[1,32], index: 2, kind: input, shape index: {}]   ;;  %s855_s3 = inlined_call_operand.vmem [shape: f32[1,32], index: 3, kind: input, shape index: {}]   ;;  %s856_s4 = inlined_call_operand.vmem [shape: f32[16,32], index: 4, kind: output, shape index: {}]  }
   0x1 LB: > { %s550_s16 = sadd.s32 4294967295, %s713_s15   ;;  %p554_p0 = scmp.ge.s32.totalorder %s713_s15, 1  ;;  %s713_s15 = sphi %s740_s15, %s14_s15  }
   0x2   : > { %p162_p1 = scmp.lt.s32.totalorder %s713_s15, 3 }
   0x4   : > { %p163_p2 = pnand %p554_p0, %p162_p1 }
   0x5   : > { %p187_p3 = scmp.lt.s32.totalorder (!%p163_p2), %s550_s16, 1 }
   0x6   : > { %166 = sbr.rel (%p163_p2) target bundleno = 188 (0xbc), region = 36 }
   0xb   : > { %v677_v0 = vld [vmem:[%s853_s1 + $0x38] sm:$0xff]  ;;  %v676_v3 = vld [vmem:[%s853_s1 + $0x30] sm:$0xff]  ;;  %s858_s16 = smov (!%p187_p3, %s550_s16), 1  ;;  %v675_v7 = vld [vmem:[%s853_s1 + $0x28] sm:$0xff]  ;;  %vm428_vm0 = vcmask 392192   ;;  %vm495_vm1 = vcmask 261120  }
   0xc   : > { %v685_v1 = vld [vmem:[%s853_s1 + $0x78] sm:$0xff]  ;;  %432 = vmatpush.bf16.msra.mxu0 %v677_v0  ;;  %v684_v4 = vld [vmem:[%s853_s1 + $0x70] sm:$0xff]  ;;  %s669_s5 = sshll.u32 %s858_s16, 4  ;;  %v683_v8 = vld [vmem:[%s853_s1 + $0x68] sm:$0xff] }
   0xd   : > { %v693_v2 = vld [vmem:[%s853_s1 + $0xb8] sm:$0xff]  ;;  %445 = vmatpush.bf16.msra.mxu1 %v685_v1  ;;  %v692_v5 = vld [vmem:[%s853_s1 + $0xb0] sm:$0xff]  ;;  %s775_s8 = scalar_lea.vmem %s852_s0, %s669_s5  ;;  %v691_v9 = vld [vmem:[%s853_s1 + $0xa8] sm:$0xff]  ;;  %s557_s5 = sshll.u32 %s858_s16, 3 }
   0xe   : > { %458 = vmatpush.bf16.msra.mxu2 %v693_v2  ;;  %v696_v6 = vld [vmem:[%s853_s1 + $0xd0] sm:$0xff]  ;;  %v695_v10 = vld [vmem:[%s853_s1 + $0xc8] sm:$0xff]  ;;  %v674_v12 = vld [vmem:[%s853_s1 + $0x20] sm:$0xff]  ;;  %s195_s9 = scalar_lea.vmem %s856_s4, %s557_s5 }
   0xf   : > { %476 = vmatpush.bf16.msra.mxu3 %v696_v6  ;;  %v198_v11 = vld [vmem:[%s775_s8 + $0x8] sm:$0xff]  ;;  %v682_v13 = vld [vmem:[%s853_s1 + $0x60] sm:$0xff]  ;;  %v673_v17 = vld [vmem:[%s853_s1 + $0x18] sm:$0xff] }
  0x10   : > { %433 = vmatpush.bf16.msra.mxu0 %v676_v3  ;;  %v690_v14 = vld [vmem:[%s853_s1 + $0xa0] sm:$0xff]  ;;  %v258_v16 = vunpack.c.h.b16 %v198_v11  ;;  %v681_v18 = vld [vmem:[%s853_s1 + $0x58] sm:$0xff]  ;;  %v672_v21 = vld [vmem:[%s853_s1 + $0x10] sm:$0xff]  ;;  %v257_v32 = vunpack.c.l.b16 %v198_v11 }
  0x11   : > { %446 = vmatpush.bf16.msra.mxu1 %v684_v4  ;;  %v694_v15 = vld [vmem:[%s853_s1 + $0xc0] sm:$0xff]  ;;  %v689_v19 = vld [vmem:[%s853_s1 + $0x98] sm:$0xff]  ;;  %v680_v22 = vld [vmem:[%s853_s1 + $0x50] sm:$0xff] }
  0x12   : > { %459 = vmatpush.bf16.msra.mxu2 %v692_v5  ;;  %v262_v20 = vpack.c.b16 %v258_v16, %v258_v16  ;;  %v688_v23 = vld [vmem:[%s853_s1 + $0x90] sm:$0xff]  ;;  %v671_v24 = vld [vmem:[%s853_s1 + $0x8] sm:$0xff]  ;;  %v197_v26 = vld [vmem:[%s775_s8] sm:$0xff]  ;;  %v261_v36 = vpack.c.b16 %v257_v32, %v257_v32 }
  0x13   : > { %477 = vmatpush.bf16.msra.mxu3 %v695_v10  ;;  %v679_v25 = vld [vmem:[%s853_s1 + $0x48] sm:$0xff]  ;;  %v255_v28 = vunpack.c.l.b16 %v197_v26  ;;  %v256_v29 = vunpack.c.h.b16 %v197_v26  ;;  %v670_v30 = vld [vmem:[%s853_s1] sm:$0xff] }
  0x14   : > { %434 = vmatpush.bf16.msra.mxu0 %v675_v7  ;;  %v687_v27 = vld [vmem:[%s853_s1 + $0x88] sm:$0xff]  ;;  %v678_v31 = vld [vmem:[%s853_s1 + $0x40] sm:$0xff] }
  0x15   : > { %447 = vmatpush.bf16.msra.mxu1 %v683_v8  ;;  %v686_v33 = vld [vmem:[%s853_s1 + $0x80] sm:$0xff]  ;;  %v259_v34 = vpack.c.b16 %v255_v28, %v255_v28  ;;  %v260_v35 = vpack.c.b16 %v256_v29, %v256_v29 }
  0x16   : > { %460 = vmatpush.bf16.msra.mxu2 %v691_v9  ;;  %v705_v44 = vld [vmem:[%s854_s2] ss:$0 sm:$0xff] }
  0x17   : > { %478 = vmatpush.bf16.msra.mxu3 %v694_v15  ;;  %v706_v48 = vld [vmem:[%s855_s3] ss:$0 sm:$0xff] }
  0x18   : > { %435 = vmatpush.bf16.msra.mxu0 %v674_v12 }
  0x19   : > { %448 = vmatpush.bf16.msra.mxu1 %v682_v13 }
  0x1a   : > { %461 = vmatpush.bf16.msra.mxu2 %v690_v14  ;;  %666 = vmatmul.msk.bf16.vlgmr.msra.gmra.mxu3 %vm428_vm0, %v262_v20 }
  0x1c   : > { %436 = vmatpush.bf16.msra.mxu0 %v673_v17 }
  0x1d   : > { %449 = vmatpush.bf16.msra.mxu1 %v681_v18 }
  0x1e   : > { %462 = vmatpush.bf16.msra.mxu2 %v689_v19 }
  0x20   : > { %437 = vmatpush.bf16.msra.mxu0 %v672_v21 }
  0x21   : > { %450 = vmatpush.bf16.msra.mxu1 %v680_v22 }
  0x22   : > { %463 = vmatpush.bf16.msra.mxu2 %v688_v23 }
  0x24   : > { %438 = vmatpush.bf16.msra.mxu0 %v671_v24 }
  0x25   : > { %451 = vmatpush.bf16.msra.mxu1 %v679_v25 }
  0x26   : > { %464 = vmatpush.bf16.msra.mxu2 %v687_v27 }
  0x28   : > { %439 = vmatpush.bf16.msra.mxu0 %v670_v30 }
  0x29   : > { %452 = vmatpush.bf16.msra.mxu1 %v678_v31 }
  0x2a   : > { %465 = vmatpush.bf16.msra.mxu2 %v686_v33 }
  0x2b   : > { %440 = vmatmul.bf16.vlgmr.msra.gmra.mxu0 %v259_v34 }
  0x2c   : > { %453 = vmatmul.bf16.vlgmr.msra.gmra.mxu1 %v260_v35 }
  0x2d   : > { %466 = vmatmul.bf16.vlgmr.msra.gmra.mxu2 %v261_v36 }
  0x9d   : > { %v480_v37 = vpop.f32.mrf.mxu3 }
  0xa5   : > { %v482_v40 = vpop.f32.mrf.mxu3 }
  0xa8   : > { %v441_v38 = vpop.f32.mrf.mxu0 }
  0xa9   : > { %v454_v39 = vpop.f32.mrf.mxu1 }
  0xaa   : > { %v455_v41 = vadd.f32 %v454_v39, %v441_v38 }
  0xb0   : > { %v467_v42 = vpop.f32.mrf.mxu2  ;;  %v443_v45 = vpop.f32.mrf.mxu0 }
  0xb1   : > { %v468_v43 = vadd.f32 %v467_v42, %v455_v41  ;;  %v456_v46 = vpop.f32.mrf.mxu1 }
  0xb3   : > { %v481_v47 = vadd.f32 %v480_v37, %v468_v43 }
  0xb5   : > { %v488_v49 = vmul.f32 %v705_v44, %v481_v47 }
  0xb7   : > { %v493_v50 = vadd.f32 %v706_v48, %v488_v49 }
  0xb8   : > { %v469_v51 = vpop.f32.mrf.mxu2 }
  0xb9   : > { %v494_v52 = vmax.f32 %v493_v50, 0.0 }
  0xbb   : > { %496 = vst.msk [vmem:[%s195_s9] sm:$0xff] %vm495_vm1, %v494_v52 }
  0xbc PF: > { %s14_s15 = sadd.s32 1, %s713_s15  }
  0xbd   : > { %p11_p4 = scmp.ge.s32.totalorder %s14_s15, 4  }
  0xbf   :  { %13 = sbr.rel (!%p11_p4) target bundleno = 1 (0x1), region = 66 }

// kernel: rec3_forward.29
= control target key start
LH: loop header
LB: loop body
LE: loop exit
PB: predicated region body
PF: predicated region fallthrough
CT: control target
= control target key end

     0   :  { %s1141_s15 = smov 0   ;;  %s1340_s0 = inlined_call_operand.vmem [shape: bf16[16,864], index: 0, kind: input, shape index: {}]   ;;  %s1341_s1 = inlined_call_operand.vmem [shape: bf16[864,32], index: 1, kind: input, shape index: {}]   ;;  %s1342_s2 = inlined_call_operand.vmem [shape: f32[1,32], index: 2, kind: input, shape index: {}]   ;;  %s1343_s3 = inlined_call_operand.vmem [shape: f32[1,32], index: 3, kind: input, shape index: {}]   ;;  %s1344_s4 = inlined_call_operand.vmem [shape: f32[16,32], index: 4, kind: output, shape index: {}]  }
   0x1 LB: > { %s817_s16 = sadd.s32 4294967295, %s1114_s15   ;;  %p821_p0 = scmp.ge.s32.totalorder %s1114_s15, 1  ;;  %s1114_s15 = sphi %s1141_s15, %s14_s15  }
   0x2   : > { %p162_p1 = scmp.lt.s32.totalorder %s1114_s15, 3 }
   0x4   : > { %p163_p2 = pnand %p821_p0, %p162_p1 }
   0x5   : > { %p187_p3 = scmp.lt.s32.totalorder (!%p163_p2), %s817_s16, 1 }
   0x6   : > { %166 = sbr.rel (%p163_p2) target bundleno = 212 (0xd4), region = 36 }
   0xb   : > { %v1050_v0 = vld [vmem:[%s1341_s1 + $0x38] sm:$0xff]  ;;  %v1049_v3 = vld [vmem:[%s1341_s1 + $0x30] sm:$0xff]  ;;  %v1048_v8 = vld [vmem:[%s1341_s1 + $0x28] sm:$0xff]  ;;  %s1346_s16 = smov (!%p187_p3, %s817_s16), 1  ;;  %vm657_vm0 = vcmask 785408   ;;  %vm762_vm1 = vcmask 261120  }
   0xc   : > { %v1058_v1 = vld [vmem:[%s1341_s1 + $0x78] sm:$0xff]  ;;  %661 = vmatpush.bf16.msra.mxu0 %v1050_v0  ;;  %v1057_v4 = vld [vmem:[%s1341_s1 + $0x70] sm:$0xff]  ;;  %v1056_v9 = vld [vmem:[%s1341_s1 + $0x68] sm:$0xff]  ;;  %s1097_s5 = smul.u32 28, %s1346_s16  ;;  %s823_s10 = sshll.u32 %s1346_s16, 3 }
   0xd   : > { %v1066_v2 = vld [vmem:[%s1341_s1 + $0xb8] sm:$0xff]  ;;  %674 = vmatpush.bf16.msra.mxu1 %v1058_v1  ;;  %v1065_v5 = vld [vmem:[%s1341_s1 + $0xb0] sm:$0xff]  ;;  %v1064_v10 = vld [vmem:[%s1341_s1 + $0xa8] sm:$0xff]  ;;  %s195_s17 = scalar_lea.vmem %s1344_s4, %s823_s10 }
   0xe   : > { %687 = vmatpush.bf16.msra.mxu2 %v1066_v2  ;;  %v1074_v6 = vld [vmem:[%s1341_s1 + $0xf8] sm:$0xff]  ;;  %v1073_v7 = vld [vmem:[%s1341_s1 + $0xf0] sm:$0xff]  ;;  %v1072_v11 = vld [vmem:[%s1341_s1 + $0xe8] sm:$0xff]  ;;  %s1228_s18 = scalar_lea.vmem %s1340_s0, %s1097_s5 }
   0xf   : > { %700 = vmatpush.bf16.msra.mxu3 %v1074_v6  ;;  %v1047_v12 = vld [vmem:[%s1341_s1 + $0x20] sm:$0xff]  ;;  %v1046_v16 = vld [vmem:[%s1341_s1 + $0x18] sm:$0xff]  ;;  %v1045_v20 = vld [vmem:[%s1341_s1 + $0x10] sm:$0xff] }
  0x10   : > { %662 = vmatpush.bf16.msra.mxu0 %v1049_v3  ;;  %v1055_v13 = vld [vmem:[%s1341_s1 + $0x60] sm:$0xff]  ;;  %v1054_v17 = vld [vmem:[%s1341_s1 + $0x58] sm:$0xff]  ;;  %v1053_v21 = vld [vmem:[%s1341_s1 + $0x50] sm:$0xff] }
  0x11   : > { %675 = vmatpush.bf16.msra.mxu1 %v1057_v4  ;;  %v1063_v14 = vld [vmem:[%s1341_s1 + $0xa0] sm:$0xff]  ;;  %v1062_v18 = vld [vmem:[%s1341_s1 + $0x98] sm:$0xff]  ;;  %v1061_v22 = vld [vmem:[%s1341_s1 + $0x90] sm:$0xff] }
  0x12   : > { %688 = vmatpush.bf16.msra.mxu2 %v1065_v5  ;;  %v1071_v15 = vld [vmem:[%s1341_s1 + $0xe0] sm:$0xff]  ;;  %v1070_v19 = vld [vmem:[%s1341_s1 + $0xd8] sm:$0xff]  ;;  %v1069_v23 = vld [vmem:[%s1341_s1 + $0xd0] sm:$0xff] }
  0x13   : > { %701 = vmatpush.bf16.msra.mxu3 %v1073_v7  ;;  %v1044_v24 = vld [vmem:[%s1341_s1 + $0x8] sm:$0xff]  ;;  %v197_v26 = vld [vmem:[%s1228_s18] sm:$0xff]  ;;  %v1082_v36 = vld [vmem:[%s1341_s1 + $0x138] sm:$0xff] }
  0x14   : > { %663 = vmatpush.bf16.msra.mxu0 %v1048_v8  ;;  %v1052_v25 = vld [vmem:[%s1341_s1 + $0x48] sm:$0xff]  ;;  %v313_v30 = vunpack.c.l.b16 %v197_v26  ;;  %v314_v31 = vunpack.c.h.b16 %v197_v26  ;;  %v1043_v32 = vld [vmem:[%s1341_s1] sm:$0xff]  ;;  %v1090_v37 = vld [vmem:[%s1341_s1 + $0x178] sm:$0xff] }
  0x15   : > { %676 = vmatpush.bf16.msra.mxu1 %v1056_v9  ;;  %v1060_v27 = vld [vmem:[%s1341_s1 + $0x88] sm:$0xff]  ;;  %v1051_v33 = vld [vmem:[%s1341_s1 + $0x40] sm:$0xff]  ;;  %v1081_v44 = vld [vmem:[%s1341_s1 + $0x130] sm:$0xff] }
  0x16   : > { %689 = vmatpush.bf16.msra.mxu2 %v1064_v10  ;;  %v198_v28 = vld [vmem:[%s1228_s18 + $0x8] sm:$0xff]  ;;  %v1059_v35 = vld [vmem:[%s1341_s1 + $0x80] sm:$0xff]  ;;  %v320_v39 = vpack.c.b16 %v313_v30, %v313_v30  ;;  %v321_v40 = vpack.c.b16 %v314_v31, %v314_v31  ;;  %v1089_v45 = vld [vmem:[%s1341_s1 + $0x170] sm:$0xff] }
  0x17   : > { %702 = vmatpush.bf16.msra.mxu3 %v1072_v11  ;;  %v1068_v29 = vld [vmem:[%s1341_s1 + $0xc8] sm:$0xff]  ;;  %v315_v34 = vunpack.c.l.b16 %v198_v28  ;;  %v316_v41 = vunpack.c.h.b16 %v198_v28  ;;  %v1067_v43 = vld [vmem:[%s1341_s1 + $0xc0] sm:$0xff]  ;;  %v1094_v50 = vld [vmem:[%s1341_s1 + $0x198] sm:$0xff] }
  0x18   : > { %664 = vmatpush.bf16.msra.mxu0 %v1047_v12  ;;  %v1096_v38 = vld [vmem:[%s1341_s1 + $0x1a8] sm:$0xff]  ;;  %v1095_v46 = vld [vmem:[%s1341_s1 + $0x1a0] sm:$0xff]  ;;  %v1093_v53 = vld [vmem:[%s1341_s1 + $0x190] sm:$0xff] }
  0x19   : > { %677 = vmatpush.bf16.msra.mxu1 %v1055_v13  ;;  %v322_v42 = vpack.c.b16 %v315_v34, %v315_v34  ;;  %v323_v47 = vpack.c.b16 %v316_v41, %v316_v41  ;;  %v1080_v48 = vld [vmem:[%s1341_s1 + $0x128] sm:$0xff]  ;;  %v1079_v51 = vld [vmem:[%s1341_s1 + $0x120] sm:$0xff]  ;;  %v1078_v54 = vld [vmem:[%s1341_s1 + $0x118] sm:$0xff] }
  0x1a   : > { %690 = vmatpush.bf16.msra.mxu2 %v1063_v14  ;;  %v1088_v49 = vld [vmem:[%s1341_s1 + $0x168] sm:$0xff]  ;;  %v1087_v52 = vld [vmem:[%s1341_s1 + $0x160] sm:$0xff]  ;;  %v1086_v55 = vld [vmem:[%s1341_s1 + $0x158] sm:$0xff] }
  0x1b   : > { %703 = vmatpush.bf16.msra.mxu3 %v1071_v15  ;;  %v1092_v56 = vld [vmem:[%s1341_s1 + $0x188] sm:$0xff]  ;;  %v200_v57 = vld [vmem:[%s1228_s18 + $0x18] sm:$0xf]  ;;  %v1077_v58 = vld [vmem:[%s1341_s1 + $0x110] sm:$0xff] }
  0x1c   : > { %665 = vmatpush.bf16.msra.mxu0 %v1046_v16  ;;  %v319_v59 = vunpack.c.l.b16 %v200_v57  ;;  %v1085_v60 = vld [vmem:[%s1341_s1 + $0x150] sm:$0xff]  ;;  %v1091_v61 = vld [vmem:[%s1341_s1 + $0x180] sm:$0xff]  ;;  %v1076_v63 = vld [vmem:[%s1341_s1 + $0x108] sm:$0xff] }
  0x1d   : > { %678 = vmatpush.bf16.msra.mxu1 %v1054_v17  ;;  %v199_v0 = vld [vmem:[%s1228_s18 + $0x10] sm:$0xff]  ;;  %v1084_v1 = vld [vmem:[%s1341_s1 + $0x148] sm:$0xff]  ;;  %v1075_v3 = vld [vmem:[%s1341_s1 + $0x100] sm:$0xff] }
  0x1e   : > { %691 = vmatpush.bf16.msra.mxu2 %v1062_v18  ;;  %v326_v62 = vpack.c.b16 %v319_v59, %v319_v59  ;;  %v317_v2 = vunpack.c.l.b16 %v199_v0  ;;  %v318_v4 = vunpack.c.h.b16 %v199_v0  ;;  %v1083_v5 = vld [vmem:[%s1341_s1 + $0x140] sm:$0xff] }
  0x1f   : > { %704 = vmatpush.bf16.msra.mxu3 %v1070_v19  ;;  %v1107_v26 = vld [vmem:[%s1343_s3] ss:$0 sm:$0xff] }
  0x20   : > { %666 = vmatpush.bf16.msra.mxu0 %v1045_v20  ;;  %v324_v6 = vpack.c.b16 %v317_v2, %v317_v2  ;;  %v325_v7 = vpack.c.b16 %v318_v4, %v318_v4 }
  0x21   : > { %679 = vmatpush.bf16.msra.mxu1 %v1053_v21 }
  0x22   : > { %692 = vmatpush.bf16.msra.mxu2 %v1061_v22 }
  0x23   : > { %705 = vmatpush.bf16.msra.mxu3 %v1069_v23 }
  0x24   : > { %667 = vmatpush.bf16.msra.mxu0 %v1044_v24  ;;  %v1106_v24 = vld [vmem:[%s1342_s2] ss:$0 sm:$0xff] }
  0x25   : > { %680 = vmatpush.bf16.msra.mxu1 %v1052_v25 }
  0x26   : > { %693 = vmatpush.bf16.msra.mxu2 %v1060_v27 }
  0x27   : > { %706 = vmatpush.bf16.msra.mxu3 %v1068_v29 }
  0x28   : > { %668 = vmatpush.bf16.msra.mxu0 %v1043_v32 }
  0x29   : > { %681 = vmatpush.bf16.msra.mxu1 %v1051_v33 }
  0x2a   : > { %694 = vmatpush.bf16.msra.mxu2 %v1059_v35 }
  0x2b   : > { %669 = vmatmul.bf16.vlgmr.msra.gmra.mxu0 %v320_v39  ;;  %707 = vmatpush.bf16.msra.mxu3 %v1067_v43 }
  0x2c   : > { %713 = vmatpush.bf16.msrb.mxu0 %v1082_v36  ;;  %682 = vmatmul.bf16.vlgmr.msra.gmra.mxu1 %v321_v40 }
  0x2d   : > { %726 = vmatpush.bf16.msrb.mxu1 %v1090_v37  ;;  %695 = vmatmul.bf16.vlgmr.msra.gmra.mxu2 %v322_v42 }
  0x2e   : > { %741 = vmatpush.bf16.msrb.mxu2 %v1096_v38  ;;  %708 = vmatmul.bf16.vlgmr.msra.gmra.mxu3 %v323_v47 }
  0x30   : > { %714 = vmatpush.bf16.msrb.mxu0 %v1081_v44 }
  0x31   : > { %727 = vmatpush.bf16.msrb.mxu1 %v1089_v45 }
  0x32   : > { %742 = vmatpush.bf16.msrb.mxu2 %v1095_v46 }
  0x34   : > { %715 = vmatpush.bf16.msrb.mxu0 %v1080_v48 }
  0x35   : > { %728 = vmatpush.bf16.msrb.mxu1 %v1088_v49 }
  0x36   : > { %743 = vmatpush.bf16.msrb.mxu2 %v1094_v50 }
  0x38   : > { %716 = vmatpush.bf16.msrb.mxu0 %v1079_v51 }
  0x39   : > { %729 = vmatpush.bf16.msrb.mxu1 %v1087_v52 }
  0x3a   : > { %744 = vmatpush.bf16.msrb.mxu2 %v1093_v53 }
  0x3c   : > { %717 = vmatpush.bf16.msrb.mxu0 %v1078_v54 }
  0x3d   : > { %730 = vmatpush.bf16.msrb.mxu1 %v1086_v55 }
  0x3e   : > { %745 = vmatpush.bf16.msrb.mxu2 %v1092_v56 }
  0x40   : > { %718 = vmatpush.bf16.msrb.mxu0 %v1077_v58 }
  0x41   : > { %731 = vmatpush.bf16.msrb.mxu1 %v1085_v60 }
  0x42   : > { %746 = vmatpush.bf16.msrb.mxu2 %v1091_v61 }
  0x44   : > { %719 = vmatpush.bf16.msrb.mxu0 %v1076_v63 }
  0x45   : > { %1040 = vmatmul.msk.bf16.vlgmr.msrb.gmra.mxu2 %vm657_vm0, %v326_v62  ;;  %732 = vmatpush.bf16.msrb.mxu1 %v1084_v1 }
  0x48   : > { %720 = vmatpush.bf16.msrb.mxu0 %v1075_v3 }
  0x49   : > { %733 = vmatpush.bf16.msrb.mxu1 %v1083_v5 }
  0x4b   : > { %721 = vmatmul.bf16.vlgmr.msrb.gmra.mxu0 %v324_v6 }
  0x4c   : > { %734 = vmatmul.bf16.vlgmr.msrb.gmra.mxu1 %v325_v7 }
  0xa8   : > { %v670_v8 = vpop.f32.mrf.mxu0 }
  0xa9   : > { %v683_v9 = vpop.f32.mrf.mxu1 }
  0xaa   : > { %v684_v16 = vadd.f32 %v683_v9, %v670_v8 }
  0xb0   : > { %v696_v10 = vpop.f32.mrf.mxu2  ;;  %v672_v11 = vpop.f32.mrf.mxu0 }
  0xb1   : > { %v685_v12 = vpop.f32.mrf.mxu1  ;;  %v709_v13 = vpop.f32.mrf.mxu3  ;;  %v697_v17 = vadd.f32 %v696_v10, %v684_v16 }
  0xb3   : > { %v710_v18 = vadd.f32 %v709_v13, %v697_v17 }
  0xb8   : > { %v698_v14 = vpop.f32.mrf.mxu2 }
  0xb9   : > { %v711_v15 = vpop.f32.mrf.mxu3 }
  0xc8   : > { %v748_v19 = vpop.f32.mrf.mxu2  ;;  %v722_v20 = vpop.f32.mrf.mxu0 }
  0xc9   : > { %v723_v21 = vadd.f32 %v722_v20, %v710_v18  ;;  %v735_v22 = vpop.f32.mrf.mxu1 }
  0xcb   : > { %v736_v23 = vadd.f32 %v735_v22, %v723_v21 }
  0xcd   : > { %v749_v25 = vadd.f32 %v748_v19, %v736_v23 }
  0xcf   : > { %v756_v27 = vmul.f32 %v1106_v24, %v749_v25 }
  0xd0   : > { %v750_v28 = vpop.f32.mrf.mxu2  ;;  %v724_v29 = vpop.f32.mrf.mxu0 }
  0xd1   : > { %v761_v30 = vadd.f32 %v1107_v26, %v756_v27  ;;  %v737_v31 = vpop.f32.mrf.mxu1 }
  0xd3   : > { %763 = vst.msk [vmem:[%s195_s17] sm:$0xff] %vm762_vm1, %v761_v30 }
  0xd4 PF: > { %s14_s15 = sadd.s32 1, %s1114_s15  }
  0xd5   : > { %p11_p4 = scmp.ge.s32.totalorder %s14_s15, 4  }
  0xd7   :  { %13 = sbr.rel (!%p11_p4) target bundleno = 1 (0x1), region = 66 }

// kernel: rec3_forward.30
= control target key start
LH: loop header
LB: loop body
LE: loop exit
PB: predicated region body
PF: predicated region fallthrough
CT: control target
= control target key end

     0   :  { %s1142_s15 = smov 0   ;;  %s1341_s0 = inlined_call_operand.vmem [shape: bf16[16,864], index: 0, kind: input, shape index: {}]   ;;  %s1342_s1 = inlined_call_operand.vmem [shape: bf16[864,32], index: 1, kind: input, shape index: {}]   ;;  %s1343_s2 = inlined_call_operand.vmem [shape: f32[1,32], index: 2, kind: input, shape index: {}]   ;;  %s1344_s3 = inlined_call_operand.vmem [shape: f32[1,32], index: 3, kind: input, shape index: {}]   ;;  %s1345_s4 = inlined_call_operand.vmem [shape: f32[16,32], index: 4, kind: output, shape index: {}]  }
   0x1 LB: > { %s818_s16 = sadd.s32 4294967295, %s1115_s15   ;;  %p822_p0 = scmp.ge.s32.totalorder %s1115_s15, 1  ;;  %s1115_s15 = sphi %s1142_s15, %s14_s15  }
   0x2   : > { %p162_p1 = scmp.lt.s32.totalorder %s1115_s15, 3 }
   0x4   : > { %p163_p2 = pnand %p822_p0, %p162_p1 }
   0x5   : > { %p187_p3 = scmp.lt.s32.totalorder (!%p163_p2), %s818_s16, 1 }
   0x6   : > { %166 = sbr.rel (%p163_p2) target bundleno = 214 (0xd6), region = 36 }
   0xb   : > { %v1051_v0 = vld [vmem:[%s1342_s1 + $0x38] sm:$0xff]  ;;  %v1050_v3 = vld [vmem:[%s1342_s1 + $0x30] sm:$0xff]  ;;  %v1049_v8 = vld [vmem:[%s1342_s1 + $0x28] sm:$0xff]  ;;  %s1347_s16 = smov (!%p187_p3, %s818_s16), 1  ;;  %vm657_vm0 = vcmask 785408   ;;  %vm763_vm1 = vcmask 261120  }
   0xc   : > { %v1059_v1 = vld [vmem:[%s1342_s1 + $0x78] sm:$0xff]  ;;  %661 = vmatpush.bf16.msra.mxu0 %v1051_v0  ;;  %v1058_v4 = vld [vmem:[%s1342_s1 + $0x70] sm:$0xff]  ;;  %v1057_v9 = vld [vmem:[%s1342_s1 + $0x68] sm:$0xff]  ;;  %s1098_s5 = smul.u32 28, %s1347_s16  ;;  %s824_s12 = sshll.u32 %s1347_s16, 3 }
   0xd   : > { %v1067_v2 = vld [vmem:[%s1342_s1 + $0xb8] sm:$0xff]  ;;  %674 = vmatpush.bf16.msra.mxu1 %v1059_v1  ;;  %v1066_v5 = vld [vmem:[%s1342_s1 + $0xb0] sm:$0xff]  ;;  %v1065_v10 = vld [vmem:[%s1342_s1 + $0xa8] sm:$0xff]  ;;  %s195_s17 = scalar_lea.vmem %s1345_s4, %s824_s12 }
   0xe   : > { %687 = vmatpush.bf16.msra.mxu2 %v1067_v2  ;;  %v1075_v6 = vld [vmem:[%s1342_s1 + $0xf8] sm:$0xff]  ;;  %v1074_v7 = vld [vmem:[%s1342_s1 + $0xf0] sm:$0xff]  ;;  %v1073_v11 = vld [vmem:[%s1342_s1 + $0xe8] sm:$0xff]  ;;  %s1229_s18 = scalar_lea.vmem %s1341_s0, %s1098_s5 }
   0xf   : > { %700 = vmatpush.bf16.msra.mxu3 %v1075_v6  ;;  %v1048_v12 = vld [vmem:[%s1342_s1 + $0x20] sm:$0xff]  ;;  %v1047_v16 = vld [vmem:[%s1342_s1 + $0x18] sm:$0xff]  ;;  %v1046_v20 = vld [vmem:[%s1342_s1 + $0x10] sm:$0xff] }
  0x10   : > { %662 = vmatpush.bf16.msra.mxu0 %v1050_v3  ;;  %v1056_v13 = vld [vmem:[%s1342_s1 + $0x60] sm:$0xff]  ;;  %v1055_v17 = vld [vmem:[%s1342_s1 + $0x58] sm:$0xff]  ;;  %v1054_v21 = vld [vmem:[%s1342_s1 + $0x50] sm:$0xff] }
  0x11   : > { %675 = vmatpush.bf16.msra.mxu1 %v1058_v4  ;;  %v1064_v14 = vld [vmem:[%s1342_s1 + $0xa0] sm:$0xff]  ;;  %v1063_v18 = vld [vmem:[%s1342_s1 + $0x98] sm:$0xff]  ;;  %v1062_v22 = vld [vmem:[%s1342_s1 + $0x90] sm:$0xff] }
  0x12   : > { %688 = vmatpush.bf16.msra.mxu2 %v1066_v5  ;;  %v1072_v15 = vld [vmem:[%s1342_s1 + $0xe0] sm:$0xff]  ;;  %v1071_v19 = vld [vmem:[%s1342_s1 + $0xd8] sm:$0xff]  ;;  %v1070_v23 = vld [vmem:[%s1342_s1 + $0xd0] sm:$0xff] }
  0x13   : > { %701 = vmatpush.bf16.msra.mxu3 %v1074_v7  ;;  %v1045_v24 = vld [vmem:[%s1342_s1 + $0x8] sm:$0xff]  ;;  %v197_v26 = vld [vmem:[%s1229_s18] sm:$0xff]  ;;  %v1083_v36 = vld [vmem:[%s1342_s1 + $0x138] sm:$0xff] }
  0x14   : > { %663 = vmatpush.bf16.msra.mxu0 %v1049_v8  ;;  %v1053_v25 = vld [vmem:[%s1342_s1 + $0x48] sm:$0xff]  ;;  %v313_v30 = vunpack.c.l.b16 %v197_v26  ;;  %v314_v31 = vunpack.c.h.b16 %v197_v26  ;;  %v1044_v32 = vld [vmem:[%s1342_s1] sm:$0xff]  ;;  %v1091_v37 = vld [vmem:[%s1342_s1 + $0x178] sm:$0xff] }
  0x15   : > { %676 = vmatpush.bf16.msra.mxu1 %v1057_v9  ;;  %v1061_v27 = vld [vmem:[%s1342_s1 + $0x88] sm:$0xff]  ;;  %v1052_v33 = vld [vmem:[%s1342_s1 + $0x40] sm:$0xff]  ;;  %v1082_v44 = vld [vmem:[%s1342_s1 + $0x130] sm:$0xff] }
  0x16   : > { %689 = vmatpush.bf16.msra.mxu2 %v1065_v10  ;;  %v198_v28 = vld [vmem:[%s1229_s18 + $0x8] sm:$0xff]  ;;  %v1060_v35 = vld [vmem:[%s1342_s1 + $0x80] sm:$0xff]  ;;  %v320_v39 = vpack.c.b16 %v313_v30, %v313_v30  ;;  %v321_v40 = vpack.c.b16 %v314_v31, %v314_v31  ;;  %v1090_v45 = vld [vmem:[%s1342_s1 + $0x170] sm:$0xff] }
  0x17   : > { %702 = vmatpush.bf16.msra.mxu3 %v1073_v11  ;;  %v1069_v29 = vld [vmem:[%s1342_s1 + $0xc8] sm:$0xff]  ;;  %v315_v34 = vunpack.c.l.b16 %v198_v28  ;;  %v316_v41 = vunpack.c.h.b16 %v198_v28  ;;  %v1068_v43 = vld [vmem:[%s1342_s1 + $0xc0] sm:$0xff]  ;;  %v1095_v50 = vld [vmem:[%s1342_s1 + $0x198] sm:$0xff] }
  0x18   : > { %664 = vmatpush.bf16.msra.mxu0 %v1048_v12  ;;  %v1097_v38 = vld [vmem:[%s1342_s1 + $0x1a8] sm:$0xff]  ;;  %v1096_v46 = vld [vmem:[%s1342_s1 + $0x1a0] sm:$0xff]  ;;  %v1094_v53 = vld [vmem:[%s1342_s1 + $0x190] sm:$0xff] }
  0x19   : > { %677 = vmatpush.bf16.msra.mxu1 %v1056_v13  ;;  %v322_v42 = vpack.c.b16 %v315_v34, %v315_v34  ;;  %v323_v47 = vpack.c.b16 %v316_v41, %v316_v41  ;;  %v1081_v48 = vld [vmem:[%s1342_s1 + $0x128] sm:$0xff]  ;;  %v1080_v51 = vld [vmem:[%s1342_s1 + $0x120] sm:$0xff]  ;;  %v1079_v54 = vld [vmem:[%s1342_s1 + $0x118] sm:$0xff] }
  0x1a   : > { %690 = vmatpush.bf16.msra.mxu2 %v1064_v14  ;;  %v1089_v49 = vld [vmem:[%s1342_s1 + $0x168] sm:$0xff]  ;;  %v1088_v52 = vld [vmem:[%s1342_s1 + $0x160] sm:$0xff]  ;;  %v1087_v55 = vld [vmem:[%s1342_s1 + $0x158] sm:$0xff] }
  0x1b   : > { %703 = vmatpush.bf16.msra.mxu3 %v1072_v15  ;;  %v1093_v56 = vld [vmem:[%s1342_s1 + $0x188] sm:$0xff]  ;;  %v200_v57 = vld [vmem:[%s1229_s18 + $0x18] sm:$0xf]  ;;  %v1078_v58 = vld [vmem:[%s1342_s1 + $0x110] sm:$0xff] }
  0x1c   : > { %665 = vmatpush.bf16.msra.mxu0 %v1047_v16  ;;  %v319_v59 = vunpack.c.l.b16 %v200_v57  ;;  %v1086_v60 = vld [vmem:[%s1342_s1 + $0x150] sm:$0xff]  ;;  %v1092_v61 = vld [vmem:[%s1342_s1 + $0x180] sm:$0xff]  ;;  %v1077_v63 = vld [vmem:[%s1342_s1 + $0x108] sm:$0xff] }
  0x1d   : > { %678 = vmatpush.bf16.msra.mxu1 %v1055_v17  ;;  %v199_v0 = vld [vmem:[%s1229_s18 + $0x10] sm:$0xff]  ;;  %v1085_v1 = vld [vmem:[%s1342_s1 + $0x148] sm:$0xff]  ;;  %v1076_v3 = vld [vmem:[%s1342_s1 + $0x100] sm:$0xff] }
  0x1e   : > { %691 = vmatpush.bf16.msra.mxu2 %v1063_v18  ;;  %v326_v62 = vpack.c.b16 %v319_v59, %v319_v59  ;;  %v317_v2 = vunpack.c.l.b16 %v199_v0  ;;  %v318_v4 = vunpack.c.h.b16 %v199_v0  ;;  %v1084_v5 = vld [vmem:[%s1342_s1 + $0x140] sm:$0xff] }
  0x1f   : > { %704 = vmatpush.bf16.msra.mxu3 %v1071_v19  ;;  %v1108_v26 = vld [vmem:[%s1344_s3] ss:$0 sm:$0xff] }
  0x20   : > { %666 = vmatpush.bf16.msra.mxu0 %v1046_v20  ;;  %v324_v6 = vpack.c.b16 %v317_v2, %v317_v2  ;;  %v325_v7 = vpack.c.b16 %v318_v4, %v318_v4 }
  0x21   : > { %679 = vmatpush.bf16.msra.mxu1 %v1054_v21 }
  0x22   : > { %692 = vmatpush.bf16.msra.mxu2 %v1062_v22 }
  0x23   : > { %705 = vmatpush.bf16.msra.mxu3 %v1070_v23 }
  0x24   : > { %667 = vmatpush.bf16.msra.mxu0 %v1045_v24  ;;  %v1107_v24 = vld [vmem:[%s1343_s2] ss:$0 sm:$0xff] }
  0x25   : > { %680 = vmatpush.bf16.msra.mxu1 %v1053_v25 }
  0x26   : > { %693 = vmatpush.bf16.msra.mxu2 %v1061_v27 }
  0x27   : > { %706 = vmatpush.bf16.msra.mxu3 %v1069_v29 }
  0x28   : > { %668 = vmatpush.bf16.msra.mxu0 %v1044_v32 }
  0x29   : > { %681 = vmatpush.bf16.msra.mxu1 %v1052_v33 }
  0x2a   : > { %694 = vmatpush.bf16.msra.mxu2 %v1060_v35 }
  0x2b   : > { %669 = vmatmul.bf16.vlgmr.msra.gmra.mxu0 %v320_v39  ;;  %707 = vmatpush.bf16.msra.mxu3 %v1068_v43 }
  0x2c   : > { %713 = vmatpush.bf16.msrb.mxu0 %v1083_v36  ;;  %682 = vmatmul.bf16.vlgmr.msra.gmra.mxu1 %v321_v40 }
  0x2d   : > { %726 = vmatpush.bf16.msrb.mxu1 %v1091_v37  ;;  %695 = vmatmul.bf16.vlgmr.msra.gmra.mxu2 %v322_v42 }
  0x2e   : > { %741 = vmatpush.bf16.msrb.mxu2 %v1097_v38  ;;  %708 = vmatmul.bf16.vlgmr.msra.gmra.mxu3 %v323_v47 }
  0x30   : > { %714 = vmatpush.bf16.msrb.mxu0 %v1082_v44 }
  0x31   : > { %727 = vmatpush.bf16.msrb.mxu1 %v1090_v45 }
  0x32   : > { %742 = vmatpush.bf16.msrb.mxu2 %v1096_v46 }
  0x34   : > { %715 = vmatpush.bf16.msrb.mxu0 %v1081_v48 }
  0x35   : > { %728 = vmatpush.bf16.msrb.mxu1 %v1089_v49 }
  0x36   : > { %743 = vmatpush.bf16.msrb.mxu2 %v1095_v50 }
  0x38   : > { %716 = vmatpush.bf16.msrb.mxu0 %v1080_v51 }
  0x39   : > { %729 = vmatpush.bf16.msrb.mxu1 %v1088_v52 }
  0x3a   : > { %744 = vmatpush.bf16.msrb.mxu2 %v1094_v53 }
  0x3c   : > { %717 = vmatpush.bf16.msrb.mxu0 %v1079_v54 }
  0x3d   : > { %730 = vmatpush.bf16.msrb.mxu1 %v1087_v55 }
  0x3e   : > { %745 = vmatpush.bf16.msrb.mxu2 %v1093_v56 }
  0x40   : > { %718 = vmatpush.bf16.msrb.mxu0 %v1078_v58 }
  0x41   : > { %731 = vmatpush.bf16.msrb.mxu1 %v1086_v60 }
  0x42   : > { %746 = vmatpush.bf16.msrb.mxu2 %v1092_v61 }
  0x44   : > { %719 = vmatpush.bf16.msrb.mxu0 %v1077_v63 }
  0x45   : > { %1041 = vmatmul.msk.bf16.vlgmr.msrb.gmra.mxu2 %vm657_vm0, %v326_v62  ;;  %732 = vmatpush.bf16.msrb.mxu1 %v1085_v1 }
  0x48   : > { %720 = vmatpush.bf16.msrb.mxu0 %v1076_v3 }
  0x49   : > { %733 = vmatpush.bf16.msrb.mxu1 %v1084_v5 }
  0x4b   : > { %721 = vmatmul.bf16.vlgmr.msrb.gmra.mxu0 %v324_v6 }
  0x4c   : > { %734 = vmatmul.bf16.vlgmr.msrb.gmra.mxu1 %v325_v7 }
  0xa8   : > { %v670_v8 = vpop.f32.mrf.mxu0 }
  0xa9   : > { %v683_v9 = vpop.f32.mrf.mxu1 }
  0xaa   : > { %v684_v16 = vadd.f32 %v683_v9, %v670_v8 }
  0xb0   : > { %v696_v10 = vpop.f32.mrf.mxu2  ;;  %v672_v11 = vpop.f32.mrf.mxu0 }
  0xb1   : > { %v685_v12 = vpop.f32.mrf.mxu1  ;;  %v709_v13 = vpop.f32.mrf.mxu3  ;;  %v697_v17 = vadd.f32 %v696_v10, %v684_v16 }
  0xb3   : > { %v710_v18 = vadd.f32 %v709_v13, %v697_v17 }
  0xb8   : > { %v698_v14 = vpop.f32.mrf.mxu2 }
  0xb9   : > { %v711_v15 = vpop.f32.mrf.mxu3 }
  0xc8   : > { %v748_v19 = vpop.f32.mrf.mxu2  ;;  %v722_v20 = vpop.f32.mrf.mxu0 }
  0xc9   : > { %v723_v21 = vadd.f32 %v722_v20, %v710_v18  ;;  %v735_v22 = vpop.f32.mrf.mxu1 }
  0xcb   : > { %v736_v23 = vadd.f32 %v735_v22, %v723_v21 }
  0xcd   : > { %v749_v25 = vadd.f32 %v748_v19, %v736_v23 }
  0xcf   : > { %v756_v27 = vmul.f32 %v1107_v24, %v749_v25 }
  0xd0   : > { %v750_v28 = vpop.f32.mrf.mxu2  ;;  %v724_v29 = vpop.f32.mrf.mxu0 }
  0xd1   : > { %v761_v30 = vadd.f32 %v1108_v26, %v756_v27  ;;  %v737_v31 = vpop.f32.mrf.mxu1 }
  0xd3   : > { %v762_v32 = vmax.f32 %v761_v30, 0.0 }
  0xd5   : > { %764 = vst.msk [vmem:[%s195_s17] sm:$0xff] %vm763_vm1, %v762_v32 }
  0xd6 PF: > { %s14_s15 = sadd.s32 1, %s1115_s15  }
  0xd7   : > { %p11_p4 = scmp.ge.s32.totalorder %s14_s15, 4  }
  0xd9   :  { %13 = sbr.rel (!%p11_p4) target bundleno = 1 (0x1), region = 66 }

// kernel: rec3_forward.31
= control target key start
LH: loop header
LB: loop body
LE: loop exit
PB: predicated region body
PF: predicated region fallthrough
CT: control target
= control target key end

     0   :  { %11 = vsyncpa [#allocation3], 0  ;;  %s1649_s0 = inlined_call_operand.vmem [shape: bf16[16,864], index: 0, kind: input, shape index: {}]   ;;  %s1650_s1 = inlined_call_operand.vmem [shape: bf16[864,32], index: 1, kind: input, shape index: {}]   ;;  %s1651_s2 = inlined_call_operand.vmem [shape: f32[1,32], index: 2, kind: input, shape index: {}]   ;;  %s1652_s3 = inlined_call_operand.vmem [shape: f32[1,32], index: 3, kind: input, shape index: {}]   ;;  %s1653_s4 = inlined_call_operand.vmem [shape: f32[16,32], index: 4, kind: input, shape index: {}]   ;;  %s1654_s5 = inlined_call_operand.vmem [shape: f32[16,32], index: 5, kind: input, shape index: {}]   ;;  %s1655_s6 = inlined_call_operand.hbm [shape: f32[16,32], index: 6, kind: output, shape index: {}]  }
   0x1   :  { %13 = vsyncpa [#allocation3 + $0x1], 0  ;;  %s1380_s21 = smov 0   ;;  %s1382_s22 = smov 0  }
   0x2   :  { %s1384_s23 = smov 0   ;;  %s1386_s24 = smov 0  }
   0x3 LB: > { %s1401_s25 = sadd.s32 4294967295, %s1343_s24   ;;  %s956_s26 = sadd.s32 4294967294, %s1343_s24   ;;  %s1343_s24 = sphi %s1386_s24, %s1661_s24   ;;  %s1339_s23 = sphi %s1384_s23, %s1660_s23   ;;  %s1335_s22 = sphi %s1382_s22, %s1659_s22   ;;  %s1331_s21 = sphi %s1380_s21, %s1658_s21  }
   0x4   : > { %s1405_s27 = sadd.s32 1, %s1343_s24   ;;  %s167_s28 = sadd.s32 1, %s1339_s23 }
   0x5   : > { %s164_s29 = ssub.s32 %s1343_s24, %s1405_s27  ;;  %p177_p0 = scmp.ne.s32.totalorder %s1339_s23, %s1335_s22 }
   0x6   : > { %p165_p1 = scmp.eq.s32.totalorder %s164_s29, 0  ;;  %p178_p2 = scmp.eq.s32.totalorder %s1401_s25, 1 }
   0x7   : > { %p183_p3 = scmp.ne.s32.totalorder %s1335_s22, %s1331_s21  ;;  %p184_p4 = scmp.eq.s32.totalorder %s956_s26, 1 }
   0x8   : > { %s1416_s30 = scalar_select %p165_p1, %s1339_s23, %s167_s28  }
   0x9   : > { %p1418_p5 = por %p178_p2, %p177_p0  ;;  %p1422_p6 = por %p184_p4, %p183_p3 }
   0xa   : > { %p959_p7 = scmp.ge.s32.totalorder %s1343_s24, 1  ;;  %p233_p8 = scmp.lt.s32.totalorder %s1343_s24, 3 }
   0xc   : > { %p234_p9 = pnand %p959_p7, %p233_p8 }
   0xd   : > { %p271_p10 = scmp.lt.s32.totalorder (!%p234_p9), %s1401_s25, 1  ;;  %s268_s14 = sand.u32 (!%p234_p9), 1, %s1335_s22  }
   0xe   : > { %237 = sbr.rel (%p234_p9) target bundleno = 228 (0xe4), region = 44  ;;  %s960_s28 = sshll.u32 (!%p234_p9), %s268_s14, 3 }
   0xf   : > { %s270_s16 = scalar_lea.vmem (!%p234_p9), [#allocation2], %s960_s28  ;;  %s1301_s28 = scalar_lea.hbm (!%p234_p9), %s1655_s6, 16 }
  0x10   : > { %s870_s17 = sshll.u32 (!%p234_p9), %s270_s16, 4  ;;  %s871_s17 = int_to_ptr.vmem [resolvable:$true] %s870_s17 }
  0x13   : > { %v1192_v0 = vld [vmem:[%s1650_s1 + $0x38] sm:$0xff]  ;;  %v1191_v3 = vld [vmem:[%s1650_s1 + $0x30] sm:$0xff]  ;;  %v1190_v8 = vld [vmem:[%s1650_s1 + $0x28] sm:$0xff]  ;;  %s1475_s9 = scalar_select %p271_p10, %s1401_s25, 1  ;;  %vm745_vm0 = vcmask 785408   ;;  %vm855_vm1 = vcmask 261120  }
  0x14   : > { %v1200_v1 = vld [vmem:[%s1650_s1 + $0x78] sm:$0xff]  ;;  %749 = vmatpush.bf16.msra.mxu0 %v1192_v0  ;;  %v1199_v4 = vld [vmem:[%s1650_s1 + $0x70] sm:$0xff]  ;;  %v1198_v9 = vld [vmem:[%s1650_s1 + $0x68] sm:$0xff] }
  0x15   : > { %v1208_v2 = vld [vmem:[%s1650_s1 + $0xb8] sm:$0xff]  ;;  %762 = vmatpush.bf16.msra.mxu1 %v1200_v1  ;;  %v1207_v5 = vld [vmem:[%s1650_s1 + $0xb0] sm:$0xff]  ;;  %v1206_v10 = vld [vmem:[%s1650_s1 + $0xa8] sm:$0xff]  ;;  %s1239_s18 = smul.u32 28, %s1475_s9 }
  0x16   : > { %775 = vmatpush.bf16.msra.mxu2 %v1208_v2  ;;  %v1216_v6 = vld [vmem:[%s1650_s1 + $0xf8] sm:$0xff]  ;;  %v1215_v7 = vld [vmem:[%s1650_s1 + $0xf0] sm:$0xff]  ;;  %v1214_v11 = vld [vmem:[%s1650_s1 + $0xe8] sm:$0xff] }
  0x17   : > { %788 = vmatpush.bf16.msra.mxu3 %v1216_v6  ;;  %v1189_v12 = vld [vmem:[%s1650_s1 + $0x20] sm:$0xff]  ;;  %v1188_v16 = vld [vmem:[%s1650_s1 + $0x18] sm:$0xff]  ;;  %v1187_v20 = vld [vmem:[%s1650_s1 + $0x10] sm:$0xff]  ;;  %s1505_s15 = scalar_lea.vmem %s1649_s0, %s1239_s18  ;;  %s1182_s18 = sshll.u32 %s1401_s25, 3 }
  0x18   : > { %750 = vmatpush.bf16.msra.mxu0 %v1191_v3  ;;  %v1197_v13 = vld [vmem:[%s1650_s1 + $0x60] sm:$0xff]  ;;  %v1196_v17 = vld [vmem:[%s1650_s1 + $0x58] sm:$0xff]  ;;  %v1195_v21 = vld [vmem:[%s1650_s1 + $0x50] sm:$0xff]  ;;  %s868_s13 = scalar_lea.hbm %s1655_s6, %s1182_s18 }
  0x19   : > { %763 = vmatpush.bf16.msra.mxu1 %v1199_v4  ;;  %v1205_v14 = vld [vmem:[%s1650_s1 + $0xa0] sm:$0xff]  ;;  %v1204_v18 = vld [vmem:[%s1650_s1 + $0x98] sm:$0xff]  ;;  %v1203_v22 = vld [vmem:[%s1650_s1 + $0x90] sm:$0xff]  ;;  %s872_s25 = sshll.u32 %s868_s13, 4  ;;  %s873_s25 = int_to_ptr.hbm [resolvable:$true] %s872_s25 }
  0x1a   : > { %776 = vmatpush.bf16.msra.mxu2 %v1207_v5  ;;  %v1213_v15 = vld [vmem:[%s1650_s1 + $0xe0] sm:$0xff]  ;;  %v1212_v19 = vld [vmem:[%s1650_s1 + $0xd8] sm:$0xff]  ;;  %v1211_v23 = vld [vmem:[%s1650_s1 + $0xd0] sm:$0xff] }
  0x1b   : > { %789 = vmatpush.bf16.msra.mxu3 %v1215_v7  ;;  %v1186_v24 = vld [vmem:[%s1650_s1 + $0x8] sm:$0xff]  ;;  %v285_v26 = vld [vmem:[%s1505_s15] sm:$0xff]  ;;  %v1224_v36 = vld [vmem:[%s1650_s1 + $0x138] sm:$0xff] }
  0x1c   : > { %751 = vmatpush.bf16.msra.mxu0 %v1190_v8  ;;  %v1194_v25 = vld [vmem:[%s1650_s1 + $0x48] sm:$0xff]  ;;  %v401_v30 = vunpack.c.l.b16 %v285_v26  ;;  %v402_v31 = vunpack.c.h.b16 %v285_v26  ;;  %v1185_v32 = vld [vmem:[%s1650_s1] sm:$0xff]  ;;  %v1232_v37 = vld [vmem:[%s1650_s1 + $0x178] sm:$0xff] }
  0x1d   : > { %764 = vmatpush.bf16.msra.mxu1 %v1198_v9  ;;  %v1202_v27 = vld [vmem:[%s1650_s1 + $0x88] sm:$0xff]  ;;  %v1193_v33 = vld [vmem:[%s1650_s1 + $0x40] sm:$0xff]  ;;  %v1223_v44 = vld [vmem:[%s1650_s1 + $0x130] sm:$0xff] }
  0x1e   : > { %777 = vmatpush.bf16.msra.mxu2 %v1206_v10  ;;  %v286_v28 = vld [vmem:[%s1505_s15 + $0x8] sm:$0xff]  ;;  %v1201_v35 = vld [vmem:[%s1650_s1 + $0x80] sm:$0xff]  ;;  %v408_v39 = vpack.c.b16 %v401_v30, %v401_v30  ;;  %v409_v40 = vpack.c.b16 %v402_v31, %v402_v31  ;;  %v1231_v45 = vld [vmem:[%s1650_s1 + $0x170] sm:$0xff] }
  0x1f   : > { %790 = vmatpush.bf16.msra.mxu3 %v1214_v11  ;;  %v1210_v29 = vld [vmem:[%s1650_s1 + $0xc8] sm:$0xff]  ;;  %v403_v34 = vunpack.c.l.b16 %v286_v28  ;;  %v404_v41 = vunpack.c.h.b16 %v286_v28  ;;  %v1209_v43 = vld [vmem:[%s1650_s1 + $0xc0] sm:$0xff]  ;;  %v1236_v50 = vld [vmem:[%s1650_s1 + $0x198] sm:$0xff] }
  0x20   : > { %752 = vmatpush.bf16.msra.mxu0 %v1189_v12  ;;  %v1238_v38 = vld [vmem:[%s1650_s1 + $0x1a8] sm:$0xff]  ;;  %v1237_v46 = vld [vmem:[%s1650_s1 + $0x1a0] sm:$0xff]  ;;  %v1235_v53 = vld [vmem:[%s1650_s1 + $0x190] sm:$0xff] }
  0x21   : > { %765 = vmatpush.bf16.msra.mxu1 %v1197_v13  ;;  %v410_v42 = vpack.c.b16 %v403_v34, %v403_v34  ;;  %v411_v47 = vpack.c.b16 %v404_v41, %v404_v41  ;;  %v1222_v48 = vld [vmem:[%s1650_s1 + $0x128] sm:$0xff]  ;;  %v1221_v51 = vld [vmem:[%s1650_s1 + $0x120] sm:$0xff]  ;;  %v1220_v54 = vld [vmem:[%s1650_s1 + $0x118] sm:$0xff] }
  0x22   : > { %778 = vmatpush.bf16.msra.mxu2 %v1205_v14  ;;  %v1230_v49 = vld [vmem:[%s1650_s1 + $0x168] sm:$0xff]  ;;  %v1229_v52 = vld [vmem:[%s1650_s1 + $0x160] sm:$0xff]  ;;  %v1228_v55 = vld [vmem:[%s1650_s1 + $0x158] sm:$0xff] }
  0x23   : > { %791 = vmatpush.bf16.msra.mxu3 %v1213_v15  ;;  %v1234_v56 = vld [vmem:[%s1650_s1 + $0x188] sm:$0xff]  ;;  %v288_v57 = vld [vmem:[%s1505_s15 + $0x18] sm:$0xf]  ;;  %v1219_v58 = vld [vmem:[%s1650_s1 + $0x110] sm:$0xff] }
  0x24   : > { %753 = vmatpush.bf16.msra.mxu0 %v1188_v16  ;;  %v407_v59 = vunpack.c.l.b16 %v288_v57  ;;  %v1227_v60 = vld [vmem:[%s1650_s1 + $0x150] sm:$0xff]  ;;  %v1233_v61 = vld [vmem:[%s1650_s1 + $0x180] sm:$0xff]  ;;  %v1218_v63 = vld [vmem:[%s1650_s1 + $0x108] sm:$0xff] }
  0x25   : > { %766 = vmatpush.bf16.msra.mxu1 %v1196_v17  ;;  %v287_v0 = vld [vmem:[%s1505_s15 + $0x10] sm:$0xff]  ;;  %v1226_v1 = vld [vmem:[%s1650_s1 + $0x148] sm:$0xff]  ;;  %v1217_v3 = vld [vmem:[%s1650_s1 + $0x100] sm:$0xff]  ;;  %s962_s15 = sshll.u32 %s1475_s9, 3 }
  0x26   : > { %779 = vmatpush.bf16.msra.mxu2 %v1204_v18  ;;  %v414_v62 = vpack.c.b16 %v407_v59, %v407_v59  ;;  %v405_v2 = vunpack.c.l.b16 %v287_v0  ;;  %v406_v4 = vunpack.c.h.b16 %v287_v0  ;;  %v1225_v5 = vld [vmem:[%s1650_s1 + $0x140] sm:$0xff]  ;;  %s279_s19 = scalar_lea.vmem %s1653_s4, %s962_s15  ;;  %s283_s10 = scalar_lea.vmem %s1654_s5, %s962_s15 }
  0x27   : > { %792 = vmatpush.bf16.msra.mxu3 %v1212_v19  ;;  %v1280_v26 = vld [vmem:[%s1652_s3] ss:$0 sm:$0xff]  ;;  %s858_s15 = scalar_lea.sflag [#allocation3], %s268_s14 }
  0x28   : > { %754 = vmatpush.bf16.msra.mxu0 %v1187_v20  ;;  %v412_v6 = vpack.c.b16 %v405_v2, %v405_v2  ;;  %v413_v7 = vpack.c.b16 %v406_v4, %v406_v4 }
  0x29   : > { %767 = vmatpush.bf16.msra.mxu1 %v1195_v21 }
  0x2a   : > { %780 = vmatpush.bf16.msra.mxu2 %v1203_v22 }
  0x2b   : > { %793 = vmatpush.bf16.msra.mxu3 %v1211_v23 }
  0x2c   : > { %755 = vmatpush.bf16.msra.mxu0 %v1186_v24  ;;  %v1279_v24 = vld [vmem:[%s1651_s2] ss:$0 sm:$0xff] }
  0x2d   : > { %768 = vmatpush.bf16.msra.mxu1 %v1194_v25 }
  0x2e   : > { %781 = vmatpush.bf16.msra.mxu2 %v1202_v27 }
  0x2f   : > { %794 = vmatpush.bf16.msra.mxu3 %v1210_v29  ;;  %v850_v29 = vld [vmem:[%s279_s19] sm:$0xff]  ;;  %s1295_s19 = sshra.s32 %s873_s25, 4  ;;  %s1296_s19 = int_to_ptr.hbm [resolvable:$true] %s1295_s19 }
  0x30   : > { %756 = vmatpush.bf16.msra.mxu0 %v1185_v32  ;;  %s1297_s20 = scalar_lea.hbm %s1296_s19, 8  ;;  %p1302_p0 = scmp.lt.s32.totalorder %s1296_s19, %s1655_s6 }
  0x31   : > { %769 = vmatpush.bf16.msra.mxu1 %v1193_v33  ;;  %v852_v33 = vld [vmem:[%s283_s10] sm:$0xff]  ;;  %p1298_p11 = scmp.ne.s32.totalorder %s1296_s19, %s1297_s20  ;;  %p1303_p1 = scmp.lt.s32.totalorder %s1301_s28, %s1297_s20 }
  0x32   : > { %782 = vmatpush.bf16.msra.mxu2 %v1201_v35 }
  0x33   : > { %757 = vmatmul.bf16.vlgmr.msra.gmra.mxu0 %v408_v39  ;;  %795 = vmatpush.bf16.msra.mxu3 %v1209_v43  ;;  %p1299_p12 = pnand %p1298_p11, %p1418_p5  ;;  %p1304_p2 = por %p1303_p1, %p1302_p0 }
  0x34   : > { %801 = vmatpush.bf16.msrb.mxu0 %v1224_v36  ;;  %770 = vmatmul.bf16.vlgmr.msra.gmra.mxu1 %v409_v40 }
  0x35   : > { %814 = vmatpush.bf16.msrb.mxu1 %v1232_v37  ;;  %783 = vmatmul.bf16.vlgmr.msra.gmra.mxu2 %v410_v42  ;;  %p1300_p13 = pneg %p1299_p12 }
  0x36   : > { %829 = vmatpush.bf16.msrb.mxu2 %v1238_v38  ;;  %796 = vmatmul.bf16.vlgmr.msra.gmra.mxu3 %v411_v47 }
  0x37   : > { %p1305_p3 = pnand %p1304_p2, %p1300_p13 }
  0x38   : > { %802 = vmatpush.bf16.msrb.mxu0 %v1223_v44 }
  0x39   : > { %815 = vmatpush.bf16.msrb.mxu1 %v1231_v45 }
  0x3a   : > { %830 = vmatpush.bf16.msrb.mxu2 %v1237_v46 }
  0x3c   : > { %803 = vmatpush.bf16.msrb.mxu0 %v1222_v48 }
  0x3d   : > { %816 = vmatpush.bf16.msrb.mxu1 %v1230_v49 }
  0x3e   : > { %831 = vmatpush.bf16.msrb.mxu2 %v1236_v50 }
  0x40   : > { %804 = vmatpush.bf16.msrb.mxu0 %v1221_v51 }
  0x41   : > { %817 = vmatpush.bf16.msrb.mxu1 %v1229_v52 }
  0x42   : > { %832 = vmatpush.bf16.msrb.mxu2 %v1235_v53 }
  0x44   : > { %805 = vmatpush.bf16.msrb.mxu0 %v1220_v54 }
  0x45   : > { %818 = vmatpush.bf16.msrb.mxu1 %v1228_v55 }
  0x46   : > { %833 = vmatpush.bf16.msrb.mxu2 %v1234_v56 }
  0x48   : > { %806 = vmatpush.bf16.msrb.mxu0 %v1219_v58 }
  0x49   : > { %819 = vmatpush.bf16.msrb.mxu1 %v1227_v60 }
  0x4a   : > { %834 = vmatpush.bf16.msrb.mxu2 %v1233_v61 }
  0x4c   : > { %807 = vmatpush.bf16.msrb.mxu0 %v1218_v63 }
  0x4d   : > { %1180 = vmatmul.msk.bf16.vlgmr.msrb.gmra.mxu2 %vm745_vm0, %v414_v62  ;;  %820 = vmatpush.bf16.msrb.mxu1 %v1226_v1 }
  0x50   : > { %808 = vmatpush.bf16.msrb.mxu0 %v1217_v3 }
  0x51   : > { %821 = vmatpush.bf16.msrb.mxu1 %v1225_v5 }
  0x53   : > { %809 = vmatmul.bf16.vlgmr.msrb.gmra.mxu0 %v412_v6 }
  0x54   : > { %822 = vmatmul.bf16.vlgmr.msrb.gmra.mxu1 %v413_v7 }
  0xb0   : > { %v758_v8 = vpop.f32.mrf.mxu0 }
  0xb1   : > { %v771_v9 = vpop.f32.mrf.mxu1 }
  0xb2   : > { %v772_v16 = vadd.f32 %v771_v9, %v758_v8 }
  0xb8   : > { %v784_v10 = vpop.f32.mrf.mxu2  ;;  %v760_v11 = vpop.f32.mrf.mxu0 }
  0xb9   : > { %v773_v12 = vpop.f32.mrf.mxu1  ;;  %v797_v13 = vpop.f32.mrf.mxu3  ;;  %v785_v17 = vadd.f32 %v784_v10, %v772_v16 }
  0xbb   : > { %v798_v18 = vadd.f32 %v797_v13, %v785_v17 }
  0xc0   : > { %v786_v14 = vpop.f32.mrf.mxu2 }
  0xc1   : > { %v799_v15 = vpop.f32.mrf.mxu3 }
  0xd0   : > { %v836_v19 = vpop.f32.mrf.mxu2  ;;  %v810_v20 = vpop.f32.mrf.mxu0 }
  0xd1   : > { %v811_v21 = vadd.f32 %v810_v20, %v798_v18  ;;  %v823_v22 = vpop.f32.mrf.mxu1 }
  0xd3   : > { %v824_v23 = vadd.f32 %v823_v22, %v811_v21 }
  0xd5   : > { %v837_v25 = vadd.f32 %v836_v19, %v824_v23 }
  0xd7   : > { %v844_v27 = vmul.f32 %v1279_v24, %v837_v25 }
  0xd8   : > { %v838_v28 = vpop.f32.mrf.mxu2  ;;  %v812_v30 = vpop.f32.mrf.mxu0 }
  0xd9   : > { %v849_v31 = vadd.f32 %v1280_v26, %v844_v27  ;;  %v825_v32 = vpop.f32.mrf.mxu1 }
  0xdb   : > { %v851_v34 = vadd.f32 %v850_v29, %v849_v31 }
  0xdd   : > { %v853_v35 = vadd.f32 %v852_v33, %v851_v34 }
  0xdf   : > { %v854_v36 = vmax.f32 %v853_v35, 0.0 }
  0xe1   : > { %856 = vst.msk [vmem:[%s270_s16] sm:$0xff] %vm855_vm1, %v854_v36 }
  0xe2   : > { %1308 = shalt.err (!%p1305_p3)
}
  0xe3   : > { %1240 = dma.vmem_to_hbm [thread:$0]  (%p1418_p5), %s871_s17, 128, %s873_s25, %s858_s15  }
  0xe4 PF: > { %p1246_p4 = scmp.ge.s32.totalorder %s1343_s24, 2  ;;  %s884_s14 = sand.u32 1, %s1331_s21  }
  0xe5   : > { %s885_s10 = scalar_lea.sflag [#allocation3], %s884_s14 }
  0xe6   : > { %p1243_p7 = pnand %p1246_p4, %p1422_p6 }
  0xe8   : > { %p1244_p8 = pneg %p1243_p7 }
  0xea   : > { %1326 = dma.done.wait (%p1244_p8), %s885_s10, 128  }
  0xeb   : > { %1328 = vsyncadd (%p1244_p8), %s885_s10, 4294967168  ;;  %p16_p9 = scmp.ge.s32.totalorder %s1405_s27, 4   ;;  %s1658_s21 = smov %s1335_s22 }
  0xec   : > { %s1659_s22 = smov %s1339_s23  ;;  %s1660_s23 = smov %s1416_s30 }
  0xed   : > { %s1661_s24 = smov %s1405_s27  ;;  %18 = sbr.rel (!%p16_p9) target bundleno = 3 (0x3), region = 85 }
  0xf2   :  { %891 = vsyncpa [#allocation3], 1 }
  0xf3   :  { %893 = vsyncpa [#allocation3 + $0x1], 1 }

</bundles_post_ra>
